<compile_context>
chip_gen: v5e
topology: v5e:2x2
jax: 0.10.0
libtpu: 0.0.40
codegen_flags: <defaults>
</compile_context>

<pallas_src>
from functools import partial

import jax
import jax.numpy as jnp
from jax.experimental import pallas as pl
from jax.experimental.pallas import tpu as pltpu


_VMEM_LIMIT = 32 * 1024 * 1024   # safe scoped-VMEM cap on v5e/v6e/v7x
_EW_BUDGET = 8 * 1024 * 1024     # target working set for elementwise tiles


def _round_up(x, m):
    return ((x + m - 1) // m) * m


def _row_tile(rows, cols, n_bufs):
    """Pick a row-tile for (rows, cols) 2D kernels that fits the VMEM budget."""
    per_buf = _EW_BUDGET // max(1, n_bufs)
    tr = per_buf // max(1, cols * 4)
    tr = max(8, min(1024, (tr // 8) * 8))
    return rows if rows <= tr else tr


def _lane_tile(L, C, n_bufs):
    """Pick a lane-tile for (1, C, L) blocks that fits the VMEM budget."""
    per_buf = _EW_BUDGET // max(1, n_bufs)
    tl = per_buf // max(1, C * 4)
    if L <= tl:
        return L
    return max(128, (tl // 128) * 128)


# ----------------------------------------------------------------------------
# Pallas matmul: bf16 MXU, f32 accumulator, fused bias (+ optional tanh)
# ----------------------------------------------------------------------------
def _matmul_kernel(a_ref, b_ref, bias_ref, o_ref, acc_ref, *, activation):
    k = pl.program_id(2)

    @pl.when(k == 0)
    def _():
        acc_ref[...] = jnp.zeros_like(acc_ref)

    acc_ref[...] += jnp.dot(a_ref[...], b_ref[...],
                            preferred_element_type=jnp.float32)

    @pl.when(k == pl.num_programs(2) - 1)
    def _():
        y = acc_ref[...] + bias_ref[...]
        if activation == "tanh":
            y = jnp.tanh(y)
        o_ref[...] = y


def pallas_matmul(a, b, bias=None, activation="none"):
    """(M,K) @ (K,N) -> (M,N) f32, bf16 MXU inputs, fused bias / tanh."""
    M, K = a.shape
    _, Ncols = b.shape
    a = a.astype(jnp.bfloat16)
    b = b.astype(jnp.bfloat16)
    if bias is None:
        bias2 = jnp.zeros((1, Ncols), jnp.float32)
    else:
        bias2 = bias.astype(jnp.float32).reshape(1, Ncols)

    TM = min(256, _round_up(M, 8))
    TN = 256 if (Ncols >= 256 and Ncols % 256 == 0) else 128
    # Full-K blocks (no K padding, no second HBM copy of the im2col A) unless
    # K is very large, in which case split K with zero padding + accumulator.
    if K <= 4096:
        TK, Kp = K, K
    else:
        TK = 2048
        Kp = _round_up(K, TK)
        a = jnp.pad(a, ((0, 0), (0, Kp - K)))
        b = jnp.pad(b, ((0, Kp - K), (0, 0)))

    grid = (pl.cdiv(M, TM), pl.cdiv(Ncols, TN), Kp // TK)
    return pl.pallas_call(
        partial(_matmul_kernel, activation=activation),
        out_shape=jax.ShapeDtypeStruct((M, Ncols), jnp.float32),
        grid=grid,
        in_specs=[pl.BlockSpec((TM, TK), lambda i, j, k: (i, k)),
                  pl.BlockSpec((TK, TN), lambda i, j, k: (k, j)),
                  pl.BlockSpec((1, TN), lambda i, j, k: (0, j))],
        out_specs=pl.BlockSpec((TM, TN), lambda i, j, k: (i, j)),
        scratch_shapes=[pltpu.VMEM((TM, TN), jnp.float32)],
        compiler_params=pltpu.CompilerParams(
            dimension_semantics=("parallel", "parallel", "arbitrary"),
            vmem_limit_bytes=_VMEM_LIMIT),
        cost_estimate=pl.CostEstimate(
            flops=2 * M * Ncols * Kp,
            transcendentals=(M * Ncols) if activation == "tanh" else 0,
            bytes_accessed=a.size * 2 + b.size * 2 + M * Ncols * 4),
    )(a, b, bias2)


# ----------------------------------------------------------------------------
# Elementwise / normalization / pooling kernels (gridded, lane-dense)
# ----------------------------------------------------------------------------
def _inorm_kernel(*refs, act, slope, eps, has_residual):
    if has_residual:
        x_ref, r_ref, o_ref = refs
    else:
        x_ref, o_ref = refs
    x = x_ref[...]
    mean = jnp.mean(x, axis=1, keepdims=True)
    var = jnp.mean(jnp.square(x - mean), axis=1, keepdims=True)
    y = (x - mean) * jax.lax.rsqrt(var + eps)
    if act == "relu":
        y = jnp.maximum(y, 0.0)
    elif act == "leaky":
        y = jnp.where(y >= 0, y, y * slope)
    if has_residual:
        y = y + r_ref[...]
    o_ref[...] = y


def instance_norm_act(x, act="none", slope=0.2, residual=None):
    """InstanceNorm2d (affine=False, eps=1e-5) + activation (+residual), NCHW."""
    N, C, H, W = x.shape
    rows, L = N * C, H * W
    operands = [x.reshape(rows, L)]
    n_bufs = 4
    if residual is not None:
        operands.append(residual.reshape(rows, L))
        n_bufs = 6
    TR = _row_tile(rows, L, n_bufs)
    in_specs = [pl.BlockSpec((TR, L), lambda i: (i, 0)) for _ in operands]
    y = pl.pallas_call(
        partial(_inorm_kernel, act=act, slope=slope, eps=1e-5,
                has_residual=residual is not None),
        out_shape=jax.ShapeDtypeStruct((rows, L), jnp.float32),
        grid=(pl.cdiv(rows, TR),),
        in_specs=in_specs,
        out_specs=pl.BlockSpec((TR, L), lambda i: (i, 0)),
        compiler_params=pltpu.CompilerParams(
            dimension_semantics=("parallel",), vmem_limit_bytes=_VMEM_LIMIT),
    )(*operands)
    return y.reshape(N, C, H, W)


def _row_pool_kernel(x_ref, avg_ref, max_ref):
    x = x_ref[...]
    avg_ref[...] = jnp.mean(x, axis=1, keepdims=True)
    max_ref[...] = jnp.max(x, axis=1, keepdims=True)


def row_avg_max(x2):
    """Row-wise mean and max over the last dim: (R, L) -> ((R,1), (R,1))."""
    rows, L = x2.shape
    TR = _row_tile(rows, L, n_bufs=2)
    return pl.pallas_call(
        _row_pool_kernel,
        out_shape=(jax.ShapeDtypeStruct((rows, 1), jnp.float32),
                   jax.ShapeDtypeStruct((rows, 1), jnp.float32)),
        grid=(pl.cdiv(rows, TR),),
        in_specs=[pl.BlockSpec((TR, L), lambda i: (i, 0))],
        out_specs=(pl.BlockSpec((TR, 1), lambda i: (i, 0)),
                   pl.BlockSpec((TR, 1), lambda i: (i, 0))),
        compiler_params=pltpu.CompilerParams(
            dimension_semantics=("parallel",), vmem_limit_bytes=_VMEM_LIMIT),
    )(x2)


def _gate_kernel(x_ref, s_ref, o_ref):
    # broadcast of the attention map happens inside the kernel (free on VPU)
    o_ref[...] = x_ref[...] * jax.nn.sigmoid(s_ref[...])


def row_gate(x2, s):
    """x2 (R,L) * sigmoid(s (R,1)) with in-kernel broadcast."""
    rows, L = x2.shape
    TR = _row_tile(rows, L, n_bufs=4)
    return pl.pallas_call(
        _gate_kernel,
        out_shape=jax.ShapeDtypeStruct((rows, L), jnp.float32),
        grid=(pl.cdiv(rows, TR),),
        in_specs=[pl.BlockSpec((TR, L), lambda i: (i, 0)),
                  pl.BlockSpec((TR, 1), lambda i: (i, 0))],
        out_specs=pl.BlockSpec((TR, L), lambda i: (i, 0)),
        compiler_params=pltpu.CompilerParams(
            dimension_semantics=("parallel",), vmem_limit_bytes=_VMEM_LIMIT),
    )(x2, s)


def _spatial_pool_kernel(x_ref, o_ref):
    x = x_ref[...]                                   # (1, C, TL)
    o_ref[:, 0:1, :] = jnp.mean(x, axis=1, keepdims=True)
    o_ref[:, 1:2, :] = jnp.max(x, axis=1, keepdims=True)


def spatial_avg_max(x3):
    """Mean/max over channels, lane-dense: (N, C, L) -> (N, 2, L)."""
    N, C, L = x3.shape
    TL = _lane_tile(L, C, n_bufs=2)
    return pl.pallas_call(
        _spatial_pool_kernel,
        out_shape=jax.ShapeDtypeStruct((N, 2, L), jnp.float32),
        grid=(N, pl.cdiv(L, TL)),
        in_specs=[pl.BlockSpec((1, C, TL), lambda n, t: (n, 0, t))],
        out_specs=pl.BlockSpec((1, 2, TL), lambda n, t: (n, 0, t)),
        compiler_params=pltpu.CompilerParams(
            dimension_semantics=("parallel", "parallel"),
            vmem_limit_bytes=_VMEM_LIMIT),
    )(x3)


def spatial_gate(x3, s):
    """x3 (N,C,L) * sigmoid(s (N,1,L)) with in-kernel broadcast over C."""
    N, C, L = x3.shape
    TL = _lane_tile(L, C, n_bufs=4)
    return pl.pallas_call(
        _gate_kernel,
        out_shape=jax.ShapeDtypeStruct((N, C, L), jnp.float32),
        grid=(N, pl.cdiv(L, TL)),
        in_specs=[pl.BlockSpec((1, C, TL), lambda n, t: (n, 0, t)),
                  pl.BlockSpec((1, 1, TL), lambda n, t: (n, 0, t))],
        out_specs=pl.BlockSpec((1, C, TL), lambda n, t: (n, 0, t)),
        compiler_params=pltpu.CompilerParams(
            dimension_semantics=("parallel", "parallel"),
            vmem_limit_bytes=_VMEM_LIMIT),
    )(x3, s)


# ----------------------------------------------------------------------------
# Conv / conv-transpose via im2col + Pallas GEMM
# ----------------------------------------------------------------------------
def conv2d(x, w, b=None, stride=1, padding=0, pad_mode="zero",
           activation="none"):
    """x: (N,Cin,H,W), w: (Cout,Cin,kh,kw). bias / tanh fused in the GEMM."""
    N, Cin, _, _ = x.shape
    Cout, _, kh, kw = w.shape
    if padding > 0:
        mode = "reflect" if pad_mode == "reflect" else "constant"
        x = jnp.pad(x, ((0, 0), (0, 0), (padding, padding), (padding, padding)),
                    mode=mode)
    Hp, Wp = x.shape[2], x.shape[3]
    Ho = (Hp - kh) // stride + 1
    Wo = (Wp - kw) // stride + 1
    xb = x.astype(jnp.bfloat16)          # store the big im2col matrix as bf16
    cols = []
    for i in range(kh):
        for j in range(kw):
            cols.append(xb[:, :, i:i + stride * Ho:stride,
                           j:j + stride * Wo:stride])
    patches = jnp.stack(cols, axis=2).reshape(N, Cin * kh * kw, Ho, Wo)
    A = patches.transpose(0, 2, 3, 1).reshape(N * Ho * Wo, Cin * kh * kw)
    B = w.reshape(Cout, Cin * kh * kw).T
    out = pallas_matmul(A, B, bias=b, activation=activation)
    return out.reshape(N, Ho, Wo, Cout).transpose(0, 3, 1, 2)


def conv_transpose2d(x, w):
    """PyTorch ConvTranspose2d(k=4, stride=2, padding=1, bias=False).

    Sub-pixel (polyphase) decomposition: one stride-1 3x3 conv on the raw
    input produces all 4 output parities at once -- no zero-inserted input
    (avoids 4x wasted MXU flops and im2col HBM traffic). w: (Cin, Cout, 4, 4).
    """
    Cin, Cout = w.shape[0], w.shape[1]
    wf = jnp.flip(w, axis=(2, 3)).transpose(1, 0, 2, 3)     # (Cout,Cin,4,4)
    W3 = jnp.zeros((2, 2, Cout, Cin, 3, 3), jnp.float32)
    for py in range(2):
        for px in range(2):
            for da in range(2):
                for db in range(2):
                    W3 = W3.at[py, px, :, :, py + da, px + db].set(
                        wf[:, :, 2 * da + py, 2 * db + px])
    W3 = W3.reshape(4 * Cout, Cin, 3, 3)
    y = conv2d(x, W3, None, stride=1, padding=1, pad_mode="zero")
    N, _, H, W = y.shape
    # (N, py, px, Cout, H, W) -> (N, Cout, H, py, W, px) -> (N, Cout, 2H, 2W)
    y = y.reshape(N, 2, 2, Cout, H, W).transpose(0, 3, 4, 1, 5, 2)
    return y.reshape(N, Cout, 2 * H, 2 * W)


# ----------------------------------------------------------------------------
# CBAM block (standard channel + spatial attention)
# ----------------------------------------------------------------------------
def cbam(x, p):
    N, C, H, W = x.shape
    L = H * W
    rows = N * C
    x2 = x.reshape(rows, L)

    # --- channel attention ---
    avg, mx = row_avg_max(x2)                               # (N*C, 1) each
    stacked = jnp.concatenate([avg.reshape(N, C), mx.reshape(N, C)], axis=0)
    hid = jnp.maximum(stacked @ p["ca_w1"], 0.0)            # tiny MLP: plain XLA
    att = hid @ p["ca_w2"]                                  # (2N, C)
    ca = (att[:N] + att[N:]).reshape(rows, 1)
    x2 = row_gate(x2, ca)                                   # x * sigmoid(ca)

    # --- spatial attention (channel reduction kept lane-dense over H*W) ---
    x3 = x2.reshape(N, C, L)
    feat = spatial_avg_max(x3).reshape(N, 2, H, W)
    sa = conv2d(feat, p["sa_w"], None, stride=1, padding=3, pad_mode="zero")
    out = spatial_gate(x3, sa.reshape(N, 1, L))             # x * sigmoid(sa)
    return out.reshape(N, C, H, W)


def resnet_block(x, p):
    h = conv2d(x, p["w1"], None, stride=1, padding=1, pad_mode="reflect")
    h = instance_norm_act(h, "relu")
    h = conv2d(h, p["w2"], None, stride=1, padding=1, pad_mode="reflect")
    # residual add fused into the InstanceNorm epilogue
    return instance_norm_act(h, "none", residual=x)


# ----------------------------------------------------------------------------
# RauneNet forward
# ----------------------------------------------------------------------------
def raune_net_forward(x, p):
    # WRPM: ReflectionPad(3) + Conv7x7 (no bias) + InstanceNorm + ReLU
    h = conv2d(x, p["wrpm_w"], None, stride=1, padding=3, pad_mode="reflect")
    h = instance_norm_act(h, "relu")
    # attention down-sampling blocks
    for dp in p["down"]:
        h = conv2d(h, dp["w"], None, stride=2, padding=1, pad_mode="zero")
        h = instance_norm_act(h, "leaky", 0.2)
        h = cbam(h, dp)
    # residual blocks
    for rp in p["res"]:
        h = resnet_block(h, rp)
    # up-sampling blocks (use_att_up=False)
    for up in p["up"]:
        h = conv_transpose2d(h, up["w"])
        h = instance_norm_act(h, "relu")
    # final: ReflectionPad(3) + Conv7x7 (with bias) + Tanh (tanh fused in GEMM)
    h = conv2d(h, p["final_w"], p["final_b"], stride=1, padding=3,
               pad_mode="reflect", activation="tanh")
    return h


# ----------------------------------------------------------------------------
# Deterministic parameter init (synthetic weights, PyTorch shapes)
# ----------------------------------------------------------------------------
def init_params(key, in_nc, out_nc, ngf, n_down, n_blocks, reduction=16):
    keys = iter(jax.random.split(key, 128))

    def nrm(shape, scale=0.05):
        return scale * jax.random.normal(next(keys), shape, jnp.float32)

    p = {"wrpm_w": nrm((ngf, in_nc, 7, 7)), "down": [], "res": [], "up": []}
    for i in range(n_down):
        cin, cout = ngf * 2 ** i, ngf * 2 ** (i + 1)
        ch = max(1, cout // reduction)
        p["down"].append({
            "w": nrm((cout, cin, 4, 4)),
            "ca_w1": nrm((cout, ch)),
            "ca_w2": nrm((ch, cout)),
            "sa_w": nrm((1, 2, 7, 7)),
        })
    dim = ngf * 2 ** n_down
    for _ in range(n_blocks):
        p["res"].append({"w1": nrm((dim, dim, 3, 3)),
                         "w2": nrm((dim, dim, 3, 3))})
    for i in range(n_down):
        cin = ngf * 2 ** (n_down - i)
        p["up"].append({"w": nrm((cin, cin // 2, 4, 4))})
    p["final_w"] = nrm((out_nc, ngf, 7, 7))
    p["final_b"] = nrm((out_nc,))
    return p


if __name__ == "__main__":
    # Small config: input_nc=3, output_nc=3, n_blocks=2, n_down=2, ngf=8
    N, IN_NC, OUT_NC, NGF = 2, 3, 3, 8
    N_DOWN, N_BLOCKS = 2, 2
    H = W = 16

    key = jax.random.PRNGKey(0)
    k_param, k_x = jax.random.split(key)
    params = init_params(k_param, IN_NC, OUT_NC, NGF, N_DOWN, N_BLOCKS)
    x = jax.random.normal(k_x, (N, IN_NC, H, W), jnp.float32)

    fwd = jax.jit(raune_net_forward)
    y = fwd(x, params)
    jax.block_until_ready(y)
    assert y.shape == (N, OUT_NC, H, W)
    assert bool(jnp.all(jnp.isfinite(y)))
    print("KERNEL_OK")
</pallas_src>

<mosaic_0001>
module attributes {stable_mosaic.version = 11 : i64} {
  func.func @_matmul_kernel(%arg0: i32, %arg1: i32, %arg2: i32, %arg3: memref<256x147xbf16, #tpu.memory_space<vmem>>, %arg4: memref<147x128xbf16, #tpu.memory_space<vmem>>, %arg5: memref<1x128xf32, #tpu.memory_space<vmem>>, %arg6: memref<256x128xf32, #tpu.memory_space<vmem>>, %arg7: memref<256x128xf32, #tpu.memory_space<vmem>>) attributes {dimension_semantics = [#tpu.dimension_semantics<parallel>, #tpu.dimension_semantics<parallel>, #tpu.dimension_semantics<arbitrary>], iteration_bounds = array<i64: 2, 1, 1>, scalar_prefetch = 0 : i64, scratch_operands = 1 : i64, tpu.core_type = #tpu.core_type<tc>, window_params = [{transform_indices = @transform_0, window_bounds = array<i64: 256, 147>}, {transform_indices = @transform_1, window_bounds = array<i64: 147, 128>}, {transform_indices = @transform_2, window_bounds = array<i64: 1, 128>}, {transform_indices = @transform_3, window_bounds = array<i64: 256, 128>}]} {
    %c0_i32 = arith.constant 0 : i32
    %0 = arith.cmpi eq, %arg2, %c0_i32 : i32
    %1 = arith.extui %0 : i1 to i32
    %c0_i32_0 = arith.constant 0 : i32
    %2 = arith.cmpi ne, %1, %c0_i32_0 : i32
    scf.if %2 {
      %cst_10 = arith.constant 0.000000e+00 : f32
      %12 = vector.broadcast %cst_10 : f32 to vector<256x128xf32>
      %c0_11 = arith.constant 0 : index
      %c0_12 = arith.constant 0 : index
      %13 = vector.load %arg7[%c0_11, %c0_12] : memref<256x128xf32, #tpu.memory_space<vmem>>, vector<256x128xf32>
      tpu.vector_store %arg7[%c0_11, %c0_12], %12 {strides = array<i32>} : memref<256x128xf32, #tpu.memory_space<vmem>>, vector<256x128xf32>,
    } else {
    }
    %c0 = arith.constant 0 : index
    %c0_1 = arith.constant 0 : index
    %3 = vector.load %arg7[%c0, %c0_1] : memref<256x128xf32, #tpu.memory_space<vmem>>, vector<256x128xf32>
    %c0_2 = arith.constant 0 : index
    %c0_3 = arith.constant 0 : index
    %4 = vector.load %arg3[%c0_2, %c0_3] : memref<256x147xbf16, #tpu.memory_space<vmem>>, vector<256x147xbf16>
    %c0_4 = arith.constant 0 : index
    %c0_5 = arith.constant 0 : index
    %5 = vector.load %arg4[%c0_4, %c0_5] : memref<147x128xbf16, #tpu.memory_space<vmem>>, vector<147x128xbf16>
    %cst = arith.constant dense<0.000000e+00> : vector<256x128xf32>
    %6 = tpu.matmul %4, %5, %cst {dimension_numbers = #tpu.dot_dimension_numbers<[1], [0], [0], [1], [0, 0, 1, 1], [], []>} : vector<256x147xbf16>, vector<147x128xbf16>, vector<256x128xf32> -> vector<256x128xf32>
    %7 = arith.addf %3, %6 : vector<256x128xf32>
    %c0_6 = arith.constant 0 : index
    %c0_7 = arith.constant 0 : index
    %8 = vector.load %arg7[%c0_6, %c0_7] : memref<256x128xf32, #tpu.memory_space<vmem>>, vector<256x128xf32>
    tpu.vector_store %arg7[%c0_6, %c0_7], %7 {strides = array<i32>} : memref<256x128xf32, #tpu.memory_space<vmem>>, vector<256x128xf32>,
    %c0_i32_8 = arith.constant 0 : i32
    %9 = arith.cmpi eq, %arg2, %c0_i32_8 : i32
    %10 = arith.extui %9 : i1 to i32
    %c0_i32_9 = arith.constant 0 : i32
    %11 = arith.cmpi ne, %10, %c0_i32_9 : i32
    scf.if %11 {
      %c0_10 = arith.constant 0 : index
      %c0_11 = arith.constant 0 : index
      %12 = vector.load %arg7[%c0_10, %c0_11] : memref<256x128xf32, #tpu.memory_space<vmem>>, vector<256x128xf32>
      %c0_12 = arith.constant 0 : index
      %c0_13 = arith.constant 0 : index
      %13 = vector.load %arg5[%c0_12, %c0_13] : memref<1x128xf32, #tpu.memory_space<vmem>>, vector<1x128xf32>
      %14 = vector.broadcast %13 : vector<1x128xf32> to vector<256x128xf32>
      %15 = arith.addf %12, %14 : vector<256x128xf32>
      %c0_14 = arith.constant 0 : index
      %c0_15 = arith.constant 0 : index
      %16 = vector.load %arg6[%c0_14, %c0_15] : memref<256x128xf32, #tpu.memory_space<vmem>>, vector<256x128xf32>
      tpu.vector_store %arg6[%c0_14, %c0_15], %15 {strides = array<i32>} : memref<256x128xf32, #tpu.memory_space<vmem>>, vector<256x128xf32>,
    } else {
    }
    return
  }
  func.func @transform_0(%arg0: i32, %arg1: i32, %arg2: i32) -> (i32, i32) {
    %c0_i32 = arith.constant 0 : i32
    return %arg0, %arg2 : i32, i32
  }
  func.func @transform_1(%arg0: i32, %arg1: i32, %arg2: i32) -> (i32, i32) {
    %c0_i32 = arith.constant 0 : i32
    return %arg2, %arg1 : i32, i32
  }
  func.func @transform_2(%arg0: i32, %arg1: i32, %arg2: i32) -> (i32, i32) {
    %c0_i32 = arith.constant 0 : i32
    %c0_i32_0 = arith.constant 0 : i32
    return %c0_i32, %arg1 : i32, i32
  }
  func.func @transform_3(%arg0: i32, %arg1: i32, %arg2: i32) -> (i32, i32) {
    %c0_i32 = arith.constant 0 : i32
    return %arg0, %arg1 : i32, i32
  }
}

module attributes {stable_mosaic.version = 11 : i64} {
  func.func @_inorm_kernel(%arg0: i32, %arg1: memref<16x256xf32, #tpu.memory_space<vmem>>, %arg2: memref<16x256xf32, #tpu.memory_space<vmem>>) attributes {dimension_semantics = [#tpu.dimension_semantics<parallel>], iteration_bounds = array<i64: 1>, scalar_prefetch = 0 : i64, scratch_operands = 0 : i64, tpu.core_type = #tpu.core_type<tc>, window_params = [{transform_indices = @transform_0, window_bounds = array<i64: 16, 256>}, {transform_indices = @transform_1, window_bounds = array<i64: 16, 256>}]} {
    %c0 = arith.constant 0 : index
    %c0_0 = arith.constant 0 : index
    %0 = vector.load %arg1[%c0, %c0_0] : memref<16x256xf32, #tpu.memory_space<vmem>>, vector<16x256xf32>
    %cst = arith.constant dense<0.000000e+00> : vector<16xf32>
    %1 = vector.multi_reduction <add>, %0, %cst [1] : vector<16x256xf32> to vector<16xf32>
    %2 = vector.shape_cast %1 : vector<16xf32> to vector<16x1xf32>
    %cst_1 = arith.constant 2.560000e+02 : f32
    %3 = vector.broadcast %cst_1 : f32 to vector<16x1xf32>
    %4 = arith.divf %2, %3 : vector<16x1xf32>
    %5 = vector.broadcast %4 : vector<16x1xf32> to vector<16x256xf32>
    %6 = arith.subf %0, %5 : vector<16x256xf32>
    %7 = arith.mulf %6, %6 : vector<16x256xf32>
    %cst_2 = arith.constant dense<0.000000e+00> : vector<16xf32>
    %8 = vector.multi_reduction <add>, %7, %cst_2 [1] : vector<16x256xf32> to vector<16xf32>
    %9 = vector.shape_cast %8 : vector<16xf32> to vector<16x1xf32>
    %cst_3 = arith.constant 2.560000e+02 : f32
    %10 = vector.broadcast %cst_3 : f32 to vector<16x1xf32>
    %11 = arith.divf %9, %10 : vector<16x1xf32>
    %12 = vector.broadcast %4 : vector<16x1xf32> to vector<16x256xf32>
    %13 = arith.subf %0, %12 : vector<16x256xf32>
    %cst_4 = arith.constant 9.99999974E-6 : f32
    %14 = vector.broadcast %cst_4 : f32 to vector<16x1xf32>
    %15 = arith.addf %11, %14 : vector<16x1xf32>
    %16 = math.rsqrt %15 : vector<16x1xf32>
    %17 = vector.broadcast %16 : vector<16x1xf32> to vector<16x256xf32>
    %18 = arith.mulf %13, %17 : vector<16x256xf32>
    %cst_5 = arith.constant 0.000000e+00 : f32
    %19 = vector.broadcast %cst_5 : f32 to vector<16x256xf32>
    %20 = arith.maximumf %18, %19 : vector<16x256xf32>
    %c0_6 = arith.constant 0 : index
    %c0_7 = arith.constant 0 : index
    %21 = vector.load %arg2[%c0_6, %c0_7] : memref<16x256xf32, #tpu.memory_space<vmem>>, vector<16x256xf32>
    tpu.vector_store %arg2[%c0_6, %c0_7], %20 {strides = array<i32>} : memref<16x256xf32, #tpu.memory_space<vmem>>, vector<16x256xf32>,
    return
  }
  func.func @transform_0(%arg0: i32) -> (i32, i32) {
    %c0_i32 = arith.constant 0 : i32
    %c0_i32_0 = arith.constant 0 : i32
    return %arg0, %c0_i32 : i32, i32
  }
  func.func @transform_1(%arg0: i32) -> (i32, i32) {
    %c0_i32 = arith.constant 0 : i32
    %c0_i32_0 = arith.constant 0 : i32
    return %arg0, %c0_i32 : i32, i32
  }
}

module attributes {stable_mosaic.version = 11 : i64} {
  func.func @_matmul_kernel(%arg0: i32, %arg1: i32, %arg2: i32, %arg3: memref<128x128xbf16, #tpu.memory_space<vmem>>, %arg4: memref<128x128xbf16, #tpu.memory_space<vmem>>, %arg5: memref<1x128xf32, #tpu.memory_space<vmem>>, %arg6: memref<128x128xf32, #tpu.memory_space<vmem>>, %arg7: memref<128x128xf32, #tpu.memory_space<vmem>>) attributes {dimension_semantics = [#tpu.dimension_semantics<parallel>, #tpu.dimension_semantics<parallel>, #tpu.dimension_semantics<arbitrary>], iteration_bounds = array<i64: 1, 1, 1>, scalar_prefetch = 0 : i64, scratch_operands = 1 : i64, tpu.core_type = #tpu.core_type<tc>, window_params = [{transform_indices = @transform_0, window_bounds = array<i64: 128, 128>}, {transform_indices = @transform_1, window_bounds = array<i64: 128, 128>}, {transform_indices = @transform_2, window_bounds = array<i64: 1, 128>}, {transform_indices = @transform_3, window_bounds = array<i64: 128, 128>}]} {
    %c0_i32 = arith.constant 0 : i32
    %0 = arith.cmpi eq, %arg2, %c0_i32 : i32
    %1 = arith.extui %0 : i1 to i32
    %c0_i32_0 = arith.constant 0 : i32
    %2 = arith.cmpi ne, %1, %c0_i32_0 : i32
    scf.if %2 {
      %cst_10 = arith.constant 0.000000e+00 : f32
      %12 = vector.broadcast %cst_10 : f32 to vector<128x128xf32>
      %c0_11 = arith.constant 0 : index
      %c0_12 = arith.constant 0 : index
      %13 = vector.load %arg7[%c0_11, %c0_12] : memref<128x128xf32, #tpu.memory_space<vmem>>, vector<128x128xf32>
      tpu.vector_store %arg7[%c0_11, %c0_12], %12 {strides = array<i32>} : memref<128x128xf32, #tpu.memory_space<vmem>>, vector<128x128xf32>,
    } else {
    }
    %c0 = arith.constant 0 : index
    %c0_1 = arith.constant 0 : index
    %3 = vector.load %arg7[%c0, %c0_1] : memref<128x128xf32, #tpu.memory_space<vmem>>, vector<128x128xf32>
    %c0_2 = arith.constant 0 : index
    %c0_3 = arith.constant 0 : index
    %4 = vector.load %arg3[%c0_2, %c0_3] : memref<128x128xbf16, #tpu.memory_space<vmem>>, vector<128x128xbf16>
    %c0_4 = arith.constant 0 : index
    %c0_5 = arith.constant 0 : index
    %5 = vector.load %arg4[%c0_4, %c0_5] : memref<128x128xbf16, #tpu.memory_space<vmem>>, vector<128x128xbf16>
    %cst = arith.constant dense<0.000000e+00> : vector<128x128xf32>
    %6 = tpu.matmul %4, %5, %cst {dimension_numbers = #tpu.dot_dimension_numbers<[1], [0], [0], [1], [0, 0, 1, 1], [], []>} : vector<128x128xbf16>, vector<128x128xbf16>, vector<128x128xf32> -> vector<128x128xf32>
    %7 = arith.addf %3, %6 : vector<128x128xf32>
    %c0_6 = arith.constant 0 : index
    %c0_7 = arith.constant 0 : index
    %8 = vector.load %arg7[%c0_6, %c0_7] : memref<128x128xf32, #tpu.memory_space<vmem>>, vector<128x128xf32>
    tpu.vector_store %arg7[%c0_6, %c0_7], %7 {strides = array<i32>} : memref<128x128xf32, #tpu.memory_space<vmem>>, vector<128x128xf32>,
    %c0_i32_8 = arith.constant 0 : i32
    %9 = arith.cmpi eq, %arg2, %c0_i32_8 : i32
    %10 = arith.extui %9 : i1 to i32
    %c0_i32_9 = arith.constant 0 : i32
    %11 = arith.cmpi ne, %10, %c0_i32_9 : i32
    scf.if %11 {
      %c0_10 = arith.constant 0 : index
      %c0_11 = arith.constant 0 : index
      %12 = vector.load %arg7[%c0_10, %c0_11] : memref<128x128xf32, #tpu.memory_space<vmem>>, vector<128x128xf32>
      %c0_12 = arith.constant 0 : index
      %c0_13 = arith.constant 0 : index
      %13 = vector.load %arg5[%c0_12, %c0_13] : memref<1x128xf32, #tpu.memory_space<vmem>>, vector<1x128xf32>
      %14 = vector.broadcast %13 : vector<1x128xf32> to vector<128x128xf32>
      %15 = arith.addf %12, %14 : vector<128x128xf32>
      %c0_14 = arith.constant 0 : index
      %c0_15 = arith.constant 0 : index
      %16 = vector.load %arg6[%c0_14, %c0_15] : memref<128x128xf32, #tpu.memory_space<vmem>>, vector<128x128xf32>
      tpu.vector_store %arg6[%c0_14, %c0_15], %15 {strides = array<i32>} : memref<128x128xf32, #tpu.memory_space<vmem>>, vector<128x128xf32>,
    } else {
    }
    return
  }
  func.func @transform_0(%arg0: i32, %arg1: i32, %arg2: i32) -> (i32, i32) {
    %c0_i32 = arith.constant 0 : i32
    return %arg0, %arg2 : i32, i32
  }
  func.func @transform_1(%arg0: i32, %arg1: i32, %arg2: i32) -> (i32, i32) {
    %c0_i32 = arith.constant 0 : i32
    return %arg2, %arg1 : i32, i32
  }
  func.func @transform_2(%arg0: i32, %arg1: i32, %arg2: i32) -> (i32, i32) {
    %c0_i32 = arith.constant 0 : i32
    %c0_i32_0 = arith.constant 0 : i32
    return %c0_i32, %arg1 : i32, i32
  }
  func.func @transform_3(%arg0: i32, %arg1: i32, %arg2: i32) -> (i32, i32) {
    %c0_i32 = arith.constant 0 : i32
    return %arg0, %arg1 : i32, i32
  }
}

module attributes {stable_mosaic.version = 11 : i64} {
  func.func @_row_pool_kernel(%arg0: i32, %arg1: memref<32x64xf32, #tpu.memory_space<vmem>>, %arg2: memref<32x1xf32, #tpu.memory_space<vmem>>, %arg3: memref<32x1xf32, #tpu.memory_space<vmem>>) attributes {dimension_semantics = [#tpu.dimension_semantics<parallel>], iteration_bounds = array<i64: 1>, scalar_prefetch = 0 : i64, scratch_operands = 0 : i64, tpu.core_type = #tpu.core_type<tc>, window_params = [{transform_indices = @transform_0, window_bounds = array<i64: 32, 64>}, {transform_indices = @transform_1, window_bounds = array<i64: 32, 1>}, {transform_indices = @transform_2, window_bounds = array<i64: 32, 1>}]} {
    %c0 = arith.constant 0 : index
    %c0_0 = arith.constant 0 : index
    %0 = vector.load %arg1[%c0, %c0_0] : memref<32x64xf32, #tpu.memory_space<vmem>>, vector<32x64xf32>
    %cst = arith.constant dense<0.000000e+00> : vector<32xf32>
    %1 = vector.multi_reduction <add>, %0, %cst [1] : vector<32x64xf32> to vector<32xf32>
    %2 = vector.shape_cast %1 : vector<32xf32> to vector<32x1xf32>
    %cst_1 = arith.constant 6.400000e+01 : f32
    %3 = vector.broadcast %cst_1 : f32 to vector<32x1xf32>
    %4 = arith.divf %2, %3 : vector<32x1xf32>
    %c0_2 = arith.constant 0 : index
    %c0_3 = arith.constant 0 : index
    %5 = vector.load %arg2[%c0_2, %c0_3] : memref<32x1xf32, #tpu.memory_space<vmem>>, vector<32x1xf32>
    tpu.vector_store %arg2[%c0_2, %c0_3], %4 {strides = array<i32>} : memref<32x1xf32, #tpu.memory_space<vmem>>, vector<32x1xf32>,
    %cst_4 = arith.constant dense<0xFF800000> : vector<32xf32>
    %6 = vector.multi_reduction <maximumf>, %0, %cst_4 [1] : vector<32x64xf32> to vector<32xf32>
    %7 = vector.shape_cast %6 : vector<32xf32> to vector<32x1xf32>
    %c0_5 = arith.constant 0 : index
    %c0_6 = arith.constant 0 : index
    %8 = vector.load %arg3[%c0_5, %c0_6] : memref<32x1xf32, #tpu.memory_space<vmem>>, vector<32x1xf32>
    tpu.vector_store %arg3[%c0_5, %c0_6], %7 {strides = array<i32>} : memref<32x1xf32, #tpu.memory_space<vmem>>, vector<32x1xf32>,
    return
  }
  func.func @transform_0(%arg0: i32) -> (i32, i32) {
    %c0_i32 = arith.constant 0 : i32
    %c0_i32_0 = arith.constant 0 : i32
    return %arg0, %c0_i32 : i32, i32
  }
  func.func @transform_1(%arg0: i32) -> (i32, i32) {
    %c0_i32 = arith.constant 0 : i32
    %c0_i32_0 = arith.constant 0 : i32
    return %arg0, %c0_i32 : i32, i32
  }
  func.func @transform_2(%arg0: i32) -> (i32, i32) {
    %c0_i32 = arith.constant 0 : i32
    %c0_i32_0 = arith.constant 0 : i32
    return %arg0, %c0_i32 : i32, i32
  }
}

module attributes {stable_mosaic.version = 11 : i64} {
  func.func @_inorm_kernel(%arg0: i32, %arg1: memref<32x64xf32, #tpu.memory_space<vmem>>, %arg2: memref<32x64xf32, #tpu.memory_space<vmem>>) attributes {dimension_semantics = [#tpu.dimension_semantics<parallel>], iteration_bounds = array<i64: 1>, scalar_prefetch = 0 : i64, scratch_operands = 0 : i64, tpu.core_type = #tpu.core_type<tc>, window_params = [{transform_indices = @transform_0, window_bounds = array<i64: 32, 64>}, {transform_indices = @transform_1, window_bounds = array<i64: 32, 64>}]} {
    %c0 = arith.constant 0 : index
    %c0_0 = arith.constant 0 : index
    %0 = vector.load %arg1[%c0, %c0_0] : memref<32x64xf32, #tpu.memory_space<vmem>>, vector<32x64xf32>
    %cst = arith.constant dense<0.000000e+00> : vector<32xf32>
    %1 = vector.multi_reduction <add>, %0, %cst [1] : vector<32x64xf32> to vector<32xf32>
    %2 = vector.shape_cast %1 : vector<32xf32> to vector<32x1xf32>
    %cst_1 = arith.constant 6.400000e+01 : f32
    %3 = vector.broadcast %cst_1 : f32 to vector<32x1xf32>
    %4 = arith.divf %2, %3 : vector<32x1xf32>
    %5 = vector.broadcast %4 : vector<32x1xf32> to vector<32x64xf32>
    %6 = arith.subf %0, %5 : vector<32x64xf32>
    %7 = arith.mulf %6, %6 : vector<32x64xf32>
    %cst_2 = arith.constant dense<0.000000e+00> : vector<32xf32>
    %8 = vector.multi_reduction <add>, %7, %cst_2 [1] : vector<32x64xf32> to vector<32xf32>
    %9 = vector.shape_cast %8 : vector<32xf32> to vector<32x1xf32>
    %cst_3 = arith.constant 6.400000e+01 : f32
    %10 = vector.broadcast %cst_3 : f32 to vector<32x1xf32>
    %11 = arith.divf %9, %10 : vector<32x1xf32>
    %12 = vector.broadcast %4 : vector<32x1xf32> to vector<32x64xf32>
    %13 = arith.subf %0, %12 : vector<32x64xf32>
    %cst_4 = arith.constant 9.99999974E-6 : f32
    %14 = vector.broadcast %cst_4 : f32 to vector<32x1xf32>
    %15 = arith.addf %11, %14 : vector<32x1xf32>
    %16 = math.rsqrt %15 : vector<32x1xf32>
    %17 = vector.broadcast %16 : vector<32x1xf32> to vector<32x64xf32>
    %18 = arith.mulf %13, %17 : vector<32x64xf32>
    %cst_5 = arith.constant 0.000000e+00 : f32
    %19 = vector.broadcast %cst_5 : f32 to vector<32x64xf32>
    %20 = arith.cmpf oge, %18, %19 : vector<32x64xf32>
    %cst_6 = arith.constant 2.000000e-01 : f32
    %21 = vector.broadcast %cst_6 : f32 to vector<32x64xf32>
    %22 = arith.mulf %18, %21 : vector<32x64xf32>
    %23 = arith.select %20, %18, %22 : vector<32x64xi1>, vector<32x64xf32>
    %c0_7 = arith.constant 0 : index
    %c0_8 = arith.constant 0 : index
    %24 = vector.load %arg2[%c0_7, %c0_8] : memref<32x64xf32, #tpu.memory_space<vmem>>, vector<32x64xf32>
    tpu.vector_store %arg2[%c0_7, %c0_8], %23 {strides = array<i32>} : memref<32x64xf32, #tpu.memory_space<vmem>>, vector<32x64xf32>,
    return
  }
  func.func @transform_0(%arg0: i32) -> (i32, i32) {
    %c0_i32 = arith.constant 0 : i32
    %c0_i32_0 = arith.constant 0 : i32
    return %arg0, %c0_i32 : i32, i32
  }
  func.func @transform_1(%arg0: i32) -> (i32, i32) {
    %c0_i32 = arith.constant 0 : i32
    %c0_i32_0 = arith.constant 0 : i32
    return %arg0, %c0_i32 : i32, i32
  }
}

module attributes {stable_mosaic.version = 11 : i64} {
  func.func @_gate_kernel(%arg0: i32, %arg1: memref<32x64xf32, #tpu.memory_space<vmem>>, %arg2: memref<32x1xf32, #tpu.memory_space<vmem>>, %arg3: memref<32x64xf32, #tpu.memory_space<vmem>>) attributes {dimension_semantics = [#tpu.dimension_semantics<parallel>], iteration_bounds = array<i64: 1>, scalar_prefetch = 0 : i64, scratch_operands = 0 : i64, tpu.core_type = #tpu.core_type<tc>, window_params = [{transform_indices = @transform_0, window_bounds = array<i64: 32, 64>}, {transform_indices = @transform_1, window_bounds = array<i64: 32, 1>}, {transform_indices = @transform_2, window_bounds = array<i64: 32, 64>}]} {
    %c0 = arith.constant 0 : index
    %c0_0 = arith.constant 0 : index
    %0 = vector.load %arg1[%c0, %c0_0] : memref<32x64xf32, #tpu.memory_space<vmem>>, vector<32x64xf32>
    %c0_1 = arith.constant 0 : index
    %c0_2 = arith.constant 0 : index
    %1 = vector.load %arg2[%c0_1, %c0_2] : memref<32x1xf32, #tpu.memory_space<vmem>>, vector<32x1xf32>
    %2 = arith.negf %1 : vector<32x1xf32>
    %3 = math.exp %2 : vector<32x1xf32>
    %cst = arith.constant 1.000000e+00 : f32
    %4 = vector.broadcast %cst : f32 to vector<32x1xf32>
    %5 = arith.addf %4, %3 : vector<32x1xf32>
    %6 = arith.divf %4, %5 : vector<32x1xf32>
    %7 = vector.broadcast %6 : vector<32x1xf32> to vector<32x64xf32>
    %8 = arith.mulf %0, %7 : vector<32x64xf32>
    %c0_3 = arith.constant 0 : index
    %c0_4 = arith.constant 0 : index
    %9 = vector.load %arg3[%c0_3, %c0_4] : memref<32x64xf32, #tpu.memory_space<vmem>>, vector<32x64xf32>
    tpu.vector_store %arg3[%c0_3, %c0_4], %8 {strides = array<i32>} : memref<32x64xf32, #tpu.memory_space<vmem>>, vector<32x64xf32>,
    return
  }
  func.func @transform_0(%arg0: i32) -> (i32, i32) {
    %c0_i32 = arith.constant 0 : i32
    %c0_i32_0 = arith.constant 0 : i32
    return %arg0, %c0_i32 : i32, i32
  }
  func.func @transform_1(%arg0: i32) -> (i32, i32) {
    %c0_i32 = arith.constant 0 : i32
    %c0_i32_0 = arith.constant 0 : i32
    return %arg0, %c0_i32 : i32, i32
  }
  func.func @transform_2(%arg0: i32) -> (i32, i32) {
    %c0_i32 = arith.constant 0 : i32
    %c0_i32_0 = arith.constant 0 : i32
    return %arg0, %c0_i32 : i32, i32
  }
}

module attributes {stable_mosaic.version = 11 : i64} {
  func.func @_spatial_pool_kernel(%arg0: i32, %arg1: i32, %arg2: memref<1x16x64xf32, #tpu.memory_space<vmem>>, %arg3: memref<1x2x64xf32, #tpu.memory_space<vmem>>) attributes {dimension_semantics = [#tpu.dimension_semantics<parallel>, #tpu.dimension_semantics<parallel>], iteration_bounds = array<i64: 2, 1>, scalar_prefetch = 0 : i64, scratch_operands = 0 : i64, tpu.core_type = #tpu.core_type<tc>, window_params = [{transform_indices = @transform_0, window_bounds = array<i64: 1, 16, 64>}, {transform_indices = @transform_1, window_bounds = array<i64: 1, 2, 64>}]} {
    %c0 = arith.constant 0 : index
    %c0_0 = arith.constant 0 : index
    %c0_1 = arith.constant 0 : index
    %0 = vector.load %arg2[%c0, %c0_0, %c0_1] : memref<1x16x64xf32, #tpu.memory_space<vmem>>, vector<1x16x64xf32>
    %cst = arith.constant dense<0.000000e+00> : vector<1x64xf32>
    %1 = vector.multi_reduction <add>, %0, %cst [1] : vector<1x16x64xf32> to vector<1x64xf32>
    %2 = vector.shape_cast %1 : vector<1x64xf32> to vector<1x1x64xf32>
    %cst_2 = arith.constant 1.600000e+01 : f32
    %3 = vector.broadcast %cst_2 : f32 to vector<1x1x64xf32>
    %4 = arith.divf %2, %3 : vector<1x1x64xf32>
    %c0_3 = arith.constant 0 : index
    %c0_4 = arith.constant 0 : index
    %c0_5 = arith.constant 0 : index
    %5 = vector.load %arg3[%c0_3, %c0_4, %c0_5] : memref<1x2x64xf32, #tpu.memory_space<vmem>>, vector<1x1x64xf32>
    tpu.vector_store %arg3[%c0_3, %c0_4, %c0_5], %4 {strides = array<i32>} : memref<1x2x64xf32, #tpu.memory_space<vmem>>, vector<1x1x64xf32>,
    %cst_6 = arith.constant dense<0xFF800000> : vector<1x64xf32>
    %6 = vector.multi_reduction <maximumf>, %0, %cst_6 [1] : vector<1x16x64xf32> to vector<1x64xf32>
    %7 = vector.shape_cast %6 : vector<1x64xf32> to vector<1x1x64xf32>
    %c0_7 = arith.constant 0 : index
    %c1 = arith.constant 1 : index
    %c0_8 = arith.constant 0 : index
    %8 = vector.load %arg3[%c0_7, %c1, %c0_8] : memref<1x2x64xf32, #tpu.memory_space<vmem>>, vector<1x1x64xf32>
    tpu.vector_store %arg3[%c0_7, %c1, %c0_8], %7 {strides = array<i32>} : memref<1x2x64xf32, #tpu.memory_space<vmem>>, vector<1x1x64xf32>,
    return
  }
  func.func @transform_0(%arg0: i32, %arg1: i32) -> (i32, i32, i32) {
    %c0_i32 = arith.constant 0 : i32
    %c0_i32_0 = arith.constant 0 : i32
    return %arg0, %c0_i32, %arg1 : i32, i32, i32
  }
  func.func @transform_1(%arg0: i32, %arg1: i32) -> (i32, i32, i32) {
    %c0_i32 = arith.constant 0 : i32
    %c0_i32_0 = arith.constant 0 : i32
    return %arg0, %c0_i32, %arg1 : i32, i32, i32
  }
}

module attributes {stable_mosaic.version = 11 : i64} {
  func.func @_matmul_kernel(%arg0: i32, %arg1: i32, %arg2: i32, %arg3: memref<128x98xbf16, #tpu.memory_space<vmem>>, %arg4: memref<98x128xbf16, #tpu.memory_space<vmem>>, %arg5: memref<1x128xf32, #tpu.memory_space<vmem>>, %arg6: memref<128x128xf32, #tpu.memory_space<vmem>>, %arg7: memref<128x128xf32, #tpu.memory_space<vmem>>) attributes {dimension_semantics = [#tpu.dimension_semantics<parallel>, #tpu.dimension_semantics<parallel>, #tpu.dimension_semantics<arbitrary>], iteration_bounds = array<i64: 1, 1, 1>, scalar_prefetch = 0 : i64, scratch_operands = 1 : i64, tpu.core_type = #tpu.core_type<tc>, window_params = [{transform_indices = @transform_0, window_bounds = array<i64: 128, 98>}, {transform_indices = @transform_1, window_bounds = array<i64: 98, 128>}, {transform_indices = @transform_2, window_bounds = array<i64: 1, 128>}, {transform_indices = @transform_3, window_bounds = array<i64: 128, 128>}]} {
    %c0_i32 = arith.constant 0 : i32
    %0 = arith.cmpi eq, %arg2, %c0_i32 : i32
    %1 = arith.extui %0 : i1 to i32
    %c0_i32_0 = arith.constant 0 : i32
    %2 = arith.cmpi ne, %1, %c0_i32_0 : i32
    scf.if %2 {
      %cst_10 = arith.constant 0.000000e+00 : f32
      %12 = vector.broadcast %cst_10 : f32 to vector<128x128xf32>
      %c0_11 = arith.constant 0 : index
      %c0_12 = arith.constant 0 : index
      %13 = vector.load %arg7[%c0_11, %c0_12] : memref<128x128xf32, #tpu.memory_space<vmem>>, vector<128x128xf32>
      tpu.vector_store %arg7[%c0_11, %c0_12], %12 {strides = array<i32>} : memref<128x128xf32, #tpu.memory_space<vmem>>, vector<128x128xf32>,
    } else {
    }
    %c0 = arith.constant 0 : index
    %c0_1 = arith.constant 0 : index
    %3 = vector.load %arg7[%c0, %c0_1] : memref<128x128xf32, #tpu.memory_space<vmem>>, vector<128x128xf32>
    %c0_2 = arith.constant 0 : index
    %c0_3 = arith.constant 0 : index
    %4 = vector.load %arg3[%c0_2, %c0_3] : memref<128x98xbf16, #tpu.memory_space<vmem>>, vector<128x98xbf16>
    %c0_4 = arith.constant 0 : index
    %c0_5 = arith.constant 0 : index
    %5 = vector.load %arg4[%c0_4, %c0_5] : memref<98x128xbf16, #tpu.memory_space<vmem>>, vector<98x128xbf16>
    %cst = arith.constant dense<0.000000e+00> : vector<128x128xf32>
    %6 = tpu.matmul %4, %5, %cst {dimension_numbers = #tpu.dot_dimension_numbers<[1], [0], [0], [1], [0, 0, 1, 1], [], []>} : vector<128x98xbf16>, vector<98x128xbf16>, vector<128x128xf32> -> vector<128x128xf32>
    %7 = arith.addf %3, %6 : vector<128x128xf32>
    %c0_6 = arith.constant 0 : index
    %c0_7 = arith.constant 0 : index
    %8 = vector.load %arg7[%c0_6, %c0_7] : memref<128x128xf32, #tpu.memory_space<vmem>>, vector<128x128xf32>
    tpu.vector_store %arg7[%c0_6, %c0_7], %7 {strides = array<i32>} : memref<128x128xf32, #tpu.memory_space<vmem>>, vector<128x128xf32>,
    %c0_i32_8 = arith.constant 0 : i32
    %9 = arith.cmpi eq, %arg2, %c0_i32_8 : i32
    %10 = arith.extui %9 : i1 to i32
    %c0_i32_9 = arith.constant 0 : i32
    %11 = arith.cmpi ne, %10, %c0_i32_9 : i32
    scf.if %11 {
      %c0_10 = arith.constant 0 : index
      %c0_11 = arith.constant 0 : index
      %12 = vector.load %arg7[%c0_10, %c0_11] : memref<128x128xf32, #tpu.memory_space<vmem>>, vector<128x128xf32>
      %c0_12 = arith.constant 0 : index
      %c0_13 = arith.constant 0 : index
      %13 = vector.load %arg5[%c0_12, %c0_13] : memref<1x128xf32, #tpu.memory_space<vmem>>, vector<1x128xf32>
      %14 = vector.broadcast %13 : vector<1x128xf32> to vector<128x128xf32>
      %15 = arith.addf %12, %14 : vector<128x128xf32>
      %c0_14 = arith.constant 0 : index
      %c0_15 = arith.constant 0 : index
      %16 = vector.load %arg6[%c0_14, %c0_15] : memref<128x128xf32, #tpu.memory_space<vmem>>, vector<128x128xf32>
      tpu.vector_store %arg6[%c0_14, %c0_15], %15 {strides = array<i32>} : memref<128x128xf32, #tpu.memory_space<vmem>>, vector<128x128xf32>,
    } else {
    }
    return
  }
  func.func @transform_0(%arg0: i32, %arg1: i32, %arg2: i32) -> (i32, i32) {
    %c0_i32 = arith.constant 0 : i32
    return %arg0, %arg2 : i32, i32
  }
  func.func @transform_1(%arg0: i32, %arg1: i32, %arg2: i32) -> (i32, i32) {
    %c0_i32 = arith.constant 0 : i32
    return %arg2, %arg1 : i32, i32
  }
  func.func @transform_2(%arg0: i32, %arg1: i32, %arg2: i32) -> (i32, i32) {
    %c0_i32 = arith.constant 0 : i32
    %c0_i32_0 = arith.constant 0 : i32
    return %c0_i32, %arg1 : i32, i32
  }
  func.func @transform_3(%arg0: i32, %arg1: i32, %arg2: i32) -> (i32, i32) {
    %c0_i32 = arith.constant 0 : i32
    return %arg0, %arg1 : i32, i32
  }
}

module attributes {stable_mosaic.version = 11 : i64} {
  func.func @_gate_kernel(%arg0: i32, %arg1: i32, %arg2: memref<1x16x64xf32, #tpu.memory_space<vmem>>, %arg3: memref<1x1x64xf32, #tpu.memory_space<vmem>>, %arg4: memref<1x16x64xf32, #tpu.memory_space<vmem>>) attributes {dimension_semantics = [#tpu.dimension_semantics<parallel>, #tpu.dimension_semantics<parallel>], iteration_bounds = array<i64: 2, 1>, scalar_prefetch = 0 : i64, scratch_operands = 0 : i64, tpu.core_type = #tpu.core_type<tc>, window_params = [{transform_indices = @transform_0, window_bounds = array<i64: 1, 16, 64>}, {transform_indices = @transform_1, window_bounds = array<i64: 1, 1, 64>}, {transform_indices = @transform_2, window_bounds = array<i64: 1, 16, 64>}]} {
    %c0 = arith.constant 0 : index
    %c0_0 = arith.constant 0 : index
    %c0_1 = arith.constant 0 : index
    %0 = vector.load %arg2[%c0, %c0_0, %c0_1] : memref<1x16x64xf32, #tpu.memory_space<vmem>>, vector<1x16x64xf32>
    %c0_2 = arith.constant 0 : index
    %c0_3 = arith.constant 0 : index
    %c0_4 = arith.constant 0 : index
    %1 = vector.load %arg3[%c0_2, %c0_3, %c0_4] : memref<1x1x64xf32, #tpu.memory_space<vmem>>, vector<1x1x64xf32>
    %2 = arith.negf %1 : vector<1x1x64xf32>
    %3 = math.exp %2 : vector<1x1x64xf32>
    %cst = arith.constant 1.000000e+00 : f32
    %4 = vector.broadcast %cst : f32 to vector<1x1x64xf32>
    %5 = arith.addf %4, %3 : vector<1x1x64xf32>
    %6 = arith.divf %4, %5 : vector<1x1x64xf32>
    %7 = vector.broadcast %6 : vector<1x1x64xf32> to vector<1x16x64xf32>
    %8 = arith.mulf %0, %7 : vector<1x16x64xf32>
    %c0_5 = arith.constant 0 : index
    %c0_6 = arith.constant 0 : index
    %c0_7 = arith.constant 0 : index
    %9 = vector.load %arg4[%c0_5, %c0_6, %c0_7] : memref<1x16x64xf32, #tpu.memory_space<vmem>>, vector<1x16x64xf32>
    tpu.vector_store %arg4[%c0_5, %c0_6, %c0_7], %8 {strides = array<i32>} : memref<1x16x64xf32, #tpu.memory_space<vmem>>, vector<1x16x64xf32>,
    return
  }
  func.func @transform_0(%arg0: i32, %arg1: i32) -> (i32, i32, i32) {
    %c0_i32 = arith.constant 0 : i32
    %c0_i32_0 = arith.constant 0 : i32
    return %arg0, %c0_i32, %arg1 : i32, i32, i32
  }
  func.func @transform_1(%arg0: i32, %arg1: i32) -> (i32, i32, i32) {
    %c0_i32 = arith.constant 0 : i32
    %c0_i32_0 = arith.constant 0 : i32
    return %arg0, %c0_i32, %arg1 : i32, i32, i32
  }
  func.func @transform_2(%arg0: i32, %arg1: i32) -> (i32, i32, i32) {
    %c0_i32 = arith.constant 0 : i32
    %c0_i32_0 = arith.constant 0 : i32
    return %arg0, %c0_i32, %arg1 : i32, i32, i32
  }
}

module attributes {stable_mosaic.version = 11 : i64} {
  func.func @_matmul_kernel(%arg0: i32, %arg1: i32, %arg2: i32, %arg3: memref<32x256xbf16, #tpu.memory_space<vmem>>, %arg4: memref<256x128xbf16, #tpu.memory_space<vmem>>, %arg5: memref<1x128xf32, #tpu.memory_space<vmem>>, %arg6: memref<32x128xf32, #tpu.memory_space<vmem>>, %arg7: memref<32x128xf32, #tpu.memory_space<vmem>>) attributes {dimension_semantics = [#tpu.dimension_semantics<parallel>, #tpu.dimension_semantics<parallel>, #tpu.dimension_semantics<arbitrary>], iteration_bounds = array<i64: 1, 1, 1>, scalar_prefetch = 0 : i64, scratch_operands = 1 : i64, tpu.core_type = #tpu.core_type<tc>, window_params = [{transform_indices = @transform_0, window_bounds = array<i64: 32, 256>}, {transform_indices = @transform_1, window_bounds = array<i64: 256, 128>}, {transform_indices = @transform_2, window_bounds = array<i64: 1, 128>}, {transform_indices = @transform_3, window_bounds = array<i64: 32, 128>}]} {
    %c0_i32 = arith.constant 0 : i32
    %0 = arith.cmpi eq, %arg2, %c0_i32 : i32
    %1 = arith.extui %0 : i1 to i32
    %c0_i32_0 = arith.constant 0 : i32
    %2 = arith.cmpi ne, %1, %c0_i32_0 : i32
    scf.if %2 {
      %cst_10 = arith.constant 0.000000e+00 : f32
      %12 = vector.broadcast %cst_10 : f32 to vector<32x128xf32>
      %c0_11 = arith.constant 0 : index
      %c0_12 = arith.constant 0 : index
      %13 = vector.load %arg7[%c0_11, %c0_12] : memref<32x128xf32, #tpu.memory_space<vmem>>, vector<32x128xf32>
      tpu.vector_store %arg7[%c0_11, %c0_12], %12 {strides = array<i32>} : memref<32x128xf32, #tpu.memory_space<vmem>>, vector<32x128xf32>,
    } else {
    }
    %c0 = arith.constant 0 : index
    %c0_1 = arith.constant 0 : index
    %3 = vector.load %arg7[%c0, %c0_1] : memref<32x128xf32, #tpu.memory_space<vmem>>, vector<32x128xf32>
    %c0_2 = arith.constant 0 : index
    %c0_3 = arith.constant 0 : index
    %4 = vector.load %arg3[%c0_2, %c0_3] : memref<32x256xbf16, #tpu.memory_space<vmem>>, vector<32x256xbf16>
    %c0_4 = arith.constant 0 : index
    %c0_5 = arith.constant 0 : index
    %5 = vector.load %arg4[%c0_4, %c0_5] : memref<256x128xbf16, #tpu.memory_space<vmem>>, vector<256x128xbf16>
    %cst = arith.constant dense<0.000000e+00> : vector<32x128xf32>
    %6 = tpu.matmul %4, %5, %cst {dimension_numbers = #tpu.dot_dimension_numbers<[1], [0], [0], [1], [0, 0, 1, 1], [], []>} : vector<32x256xbf16>, vector<256x128xbf16>, vector<32x128xf32> -> vector<32x128xf32>
    %7 = arith.addf %3, %6 : vector<32x128xf32>
    %c0_6 = arith.constant 0 : index
    %c0_7 = arith.constant 0 : index
    %8 = vector.load %arg7[%c0_6, %c0_7] : memref<32x128xf32, #tpu.memory_space<vmem>>, vector<32x128xf32>
    tpu.vector_store %arg7[%c0_6, %c0_7], %7 {strides = array<i32>} : memref<32x128xf32, #tpu.memory_space<vmem>>, vector<32x128xf32>,
    %c0_i32_8 = arith.constant 0 : i32
    %9 = arith.cmpi eq, %arg2, %c0_i32_8 : i32
    %10 = arith.extui %9 : i1 to i32
    %c0_i32_9 = arith.constant 0 : i32
    %11 = arith.cmpi ne, %10, %c0_i32_9 : i32
    scf.if %11 {
      %c0_10 = arith.constant 0 : index
      %c0_11 = arith.constant 0 : index
      %12 = vector.load %arg7[%c0_10, %c0_11] : memref<32x128xf32, #tpu.memory_space<vmem>>, vector<32x128xf32>
      %c0_12 = arith.constant 0 : index
      %c0_13 = arith.constant 0 : index
      %13 = vector.load %arg5[%c0_12, %c0_13] : memref<1x128xf32, #tpu.memory_space<vmem>>, vector<1x128xf32>
      %14 = vector.broadcast %13 : vector<1x128xf32> to vector<32x128xf32>
      %15 = arith.addf %12, %14 : vector<32x128xf32>
      %c0_14 = arith.constant 0 : index
      %c0_15 = arith.constant 0 : index
      %16 = vector.load %arg6[%c0_14, %c0_15] : memref<32x128xf32, #tpu.memory_space<vmem>>, vector<32x128xf32>
      tpu.vector_store %arg6[%c0_14, %c0_15], %15 {strides = array<i32>} : memref<32x128xf32, #tpu.memory_space<vmem>>, vector<32x128xf32>,
    } else {
    }
    return
  }
  func.func @transform_0(%arg0: i32, %arg1: i32, %arg2: i32) -> (i32, i32) {
    %c0_i32 = arith.constant 0 : i32
    return %arg0, %arg2 : i32, i32
  }
  func.func @transform_1(%arg0: i32, %arg1: i32, %arg2: i32) -> (i32, i32) {
    %c0_i32 = arith.constant 0 : i32
    return %arg2, %arg1 : i32, i32
  }
  func.func @transform_2(%arg0: i32, %arg1: i32, %arg2: i32) -> (i32, i32) {
    %c0_i32 = arith.constant 0 : i32
    %c0_i32_0 = arith.constant 0 : i32
    return %c0_i32, %arg1 : i32, i32
  }
  func.func @transform_3(%arg0: i32, %arg1: i32, %arg2: i32) -> (i32, i32) {
    %c0_i32 = arith.constant 0 : i32
    return %arg0, %arg1 : i32, i32
  }
}

module attributes {stable_mosaic.version = 11 : i64} {
  func.func @_row_pool_kernel(%arg0: i32, %arg1: memref<64x16xf32, #tpu.memory_space<vmem>>, %arg2: memref<64x1xf32, #tpu.memory_space<vmem>>, %arg3: memref<64x1xf32, #tpu.memory_space<vmem>>) attributes {dimension_semantics = [#tpu.dimension_semantics<parallel>], iteration_bounds = array<i64: 1>, scalar_prefetch = 0 : i64, scratch_operands = 0 : i64, tpu.core_type = #tpu.core_type<tc>, window_params = [{transform_indices = @transform_0, window_bounds = array<i64: 64, 16>}, {transform_indices = @transform_1, window_bounds = array<i64: 64, 1>}, {transform_indices = @transform_2, window_bounds = array<i64: 64, 1>}]} {
    %c0 = arith.constant 0 : index
    %c0_0 = arith.constant 0 : index
    %0 = vector.load %arg1[%c0, %c0_0] : memref<64x16xf32, #tpu.memory_space<vmem>>, vector<64x16xf32>
    %cst = arith.constant dense<0.000000e+00> : vector<64xf32>
    %1 = vector.multi_reduction <add>, %0, %cst [1] : vector<64x16xf32> to vector<64xf32>
    %2 = vector.shape_cast %1 : vector<64xf32> to vector<64x1xf32>
    %cst_1 = arith.constant 1.600000e+01 : f32
    %3 = vector.broadcast %cst_1 : f32 to vector<64x1xf32>
    %4 = arith.divf %2, %3 : vector<64x1xf32>
    %c0_2 = arith.constant 0 : index
    %c0_3 = arith.constant 0 : index
    %5 = vector.load %arg2[%c0_2, %c0_3] : memref<64x1xf32, #tpu.memory_space<vmem>>, vector<64x1xf32>
    tpu.vector_store %arg2[%c0_2, %c0_3], %4 {strides = array<i32>} : memref<64x1xf32, #tpu.memory_space<vmem>>, vector<64x1xf32>,
    %cst_4 = arith.constant dense<0xFF800000> : vector<64xf32>
    %6 = vector.multi_reduction <maximumf>, %0, %cst_4 [1] : vector<64x16xf32> to vector<64xf32>
    %7 = vector.shape_cast %6 : vector<64xf32> to vector<64x1xf32>
    %c0_5 = arith.constant 0 : index
    %c0_6 = arith.constant 0 : index
    %8 = vector.load %arg3[%c0_5, %c0_6] : memref<64x1xf32, #tpu.memory_space<vmem>>, vector<64x1xf32>
    tpu.vector_store %arg3[%c0_5, %c0_6], %7 {strides = array<i32>} : memref<64x1xf32, #tpu.memory_space<vmem>>, vector<64x1xf32>,
    return
  }
  func.func @transform_0(%arg0: i32) -> (i32, i32) {
    %c0_i32 = arith.constant 0 : i32
    %c0_i32_0 = arith.constant 0 : i32
    return %arg0, %c0_i32 : i32, i32
  }
  func.func @transform_1(%arg0: i32) -> (i32, i32) {
    %c0_i32 = arith.constant 0 : i32
    %c0_i32_0 = arith.constant 0 : i32
    return %arg0, %c0_i32 : i32, i32
  }
  func.func @transform_2(%arg0: i32) -> (i32, i32) {
    %c0_i32 = arith.constant 0 : i32
    %c0_i32_0 = arith.constant 0 : i32
    return %arg0, %c0_i32 : i32, i32
  }
}

module attributes {stable_mosaic.version = 11 : i64} {
  func.func @_inorm_kernel(%arg0: i32, %arg1: memref<64x16xf32, #tpu.memory_space<vmem>>, %arg2: memref<64x16xf32, #tpu.memory_space<vmem>>) attributes {dimension_semantics = [#tpu.dimension_semantics<parallel>], iteration_bounds = array<i64: 1>, scalar_prefetch = 0 : i64, scratch_operands = 0 : i64, tpu.core_type = #tpu.core_type<tc>, window_params = [{transform_indices = @transform_0, window_bounds = array<i64: 64, 16>}, {transform_indices = @transform_1, window_bounds = array<i64: 64, 16>}]} {
    %c0 = arith.constant 0 : index
    %c0_0 = arith.constant 0 : index
    %0 = vector.load %arg1[%c0, %c0_0] : memref<64x16xf32, #tpu.memory_space<vmem>>, vector<64x16xf32>
    %cst = arith.constant dense<0.000000e+00> : vector<64xf32>
    %1 = vector.multi_reduction <add>, %0, %cst [1] : vector<64x16xf32> to vector<64xf32>
    %2 = vector.shape_cast %1 : vector<64xf32> to vector<64x1xf32>
    %cst_1 = arith.constant 1.600000e+01 : f32
    %3 = vector.broadcast %cst_1 : f32 to vector<64x1xf32>
    %4 = arith.divf %2, %3 : vector<64x1xf32>
    %5 = vector.broadcast %4 : vector<64x1xf32> to vector<64x16xf32>
    %6 = arith.subf %0, %5 : vector<64x16xf32>
    %7 = arith.mulf %6, %6 : vector<64x16xf32>
    %cst_2 = arith.constant dense<0.000000e+00> : vector<64xf32>
    %8 = vector.multi_reduction <add>, %7, %cst_2 [1] : vector<64x16xf32> to vector<64xf32>
    %9 = vector.shape_cast %8 : vector<64xf32> to vector<64x1xf32>
    %cst_3 = arith.constant 1.600000e+01 : f32
    %10 = vector.broadcast %cst_3 : f32 to vector<64x1xf32>
    %11 = arith.divf %9, %10 : vector<64x1xf32>
    %12 = vector.broadcast %4 : vector<64x1xf32> to vector<64x16xf32>
    %13 = arith.subf %0, %12 : vector<64x16xf32>
    %cst_4 = arith.constant 9.99999974E-6 : f32
    %14 = vector.broadcast %cst_4 : f32 to vector<64x1xf32>
    %15 = arith.addf %11, %14 : vector<64x1xf32>
    %16 = math.rsqrt %15 : vector<64x1xf32>
    %17 = vector.broadcast %16 : vector<64x1xf32> to vector<64x16xf32>
    %18 = arith.mulf %13, %17 : vector<64x16xf32>
    %cst_5 = arith.constant 0.000000e+00 : f32
    %19 = vector.broadcast %cst_5 : f32 to vector<64x16xf32>
    %20 = arith.cmpf oge, %18, %19 : vector<64x16xf32>
    %cst_6 = arith.constant 2.000000e-01 : f32
    %21 = vector.broadcast %cst_6 : f32 to vector<64x16xf32>
    %22 = arith.mulf %18, %21 : vector<64x16xf32>
    %23 = arith.select %20, %18, %22 : vector<64x16xi1>, vector<64x16xf32>
    %c0_7 = arith.constant 0 : index
    %c0_8 = arith.constant 0 : index
    %24 = vector.load %arg2[%c0_7, %c0_8] : memref<64x16xf32, #tpu.memory_space<vmem>>, vector<64x16xf32>
    tpu.vector_store %arg2[%c0_7, %c0_8], %23 {strides = array<i32>} : memref<64x16xf32, #tpu.memory_space<vmem>>, vector<64x16xf32>,
    return
  }
  func.func @transform_0(%arg0: i32) -> (i32, i32) {
    %c0_i32 = arith.constant 0 : i32
    %c0_i32_0 = arith.constant 0 : i32
    return %arg0, %c0_i32 : i32, i32
  }
  func.func @transform_1(%arg0: i32) -> (i32, i32) {
    %c0_i32 = arith.constant 0 : i32
    %c0_i32_0 = arith.constant 0 : i32
    return %arg0, %c0_i32 : i32, i32
  }
}

module attributes {stable_mosaic.version = 11 : i64} {
  func.func @_gate_kernel(%arg0: i32, %arg1: memref<64x16xf32, #tpu.memory_space<vmem>>, %arg2: memref<64x1xf32, #tpu.memory_space<vmem>>, %arg3: memref<64x16xf32, #tpu.memory_space<vmem>>) attributes {dimension_semantics = [#tpu.dimension_semantics<parallel>], iteration_bounds = array<i64: 1>, scalar_prefetch = 0 : i64, scratch_operands = 0 : i64, tpu.core_type = #tpu.core_type<tc>, window_params = [{transform_indices = @transform_0, window_bounds = array<i64: 64, 16>}, {transform_indices = @transform_1, window_bounds = array<i64: 64, 1>}, {transform_indices = @transform_2, window_bounds = array<i64: 64, 16>}]} {
    %c0 = arith.constant 0 : index
    %c0_0 = arith.constant 0 : index
    %0 = vector.load %arg1[%c0, %c0_0] : memref<64x16xf32, #tpu.memory_space<vmem>>, vector<64x16xf32>
    %c0_1 = arith.constant 0 : index
    %c0_2 = arith.constant 0 : index
    %1 = vector.load %arg2[%c0_1, %c0_2] : memref<64x1xf32, #tpu.memory_space<vmem>>, vector<64x1xf32>
    %2 = arith.negf %1 : vector<64x1xf32>
    %3 = math.exp %2 : vector<64x1xf32>
    %cst = arith.constant 1.000000e+00 : f32
    %4 = vector.broadcast %cst : f32 to vector<64x1xf32>
    %5 = arith.addf %4, %3 : vector<64x1xf32>
    %6 = arith.divf %4, %5 : vector<64x1xf32>
    %7 = vector.broadcast %6 : vector<64x1xf32> to vector<64x16xf32>
    %8 = arith.mulf %0, %7 : vector<64x16xf32>
    %c0_3 = arith.constant 0 : index
    %c0_4 = arith.constant 0 : index
    %9 = vector.load %arg3[%c0_3, %c0_4] : memref<64x16xf32, #tpu.memory_space<vmem>>, vector<64x16xf32>
    tpu.vector_store %arg3[%c0_3, %c0_4], %8 {strides = array<i32>} : memref<64x16xf32, #tpu.memory_space<vmem>>, vector<64x16xf32>,
    return
  }
  func.func @transform_0(%arg0: i32) -> (i32, i32) {
    %c0_i32 = arith.constant 0 : i32
    %c0_i32_0 = arith.constant 0 : i32
    return %arg0, %c0_i32 : i32, i32
  }
  func.func @transform_1(%arg0: i32) -> (i32, i32) {
    %c0_i32 = arith.constant 0 : i32
    %c0_i32_0 = arith.constant 0 : i32
    return %arg0, %c0_i32 : i32, i32
  }
  func.func @transform_2(%arg0: i32) -> (i32, i32) {
    %c0_i32 = arith.constant 0 : i32
    %c0_i32_0 = arith.constant 0 : i32
    return %arg0, %c0_i32 : i32, i32
  }
}

module attributes {stable_mosaic.version = 11 : i64} {
  func.func @_spatial_pool_kernel(%arg0: i32, %arg1: i32, %arg2: memref<1x32x16xf32, #tpu.memory_space<vmem>>, %arg3: memref<1x2x16xf32, #tpu.memory_space<vmem>>) attributes {dimension_semantics = [#tpu.dimension_semantics<parallel>, #tpu.dimension_semantics<parallel>], iteration_bounds = array<i64: 2, 1>, scalar_prefetch = 0 : i64, scratch_operands = 0 : i64, tpu.core_type = #tpu.core_type<tc>, window_params = [{transform_indices = @transform_0, window_bounds = array<i64: 1, 32, 16>}, {transform_indices = @transform_1, window_bounds = array<i64: 1, 2, 16>}]} {
    %c0 = arith.constant 0 : index
    %c0_0 = arith.constant 0 : index
    %c0_1 = arith.constant 0 : index
    %0 = vector.load %arg2[%c0, %c0_0, %c0_1] : memref<1x32x16xf32, #tpu.memory_space<vmem>>, vector<1x32x16xf32>
    %cst = arith.constant dense<0.000000e+00> : vector<1x16xf32>
    %1 = vector.multi_reduction <add>, %0, %cst [1] : vector<1x32x16xf32> to vector<1x16xf32>
    %2 = vector.shape_cast %1 : vector<1x16xf32> to vector<1x1x16xf32>
    %cst_2 = arith.constant 3.200000e+01 : f32
    %3 = vector.broadcast %cst_2 : f32 to vector<1x1x16xf32>
    %4 = arith.divf %2, %3 : vector<1x1x16xf32>
    %c0_3 = arith.constant 0 : index
    %c0_4 = arith.constant 0 : index
    %c0_5 = arith.constant 0 : index
    %5 = vector.load %arg3[%c0_3, %c0_4, %c0_5] : memref<1x2x16xf32, #tpu.memory_space<vmem>>, vector<1x1x16xf32>
    tpu.vector_store %arg3[%c0_3, %c0_4, %c0_5], %4 {strides = array<i32>} : memref<1x2x16xf32, #tpu.memory_space<vmem>>, vector<1x1x16xf32>,
    %cst_6 = arith.constant dense<0xFF800000> : vector<1x16xf32>
    %6 = vector.multi_reduction <maximumf>, %0, %cst_6 [1] : vector<1x32x16xf32> to vector<1x16xf32>
    %7 = vector.shape_cast %6 : vector<1x16xf32> to vector<1x1x16xf32>
    %c0_7 = arith.constant 0 : index
    %c1 = arith.constant 1 : index
    %c0_8 = arith.constant 0 : index
    %8 = vector.load %arg3[%c0_7, %c1, %c0_8] : memref<1x2x16xf32, #tpu.memory_space<vmem>>, vector<1x1x16xf32>
    tpu.vector_store %arg3[%c0_7, %c1, %c0_8], %7 {strides = array<i32>} : memref<1x2x16xf32, #tpu.memory_space<vmem>>, vector<1x1x16xf32>,
    return
  }
  func.func @transform_0(%arg0: i32, %arg1: i32) -> (i32, i32, i32) {
    %c0_i32 = arith.constant 0 : i32
    %c0_i32_0 = arith.constant 0 : i32
    return %arg0, %c0_i32, %arg1 : i32, i32, i32
  }
  func.func @transform_1(%arg0: i32, %arg1: i32) -> (i32, i32, i32) {
    %c0_i32 = arith.constant 0 : i32
    %c0_i32_0 = arith.constant 0 : i32
    return %arg0, %c0_i32, %arg1 : i32, i32, i32
  }
}

module attributes {stable_mosaic.version = 11 : i64} {
  func.func @_gate_kernel(%arg0: i32, %arg1: i32, %arg2: memref<1x32x16xf32, #tpu.memory_space<vmem>>, %arg3: memref<1x1x16xf32, #tpu.memory_space<vmem>>, %arg4: memref<1x32x16xf32, #tpu.memory_space<vmem>>) attributes {dimension_semantics = [#tpu.dimension_semantics<parallel>, #tpu.dimension_semantics<parallel>], iteration_bounds = array<i64: 2, 1>, scalar_prefetch = 0 : i64, scratch_operands = 0 : i64, tpu.core_type = #tpu.core_type<tc>, window_params = [{transform_indices = @transform_0, window_bounds = array<i64: 1, 32, 16>}, {transform_indices = @transform_1, window_bounds = array<i64: 1, 1, 16>}, {transform_indices = @transform_2, window_bounds = array<i64: 1, 32, 16>}]} {
    %c0 = arith.constant 0 : index
    %c0_0 = arith.constant 0 : index
    %c0_1 = arith.constant 0 : index
    %0 = vector.load %arg2[%c0, %c0_0, %c0_1] : memref<1x32x16xf32, #tpu.memory_space<vmem>>, vector<1x32x16xf32>
    %c0_2 = arith.constant 0 : index
    %c0_3 = arith.constant 0 : index
    %c0_4 = arith.constant 0 : index
    %1 = vector.load %arg3[%c0_2, %c0_3, %c0_4] : memref<1x1x16xf32, #tpu.memory_space<vmem>>, vector<1x1x16xf32>
    %2 = arith.negf %1 : vector<1x1x16xf32>
    %3 = math.exp %2 : vector<1x1x16xf32>
    %cst = arith.constant 1.000000e+00 : f32
    %4 = vector.broadcast %cst : f32 to vector<1x1x16xf32>
    %5 = arith.addf %4, %3 : vector<1x1x16xf32>
    %6 = arith.divf %4, %5 : vector<1x1x16xf32>
    %7 = vector.broadcast %6 : vector<1x1x16xf32> to vector<1x32x16xf32>
    %8 = arith.mulf %0, %7 : vector<1x32x16xf32>
    %c0_5 = arith.constant 0 : index
    %c0_6 = arith.constant 0 : index
    %c0_7 = arith.constant 0 : index
    %9 = vector.load %arg4[%c0_5, %c0_6, %c0_7] : memref<1x32x16xf32, #tpu.memory_space<vmem>>, vector<1x32x16xf32>
    tpu.vector_store %arg4[%c0_5, %c0_6, %c0_7], %8 {strides = array<i32>} : memref<1x32x16xf32, #tpu.memory_space<vmem>>, vector<1x32x16xf32>,
    return
  }
  func.func @transform_0(%arg0: i32, %arg1: i32) -> (i32, i32, i32) {
    %c0_i32 = arith.constant 0 : i32
    %c0_i32_0 = arith.constant 0 : i32
    return %arg0, %c0_i32, %arg1 : i32, i32, i32
  }
  func.func @transform_1(%arg0: i32, %arg1: i32) -> (i32, i32, i32) {
    %c0_i32 = arith.constant 0 : i32
    %c0_i32_0 = arith.constant 0 : i32
    return %arg0, %c0_i32, %arg1 : i32, i32, i32
  }
  func.func @transform_2(%arg0: i32, %arg1: i32) -> (i32, i32, i32) {
    %c0_i32 = arith.constant 0 : i32
    %c0_i32_0 = arith.constant 0 : i32
    return %arg0, %c0_i32, %arg1 : i32, i32, i32
  }
}

module attributes {stable_mosaic.version = 11 : i64} {
  func.func @_matmul_kernel(%arg0: i32, %arg1: i32, %arg2: i32, %arg3: memref<32x98xbf16, #tpu.memory_space<vmem>>, %arg4: memref<98x128xbf16, #tpu.memory_space<vmem>>, %arg5: memref<1x128xf32, #tpu.memory_space<vmem>>, %arg6: memref<32x128xf32, #tpu.memory_space<vmem>>, %arg7: memref<32x128xf32, #tpu.memory_space<vmem>>) attributes {dimension_semantics = [#tpu.dimension_semantics<parallel>, #tpu.dimension_semantics<parallel>, #tpu.dimension_semantics<arbitrary>], iteration_bounds = array<i64: 1, 1, 1>, scalar_prefetch = 0 : i64, scratch_operands = 1 : i64, tpu.core_type = #tpu.core_type<tc>, window_params = [{transform_indices = @transform_0, window_bounds = array<i64: 32, 98>}, {transform_indices = @transform_1, window_bounds = array<i64: 98, 128>}, {transform_indices = @transform_2, window_bounds = array<i64: 1, 128>}, {transform_indices = @transform_3, window_bounds = array<i64: 32, 128>}]} {
    %c0_i32 = arith.constant 0 : i32
    %0 = arith.cmpi eq, %arg2, %c0_i32 : i32
    %1 = arith.extui %0 : i1 to i32
    %c0_i32_0 = arith.constant 0 : i32
    %2 = arith.cmpi ne, %1, %c0_i32_0 : i32
    scf.if %2 {
      %cst_10 = arith.constant 0.000000e+00 : f32
      %12 = vector.broadcast %cst_10 : f32 to vector<32x128xf32>
      %c0_11 = arith.constant 0 : index
      %c0_12 = arith.constant 0 : index
      %13 = vector.load %arg7[%c0_11, %c0_12] : memref<32x128xf32, #tpu.memory_space<vmem>>, vector<32x128xf32>
      tpu.vector_store %arg7[%c0_11, %c0_12], %12 {strides = array<i32>} : memref<32x128xf32, #tpu.memory_space<vmem>>, vector<32x128xf32>,
    } else {
    }
    %c0 = arith.constant 0 : index
    %c0_1 = arith.constant 0 : index
    %3 = vector.load %arg7[%c0, %c0_1] : memref<32x128xf32, #tpu.memory_space<vmem>>, vector<32x128xf32>
    %c0_2 = arith.constant 0 : index
    %c0_3 = arith.constant 0 : index
    %4 = vector.load %arg3[%c0_2, %c0_3] : memref<32x98xbf16, #tpu.memory_space<vmem>>, vector<32x98xbf16>
    %c0_4 = arith.constant 0 : index
    %c0_5 = arith.constant 0 : index
    %5 = vector.load %arg4[%c0_4, %c0_5] : memref<98x128xbf16, #tpu.memory_space<vmem>>, vector<98x128xbf16>
    %cst = arith.constant dense<0.000000e+00> : vector<32x128xf32>
    %6 = tpu.matmul %4, %5, %cst {dimension_numbers = #tpu.dot_dimension_numbers<[1], [0], [0], [1], [0, 0, 1, 1], [], []>} : vector<32x98xbf16>, vector<98x128xbf16>, vector<32x128xf32> -> vector<32x128xf32>
    %7 = arith.addf %3, %6 : vector<32x128xf32>
    %c0_6 = arith.constant 0 : index
    %c0_7 = arith.constant 0 : index
    %8 = vector.load %arg7[%c0_6, %c0_7] : memref<32x128xf32, #tpu.memory_space<vmem>>, vector<32x128xf32>
    tpu.vector_store %arg7[%c0_6, %c0_7], %7 {strides = array<i32>} : memref<32x128xf32, #tpu.memory_space<vmem>>, vector<32x128xf32>,
    %c0_i32_8 = arith.constant 0 : i32
    %9 = arith.cmpi eq, %arg2, %c0_i32_8 : i32
    %10 = arith.extui %9 : i1 to i32
    %c0_i32_9 = arith.constant 0 : i32
    %11 = arith.cmpi ne, %10, %c0_i32_9 : i32
    scf.if %11 {
      %c0_10 = arith.constant 0 : index
      %c0_11 = arith.constant 0 : index
      %12 = vector.load %arg7[%c0_10, %c0_11] : memref<32x128xf32, #tpu.memory_space<vmem>>, vector<32x128xf32>
      %c0_12 = arith.constant 0 : index
      %c0_13 = arith.constant 0 : index
      %13 = vector.load %arg5[%c0_12, %c0_13] : memref<1x128xf32, #tpu.memory_space<vmem>>, vector<1x128xf32>
      %14 = vector.broadcast %13 : vector<1x128xf32> to vector<32x128xf32>
      %15 = arith.addf %12, %14 : vector<32x128xf32>
      %c0_14 = arith.constant 0 : index
      %c0_15 = arith.constant 0 : index
      %16 = vector.load %arg6[%c0_14, %c0_15] : memref<32x128xf32, #tpu.memory_space<vmem>>, vector<32x128xf32>
      tpu.vector_store %arg6[%c0_14, %c0_15], %15 {strides = array<i32>} : memref<32x128xf32, #tpu.memory_space<vmem>>, vector<32x128xf32>,
    } else {
    }
    return
  }
  func.func @transform_0(%arg0: i32, %arg1: i32, %arg2: i32) -> (i32, i32) {
    %c0_i32 = arith.constant 0 : i32
    return %arg0, %arg2 : i32, i32
  }
  func.func @transform_1(%arg0: i32, %arg1: i32, %arg2: i32) -> (i32, i32) {
    %c0_i32 = arith.constant 0 : i32
    return %arg2, %arg1 : i32, i32
  }
  func.func @transform_2(%arg0: i32, %arg1: i32, %arg2: i32) -> (i32, i32) {
    %c0_i32 = arith.constant 0 : i32
    %c0_i32_0 = arith.constant 0 : i32
    return %c0_i32, %arg1 : i32, i32
  }
  func.func @transform_3(%arg0: i32, %arg1: i32, %arg2: i32) -> (i32, i32) {
    %c0_i32 = arith.constant 0 : i32
    return %arg0, %arg1 : i32, i32
  }
}

module attributes {stable_mosaic.version = 11 : i64} {
  func.func @_inorm_kernel(%arg0: i32, %arg1: memref<64x16xf32, #tpu.memory_space<vmem>>, %arg2: memref<64x16xf32, #tpu.memory_space<vmem>>) attributes {dimension_semantics = [#tpu.dimension_semantics<parallel>], iteration_bounds = array<i64: 1>, scalar_prefetch = 0 : i64, scratch_operands = 0 : i64, tpu.core_type = #tpu.core_type<tc>, window_params = [{transform_indices = @transform_0, window_bounds = array<i64: 64, 16>}, {transform_indices = @transform_1, window_bounds = array<i64: 64, 16>}]} {
    %c0 = arith.constant 0 : index
    %c0_0 = arith.constant 0 : index
    %0 = vector.load %arg1[%c0, %c0_0] : memref<64x16xf32, #tpu.memory_space<vmem>>, vector<64x16xf32>
    %cst = arith.constant dense<0.000000e+00> : vector<64xf32>
    %1 = vector.multi_reduction <add>, %0, %cst [1] : vector<64x16xf32> to vector<64xf32>
    %2 = vector.shape_cast %1 : vector<64xf32> to vector<64x1xf32>
    %cst_1 = arith.constant 1.600000e+01 : f32
    %3 = vector.broadcast %cst_1 : f32 to vector<64x1xf32>
    %4 = arith.divf %2, %3 : vector<64x1xf32>
    %5 = vector.broadcast %4 : vector<64x1xf32> to vector<64x16xf32>
    %6 = arith.subf %0, %5 : vector<64x16xf32>
    %7 = arith.mulf %6, %6 : vector<64x16xf32>
    %cst_2 = arith.constant dense<0.000000e+00> : vector<64xf32>
    %8 = vector.multi_reduction <add>, %7, %cst_2 [1] : vector<64x16xf32> to vector<64xf32>
    %9 = vector.shape_cast %8 : vector<64xf32> to vector<64x1xf32>
    %cst_3 = arith.constant 1.600000e+01 : f32
    %10 = vector.broadcast %cst_3 : f32 to vector<64x1xf32>
    %11 = arith.divf %9, %10 : vector<64x1xf32>
    %12 = vector.broadcast %4 : vector<64x1xf32> to vector<64x16xf32>
    %13 = arith.subf %0, %12 : vector<64x16xf32>
    %cst_4 = arith.constant 9.99999974E-6 : f32
    %14 = vector.broadcast %cst_4 : f32 to vector<64x1xf32>
    %15 = arith.addf %11, %14 : vector<64x1xf32>
    %16 = math.rsqrt %15 : vector<64x1xf32>
    %17 = vector.broadcast %16 : vector<64x1xf32> to vector<64x16xf32>
    %18 = arith.mulf %13, %17 : vector<64x16xf32>
    %cst_5 = arith.constant 0.000000e+00 : f32
    %19 = vector.broadcast %cst_5 : f32 to vector<64x16xf32>
    %20 = arith.maximumf %18, %19 : vector<64x16xf32>
    %c0_6 = arith.constant 0 : index
    %c0_7 = arith.constant 0 : index
    %21 = vector.load %arg2[%c0_6, %c0_7] : memref<64x16xf32, #tpu.memory_space<vmem>>, vector<64x16xf32>
    tpu.vector_store %arg2[%c0_6, %c0_7], %20 {strides = array<i32>} : memref<64x16xf32, #tpu.memory_space<vmem>>, vector<64x16xf32>,
    return
  }
  func.func @transform_0(%arg0: i32) -> (i32, i32) {
    %c0_i32 = arith.constant 0 : i32
    %c0_i32_0 = arith.constant 0 : i32
    return %arg0, %c0_i32 : i32, i32
  }
  func.func @transform_1(%arg0: i32) -> (i32, i32) {
    %c0_i32 = arith.constant 0 : i32
    %c0_i32_0 = arith.constant 0 : i32
    return %arg0, %c0_i32 : i32, i32
  }
}

module attributes {stable_mosaic.version = 11 : i64} {
  func.func @_matmul_kernel(%arg0: i32, %arg1: i32, %arg2: i32, %arg3: memref<32x288xbf16, #tpu.memory_space<vmem>>, %arg4: memref<288x128xbf16, #tpu.memory_space<vmem>>, %arg5: memref<1x128xf32, #tpu.memory_space<vmem>>, %arg6: memref<32x128xf32, #tpu.memory_space<vmem>>, %arg7: memref<32x128xf32, #tpu.memory_space<vmem>>) attributes {dimension_semantics = [#tpu.dimension_semantics<parallel>, #tpu.dimension_semantics<parallel>, #tpu.dimension_semantics<arbitrary>], iteration_bounds = array<i64: 1, 1, 1>, scalar_prefetch = 0 : i64, scratch_operands = 1 : i64, tpu.core_type = #tpu.core_type<tc>, window_params = [{transform_indices = @transform_0, window_bounds = array<i64: 32, 288>}, {transform_indices = @transform_1, window_bounds = array<i64: 288, 128>}, {transform_indices = @transform_2, window_bounds = array<i64: 1, 128>}, {transform_indices = @transform_3, window_bounds = array<i64: 32, 128>}]} {
    %c0_i32 = arith.constant 0 : i32
    %0 = arith.cmpi eq, %arg2, %c0_i32 : i32
    %1 = arith.extui %0 : i1 to i32
    %c0_i32_0 = arith.constant 0 : i32
    %2 = arith.cmpi ne, %1, %c0_i32_0 : i32
    scf.if %2 {
      %cst_10 = arith.constant 0.000000e+00 : f32
      %12 = vector.broadcast %cst_10 : f32 to vector<32x128xf32>
      %c0_11 = arith.constant 0 : index
      %c0_12 = arith.constant 0 : index
      %13 = vector.load %arg7[%c0_11, %c0_12] : memref<32x128xf32, #tpu.memory_space<vmem>>, vector<32x128xf32>
      tpu.vector_store %arg7[%c0_11, %c0_12], %12 {strides = array<i32>} : memref<32x128xf32, #tpu.memory_space<vmem>>, vector<32x128xf32>,
    } else {
    }
    %c0 = arith.constant 0 : index
    %c0_1 = arith.constant 0 : index
    %3 = vector.load %arg7[%c0, %c0_1] : memref<32x128xf32, #tpu.memory_space<vmem>>, vector<32x128xf32>
    %c0_2 = arith.constant 0 : index
    %c0_3 = arith.constant 0 : index
    %4 = vector.load %arg3[%c0_2, %c0_3] : memref<32x288xbf16, #tpu.memory_space<vmem>>, vector<32x288xbf16>
    %c0_4 = arith.constant 0 : index
    %c0_5 = arith.constant 0 : index
    %5 = vector.load %arg4[%c0_4, %c0_5] : memref<288x128xbf16, #tpu.memory_space<vmem>>, vector<288x128xbf16>
    %cst = arith.constant dense<0.000000e+00> : vector<32x128xf32>
    %6 = tpu.matmul %4, %5, %cst {dimension_numbers = #tpu.dot_dimension_numbers<[1], [0], [0], [1], [0, 0, 1, 1], [], []>} : vector<32x288xbf16>, vector<288x128xbf16>, vector<32x128xf32> -> vector<32x128xf32>
    %7 = arith.addf %3, %6 : vector<32x128xf32>
    %c0_6 = arith.constant 0 : index
    %c0_7 = arith.constant 0 : index
    %8 = vector.load %arg7[%c0_6, %c0_7] : memref<32x128xf32, #tpu.memory_space<vmem>>, vector<32x128xf32>
    tpu.vector_store %arg7[%c0_6, %c0_7], %7 {strides = array<i32>} : memref<32x128xf32, #tpu.memory_space<vmem>>, vector<32x128xf32>,
    %c0_i32_8 = arith.constant 0 : i32
    %9 = arith.cmpi eq, %arg2, %c0_i32_8 : i32
    %10 = arith.extui %9 : i1 to i32
    %c0_i32_9 = arith.constant 0 : i32
    %11 = arith.cmpi ne, %10, %c0_i32_9 : i32
    scf.if %11 {
      %c0_10 = arith.constant 0 : index
      %c0_11 = arith.constant 0 : index
      %12 = vector.load %arg7[%c0_10, %c0_11] : memref<32x128xf32, #tpu.memory_space<vmem>>, vector<32x128xf32>
      %c0_12 = arith.constant 0 : index
      %c0_13 = arith.constant 0 : index
      %13 = vector.load %arg5[%c0_12, %c0_13] : memref<1x128xf32, #tpu.memory_space<vmem>>, vector<1x128xf32>
      %14 = vector.broadcast %13 : vector<1x128xf32> to vector<32x128xf32>
      %15 = arith.addf %12, %14 : vector<32x128xf32>
      %c0_14 = arith.constant 0 : index
      %c0_15 = arith.constant 0 : index
      %16 = vector.load %arg6[%c0_14, %c0_15] : memref<32x128xf32, #tpu.memory_space<vmem>>, vector<32x128xf32>
      tpu.vector_store %arg6[%c0_14, %c0_15], %15 {strides = array<i32>} : memref<32x128xf32, #tpu.memory_space<vmem>>, vector<32x128xf32>,
    } else {
    }
    return
  }
  func.func @transform_0(%arg0: i32, %arg1: i32, %arg2: i32) -> (i32, i32) {
    %c0_i32 = arith.constant 0 : i32
    return %arg0, %arg2 : i32, i32
  }
  func.func @transform_1(%arg0: i32, %arg1: i32, %arg2: i32) -> (i32, i32) {
    %c0_i32 = arith.constant 0 : i32
    return %arg2, %arg1 : i32, i32
  }
  func.func @transform_2(%arg0: i32, %arg1: i32, %arg2: i32) -> (i32, i32) {
    %c0_i32 = arith.constant 0 : i32
    %c0_i32_0 = arith.constant 0 : i32
    return %c0_i32, %arg1 : i32, i32
  }
  func.func @transform_3(%arg0: i32, %arg1: i32, %arg2: i32) -> (i32, i32) {
    %c0_i32 = arith.constant 0 : i32
    return %arg0, %arg1 : i32, i32
  }
}

module attributes {stable_mosaic.version = 11 : i64} {
  func.func @_inorm_kernel(%arg0: i32, %arg1: memref<64x16xf32, #tpu.memory_space<vmem>>, %arg2: memref<64x16xf32, #tpu.memory_space<vmem>>, %arg3: memref<64x16xf32, #tpu.memory_space<vmem>>) attributes {dimension_semantics = [#tpu.dimension_semantics<parallel>], iteration_bounds = array<i64: 1>, scalar_prefetch = 0 : i64, scratch_operands = 0 : i64, tpu.core_type = #tpu.core_type<tc>, window_params = [{transform_indices = @transform_0, window_bounds = array<i64: 64, 16>}, {transform_indices = @transform_1, window_bounds = array<i64: 64, 16>}, {transform_indices = @transform_2, window_bounds = array<i64: 64, 16>}]} {
    %c0 = arith.constant 0 : index
    %c0_0 = arith.constant 0 : index
    %0 = vector.load %arg1[%c0, %c0_0] : memref<64x16xf32, #tpu.memory_space<vmem>>, vector<64x16xf32>
    %cst = arith.constant dense<0.000000e+00> : vector<64xf32>
    %1 = vector.multi_reduction <add>, %0, %cst [1] : vector<64x16xf32> to vector<64xf32>
    %2 = vector.shape_cast %1 : vector<64xf32> to vector<64x1xf32>
    %cst_1 = arith.constant 1.600000e+01 : f32
    %3 = vector.broadcast %cst_1 : f32 to vector<64x1xf32>
    %4 = arith.divf %2, %3 : vector<64x1xf32>
    %5 = vector.broadcast %4 : vector<64x1xf32> to vector<64x16xf32>
    %6 = arith.subf %0, %5 : vector<64x16xf32>
    %7 = arith.mulf %6, %6 : vector<64x16xf32>
    %cst_2 = arith.constant dense<0.000000e+00> : vector<64xf32>
    %8 = vector.multi_reduction <add>, %7, %cst_2 [1] : vector<64x16xf32> to vector<64xf32>
    %9 = vector.shape_cast %8 : vector<64xf32> to vector<64x1xf32>
    %cst_3 = arith.constant 1.600000e+01 : f32
    %10 = vector.broadcast %cst_3 : f32 to vector<64x1xf32>
    %11 = arith.divf %9, %10 : vector<64x1xf32>
    %12 = vector.broadcast %4 : vector<64x1xf32> to vector<64x16xf32>
    %13 = arith.subf %0, %12 : vector<64x16xf32>
    %cst_4 = arith.constant 9.99999974E-6 : f32
    %14 = vector.broadcast %cst_4 : f32 to vector<64x1xf32>
    %15 = arith.addf %11, %14 : vector<64x1xf32>
    %16 = math.rsqrt %15 : vector<64x1xf32>
    %17 = vector.broadcast %16 : vector<64x1xf32> to vector<64x16xf32>
    %18 = arith.mulf %13, %17 : vector<64x16xf32>
    %c0_5 = arith.constant 0 : index
    %c0_6 = arith.constant 0 : index
    %19 = vector.load %arg2[%c0_5, %c0_6] : memref<64x16xf32, #tpu.memory_space<vmem>>, vector<64x16xf32>
    %20 = arith.addf %18, %19 : vector<64x16xf32>
    %c0_7 = arith.constant 0 : index
    %c0_8 = arith.constant 0 : index
    %21 = vector.load %arg3[%c0_7, %c0_8] : memref<64x16xf32, #tpu.memory_space<vmem>>, vector<64x16xf32>
    tpu.vector_store %arg3[%c0_7, %c0_8], %20 {strides = array<i32>} : memref<64x16xf32, #tpu.memory_space<vmem>>, vector<64x16xf32>,
    return
  }
  func.func @transform_0(%arg0: i32) -> (i32, i32) {
    %c0_i32 = arith.constant 0 : i32
    %c0_i32_0 = arith.constant 0 : i32
    return %arg0, %c0_i32 : i32, i32
  }
  func.func @transform_1(%arg0: i32) -> (i32, i32) {
    %c0_i32 = arith.constant 0 : i32
    %c0_i32_0 = arith.constant 0 : i32
    return %arg0, %c0_i32 : i32, i32
  }
  func.func @transform_2(%arg0: i32) -> (i32, i32) {
    %c0_i32 = arith.constant 0 : i32
    %c0_i32_0 = arith.constant 0 : i32
    return %arg0, %c0_i32 : i32, i32
  }
}

module attributes {stable_mosaic.version = 11 : i64} {
  func.func @_matmul_kernel(%arg0: i32, %arg1: i32, %arg2: i32, %arg3: memref<32x288xbf16, #tpu.memory_space<vmem>>, %arg4: memref<288x128xbf16, #tpu.memory_space<vmem>>, %arg5: memref<1x128xf32, #tpu.memory_space<vmem>>, %arg6: memref<32x128xf32, #tpu.memory_space<vmem>>, %arg7: memref<32x128xf32, #tpu.memory_space<vmem>>) attributes {dimension_semantics = [#tpu.dimension_semantics<parallel>, #tpu.dimension_semantics<parallel>, #tpu.dimension_semantics<arbitrary>], iteration_bounds = array<i64: 1, 1, 1>, scalar_prefetch = 0 : i64, scratch_operands = 1 : i64, tpu.core_type = #tpu.core_type<tc>, window_params = [{transform_indices = @transform_0, window_bounds = array<i64: 32, 288>}, {transform_indices = @transform_1, window_bounds = array<i64: 288, 128>}, {transform_indices = @transform_2, window_bounds = array<i64: 1, 128>}, {transform_indices = @transform_3, window_bounds = array<i64: 32, 128>}]} {
    %c0_i32 = arith.constant 0 : i32
    %0 = arith.cmpi eq, %arg2, %c0_i32 : i32
    %1 = arith.extui %0 : i1 to i32
    %c0_i32_0 = arith.constant 0 : i32
    %2 = arith.cmpi ne, %1, %c0_i32_0 : i32
    scf.if %2 {
      %cst_10 = arith.constant 0.000000e+00 : f32
      %12 = vector.broadcast %cst_10 : f32 to vector<32x128xf32>
      %c0_11 = arith.constant 0 : index
      %c0_12 = arith.constant 0 : index
      %13 = vector.load %arg7[%c0_11, %c0_12] : memref<32x128xf32, #tpu.memory_space<vmem>>, vector<32x128xf32>
      tpu.vector_store %arg7[%c0_11, %c0_12], %12 {strides = array<i32>} : memref<32x128xf32, #tpu.memory_space<vmem>>, vector<32x128xf32>,
    } else {
    }
    %c0 = arith.constant 0 : index
    %c0_1 = arith.constant 0 : index
    %3 = vector.load %arg7[%c0, %c0_1] : memref<32x128xf32, #tpu.memory_space<vmem>>, vector<32x128xf32>
    %c0_2 = arith.constant 0 : index
    %c0_3 = arith.constant 0 : index
    %4 = vector.load %arg3[%c0_2, %c0_3] : memref<32x288xbf16, #tpu.memory_space<vmem>>, vector<32x288xbf16>
    %c0_4 = arith.constant 0 : index
    %c0_5 = arith.constant 0 : index
    %5 = vector.load %arg4[%c0_4, %c0_5] : memref<288x128xbf16, #tpu.memory_space<vmem>>, vector<288x128xbf16>
    %cst = arith.constant dense<0.000000e+00> : vector<32x128xf32>
    %6 = tpu.matmul %4, %5, %cst {dimension_numbers = #tpu.dot_dimension_numbers<[1], [0], [0], [1], [0, 0, 1, 1], [], []>} : vector<32x288xbf16>, vector<288x128xbf16>, vector<32x128xf32> -> vector<32x128xf32>
    %7 = arith.addf %3, %6 : vector<32x128xf32>
    %c0_6 = arith.constant 0 : index
    %c0_7 = arith.constant 0 : index
    %8 = vector.load %arg7[%c0_6, %c0_7] : memref<32x128xf32, #tpu.memory_space<vmem>>, vector<32x128xf32>
    tpu.vector_store %arg7[%c0_6, %c0_7], %7 {strides = array<i32>} : memref<32x128xf32, #tpu.memory_space<vmem>>, vector<32x128xf32>,
    %c0_i32_8 = arith.constant 0 : i32
    %9 = arith.cmpi eq, %arg2, %c0_i32_8 : i32
    %10 = arith.extui %9 : i1 to i32
    %c0_i32_9 = arith.constant 0 : i32
    %11 = arith.cmpi ne, %10, %c0_i32_9 : i32
    scf.if %11 {
      %c0_10 = arith.constant 0 : index
      %c0_11 = arith.constant 0 : index
      %12 = vector.load %arg7[%c0_10, %c0_11] : memref<32x128xf32, #tpu.memory_space<vmem>>, vector<32x128xf32>
      %c0_12 = arith.constant 0 : index
      %c0_13 = arith.constant 0 : index
      %13 = vector.load %arg5[%c0_12, %c0_13] : memref<1x128xf32, #tpu.memory_space<vmem>>, vector<1x128xf32>
      %14 = vector.broadcast %13 : vector<1x128xf32> to vector<32x128xf32>
      %15 = arith.addf %12, %14 : vector<32x128xf32>
      %c0_14 = arith.constant 0 : index
      %c0_15 = arith.constant 0 : index
      %16 = vector.load %arg6[%c0_14, %c0_15] : memref<32x128xf32, #tpu.memory_space<vmem>>, vector<32x128xf32>
      tpu.vector_store %arg6[%c0_14, %c0_15], %15 {strides = array<i32>} : memref<32x128xf32, #tpu.memory_space<vmem>>, vector<32x128xf32>,
    } else {
    }
    return
  }
  func.func @transform_0(%arg0: i32, %arg1: i32, %arg2: i32) -> (i32, i32) {
    %c0_i32 = arith.constant 0 : i32
    return %arg0, %arg2 : i32, i32
  }
  func.func @transform_1(%arg0: i32, %arg1: i32, %arg2: i32) -> (i32, i32) {
    %c0_i32 = arith.constant 0 : i32
    return %arg2, %arg1 : i32, i32
  }
  func.func @transform_2(%arg0: i32, %arg1: i32, %arg2: i32) -> (i32, i32) {
    %c0_i32 = arith.constant 0 : i32
    %c0_i32_0 = arith.constant 0 : i32
    return %c0_i32, %arg1 : i32, i32
  }
  func.func @transform_3(%arg0: i32, %arg1: i32, %arg2: i32) -> (i32, i32) {
    %c0_i32 = arith.constant 0 : i32
    return %arg0, %arg1 : i32, i32
  }
}

module attributes {stable_mosaic.version = 11 : i64} {
  func.func @_inorm_kernel(%arg0: i32, %arg1: memref<32x64xf32, #tpu.memory_space<vmem>>, %arg2: memref<32x64xf32, #tpu.memory_space<vmem>>) attributes {dimension_semantics = [#tpu.dimension_semantics<parallel>], iteration_bounds = array<i64: 1>, scalar_prefetch = 0 : i64, scratch_operands = 0 : i64, tpu.core_type = #tpu.core_type<tc>, window_params = [{transform_indices = @transform_0, window_bounds = array<i64: 32, 64>}, {transform_indices = @transform_1, window_bounds = array<i64: 32, 64>}]} {
    %c0 = arith.constant 0 : index
    %c0_0 = arith.constant 0 : index
    %0 = vector.load %arg1[%c0, %c0_0] : memref<32x64xf32, #tpu.memory_space<vmem>>, vector<32x64xf32>
    %cst = arith.constant dense<0.000000e+00> : vector<32xf32>
    %1 = vector.multi_reduction <add>, %0, %cst [1] : vector<32x64xf32> to vector<32xf32>
    %2 = vector.shape_cast %1 : vector<32xf32> to vector<32x1xf32>
    %cst_1 = arith.constant 6.400000e+01 : f32
    %3 = vector.broadcast %cst_1 : f32 to vector<32x1xf32>
    %4 = arith.divf %2, %3 : vector<32x1xf32>
    %5 = vector.broadcast %4 : vector<32x1xf32> to vector<32x64xf32>
    %6 = arith.subf %0, %5 : vector<32x64xf32>
    %7 = arith.mulf %6, %6 : vector<32x64xf32>
    %cst_2 = arith.constant dense<0.000000e+00> : vector<32xf32>
    %8 = vector.multi_reduction <add>, %7, %cst_2 [1] : vector<32x64xf32> to vector<32xf32>
    %9 = vector.shape_cast %8 : vector<32xf32> to vector<32x1xf32>
    %cst_3 = arith.constant 6.400000e+01 : f32
    %10 = vector.broadcast %cst_3 : f32 to vector<32x1xf32>
    %11 = arith.divf %9, %10 : vector<32x1xf32>
    %12 = vector.broadcast %4 : vector<32x1xf32> to vector<32x64xf32>
    %13 = arith.subf %0, %12 : vector<32x64xf32>
    %cst_4 = arith.constant 9.99999974E-6 : f32
    %14 = vector.broadcast %cst_4 : f32 to vector<32x1xf32>
    %15 = arith.addf %11, %14 : vector<32x1xf32>
    %16 = math.rsqrt %15 : vector<32x1xf32>
    %17 = vector.broadcast %16 : vector<32x1xf32> to vector<32x64xf32>
    %18 = arith.mulf %13, %17 : vector<32x64xf32>
    %cst_5 = arith.constant 0.000000e+00 : f32
    %19 = vector.broadcast %cst_5 : f32 to vector<32x64xf32>
    %20 = arith.maximumf %18, %19 : vector<32x64xf32>
    %c0_6 = arith.constant 0 : index
    %c0_7 = arith.constant 0 : index
    %21 = vector.load %arg2[%c0_6, %c0_7] : memref<32x64xf32, #tpu.memory_space<vmem>>, vector<32x64xf32>
    tpu.vector_store %arg2[%c0_6, %c0_7], %20 {strides = array<i32>} : memref<32x64xf32, #tpu.memory_space<vmem>>, vector<32x64xf32>,
    return
  }
  func.func @transform_0(%arg0: i32) -> (i32, i32) {
    %c0_i32 = arith.constant 0 : i32
    %c0_i32_0 = arith.constant 0 : i32
    return %arg0, %c0_i32 : i32, i32
  }
  func.func @transform_1(%arg0: i32) -> (i32, i32) {
    %c0_i32 = arith.constant 0 : i32
    %c0_i32_0 = arith.constant 0 : i32
    return %arg0, %c0_i32 : i32, i32
  }
}

module attributes {stable_mosaic.version = 11 : i64} {
  func.func @_matmul_kernel(%arg0: i32, %arg1: i32, %arg2: i32, %arg3: memref<128x144xbf16, #tpu.memory_space<vmem>>, %arg4: memref<144x128xbf16, #tpu.memory_space<vmem>>, %arg5: memref<1x128xf32, #tpu.memory_space<vmem>>, %arg6: memref<128x128xf32, #tpu.memory_space<vmem>>, %arg7: memref<128x128xf32, #tpu.memory_space<vmem>>) attributes {dimension_semantics = [#tpu.dimension_semantics<parallel>, #tpu.dimension_semantics<parallel>, #tpu.dimension_semantics<arbitrary>], iteration_bounds = array<i64: 1, 1, 1>, scalar_prefetch = 0 : i64, scratch_operands = 1 : i64, tpu.core_type = #tpu.core_type<tc>, window_params = [{transform_indices = @transform_0, window_bounds = array<i64: 128, 144>}, {transform_indices = @transform_1, window_bounds = array<i64: 144, 128>}, {transform_indices = @transform_2, window_bounds = array<i64: 1, 128>}, {transform_indices = @transform_3, window_bounds = array<i64: 128, 128>}]} {
    %c0_i32 = arith.constant 0 : i32
    %0 = arith.cmpi eq, %arg2, %c0_i32 : i32
    %1 = arith.extui %0 : i1 to i32
    %c0_i32_0 = arith.constant 0 : i32
    %2 = arith.cmpi ne, %1, %c0_i32_0 : i32
    scf.if %2 {
      %cst_10 = arith.constant 0.000000e+00 : f32
      %12 = vector.broadcast %cst_10 : f32 to vector<128x128xf32>
      %c0_11 = arith.constant 0 : index
      %c0_12 = arith.constant 0 : index
      %13 = vector.load %arg7[%c0_11, %c0_12] : memref<128x128xf32, #tpu.memory_space<vmem>>, vector<128x128xf32>
      tpu.vector_store %arg7[%c0_11, %c0_12], %12 {strides = array<i32>} : memref<128x128xf32, #tpu.memory_space<vmem>>, vector<128x128xf32>,
    } else {
    }
    %c0 = arith.constant 0 : index
    %c0_1 = arith.constant 0 : index
    %3 = vector.load %arg7[%c0, %c0_1] : memref<128x128xf32, #tpu.memory_space<vmem>>, vector<128x128xf32>
    %c0_2 = arith.constant 0 : index
    %c0_3 = arith.constant 0 : index
    %4 = vector.load %arg3[%c0_2, %c0_3] : memref<128x144xbf16, #tpu.memory_space<vmem>>, vector<128x144xbf16>
    %c0_4 = arith.constant 0 : index
    %c0_5 = arith.constant 0 : index
    %5 = vector.load %arg4[%c0_4, %c0_5] : memref<144x128xbf16, #tpu.memory_space<vmem>>, vector<144x128xbf16>
    %cst = arith.constant dense<0.000000e+00> : vector<128x128xf32>
    %6 = tpu.matmul %4, %5, %cst {dimension_numbers = #tpu.dot_dimension_numbers<[1], [0], [0], [1], [0, 0, 1, 1], [], []>} : vector<128x144xbf16>, vector<144x128xbf16>, vector<128x128xf32> -> vector<128x128xf32>
    %7 = arith.addf %3, %6 : vector<128x128xf32>
    %c0_6 = arith.constant 0 : index
    %c0_7 = arith.constant 0 : index
    %8 = vector.load %arg7[%c0_6, %c0_7] : memref<128x128xf32, #tpu.memory_space<vmem>>, vector<128x128xf32>
    tpu.vector_store %arg7[%c0_6, %c0_7], %7 {strides = array<i32>} : memref<128x128xf32, #tpu.memory_space<vmem>>, vector<128x128xf32>,
    %c0_i32_8 = arith.constant 0 : i32
    %9 = arith.cmpi eq, %arg2, %c0_i32_8 : i32
    %10 = arith.extui %9 : i1 to i32
    %c0_i32_9 = arith.constant 0 : i32
    %11 = arith.cmpi ne, %10, %c0_i32_9 : i32
    scf.if %11 {
      %c0_10 = arith.constant 0 : index
      %c0_11 = arith.constant 0 : index
      %12 = vector.load %arg7[%c0_10, %c0_11] : memref<128x128xf32, #tpu.memory_space<vmem>>, vector<128x128xf32>
      %c0_12 = arith.constant 0 : index
      %c0_13 = arith.constant 0 : index
      %13 = vector.load %arg5[%c0_12, %c0_13] : memref<1x128xf32, #tpu.memory_space<vmem>>, vector<1x128xf32>
      %14 = vector.broadcast %13 : vector<1x128xf32> to vector<128x128xf32>
      %15 = arith.addf %12, %14 : vector<128x128xf32>
      %c0_14 = arith.constant 0 : index
      %c0_15 = arith.constant 0 : index
      %16 = vector.load %arg6[%c0_14, %c0_15] : memref<128x128xf32, #tpu.memory_space<vmem>>, vector<128x128xf32>
      tpu.vector_store %arg6[%c0_14, %c0_15], %15 {strides = array<i32>} : memref<128x128xf32, #tpu.memory_space<vmem>>, vector<128x128xf32>,
    } else {
    }
    return
  }
  func.func @transform_0(%arg0: i32, %arg1: i32, %arg2: i32) -> (i32, i32) {
    %c0_i32 = arith.constant 0 : i32
    return %arg0, %arg2 : i32, i32
  }
  func.func @transform_1(%arg0: i32, %arg1: i32, %arg2: i32) -> (i32, i32) {
    %c0_i32 = arith.constant 0 : i32
    return %arg2, %arg1 : i32, i32
  }
  func.func @transform_2(%arg0: i32, %arg1: i32, %arg2: i32) -> (i32, i32) {
    %c0_i32 = arith.constant 0 : i32
    %c0_i32_0 = arith.constant 0 : i32
    return %c0_i32, %arg1 : i32, i32
  }
  func.func @transform_3(%arg0: i32, %arg1: i32, %arg2: i32) -> (i32, i32) {
    %c0_i32 = arith.constant 0 : i32
    return %arg0, %arg1 : i32, i32
  }
}

module attributes {stable_mosaic.version = 11 : i64} {
  func.func @_matmul_kernel(%arg0: i32, %arg1: i32, %arg2: i32, %arg3: memref<256x392xbf16, #tpu.memory_space<vmem>>, %arg4: memref<392x128xbf16, #tpu.memory_space<vmem>>, %arg5: memref<1x128xf32, #tpu.memory_space<vmem>>, %arg6: memref<256x128xf32, #tpu.memory_space<vmem>>, %arg7: memref<256x128xf32, #tpu.memory_space<vmem>>) attributes {dimension_semantics = [#tpu.dimension_semantics<parallel>, #tpu.dimension_semantics<parallel>, #tpu.dimension_semantics<arbitrary>], iteration_bounds = array<i64: 2, 1, 1>, scalar_prefetch = 0 : i64, scratch_operands = 1 : i64, tpu.core_type = #tpu.core_type<tc>, window_params = [{transform_indices = @transform_0, window_bounds = array<i64: 256, 392>}, {transform_indices = @transform_1, window_bounds = array<i64: 392, 128>}, {transform_indices = @transform_2, window_bounds = array<i64: 1, 128>}, {transform_indices = @transform_3, window_bounds = array<i64: 256, 128>}]} {
    %c0_i32 = arith.constant 0 : i32
    %0 = arith.cmpi eq, %arg2, %c0_i32 : i32
    %1 = arith.extui %0 : i1 to i32
    %c0_i32_0 = arith.constant 0 : i32
    %2 = arith.cmpi ne, %1, %c0_i32_0 : i32
    scf.if %2 {
      %cst_10 = arith.constant 0.000000e+00 : f32
      %12 = vector.broadcast %cst_10 : f32 to vector<256x128xf32>
      %c0_11 = arith.constant 0 : index
      %c0_12 = arith.constant 0 : index
      %13 = vector.load %arg7[%c0_11, %c0_12] : memref<256x128xf32, #tpu.memory_space<vmem>>, vector<256x128xf32>
      tpu.vector_store %arg7[%c0_11, %c0_12], %12 {strides = array<i32>} : memref<256x128xf32, #tpu.memory_space<vmem>>, vector<256x128xf32>,
    } else {
    }
    %c0 = arith.constant 0 : index
    %c0_1 = arith.constant 0 : index
    %3 = vector.load %arg7[%c0, %c0_1] : memref<256x128xf32, #tpu.memory_space<vmem>>, vector<256x128xf32>
    %c0_2 = arith.constant 0 : index
    %c0_3 = arith.constant 0 : index
    %4 = vector.load %arg3[%c0_2, %c0_3] : memref<256x392xbf16, #tpu.memory_space<vmem>>, vector<256x392xbf16>
    %c0_4 = arith.constant 0 : index
    %c0_5 = arith.constant 0 : index
    %5 = vector.load %arg4[%c0_4, %c0_5] : memref<392x128xbf16, #tpu.memory_space<vmem>>, vector<392x128xbf16>
    %cst = arith.constant dense<0.000000e+00> : vector<256x128xf32>
    %6 = tpu.matmul %4, %5, %cst {dimension_numbers = #tpu.dot_dimension_numbers<[1], [0], [0], [1], [0, 0, 1, 1], [], []>} : vector<256x392xbf16>, vector<392x128xbf16>, vector<256x128xf32> -> vector<256x128xf32>
    %7 = arith.addf %3, %6 : vector<256x128xf32>
    %c0_6 = arith.constant 0 : index
    %c0_7 = arith.constant 0 : index
    %8 = vector.load %arg7[%c0_6, %c0_7] : memref<256x128xf32, #tpu.memory_space<vmem>>, vector<256x128xf32>
    tpu.vector_store %arg7[%c0_6, %c0_7], %7 {strides = array<i32>} : memref<256x128xf32, #tpu.memory_space<vmem>>, vector<256x128xf32>,
    %c0_i32_8 = arith.constant 0 : i32
    %9 = arith.cmpi eq, %arg2, %c0_i32_8 : i32
    %10 = arith.extui %9 : i1 to i32
    %c0_i32_9 = arith.constant 0 : i32
    %11 = arith.cmpi ne, %10, %c0_i32_9 : i32
    scf.if %11 {
      %c0_10 = arith.constant 0 : index
      %c0_11 = arith.constant 0 : index
      %12 = vector.load %arg7[%c0_10, %c0_11] : memref<256x128xf32, #tpu.memory_space<vmem>>, vector<256x128xf32>
      %c0_12 = arith.constant 0 : index
      %c0_13 = arith.constant 0 : index
      %13 = vector.load %arg5[%c0_12, %c0_13] : memref<1x128xf32, #tpu.memory_space<vmem>>, vector<1x128xf32>
      %14 = vector.broadcast %13 : vector<1x128xf32> to vector<256x128xf32>
      %15 = arith.addf %12, %14 : vector<256x128xf32>
      %16 = math.tanh %15 : vector<256x128xf32>
      %c0_14 = arith.constant 0 : index
      %c0_15 = arith.constant 0 : index
      %17 = vector.load %arg6[%c0_14, %c0_15] : memref<256x128xf32, #tpu.memory_space<vmem>>, vector<256x128xf32>
      tpu.vector_store %arg6[%c0_14, %c0_15], %16 {strides = array<i32>} : memref<256x128xf32, #tpu.memory_space<vmem>>, vector<256x128xf32>,
    } else {
    }
    return
  }
  func.func @transform_0(%arg0: i32, %arg1: i32, %arg2: i32) -> (i32, i32) {
    %c0_i32 = arith.constant 0 : i32
    return %arg0, %arg2 : i32, i32
  }
  func.func @transform_1(%arg0: i32, %arg1: i32, %arg2: i32) -> (i32, i32) {
    %c0_i32 = arith.constant 0 : i32
    return %arg2, %arg1 : i32, i32
  }
  func.func @transform_2(%arg0: i32, %arg1: i32, %arg2: i32) -> (i32, i32) {
    %c0_i32 = arith.constant 0 : i32
    %c0_i32_0 = arith.constant 0 : i32
    return %c0_i32, %arg1 : i32, i32
  }
  func.func @transform_3(%arg0: i32, %arg1: i32, %arg2: i32) -> (i32, i32) {
    %c0_i32 = arith.constant 0 : i32
    return %arg0, %arg1 : i32, i32
  }
}

</mosaic_0001>

<bundles_post_ra>
// kernel: raune_net_forward.30
= control target key start
LH: loop header
LB: loop body
LE: loop exit
PB: predicated region body
PF: predicated region fallthrough
CT: control target
= control target key end

     0   :  { %v88_v6 = vmov 256.0   ;;  %s123_s0 = inlined_call_operand.vmem [shape: f32[16,256], index: 0, kind: input, shape index: {}]   ;;  %s124_s1 = inlined_call_operand.vmem [shape: f32[16,256], index: 1, kind: output, shape index: {}]  }
   0x1   :  { %v8_v0 = vld [vmem:[%s123_s0] sm:$0xff]  ;;  %v9_v1 = vld [vmem:[%s123_s0 + $0x8] sm:$0xff]  ;;  %v10_v3 = vld [vmem:[%s123_s0 + $0x10] sm:$0xff]  ;;  %82 = vrcp.f32 %v88_v6 }
   0x2   :  { %v12_v2 = vadd.f32 %v9_v1, %v8_v0  ;;  %v11_v4 = vld [vmem:[%s123_s0 + $0x18] sm:$0xff] }
   0x3   :  { %v15_v5 = vadd.f32 %v11_v4, %v10_v3 }
   0x4   :  { %13 = vadd.xlane.f32.xlu0 %v12_v2 }
   0x7   :  { %v83_v7 = vpop.eup %82 }
   0x8   :  { %v19_v8 = vmul.f32 256.0, %v83_v7  ;;  %vm23_vm0 = vweird.f32 %v83_v7 }
   0xa   :  { %v20_v9 = vsub.f32 1.0, %v19_v8 }
   0xc   :  { %16 = vadd.xlane.f32.xlu0 %v15_v5  ;;  %v21_v10 = vmul.f32 %v83_v7, %v20_v9 }
   0xe   :  { %v22_v11 = vadd.f32 %v83_v7, %v21_v10 }
  0x10   :  { %v24_v12 = vsel %vm23_vm0, %v83_v7, %v22_v11 }
  0x77   :  { %v14_v13 = vpop.xlane.xlu0 %13 }
  0x78   :  { %v25_v14 = vmul.f32 %v24_v12, %v14_v13 }
  0x7a   :  { %v27_v15 = vsub.f32 %v8_v0, %v25_v14  ;;  %v28_v16 = vsub.f32 %v9_v1, %v25_v14 }
  0x7c   :  { %v31_v17 = vmul.f32 %v27_v15, %v27_v15  ;;  %v32_v18 = vmul.f32 %v28_v16, %v28_v16 }
  0x7e   :  { %v35_v19 = vadd.f32 %v32_v18, %v31_v17 }
  0x7f   :  { %v17_v20 = vpop.xlane.xlu0 %16 }
  0x80   :  { %v26_v21 = vmul.f32 %v24_v12, %v17_v20  ;;  %36 = vadd.xlane.f32.xlu1 %v35_v19 }
  0x82   :  { %v29_v22 = vsub.f32 %v10_v3, %v26_v21  ;;  %v30_v23 = vsub.f32 %v11_v4, %v26_v21 }
  0x84   :  { %v33_v24 = vmul.f32 %v29_v22, %v29_v22  ;;  %v34_v25 = vmul.f32 %v30_v23, %v30_v23 }
  0x86   :  { %v38_v26 = vadd.f32 %v34_v25, %v33_v24 }
  0x88   :  { %39 = vadd.xlane.f32.xlu1 %v38_v26 }
  0xf3   :  { %v37_v27 = vpop.xlane.xlu1 %36 }
  0xf4   :  { %v41_v28 = vmul.f32 %v37_v27, %v24_v12 }
  0xf6   :  { %v43_v29 = vadd.f32 1e-05, %v41_v28 }
  0xf8   :  { %84 = vrsqrt.f32 %v43_v29  ;;  %vm51_vm2 = vweird.f32 %v43_v29 }
  0xfb   :  { %v40_v30 = vpop.xlane.xlu1 %39 }
  0xfc   :  { %v42_v31 = vmul.f32 %v40_v30, %v24_v12 }
  0xfe   :  { %v85_v32 = vpop.eup %84  ;;  %v44_v33 = vadd.f32 1e-05, %v42_v31 }
  0xff   :  { %v46_v34 = vmul.f32 %v85_v32, %v43_v29  ;;  %vm52_vm1 = vweird.f32 %v85_v32 }
 0x100   :  { %86 = vrsqrt.f32 %v44_v33  ;;  %vm53_vm3 = vmor %vm51_vm2, %vm52_vm1  ;;  %vm61_vm5 = vweird.f32 %v44_v33 }
 0x101   :  { %v47_v35 = vmul.f32 %v85_v32, %v46_v34 }
 0x103   :  { %v48_v36 = vmul.f32 0.5, %v47_v35 }
 0x105   :  { %v49_v37 = vsub.f32 1.5, %v48_v36 }
 0x106   :  { %v87_v38 = vpop.eup %86 }
 0x107   :  { %v50_v39 = vmul.f32 %v85_v32, %v49_v37  ;;  %v56_v40 = vmul.f32 %v87_v38, %v44_v33  ;;  %vm62_vm4 = vweird.f32 %v87_v38 }
 0x108   :  { %vm63_vm6 = vmor %vm61_vm5, %vm62_vm4 }
 0x109   :  { %v54_v41 = vsel %vm53_vm3, %v85_v32, %v50_v39  ;;  %v57_v42 = vmul.f32 %v87_v38, %v56_v40 }
 0x10a   :  { %v65_v43 = vmul.f32 %v54_v41, %v27_v15  ;;  %v66_v44 = vmul.f32 %v54_v41, %v28_v16 }
 0x10b   :  { %v58_v45 = vmul.f32 0.5, %v57_v42 }
 0x10c   :  { %v69_v46 = vmax.f32 %v65_v43, 0.0  ;;  %v70_v47 = vmax.f32 %v66_v44, 0.0 }
 0x10d   :  { %v59_v48 = vsub.f32 1.5, %v58_v45 }
 0x10e   :  { %73 = vst [vmem:[%s124_s1] sm:$0xff] %v69_v46 }
 0x10f   :  { %74 = vst [vmem:[%s124_s1 + $0x8] sm:$0xff] %v70_v47  ;;  %v60_v49 = vmul.f32 %v87_v38, %v59_v48 }
 0x111   :  { %v64_v50 = vsel %vm63_vm6, %v87_v38, %v60_v49 }
 0x112   :  { %v67_v51 = vmul.f32 %v64_v50, %v29_v22  ;;  %v68_v52 = vmul.f32 %v64_v50, %v30_v23 }
 0x114   :  { %v71_v53 = vmax.f32 %v67_v51, 0.0  ;;  %v72_v54 = vmax.f32 %v68_v52, 0.0 }
 0x116   :  { %75 = vst [vmem:[%s124_s1 + $0x10] sm:$0xff] %v71_v53 }
 0x117   :  { %76 = vst [vmem:[%s124_s1 + $0x18] sm:$0xff] %v72_v54 }

// kernel: raune_net_forward.29
= control target key start
LH: loop header
LB: loop body
LE: loop exit
PB: predicated region body
PF: predicated region fallthrough
CT: control target
= control target key end

     0   :  { %s1420_s12 = smov 0   ;;  %s1422_s13 = smov 0   ;;  %s1649_s0 = inlined_call_operand.vmem [shape: bf16[512,147], index: 0, kind: input, shape index: {}]   ;;  %s1650_s1 = inlined_call_operand.vmem [shape: bf16[147,8], index: 1, kind: input, shape index: {}]   ;;  %s1651_s2 = inlined_call_operand.vmem [shape: f32[1,8], index: 2, kind: input, shape index: {}]   ;;  %s1652_s3 = inlined_call_operand.vmem [shape: f32[512,8], index: 3, kind: output, shape index: {}]  }
   0x1   :  { %s1424_s14 = smov 0  }
   0x2 LB: > { %s32_s15 = sadd.s32 1, %s1393_s13  ;;  %p1109_p0 = scmp.ge.s32.totalorder %s1397_s14, 1  ;;  %s1397_s14 = sphi %s1424_s14, %s13_s14   ;;  %s1393_s13 = sphi %s1422_s13, %s1654_s13   ;;  %s1389_s12 = sphi %s1420_s12, %s1653_s12  }
   0x3   : > { %p34_p1 = scmp.ge.s32.totalorder %s32_s15, 2  ;;  %p191_p2 = scmp.lt.s32.totalorder %s1397_s14, 3 }
   0x5   : > { %s1656_s15 = smov (%p34_p1, %s32_s15), 0  ;;  %p192_p3 = pnand %p1109_p0, %p191_p2 }
   0x6   : > { %s1110_s20 = sshll.u32 (!%p192_p3), %s1389_s12, 5 }
   0x7   : > { %195 = sbr.rel (%p192_p3) target bundleno = 301 (0x12d), region = 32  ;;  %p236_p4 = scmp.lt.s32.totalorder (!%p192_p3), %s1110_s20, 63 }
   0xc   : > { %v1337_v0 = vld [vmem:[%s1650_s1 + $0x38] sm:$0xff]  ;;  %v386_v1 = vld [vmem:[%s1650_s1 + $0x48] sm:$0x3]  ;;  %vm637_vm0 = vcmask 1040384   ;;  %vm638_vm1 = vcmask 1041408   ;;  %v1336_v3 = vld [vmem:[%s1650_s1 + $0x30] sm:$0xff] }
   0xd   : > { %v568_v2 = vunpack.c.l.b16 %v386_v1  ;;  %644 = vmatpush.bf16.msra.mxu0 %v1337_v0  ;;  %1339 = vmatpush.bf16.msra.mxu2 %v1337_v0  ;;  %v1399_v4 = vmov 65535   ;;  %s1658_s20 = smov (!%p236_p4, %s1110_s20), 63  ;;  %v1335_v9 = vld [vmem:[%s1650_s1 + $0x28] sm:$0xff]  ;;  %v1338_v10 = vld [vmem:[%s1650_s1 + $0x40] sm:$0xff]  ;;  %vm588_vm2 = vcmask 154624   ;;  %v1333_v18 = vld [vmem:[%s1650_s1 + $0x18] sm:$0xff] }
   0xe   : > { %v639_v5 = vsel %vm637_vm0, 4294967295, %v1399_v4  ;;  %s1297_s25 = sshll.u32 %s1658_s20, 3  ;;  %v1334_v14 = vld [vmem:[%s1650_s1 + $0x20] sm:$0xff]  ;;  %v1332_v19 = vld [vmem:[%s1650_s1 + $0x10] sm:$0xff]  ;;  %v1331_v20 = vld [vmem:[%s1650_s1 + $0x8] sm:$0xff] }
   0xf   : > { %v578_v6 = vpack.c.b16 %v568_v2, %v568_v2  ;;  %v640_v7 = vsel %vm638_vm1, %v639_v5, 0  ;;  %s1461_s30 = scalar_lea.vmem %s1649_s0, %s1297_s25  ;;  %v1330_v26 = vld [vmem:[%s1650_s1] sm:$0xff]  ;;  %s1568_s22 = scalar_lea.vmem %s1652_s3, %s1297_s25 }
  0x10   : > { %v1298_v11 = vld [vmem:[%s1461_s30 + $0x4] sm:$0xf]  ;;  %v1119_v12 = vld [vmem:[%s1461_s30 + $0x8] sm:$0xf0]  ;;  %v1316_v15 = vld [vmem:[%s1461_s30 + $0x94] sm:$0xf] }
  0x11   : > { %v642_v8 = vand.u32 %v640_v7, %v578_v6  ;;  %645 = vmatpush.bf16.msra.mxu0 %v1336_v3  ;;  %1340 = vmatpush.bf16.msra.mxu2 %v1336_v3  ;;  %v1122_v13 = vor.u32 %v1298_v11, %v1119_v12  ;;  %v1191_v16 = vld [vmem:[%s1461_s30 + $0x98] sm:$0xf0]  ;;  %v1300_v21 = vld [vmem:[%s1461_s30 + $0x14] sm:$0xf]  ;;  %v1318_v23 = vld [vmem:[%s1461_s30 + $0xa4] sm:$0xf] }
  0x12   : > { %v1194_v17 = vor.u32 %v1316_v15, %v1191_v16  ;;  %v1127_v22 = vld [vmem:[%s1461_s30 + $0x18] sm:$0xf0]  ;;  %v1199_v24 = vld [vmem:[%s1461_s30 + $0xa8] sm:$0xf0]  ;;  %v1117_v27 = vld [vmem:[%s1461_s30] sm:$0xf] }
  0x13   : > { %739 = vmatpush.bf16.msra.mxu1 %v642_v8  ;;  %1347 = vmatpush.bf16.msra.mxu3 %v642_v8  ;;  %v1130_v25 = vor.u32 %v1300_v21, %v1127_v22  ;;  %v1299_v28 = vld [vmem:[%s1461_s30 + $0x4] sm:$0xf0]  ;;  %v1181_v29 = vld [vmem:[%s1461_s30 + $0x80] sm:$0xf]  ;;  %v1202_v31 = vor.u32 %v1318_v23, %v1199_v24  ;;  %v1302_v34 = vld [vmem:[%s1461_s30 + $0x24] sm:$0xf] }
  0x14   : > { %v1315_v30 = vld [vmem:[%s1461_s30 + $0x84] sm:$0xf0]  ;;  %v1118_v32 = vor.u32 %v1299_v28, %v1117_v27  ;;  %v1135_v35 = vld [vmem:[%s1461_s30 + $0x28] sm:$0xf0]  ;;  %v1320_v36 = vld [vmem:[%s1461_s30 + $0xb4] sm:$0xf] }
  0x15   : > { %646 = vmatpush.bf16.msra.mxu0 %v1335_v9  ;;  %1341 = vmatpush.bf16.msra.mxu2 %v1335_v9  ;;  %v1182_v33 = vor.u32 %v1315_v30, %v1181_v29  ;;  %v1207_v37 = vld [vmem:[%s1461_s30 + $0xb8] sm:$0xf0]  ;;  %v1138_v38 = vor.u32 %v1302_v34, %v1135_v35  ;;  %v1125_v39 = vld [vmem:[%s1461_s30 + $0x10] sm:$0xf]  ;;  %v1301_v40 = vld [vmem:[%s1461_s30 + $0x14] sm:$0xf0] }
  0x16   : > { %v1189_v41 = vld [vmem:[%s1461_s30 + $0x90] sm:$0xf]  ;;  %v1317_v42 = vld [vmem:[%s1461_s30 + $0x94] sm:$0xf0]  ;;  %v1210_v43 = vor.u32 %v1320_v36, %v1207_v37  ;;  %v1126_v44 = vor.u32 %v1301_v40, %v1125_v39  ;;  %v1304_v46 = vld [vmem:[%s1461_s30 + $0x34] sm:$0xf] }
  0x17   : > { %740 = vmatpush.bf16.msra.mxu1 %v1338_v10  ;;  %1348 = vmatpush.bf16.msra.mxu3 %v1338_v10  ;;  %v1190_v45 = vor.u32 %v1317_v42, %v1189_v41  ;;  %v1143_v47 = vld [vmem:[%s1461_s30 + $0x38] sm:$0xf0]  ;;  %v1322_v48 = vld [vmem:[%s1461_s30 + $0xc4] sm:$0xf]  ;;  %v1215_v49 = vld [vmem:[%s1461_s30 + $0xc8] sm:$0xf0] }
  0x18   : > { %v1146_v50 = vor.u32 %v1304_v46, %v1143_v47  ;;  %v1133_v51 = vld [vmem:[%s1461_s30 + $0x20] sm:$0xf]  ;;  %v1303_v52 = vld [vmem:[%s1461_s30 + $0x24] sm:$0xf0]  ;;  %v1218_v55 = vor.u32 %v1322_v48, %v1215_v49  ;;  %v1306_v58 = vld [vmem:[%s1461_s30 + $0x44] sm:$0xf] }
  0x19   : > { %647 = vmatpush.bf16.msra.mxu0 %v1334_v14  ;;  %1342 = vmatpush.bf16.msra.mxu2 %v1334_v14  ;;  %v1197_v53 = vld [vmem:[%s1461_s30 + $0xa0] sm:$0xf]  ;;  %v1319_v54 = vld [vmem:[%s1461_s30 + $0xa4] sm:$0xf0]  ;;  %v1134_v56 = vor.u32 %v1303_v52, %v1133_v51  ;;  %v1151_v59 = vld [vmem:[%s1461_s30 + $0x48] sm:$0xf0] }
  0x1a   : > { %1279 = vmatmul.msk.bf16.vlgmr.msra.gmra.mxu1 %vm588_vm2, %v1122_v13  ;;  %1288 = vmatmul.msk.bf16.vlgmr.msra.gmra.mxu3 %vm588_vm2, %v1194_v17  ;;  %v1198_v57 = vor.u32 %v1319_v54, %v1197_v53  ;;  %v1324_v60 = vld [vmem:[%s1461_s30 + $0xd4] sm:$0xf]  ;;  %v1223_v61 = vld [vmem:[%s1461_s30 + $0xd8] sm:$0xf0]  ;;  %v1154_v62 = vor.u32 %v1306_v58, %v1151_v59  ;;  %v1141_v63 = vld [vmem:[%s1461_s30 + $0x30] sm:$0xf] }
  0x1b   : > { %v1305_v0 = vld [vmem:[%s1461_s30 + $0x34] sm:$0xf0]  ;;  %v1205_v1 = vld [vmem:[%s1461_s30 + $0xb0] sm:$0xf]  ;;  %v1226_v3 = vor.u32 %v1324_v60, %v1223_v61  ;;  %v1308_v6 = vld [vmem:[%s1461_s30 + $0x54] sm:$0xf] }
  0x1c   : > { %v1321_v2 = vld [vmem:[%s1461_s30 + $0xb4] sm:$0xf0]  ;;  %v1142_v4 = vor.u32 %v1305_v0, %v1141_v63  ;;  %v1159_v7 = vld [vmem:[%s1461_s30 + $0x58] sm:$0xf0]  ;;  %v1326_v8 = vld [vmem:[%s1461_s30 + $0xe4] sm:$0xf] }
  0x1d   : > { %648 = vmatpush.bf16.msra.mxu0 %v1333_v18  ;;  %1343 = vmatpush.bf16.msra.mxu2 %v1333_v18  ;;  %v1206_v5 = vor.u32 %v1321_v2, %v1205_v1  ;;  %v1231_v9 = vld [vmem:[%s1461_s30 + $0xe8] sm:$0xf0]  ;;  %v1162_v10 = vor.u32 %v1308_v6, %v1159_v7  ;;  %v1149_v11 = vld [vmem:[%s1461_s30 + $0x40] sm:$0xf]  ;;  %v1307_v12 = vld [vmem:[%s1461_s30 + $0x44] sm:$0xf0] }
  0x1e   : > { %v1213_v13 = vld [vmem:[%s1461_s30 + $0xc0] sm:$0xf]  ;;  %v1323_v14 = vld [vmem:[%s1461_s30 + $0xc4] sm:$0xf0]  ;;  %v1234_v15 = vor.u32 %v1326_v8, %v1231_v9  ;;  %v1150_v16 = vor.u32 %v1307_v12, %v1149_v11  ;;  %v1310_v18 = vld [vmem:[%s1461_s30 + $0x64] sm:$0xf] }
  0x1f   : > { %v1214_v17 = vor.u32 %v1323_v14, %v1213_v13  ;;  %v1239_v21 = vld [vmem:[%s1461_s30 + $0xf8] sm:$0xf0]  ;;  %v1157_v23 = vld [vmem:[%s1461_s30 + $0x50] sm:$0xf]  ;;  %v1309_v24 = vld [vmem:[%s1461_s30 + $0x54] sm:$0xf0] }
  0x20   : > { %v1158_v28 = vor.u32 %v1309_v24, %v1157_v23  ;;  %v1312_v30 = vld [vmem:[%s1461_s30 + $0x74] sm:$0xf]  ;;  %v1311_v34 = vld [vmem:[%s1461_s30 + $0x64] sm:$0xf0]  ;;  %v1229_v35 = vld [vmem:[%s1461_s30 + $0xe0] sm:$0xf] }
  0x21   : > { %649 = vmatpush.bf16.msra.mxu0 %v1332_v19  ;;  %1344 = vmatpush.bf16.msra.mxu2 %v1332_v19  ;;  %v1167_v19 = vld [vmem:[%s1461_s30 + $0x68] sm:$0xf0]  ;;  %v1327_v36 = vld [vmem:[%s1461_s30 + $0xe4] sm:$0xf0]  ;;  %v1314_v39 = vld [vmem:[%s1461_s30 + $0x84] sm:$0xf] }
  0x22   : > { %v1170_v22 = vor.u32 %v1310_v18, %v1167_v19  ;;  %v1183_v40 = vld [vmem:[%s1461_s30 + $0x88] sm:$0xf0]  ;;  %v1173_v42 = vld [vmem:[%s1461_s30 + $0x70] sm:$0xf]  ;;  %v1329_v46 = vld [vmem:[%s1461_s30 + $0xf4] sm:$0xf0] }
  0x23   : > { %v1186_v41 = vor.u32 %v1314_v39, %v1183_v40  ;;  %v1561_v52 = vld [vmem:[%s1651_s2] ss:$0 sm:$0xff] }
  0x25   : > { %650 = vmatpush.bf16.msra.mxu0 %v1331_v20  ;;  %1345 = vmatpush.bf16.msra.mxu2 %v1331_v20  ;;  %v1328_v20 = vld [vmem:[%s1461_s30 + $0xf4] sm:$0xf] }
  0x26   : > { %v1242_v27 = vor.u32 %v1328_v20, %v1239_v21 }
  0x29   : > { %651 = vmatpush.bf16.msra.mxu0 %v1330_v26  ;;  %1346 = vmatpush.bf16.msra.mxu2 %v1330_v26  ;;  %v1325_v26 = vld [vmem:[%s1461_s30 + $0xd4] sm:$0xf0] }
  0x2a   : > { %1280 = vmatmul.msk.bf16.gmra.mxu1 %vm588_vm2, %v1130_v25  ;;  %1289 = vmatmul.msk.bf16.gmra.mxu3 %vm588_vm2, %v1202_v31  ;;  %v1221_v25 = vld [vmem:[%s1461_s30 + $0xd0] sm:$0xf]  ;;  %v1175_v31 = vld [vmem:[%s1461_s30 + $0x78] sm:$0xf0] }
  0x2b   : > { %v1222_v29 = vor.u32 %v1325_v26, %v1221_v25 }
  0x2c   : > { %652 = vmatmul.bf16.vlgmr.msra.gmra.mxu0 %v1118_v32  ;;  %692 = vmatmul.bf16.vlgmr.msra.gmra.mxu2 %v1182_v33  ;;  %v1178_v32 = vor.u32 %v1312_v30, %v1175_v31  ;;  %v1165_v33 = vld [vmem:[%s1461_s30 + $0x60] sm:$0xf] }
  0x2d   : > { %v1166_v37 = vor.u32 %v1311_v34, %v1165_v33 }
  0x3a   : > { %1281 = vmatmul.msk.bf16.gmra.mxu1 %vm588_vm2, %v1138_v38  ;;  %1290 = vmatmul.msk.bf16.gmra.mxu3 %vm588_vm2, %v1210_v43  ;;  %v1230_v38 = vor.u32 %v1327_v36, %v1229_v35  ;;  %v1313_v43 = vld [vmem:[%s1461_s30 + $0x74] sm:$0xf0] }
  0x3b   : > { %v1174_v47 = vor.u32 %v1313_v43, %v1173_v42 }
  0x3c   : > { %657 = vmatmul.bf16.gmra.mxu0 %v1126_v44  ;;  %697 = vmatmul.bf16.gmra.mxu2 %v1190_v45  ;;  %v1237_v45 = vld [vmem:[%s1461_s30 + $0xf0] sm:$0xf] }
  0x3d   : > { %v1238_v48 = vor.u32 %v1329_v46, %v1237_v45 }
  0x4a   : > { %1282 = vmatmul.msk.bf16.gmra.mxu1 %vm588_vm2, %v1146_v50  ;;  %1291 = vmatmul.msk.bf16.gmra.mxu3 %vm588_vm2, %v1218_v55 }
  0x4c   : > { %662 = vmatmul.bf16.gmra.mxu0 %v1134_v56  ;;  %702 = vmatmul.bf16.gmra.mxu2 %v1198_v57 }
  0x5a   : > { %1283 = vmatmul.msk.bf16.gmra.mxu1 %vm588_vm2, %v1154_v62  ;;  %1292 = vmatmul.msk.bf16.gmra.mxu3 %vm588_vm2, %v1226_v3 }
  0x5c   : > { %667 = vmatmul.bf16.gmra.mxu0 %v1142_v4  ;;  %707 = vmatmul.bf16.gmra.mxu2 %v1206_v5 }
  0x6a   : > { %1284 = vmatmul.msk.bf16.gmra.mxu1 %vm588_vm2, %v1162_v10  ;;  %1293 = vmatmul.msk.bf16.gmra.mxu3 %vm588_vm2, %v1234_v15 }
  0x6c   : > { %672 = vmatmul.bf16.gmra.mxu0 %v1150_v16  ;;  %712 = vmatmul.bf16.gmra.mxu2 %v1214_v17 }
  0x7a   : > { %1285 = vmatmul.msk.bf16.gmra.mxu1 %vm588_vm2, %v1170_v22  ;;  %1294 = vmatmul.msk.bf16.gmra.mxu3 %vm588_vm2, %v1242_v27 }
  0x7c   : > { %677 = vmatmul.bf16.gmra.mxu0 %v1158_v28  ;;  %717 = vmatmul.bf16.gmra.mxu2 %v1222_v29 }
  0x8a   : > { %1286 = vmatmul.msk.bf16.gmra.mxu1 %vm588_vm2, %v1178_v32 }
  0x8c   : > { %682 = vmatmul.bf16.gmra.mxu0 %v1166_v37  ;;  %722 = vmatmul.bf16.gmra.mxu2 %v1230_v38 }
  0x97   : > { %v742_v44 = vpop.f32.mrf.mxu1 }
  0x9a   : > { %1287 = vmatmul.msk.bf16.gmra.mxu1 %vm588_vm2, %v1186_v41 }
  0x9c   : > { %687 = vmatmul.bf16.gmra.mxu0 %v1174_v47  ;;  %727 = vmatmul.bf16.gmra.mxu2 %v1238_v48 }
  0x9d   : > { %v787_v51 = vpop.f32.mrf.mxu3 }
  0x9f   : > { %v744_v49 = vpop.f32.mrf.mxu1 }
  0xa5   : > { %v789_v58 = vpop.f32.mrf.mxu3 }
  0xa7   : > { %v747_v50 = vpop.f32.mrf.mxu1 }
  0xa9   : > { %v653_v53 = vpop.f32.mrf.mxu0 }
  0xaa   : > { %v743_v54 = vadd.f32 %v742_v44, %v653_v53 }
  0xac   : > { %v925_v55 = vadd.f32 %v1561_v52, %v743_v54 }
  0xad   : > { %v792_v2 = vpop.f32.mrf.mxu3 }
  0xae   : > { %957 = vst [vmem:[%s1568_s22] sm:$0xff] %v925_v55 }
  0xaf   : > { %v749_v56 = vpop.f32.mrf.mxu1  ;;  %v1572_v57 = vpop.f32.mrf.mxu2 }
  0xb1   : > { %v655_v59 = vpop.f32.mrf.mxu0 }
  0xb2   : > { %v745_v60 = vadd.f32 %v744_v49, %v655_v59 }
  0xb4   : > { %v926_v61 = vadd.f32 %v1561_v52, %v745_v60 }
  0xb5   : > { %v794_v11 = vpop.f32.mrf.mxu3 }
  0xb6   : > { %958 = vst [vmem:[%s1568_s22 + $0x8] sm:$0xff] %v926_v61 }
  0xb7   : > { %v752_v62 = vpop.f32.mrf.mxu1  ;;  %v1576_v63 = vpop.f32.mrf.mxu2 }
  0xb9   : > { %v658_v0 = vpop.f32.mrf.mxu0 }
  0xba   : > { %v748_v1 = vadd.f32 %v747_v50, %v658_v0 }
  0xbc   : > { %v927_v3 = vadd.f32 %v1561_v52, %v748_v1 }
  0xbd   : > { %v797_v20 = vpop.f32.mrf.mxu3 }
  0xbe   : > { %959 = vst [vmem:[%s1568_s22 + $0x10] sm:$0xff] %v927_v3 }
  0xbf   : > { %v754_v4 = vpop.f32.mrf.mxu1  ;;  %v698_v5 = vpop.f32.mrf.mxu2 }
  0xc0   : > { %v788_v6 = vadd.f32 %v787_v51, %v698_v5 }
  0xc1   : > { %v660_v7 = vpop.f32.mrf.mxu0 }
  0xc2   : > { %v750_v8 = vadd.f32 %v749_v56, %v660_v7  ;;  %v943_v9 = vadd.f32 %v1561_v52, %v788_v6 }
  0xc4   : > { %v928_v10 = vadd.f32 %v1561_v52, %v750_v8  ;;  %975 = vst [vmem:[%s1568_s22 + $0x90] sm:$0xff] %v943_v9 }
  0xc5   : > { %v799_v29 = vpop.f32.mrf.mxu3 }
  0xc6   : > { %960 = vst [vmem:[%s1568_s22 + $0x18] sm:$0xff] %v928_v10 }
  0xc7   : > { %v757_v12 = vpop.f32.mrf.mxu1  ;;  %v700_v13 = vpop.f32.mrf.mxu2 }
  0xc8   : > { %v790_v14 = vadd.f32 %v789_v58, %v700_v13 }
  0xc9   : > { %v663_v15 = vpop.f32.mrf.mxu0 }
  0xca   : > { %v753_v16 = vadd.f32 %v752_v62, %v663_v15  ;;  %v944_v17 = vadd.f32 %v1561_v52, %v790_v14 }
  0xcc   : > { %v929_v18 = vadd.f32 %v1561_v52, %v753_v16  ;;  %976 = vst [vmem:[%s1568_s22 + $0x98] sm:$0xff] %v944_v17 }
  0xcd   : > { %v802_v40 = vpop.f32.mrf.mxu3 }
  0xce   : > { %961 = vst [vmem:[%s1568_s22 + $0x20] sm:$0xff] %v929_v18 }
  0xcf   : > { %v759_v19 = vpop.f32.mrf.mxu1  ;;  %v703_v21 = vpop.f32.mrf.mxu2 }
  0xd0   : > { %v793_v22 = vadd.f32 %v792_v2, %v703_v21 }
  0xd1   : > { %v665_v23 = vpop.f32.mrf.mxu0 }
  0xd2   : > { %v755_v24 = vadd.f32 %v754_v4, %v665_v23  ;;  %v945_v25 = vadd.f32 %v1561_v52, %v793_v22 }
  0xd4   : > { %v930_v26 = vadd.f32 %v1561_v52, %v755_v24  ;;  %977 = vst [vmem:[%s1568_s22 + $0xa0] sm:$0xff] %v945_v25 }
  0xd5   : > { %v804_v50 = vpop.f32.mrf.mxu3 }
  0xd6   : > { %962 = vst [vmem:[%s1568_s22 + $0x28] sm:$0xff] %v930_v26 }
  0xd7   : > { %v762_v27 = vpop.f32.mrf.mxu1  ;;  %v705_v28 = vpop.f32.mrf.mxu2 }
  0xd8   : > { %v795_v30 = vadd.f32 %v794_v11, %v705_v28 }
  0xd9   : > { %v668_v31 = vpop.f32.mrf.mxu0 }
  0xda   : > { %v758_v32 = vadd.f32 %v757_v12, %v668_v31  ;;  %v946_v33 = vadd.f32 %v1561_v52, %v795_v30 }
  0xdc   : > { %v931_v34 = vadd.f32 %v1561_v52, %v758_v32  ;;  %978 = vst [vmem:[%s1568_s22 + $0xa8] sm:$0xff] %v946_v33 }
  0xdd   : > { %v807_v61 = vpop.f32.mrf.mxu3 }
  0xde   : > { %963 = vst [vmem:[%s1568_s22 + $0x30] sm:$0xff] %v931_v34 }
  0xdf   : > { %v764_v35 = vpop.f32.mrf.mxu1  ;;  %v708_v36 = vpop.f32.mrf.mxu2 }
  0xe0   : > { %v798_v37 = vadd.f32 %v797_v20, %v708_v36 }
  0xe1   : > { %v670_v38 = vpop.f32.mrf.mxu0 }
  0xe2   : > { %v760_v39 = vadd.f32 %v759_v19, %v670_v38  ;;  %v947_v41 = vadd.f32 %v1561_v52, %v798_v37 }
  0xe4   : > { %v932_v42 = vadd.f32 %v1561_v52, %v760_v39  ;;  %979 = vst [vmem:[%s1568_s22 + $0xb0] sm:$0xff] %v947_v41 }
  0xe5   : > { %v809_v7 = vpop.f32.mrf.mxu3 }
  0xe6   : > { %964 = vst [vmem:[%s1568_s22 + $0x38] sm:$0xff] %v932_v42 }
  0xe7   : > { %v767_v43 = vpop.f32.mrf.mxu1  ;;  %v710_v44 = vpop.f32.mrf.mxu2 }
  0xe8   : > { %v800_v45 = vadd.f32 %v799_v29, %v710_v44 }
  0xe9   : > { %v673_v46 = vpop.f32.mrf.mxu0 }
  0xea   : > { %v763_v47 = vadd.f32 %v762_v27, %v673_v46  ;;  %v948_v48 = vadd.f32 %v1561_v52, %v800_v45 }
  0xec   : > { %v933_v49 = vadd.f32 %v1561_v52, %v763_v47  ;;  %980 = vst [vmem:[%s1568_s22 + $0xb8] sm:$0xff] %v948_v48 }
  0xed   : > { %v812_v17 = vpop.f32.mrf.mxu3 }
  0xee   : > { %965 = vst [vmem:[%s1568_s22 + $0x40] sm:$0xff] %v933_v49 }
  0xef   : > { %v769_v51 = vpop.f32.mrf.mxu1  ;;  %v713_v53 = vpop.f32.mrf.mxu2 }
  0xf0   : > { %v803_v54 = vadd.f32 %v802_v40, %v713_v53 }
  0xf1   : > { %v675_v55 = vpop.f32.mrf.mxu0 }
  0xf2   : > { %v765_v56 = vadd.f32 %v764_v35, %v675_v55  ;;  %v949_v58 = vadd.f32 %v1561_v52, %v803_v54 }
  0xf4   : > { %v934_v59 = vadd.f32 %v1561_v52, %v765_v56  ;;  %981 = vst [vmem:[%s1568_s22 + $0xc0] sm:$0xff] %v949_v58 }
  0xf5   : > { %v814_v27 = vpop.f32.mrf.mxu3 }
  0xf6   : > { %966 = vst [vmem:[%s1568_s22 + $0x48] sm:$0xff] %v934_v59 }
  0xf7   : > { %v772_v60 = vpop.f32.mrf.mxu1  ;;  %v715_v62 = vpop.f32.mrf.mxu2 }
  0xf8   : > { %v805_v0 = vadd.f32 %v804_v50, %v715_v62 }
  0xf9   : > { %v678_v1 = vpop.f32.mrf.mxu0 }
  0xfa   : > { %v768_v2 = vadd.f32 %v767_v43, %v678_v1  ;;  %v950_v3 = vadd.f32 %v1561_v52, %v805_v0 }
  0xfc   : > { %v935_v4 = vadd.f32 %v1561_v52, %v768_v2  ;;  %982 = vst [vmem:[%s1568_s22 + $0xc8] sm:$0xff] %v950_v3 }
  0xfd   : > { %v817_v38 = vpop.f32.mrf.mxu3 }
  0xfe   : > { %967 = vst [vmem:[%s1568_s22 + $0x50] sm:$0xff] %v935_v4 }
  0xff   : > { %v774_v5 = vpop.f32.mrf.mxu1  ;;  %v718_v6 = vpop.f32.mrf.mxu2 }
 0x100   : > { %v808_v8 = vadd.f32 %v807_v61, %v718_v6 }
 0x101   : > { %v680_v9 = vpop.f32.mrf.mxu0 }
 0x102   : > { %v770_v10 = vadd.f32 %v769_v51, %v680_v9  ;;  %v951_v11 = vadd.f32 %v1561_v52, %v808_v8 }
 0x104   : > { %v936_v12 = vadd.f32 %v1561_v52, %v770_v10  ;;  %983 = vst [vmem:[%s1568_s22 + $0xd0] sm:$0xff] %v951_v11 }
 0x105   : > { %v819_v47 = vpop.f32.mrf.mxu3 }
 0x106   : > { %968 = vst [vmem:[%s1568_s22 + $0x58] sm:$0xff] %v936_v12 }
 0x107   : > { %v777_v13 = vpop.f32.mrf.mxu1  ;;  %v720_v14 = vpop.f32.mrf.mxu2 }
 0x108   : > { %v810_v15 = vadd.f32 %v809_v7, %v720_v14 }
 0x109   : > { %v683_v16 = vpop.f32.mrf.mxu0 }
 0x10a   : > { %v773_v18 = vadd.f32 %v772_v60, %v683_v16  ;;  %v952_v19 = vadd.f32 %v1561_v52, %v810_v15 }
 0x10c   : > { %v937_v20 = vadd.f32 %v1561_v52, %v773_v18  ;;  %984 = vst [vmem:[%s1568_s22 + $0xd8] sm:$0xff] %v952_v19 }
 0x10e   : > { %969 = vst [vmem:[%s1568_s22 + $0x60] sm:$0xff] %v937_v20 }
 0x10f   : > { %v779_v21 = vpop.f32.mrf.mxu1  ;;  %v723_v22 = vpop.f32.mrf.mxu2 }
 0x110   : > { %v813_v23 = vadd.f32 %v812_v17, %v723_v22 }
 0x111   : > { %v685_v24 = vpop.f32.mrf.mxu0 }
 0x112   : > { %v775_v25 = vadd.f32 %v774_v5, %v685_v24  ;;  %v953_v26 = vadd.f32 %v1561_v52, %v813_v23 }
 0x114   : > { %v938_v28 = vadd.f32 %v1561_v52, %v775_v25  ;;  %985 = vst [vmem:[%s1568_s22 + $0xe0] sm:$0xff] %v953_v26 }
 0x116   : > { %970 = vst [vmem:[%s1568_s22 + $0x68] sm:$0xff] %v938_v28 }
 0x117   : > { %v782_v29 = vpop.f32.mrf.mxu1  ;;  %v725_v31 = vpop.f32.mrf.mxu2 }
 0x118   : > { %v783_v30 = vadd.f32 %v782_v29, %v1572_v57  ;;  %v815_v33 = vadd.f32 %v814_v27, %v725_v31 }
 0x119   : > { %v688_v34 = vpop.f32.mrf.mxu0 }
 0x11a   : > { %v941_v32 = vadd.f32 %v1561_v52, %v783_v30  ;;  %v778_v35 = vadd.f32 %v777_v13, %v688_v34  ;;  %v954_v36 = vadd.f32 %v1561_v52, %v815_v33 }
 0x11c   : > { %973 = vst [vmem:[%s1568_s22 + $0x80] sm:$0xff] %v941_v32  ;;  %v939_v37 = vadd.f32 %v1561_v52, %v778_v35 }
 0x11d   : > { %986 = vst [vmem:[%s1568_s22 + $0xe8] sm:$0xff] %v954_v36 }
 0x11e   : > { %971 = vst [vmem:[%s1568_s22 + $0x70] sm:$0xff] %v939_v37 }
 0x11f   : > { %v784_v39 = vpop.f32.mrf.mxu1  ;;  %v728_v40 = vpop.f32.mrf.mxu2 }
 0x120   : > { %v785_v57 = vadd.f32 %v784_v39, %v1576_v63  ;;  %v818_v42 = vadd.f32 %v817_v38, %v728_v40 }
 0x121   : > { %v690_v43 = vpop.f32.mrf.mxu0 }
 0x122   : > { %v942_v41 = vadd.f32 %v1561_v52, %v785_v57  ;;  %v780_v44 = vadd.f32 %v779_v21, %v690_v43  ;;  %v955_v45 = vadd.f32 %v1561_v52, %v818_v42 }
 0x124   : > { %974 = vst [vmem:[%s1568_s22 + $0x88] sm:$0xff] %v942_v41  ;;  %v940_v46 = vadd.f32 %v1561_v52, %v780_v44 }
 0x125   : > { %987 = vst [vmem:[%s1568_s22 + $0xf0] sm:$0xff] %v955_v45 }
 0x126   : > { %972 = vst [vmem:[%s1568_s22 + $0x78] sm:$0xff] %v940_v46 }
 0x127   : > { %v730_v48 = vpop.f32.mrf.mxu2 }
 0x128   : > { %v820_v49 = vadd.f32 %v819_v47, %v730_v48 }
 0x12a   : > { %v956_v50 = vadd.f32 %v1561_v52, %v820_v49 }
 0x12c   : > { %988 = vst [vmem:[%s1568_s22 + $0xf8] sm:$0xff] %v956_v50 }
 0x12d PF: > { %s13_s14 = sadd.s32 1, %s1397_s14   ;;  %s1653_s12 = smov %s1393_s13 }
 0x12e   : > { %p10_p5 = scmp.ge.s32.totalorder %s13_s14, 4   ;;  %s1654_s13 = smov %s1656_s15 }
 0x130   :  { %12 = sbr.rel (!%p10_p5) target bundleno = 2 (0x2), region = 76 }

// kernel: raune_net_forward.31
= control target key start
LH: loop header
LB: loop body
LE: loop exit
PB: predicated region body
PF: predicated region fallthrough
CT: control target
= control target key end

     0   :  { %s542_s1 = inlined_call_operand.vmem [shape: bf16[128,16], index: 1, kind: input, shape index: {}]   ;;  %s543_s2 = inlined_call_operand.vmem [shape: f32[1,16], index: 2, kind: input, shape index: {}]   ;;  %s544_s0 = inlined_call_operand.vmem [shape: bf16[128,128], index: 0, kind: input, shape index: {}]   ;;  %s545_s3 = inlined_call_operand.vmem [shape: f32[128,16], index: 3, kind: output, shape index: {}]  }
   0x1   :  { %v397_v0 = vld [vmem:[%s542_s1 + $0x38] sm:$0xff]  ;;  %v396_v1 = vld [vmem:[%s542_s1 + $0x30] sm:$0xff]  ;;  %v395_v2 = vld [vmem:[%s542_s1 + $0x28] sm:$0xff] }
   0x2   :  { %178 = vmatpush.bf16.msra.mxu0 %v397_v0  ;;  %398 = vmatpush.bf16.msra.mxu1 %v397_v0  ;;  %v394_v3 = vld [vmem:[%s542_s1 + $0x20] sm:$0xff]  ;;  %v393_v4 = vld [vmem:[%s542_s1 + $0x18] sm:$0xff]  ;;  %v392_v5 = vld [vmem:[%s542_s1 + $0x10] sm:$0xff] }
   0x3   :  { %399 = vmatpush.bf16.msra.mxu2 %v397_v0  ;;  %400 = vmatpush.bf16.msra.mxu3 %v397_v0  ;;  %v391_v6 = vld [vmem:[%s542_s1 + $0x8] sm:$0xff]  ;;  %v390_v7 = vld [vmem:[%s542_s1] sm:$0xff]  ;;  %v384_v9 = vld [vmem:[%s544_s0 + $0x10] sm:$0xff] }
   0x4   :  { %v382_v8 = vld [vmem:[%s544_s0] sm:$0xff]  ;;  %v388_v11 = vld [vmem:[%s544_s0 + $0x30] sm:$0xff]  ;;  %v383_v12 = vld [vmem:[%s544_s0 + $0x8] sm:$0xff] }
   0x5   :  { %v386_v10 = vld [vmem:[%s544_s0 + $0x20] sm:$0xff]  ;;  %v385_v13 = vld [vmem:[%s544_s0 + $0x18] sm:$0xff]  ;;  %v387_v14 = vld [vmem:[%s544_s0 + $0x28] sm:$0xff] }
   0x6   :  { %179 = vmatpush.bf16.msra.mxu0 %v396_v1  ;;  %401 = vmatpush.bf16.msra.mxu1 %v396_v1  ;;  %v389_v15 = vld [vmem:[%s544_s0 + $0x38] sm:$0xff]  ;;  %v422_v16 = vld [vmem:[%s543_s2] ss:$0 sm:$0xff] }
   0x7   :  { %402 = vmatpush.bf16.msra.mxu2 %v396_v1  ;;  %403 = vmatpush.bf16.msra.mxu3 %v396_v1 }
   0xa   :  { %180 = vmatpush.bf16.msra.mxu0 %v395_v2  ;;  %404 = vmatpush.bf16.msra.mxu1 %v395_v2 }
   0xb   :  { %405 = vmatpush.bf16.msra.mxu2 %v395_v2  ;;  %406 = vmatpush.bf16.msra.mxu3 %v395_v2 }
   0xe   :  { %181 = vmatpush.bf16.msra.mxu0 %v394_v3  ;;  %407 = vmatpush.bf16.msra.mxu1 %v394_v3 }
   0xf   :  { %408 = vmatpush.bf16.msra.mxu2 %v394_v3  ;;  %409 = vmatpush.bf16.msra.mxu3 %v394_v3 }
  0x12   :  { %182 = vmatpush.bf16.msra.mxu0 %v393_v4  ;;  %410 = vmatpush.bf16.msra.mxu1 %v393_v4 }
  0x13   :  { %411 = vmatpush.bf16.msra.mxu2 %v393_v4  ;;  %412 = vmatpush.bf16.msra.mxu3 %v393_v4 }
  0x16   :  { %183 = vmatpush.bf16.msra.mxu0 %v392_v5  ;;  %413 = vmatpush.bf16.msra.mxu1 %v392_v5 }
  0x17   :  { %414 = vmatpush.bf16.msra.mxu2 %v392_v5  ;;  %415 = vmatpush.bf16.msra.mxu3 %v392_v5 }
  0x1a   :  { %184 = vmatpush.bf16.msra.mxu0 %v391_v6  ;;  %416 = vmatpush.bf16.msra.mxu1 %v391_v6 }
  0x1b   :  { %417 = vmatpush.bf16.msra.mxu2 %v391_v6  ;;  %418 = vmatpush.bf16.msra.mxu3 %v391_v6 }
  0x1e   :  { %185 = vmatpush.bf16.msra.mxu0 %v390_v7  ;;  %419 = vmatpush.bf16.msra.mxu1 %v390_v7 }
  0x1f   :  { %420 = vmatpush.bf16.msra.mxu2 %v390_v7  ;;  %421 = vmatpush.bf16.msra.mxu3 %v390_v7 }
  0x21   :  { %186 = vmatmul.bf16.vlgmr.msra.gmra.mxu0 %v382_v8  ;;  %196 = vmatmul.bf16.vlgmr.msra.gmra.mxu1 %v384_v9 }
  0x22   :  { %206 = vmatmul.bf16.vlgmr.msra.gmra.mxu2 %v386_v10  ;;  %216 = vmatmul.bf16.vlgmr.msra.gmra.mxu3 %v388_v11 }
  0x31   :  { %191 = vmatmul.bf16.gmra.mxu0 %v383_v12  ;;  %201 = vmatmul.bf16.gmra.mxu1 %v385_v13 }
  0x32   :  { %211 = vmatmul.bf16.gmra.mxu2 %v387_v14  ;;  %221 = vmatmul.bf16.gmra.mxu3 %v389_v15 }
  0x9e   :  { %v187_v17 = vpop.f32.mrf.mxu0  ;;  %v197_v18 = vpop.f32.mrf.mxu1 }
  0x9f   :  { %v282_v19 = vadd.f32 %v422_v16, %v187_v17  ;;  %v286_v20 = vadd.f32 %v422_v16, %v197_v18 }
  0xa1   :  { %298 = vst [vmem:[%s545_s3] sm:$0xff] %v282_v19 }
  0xa2   :  { %302 = vst [vmem:[%s545_s3 + $0x20] sm:$0xff] %v286_v20 }
  0xa5   :  { %v207_v21 = vpop.f32.mrf.mxu2  ;;  %v217_v22 = vpop.f32.mrf.mxu3 }
  0xa6   :  { %v290_v23 = vadd.f32 %v422_v16, %v207_v21  ;;  %v294_v24 = vadd.f32 %v422_v16, %v217_v22  ;;  %v189_v25 = vpop.f32.mrf.mxu0  ;;  %v199_v26 = vpop.f32.mrf.mxu1 }
  0xa7   :  { %v283_v27 = vadd.f32 %v422_v16, %v189_v25  ;;  %v287_v28 = vadd.f32 %v422_v16, %v199_v26 }
  0xa8   :  { %306 = vst [vmem:[%s545_s3 + $0x40] sm:$0xff] %v290_v23 }
  0xa9   :  { %310 = vst [vmem:[%s545_s3 + $0x60] sm:$0xff] %v294_v24 }
  0xaa   :  { %299 = vst [vmem:[%s545_s3 + $0x8] sm:$0xff] %v283_v27 }
  0xab   :  { %303 = vst [vmem:[%s545_s3 + $0x28] sm:$0xff] %v287_v28 }
  0xad   :  { %v209_v29 = vpop.f32.mrf.mxu2  ;;  %v219_v30 = vpop.f32.mrf.mxu3 }
  0xae   :  { %v291_v31 = vadd.f32 %v422_v16, %v209_v29  ;;  %v295_v32 = vadd.f32 %v422_v16, %v219_v30  ;;  %v192_v33 = vpop.f32.mrf.mxu0  ;;  %v202_v34 = vpop.f32.mrf.mxu1 }
  0xaf   :  { %v284_v35 = vadd.f32 %v422_v16, %v192_v33  ;;  %v288_v36 = vadd.f32 %v422_v16, %v202_v34 }
  0xb0   :  { %307 = vst [vmem:[%s545_s3 + $0x48] sm:$0xff] %v291_v31 }
  0xb1   :  { %311 = vst [vmem:[%s545_s3 + $0x68] sm:$0xff] %v295_v32 }
  0xb2   :  { %300 = vst [vmem:[%s545_s3 + $0x10] sm:$0xff] %v284_v35 }
  0xb3   :  { %304 = vst [vmem:[%s545_s3 + $0x30] sm:$0xff] %v288_v36 }
  0xb5   :  { %v212_v37 = vpop.f32.mrf.mxu2  ;;  %v222_v38 = vpop.f32.mrf.mxu3 }
  0xb6   :  { %v292_v39 = vadd.f32 %v422_v16, %v212_v37  ;;  %v296_v40 = vadd.f32 %v422_v16, %v222_v38  ;;  %v194_v41 = vpop.f32.mrf.mxu0  ;;  %v204_v42 = vpop.f32.mrf.mxu1 }
  0xb7   :  { %v285_v43 = vadd.f32 %v422_v16, %v194_v41  ;;  %v289_v44 = vadd.f32 %v422_v16, %v204_v42 }
  0xb8   :  { %308 = vst [vmem:[%s545_s3 + $0x50] sm:$0xff] %v292_v39 }
  0xb9   :  { %312 = vst [vmem:[%s545_s3 + $0x70] sm:$0xff] %v296_v40 }
  0xba   :  { %301 = vst [vmem:[%s545_s3 + $0x18] sm:$0xff] %v285_v43 }
  0xbb   :  { %305 = vst [vmem:[%s545_s3 + $0x38] sm:$0xff] %v289_v44 }
  0xbd   :  { %v214_v45 = vpop.f32.mrf.mxu2  ;;  %v224_v46 = vpop.f32.mrf.mxu3 }
  0xbe   :  { %v293_v47 = vadd.f32 %v422_v16, %v214_v45  ;;  %v297_v48 = vadd.f32 %v422_v16, %v224_v46 }
  0xc0   :  { %309 = vst [vmem:[%s545_s3 + $0x58] sm:$0xff] %v293_v47 }
  0xc1   :  { %313 = vst [vmem:[%s545_s3 + $0x78] sm:$0xff] %v297_v48 }

// kernel: raune_net_forward.33
= control target key start
LH: loop header
LB: loop body
LE: loop exit
PB: predicated region body
PF: predicated region fallthrough
CT: control target
= control target key end

     0   :  { %vm14_vm0 = vcmask 523264   ;;  %v70_v12 = vmov 64.0   ;;  %vm38_vm2 = vcmask 7168   ;;  %s138_s0 = inlined_call_operand.vmem [shape: f32[32,64], index: 0, kind: input, shape index: {}]   ;;  %s139_s2 = inlined_call_operand.vmem [shape: f32[32,1], index: 2, kind: output, shape index: {1}]   ;;  %s140_s1 = inlined_call_operand.vmem [shape: f32[32,1], index: 1, kind: output, shape index: {0}]  }
   0x1   :  { %v12_v0 = vld [vmem:[%s138_s0 + $0x10] sm:$0xff]  ;;  %v10_v1 = vld [vmem:[%s138_s0] sm:$0xff]  ;;  %v13_v5 = vld [vmem:[%s138_s0 + $0x18] sm:$0xff]  ;;  %68 = vrcp.f32 %v70_v12 }
   0x2   :  { %v21_v2 = vsel %vm14_vm0, %v12_v0, 0.0  ;;  %v15_v3 = vsel %vm14_vm0, %v10_v1, 0.0  ;;  %v43_v4 = vsel %vm14_vm0, %v10_v1, -inf  ;;  %v11_v6 = vld [vmem:[%s138_s0 + $0x8] sm:$0xff]  ;;  %v24_v7 = vsel %vm14_vm0, %v13_v5, 0.0 }
   0x3   :  { %22 = vadd.xlane.f32.xlu1 %v21_v2  ;;  %16 = vadd.xlane.f32.xlu0 %v15_v3  ;;  %v18_v8 = vsel %vm14_vm0, %v11_v6, 0.0  ;;  %v46_v9 = vsel %vm14_vm0, %v11_v6, -inf  ;;  %v52_v10 = vsel %vm14_vm0, %v13_v5, -inf  ;;  %v49_v11 = vsel %vm14_vm0, %v12_v0, -inf }
   0x4   :  { %44 = vmax.xlane.f32.xlu2 %v43_v4 }
   0x7   :  { %v69_v13 = vpop.eup %68 }
   0x8   :  { %v28_v14 = vmul.f32 64.0, %v69_v13  ;;  %vm32_vm1 = vweird.f32 %v69_v13 }
   0xa   :  { %v29_v15 = vsub.f32 1.0, %v28_v14 }
   0xb   :  { %25 = vadd.xlane.f32.xlu1 %v24_v7  ;;  %19 = vadd.xlane.f32.xlu0 %v18_v8 }
   0xc   :  { %47 = vmax.xlane.f32.xlu2 %v46_v9  ;;  %v30_v16 = vmul.f32 %v69_v13, %v29_v15 }
   0xe   :  { %v31_v17 = vadd.f32 %v69_v13, %v30_v16 }
  0x10   :  { %v33_v18 = vsel %vm32_vm1, %v69_v13, %v31_v17 }
  0x13   :  { %53 = vmax.xlane.f32.xlu1 %v52_v10  ;;  %50 = vmax.xlane.f32.xlu0 %v49_v11 }
  0x76   :  { %v23_v19 = vpop.xlane.xlu1 %22  ;;  %v17_v20 = vpop.xlane.xlu0 %16 }
  0x77   :  { %v36_v21 = vmul.f32 %v33_v18, %v23_v19  ;;  %v34_v22 = vmul.f32 %v33_v18, %v17_v20  ;;  %v45_v23 = vpop.xlane.xlu2 %44 }
  0x78   :  { %55 = vst.msk [vmem:[%s139_s2] sm:$0xff] %vm38_vm2, %v45_v23 }
  0x79   :  { %41 = vst.msk [vmem:[%s140_s1 + $0x10] sm:$0xff] %vm38_vm2, %v36_v21 }
  0x7a   :  { %39 = vst.msk [vmem:[%s140_s1] sm:$0xff] %vm38_vm2, %v34_v22 }
  0x7e   :  { %v26_v24 = vpop.xlane.xlu1 %25  ;;  %v20_v25 = vpop.xlane.xlu0 %19 }
  0x7f   :  { %v37_v26 = vmul.f32 %v33_v18, %v26_v24  ;;  %v35_v27 = vmul.f32 %v33_v18, %v20_v25  ;;  %v48_v28 = vpop.xlane.xlu2 %47 }
  0x80   :  { %56 = vst.msk [vmem:[%s139_s2 + $0x8] sm:$0xff] %vm38_vm2, %v48_v28 }
  0x81   :  { %42 = vst.msk [vmem:[%s140_s1 + $0x18] sm:$0xff] %vm38_vm2, %v37_v26 }
  0x82   :  { %40 = vst.msk [vmem:[%s140_s1 + $0x8] sm:$0xff] %vm38_vm2, %v35_v27 }
  0x86   :  { %v54_v29 = vpop.xlane.xlu1 %53  ;;  %v51_v30 = vpop.xlane.xlu0 %50 }
  0x87   :  { %58 = vst.msk [vmem:[%s139_s2 + $0x18] sm:$0xff] %vm38_vm2, %v54_v29 }
  0x88   :  { %57 = vst.msk [vmem:[%s139_s2 + $0x10] sm:$0xff] %vm38_vm2, %v51_v30 }

// kernel: raune_net_forward.34
= control target key start
LH: loop header
LB: loop body
LE: loop exit
PB: predicated region body
PF: predicated region fallthrough
CT: control target
= control target key end

     0   :  { %v151_v0 = vmov 0   ;;  %s234_s1 = inlined_call_operand.vmem [shape: f32[32,1], index: 1, kind: input, shape index: {}]   ;;  %s235_s0 = inlined_call_operand.vmem [shape: f32[32,64], index: 0, kind: input, shape index: {}]   ;;  %s236_s2 = inlined_call_operand.vmem [shape: f32[32,64], index: 2, kind: output, shape index: {}]  }
   0x1   :  { %134 = vset.pattern.permute.xlu1 %v151_v0  ;;  %133 = vset.pattern.permute.xlu0 %v151_v0  ;;  %v17_v1 = vld [vmem:[%s234_s1 + $0x10] sm:$0xff]  ;;  %v15_v2 = vld [vmem:[%s234_s1] sm:$0xff]  ;;  %v18_v3 = vld [vmem:[%s234_s1 + $0x18] sm:$0xff] }
   0x2   :  { %v130_v4 = vmul.f32 -1.442695, %v17_v1  ;;  %v128_v5 = vmul.f32 -1.442695, %v15_v2  ;;  %v131_v6 = vmul.f32 -1.442695, %v18_v3 }
   0x3   :  { %v16_v7 = vld [vmem:[%s234_s1 + $0x8] sm:$0xff]  ;;  %v13_v62 = vld [vmem:[%s235_s0 + $0x10] sm:$0xff]  ;;  %v11_v63 = vld [vmem:[%s235_s0] sm:$0xff] }
   0x4   :  { %135 = vpow2.f32 %v130_v4  ;;  %v129_v8 = vmul.f32 -1.442695, %v16_v7  ;;  %v14_v4 = vld [vmem:[%s235_s0 + $0x18] sm:$0xff] }
   0x5   :  { %137 = vpow2.f32 %v128_v5  ;;  %v12_v5 = vld [vmem:[%s235_s0 + $0x8] sm:$0xff] }
   0x6   :  { %139 = vpow2.f32 %v131_v6 }
   0x7   :  { %141 = vpow2.f32 %v129_v8 }
   0xa   :  { %v136_v9 = vpop.eup %135 }
   0xb   :  { %v138_v10 = vpop.eup %137  ;;  %v33_v11 = vadd.f32 1.0, %v136_v9 }
   0xc   :  { %v140_v12 = vpop.eup %139  ;;  %v31_v13 = vadd.f32 1.0, %v138_v10 }
   0xd   :  { %v142_v14 = vpop.eup %141  ;;  %143 = vrcp.f32 %v33_v11  ;;  %v34_v15 = vadd.f32 1.0, %v140_v12  ;;  %v74_v18 = vand.u32 2147483647, %v33_v11  ;;  %v76_v21 = vand.u32 2147483648, %v33_v11 }
   0xe   :  { %145 = vrcp.f32 %v31_v13  ;;  %v32_v16 = vadd.f32 1.0, %v142_v14  ;;  %v44_v22 = vand.u32 2147483647, %v31_v13  ;;  %v46_v24 = vand.u32 2147483648, %v31_v13 }
   0xf   :  { %147 = vrcp.f32 %v34_v15  ;;  %vm70_vm0 = vweird.f32 %v33_v11  ;;  %vm179_vm2 = vcmp.eq.f32.partialorder %v74_v18, 8.507059e+37  ;;  %vm40_vm3 = vweird.f32 %v31_v13 }
  0x10   :  { %149 = vrcp.f32 %v32_v16  ;;  %v77_v31 = vor.u32 1.1754944e-38, %v76_v21  ;;  %vm183_vm5 = vcmp.eq.f32.partialorder %v44_v22, 8.507059e+37  ;;  %v47_v36 = vor.u32 1.1754944e-38, %v46_v24 }
  0x11   :  { %vm85_vm7 = vweird.f32 %v34_v15  ;;  %v91_v41 = vand.u32 2147483648, %v34_v15  ;;  %vm55_vm10 = vweird.f32 %v32_v16  ;;  %v89_v46 = vand.u32 2147483647, %v34_v15 }
  0x12   :  { %v61_v47 = vand.u32 2147483648, %v32_v16  ;;  %v59_v52 = vand.u32 2147483647, %v32_v16 }
  0x13   :  { %v144_v17 = vpop.eup %143  ;;  %v92_v55 = vor.u32 1.1754944e-38, %v91_v41  ;;  %vm90_vm14 = vcmp.eq.f32.partialorder %v89_v46, 8.507059e+37 }
  0x14   :  { %v146_v19 = vpop.eup %145  ;;  %v66_v20 = vmul.f32 %v144_v17, %v33_v11  ;;  %vm71_vm1 = vweird.f32 %v144_v17  ;;  %v62_v58 = vor.u32 1.1754944e-38, %v61_v47  ;;  %vm60_vm15 = vcmp.eq.f32.partialorder %v59_v52, 8.507059e+37 }
  0x15   :  { %v36_v23 = vmul.f32 %v146_v19, %v31_v13  ;;  %v148_v26 = vpop.eup %147  ;;  %vm41_vm4 = vweird.f32 %v146_v19  ;;  %vm187_vm6 = vmor %vm70_vm0, %vm71_vm1  ;;  %vm119_vm0 = vcmask 523264  }
  0x16   :  { %v67_v25 = vsub.f32 1.0, %v66_v20  ;;  %v150_v29 = vpop.eup %149  ;;  %v81_v33 = vmul.f32 %v148_v26, %v34_v15  ;;  %vm191_vm8 = vmor %vm40_vm3, %vm41_vm4  ;;  %vm86_vm9 = vweird.f32 %v148_v26 }
  0x17   :  { %v37_v28 = vsub.f32 1.0, %v36_v23  ;;  %v51_v37 = vmul.f32 %v150_v29, %v32_v16  ;;  %vm56_vm11 = vweird.f32 %v150_v29  ;;  %vm202_vm12 = vmor %vm85_vm7, %vm86_vm9 }
  0x18   :  { %v68_v30 = vmul.f32 %v144_v17, %v67_v25  ;;  %v82_v40 = vsub.f32 1.0, %v81_v33  ;;  %vm57_vm13 = vmor %vm55_vm10, %vm56_vm11 }
  0x19   :  { %v38_v35 = vmul.f32 %v146_v19, %v37_v28  ;;  %v52_v43 = vsub.f32 1.0, %v51_v37 }
  0x1a   :  { %v69_v38 = vadd.f32 %v144_v17, %v68_v30  ;;  %v83_v45 = vmul.f32 %v148_v26, %v82_v40 }
  0x1b   :  { %v39_v42 = vadd.f32 %v146_v19, %v38_v35  ;;  %v53_v51 = vmul.f32 %v150_v29, %v52_v43 }
  0x1c   :  { %v73_v44 = vsel %vm187_vm6, %v144_v17, %v69_v38  ;;  %v84_v54 = vadd.f32 %v148_v26, %v83_v45 }
  0x1d   :  { %v78_v48 = vsel %vm179_vm2, %v77_v31, %v73_v44  ;;  %v43_v49 = vsel %vm191_vm8, %v146_v19, %v39_v42  ;;  %v54_v56 = vadd.f32 %v150_v29, %v53_v51 }
  0x1e   :  { %107 = vperm.xlu1 %134, %v78_v48   ;;  %v48_v53 = vsel %vm183_vm5, %v47_v36, %v43_v49  ;;  %v88_v57 = vsel %vm202_vm12, %v148_v26, %v84_v54 }
  0x1f   :  { %97 = vperm.xlu0 %133, %v48_v53   ;;  %v58_v59 = vsel %vm57_vm13, %v150_v29, %v54_v56  ;;  %v93_v60 = vsel %vm90_vm14, %v92_v55, %v88_v57 }
  0x20   :  { %v63_v61 = vsel %vm60_vm15, %v62_v58, %v58_v59 }
  0x26   :  { %112 = vperm.xlu1 %134, %v93_v60  }
  0x27   :  { %102 = vperm.xlu0 %133, %v63_v61  }
  0x90   :  { %v108_v0 = vpop.permute.xlu1 %107 }
  0x91   :  { %v117_v1 = vmul.f32 %v108_v0, %v13_v62  ;;  %v98_v2 = vpop.permute.xlu0 %97 }
  0x92   :  { %v115_v3 = vmul.f32 %v98_v2, %v11_v63 }
  0x93   :  { %122 = vst.msk [vmem:[%s236_s2 + $0x10] sm:$0xff] %vm119_vm0, %v117_v1 }
  0x94   :  { %120 = vst.msk [vmem:[%s236_s2] sm:$0xff] %vm119_vm0, %v115_v3 }
  0x98   :  { %v113_v6 = vpop.permute.xlu1 %112 }
  0x99   :  { %v118_v7 = vmul.f32 %v113_v6, %v14_v4  ;;  %v103_v8 = vpop.permute.xlu0 %102 }
  0x9a   :  { %v116_v9 = vmul.f32 %v103_v8, %v12_v5 }
  0x9b   :  { %123 = vst.msk [vmem:[%s236_s2 + $0x18] sm:$0xff] %vm119_vm0, %v118_v7 }
  0x9c   :  { %121 = vst.msk [vmem:[%s236_s2 + $0x8] sm:$0xff] %vm119_vm0, %v116_v9 }

// kernel: raune_net_forward.35
= control target key start
LH: loop header
LB: loop body
LE: loop exit
PB: predicated region body
PF: predicated region fallthrough
CT: control target
= control target key end

     0   :  { %s328_s6 = smov 0   ;;  %s330_s7 = smov 0   ;;  %s365_s0 = inlined_call_operand.vmem [shape: f32[2,16,64], index: 0, kind: input, shape index: {}]   ;;  %s366_s1 = inlined_call_operand.vmem [shape: f32[2,2,64], index: 1, kind: output, shape index: {}]  }
   0x1   :  { %s332_s8 = smov 0  }
   0x2 LB: > { %s23_s9 = sadd.s32 1, %s311_s7  ;;  %p259_p0 = scmp.ge.s32.totalorder %s315_s8, 1  ;;  %s315_s8 = sphi %s332_s8, %s11_s8   ;;  %s311_s7 = sphi %s330_s7, %s368_s7   ;;  %s307_s6 = sphi %s328_s6, %s367_s6  }
   0x3   : > { %p25_p1 = scmp.ge.s32.totalorder %s23_s9, 2  ;;  %p106_p2 = scmp.lt.s32.totalorder %s315_s8, 3 }
   0x5   : > { %s370_s9 = smov (%p25_p1, %s23_s9), 0  ;;  %p107_p3 = pnand %p259_p0, %p106_p2 }
   0x6   : > { %p131_p4 = scmp.lt.s32.totalorder (!%p107_p3), %s307_s6, 1 }
   0x7   : > { %110 = sbr.rel (%p107_p3) target bundleno = 34 (0x22), region = 24 }
   0xc   : > { %v317_v0 = vmov 16.0   ;;  %s372_s6 = smov (!%p131_p4, %s307_s6), 1  ;;  %vm148_vm0 = vcmask 523264   ;;  %vm166_vm2 = vcmask 516096  }
   0xd   : > { %291 = vrcp.f32 %v317_v0  ;;  %s265_s10 = sshll.u32 %s372_s6, 4  ;;  %s262_s14 = sshll.u32 %s372_s6, 1 }
   0xe   : > { %s138_s13 = scalar_lea.vmem %s365_s0, %s265_s10  ;;  %s145_s17 = scalar_lea.vmem %s366_s1, %s262_s14 }
   0xf   : > { %v146_v1 = vld [vmem:[%s138_s13] sm:$0xff]  ;;  %v147_v2 = vld [vmem:[%s138_s13 + $0x8] sm:$0xff] }
  0x10   : > { %v149_v4 = vsel %vm148_vm0, %v146_v1, 0.0  ;;  %v150_v5 = vsel %vm148_vm0, %v147_v2, 0.0  ;;  %v168_v6 = vsel %vm148_vm0, %v146_v1, -inf  ;;  %v169_v7 = vsel %vm148_vm0, %v147_v2, -inf }
  0x11   : > { %v151_v8 = vadd.f32 %v150_v5, %v149_v4  ;;  %v170_v10 = vmax.f32 %v168_v6, %v169_v7 }
  0x13   : > { %v292_v3 = vpop.eup %291  ;;  %v152_v11 = vrot.slane %v151_v8, 4  ;;  %v171_v13 = vrot.slane %v170_v10, 4 }
  0x14   : > { %v159_v9 = vmul.f32 16.0, %v292_v3  ;;  %vm163_vm1 = vweird.f32 %v292_v3 }
  0x15   : > { %v153_v14 = vadd.f32 %v152_v11, %v151_v8  ;;  %v172_v16 = vmax.f32 %v170_v10, %v171_v13 }
  0x16   : > { %v160_v12 = vsub.f32 1.0, %v159_v9 }
  0x17   : > { %v154_v17 = vrot.slane %v153_v14, 2  ;;  %v173_v18 = vrot.slane %v172_v16, 2 }
  0x18   : > { %v161_v15 = vmul.f32 %v292_v3, %v160_v12 }
  0x19   : > { %v155_v20 = vadd.f32 %v154_v17, %v153_v14  ;;  %v174_v21 = vmax.f32 %v172_v16, %v173_v18 }
  0x1a   : > { %v162_v19 = vadd.f32 %v292_v3, %v161_v15 }
  0x1b   : > { %v156_v22 = vrot.slane %v155_v20, 1  ;;  %v175_v23 = vrot.slane %v174_v21, 1 }
  0x1c   : > { %v164_v24 = vsel %vm163_vm1, %v292_v3, %v162_v19 }
  0x1d   : > { %v157_v25 = vadd.f32 %v156_v22, %v155_v20  ;;  %v176_v26 = vmax.f32 %v174_v21, %v175_v23 }
  0x1f   : > { %v165_v27 = vmul.f32 %v164_v24, %v157_v25  ;;  %177 = vst.msk [vmem:[%s145_s17 + $0x1] sm:$0x1] %vm166_vm2, %v176_v26 }
  0x21   : > { %167 = vst.msk [vmem:[%s145_s17] sm:$0x1] %vm166_vm2, %v165_v27 }
  0x22 PF: > { %s11_s8 = sadd.s32 1, %s315_s8   ;;  %s367_s6 = smov %s311_s7 }
  0x23   : > { %p8_p5 = scmp.ge.s32.totalorder %s11_s8, 4   ;;  %s368_s7 = smov %s370_s9 }
  0x25   :  { %10 = sbr.rel (!%p8_p5) target bundleno = 2 (0x2), region = 54 }

// kernel: raune_net_forward.32
= control target key start
LH: loop header
LB: loop body
LE: loop exit
PB: predicated region body
PF: predicated region fallthrough
CT: control target
= control target key end

     0   :  { %vm12_vm0 = vcmask 523264   ;;  %v139_v8 = vmov 64.0   ;;  %s201_s0 = inlined_call_operand.vmem [shape: f32[32,64], index: 0, kind: input, shape index: {}]   ;;  %s202_s1 = inlined_call_operand.vmem [shape: f32[32,64], index: 1, kind: output, shape index: {}]  }
   0x1   :  { %v10_v0 = vld [vmem:[%s201_s0 + $0x10] sm:$0xff]  ;;  %v8_v1 = vld [vmem:[%s201_s0] sm:$0xff]  ;;  %v11_v4 = vld [vmem:[%s201_s0 + $0x18] sm:$0xff]  ;;  %129 = vrcp.f32 %v139_v8 }
   0x2   :  { %v19_v2 = vsel %vm12_vm0, %v10_v0, 0.0  ;;  %v13_v3 = vsel %vm12_vm0, %v8_v1, 0.0  ;;  %v9_v5 = vld [vmem:[%s201_s0 + $0x8] sm:$0xff]  ;;  %v22_v6 = vsel %vm12_vm0, %v11_v4, 0.0 }
   0x3   :  { %20 = vadd.xlane.f32.xlu1 %v19_v2  ;;  %14 = vadd.xlane.f32.xlu0 %v13_v3  ;;  %v16_v7 = vsel %vm12_vm0, %v9_v5, 0.0 }
   0x7   :  { %v130_v9 = vpop.eup %129 }
   0x8   :  { %v26_v10 = vmul.f32 64.0, %v130_v9  ;;  %vm30_vm1 = vweird.f32 %v130_v9 }
   0xa   :  { %v27_v11 = vsub.f32 1.0, %v26_v10 }
   0xb   :  { %23 = vadd.xlane.f32.xlu1 %v22_v6  ;;  %17 = vadd.xlane.f32.xlu0 %v16_v7 }
   0xc   :  { %v28_v12 = vmul.f32 %v130_v9, %v27_v11 }
   0xe   :  { %v29_v13 = vadd.f32 %v130_v9, %v28_v12 }
  0x10   :  { %v31_v14 = vsel %vm30_vm1, %v130_v9, %v29_v13 }
  0x76   :  { %v21_v15 = vpop.xlane.xlu1 %20  ;;  %v15_v16 = vpop.xlane.xlu0 %14 }
  0x77   :  { %v34_v17 = vmul.f32 %v31_v14, %v21_v15  ;;  %v32_v18 = vmul.f32 %v31_v14, %v15_v16 }
  0x79   :  { %v166_v19 = vsub.f32 %v10_v0, %v34_v17  ;;  %v36_v20 = vsub.f32 %v8_v1, %v32_v18 }
  0x7b   :  { %v42_v21 = vmul.f32 %v166_v19, %v166_v19  ;;  %v40_v22 = vmul.f32 %v36_v20, %v36_v20 }
  0x7d   :  { %v50_v23 = vsel %vm12_vm0, %v42_v21, 0.0  ;;  %v44_v24 = vsel %vm12_vm0, %v40_v22, 0.0 }
  0x7e   :  { %v24_v25 = vpop.xlane.xlu1 %23  ;;  %51 = vadd.xlane.f32.xlu0 %v50_v23  ;;  %45 = vadd.xlane.f32.xlu2 %v44_v24  ;;  %v18_v26 = vpop.xlane.xlu0 %17 }
  0x7f   :  { %v35_v27 = vmul.f32 %v31_v14, %v24_v25  ;;  %v33_v28 = vmul.f32 %v31_v14, %v18_v26 }
  0x81   :  { %v172_v29 = vsub.f32 %v11_v4, %v35_v27  ;;  %v174_v30 = vsub.f32 %v9_v5, %v33_v28 }
  0x83   :  { %v43_v31 = vmul.f32 %v172_v29, %v172_v29  ;;  %v41_v32 = vmul.f32 %v174_v30, %v174_v30 }
  0x85   :  { %v53_v33 = vsel %vm12_vm0, %v43_v31, 0.0  ;;  %v47_v34 = vsel %vm12_vm0, %v41_v32, 0.0 }
  0x86   :  { %54 = vadd.xlane.f32.xlu1 %v53_v33  ;;  %48 = vadd.xlane.f32.xlu2 %v47_v34 }
  0xf1   :  { %v46_v35 = vpop.xlane.xlu2 %45  ;;  %v52_v36 = vpop.xlane.xlu0 %51 }
  0xf2   :  { %v56_v37 = vmul.f32 %v46_v35, %v31_v14  ;;  %v58_v38 = vmul.f32 %v52_v36, %v31_v14 }
  0xf4   :  { %v60_v39 = vadd.f32 1e-05, %v56_v37  ;;  %v62_v40 = vadd.f32 1e-05, %v58_v38 }
  0xf6   :  { %131 = vrsqrt.f32 %v60_v39  ;;  %vm70_vm4 = vweird.f32 %v60_v39  ;;  %vm90_vm6 = vweird.f32 %v62_v40 }
  0xf7   :  { %133 = vrsqrt.f32 %v62_v40 }
  0xf9   :  { %v55_v41 = vpop.xlane.xlu1 %54  ;;  %v49_v42 = vpop.xlane.xlu2 %48 }
  0xfa   :  { %v59_v43 = vmul.f32 %v55_v41, %v31_v14  ;;  %v57_v44 = vmul.f32 %v49_v42, %v31_v14 }
  0xfc   :  { %v132_v45 = vpop.eup %131  ;;  %v63_v46 = vadd.f32 1e-05, %v59_v43  ;;  %v61_v47 = vadd.f32 1e-05, %v57_v44 }
  0xfd   :  { %v134_v48 = vpop.eup %133  ;;  %v65_v49 = vmul.f32 %v132_v45, %v60_v39  ;;  %vm71_vm2 = vweird.f32 %v132_v45 }
  0xfe   :  { %v85_v50 = vmul.f32 %v134_v48, %v62_v40  ;;  %135 = vrsqrt.f32 %v63_v46  ;;  %vm91_vm3 = vweird.f32 %v134_v48  ;;  %vm72_vm5 = vmor %vm70_vm4, %vm71_vm2  ;;  %vm100_vm12 = vweird.f32 %v63_v46 }
  0xff   :  { %v66_v51 = vmul.f32 %v132_v45, %v65_v49  ;;  %137 = vrsqrt.f32 %v61_v47  ;;  %vm92_vm7 = vmor %vm90_vm6, %vm91_vm3  ;;  %vm80_vm14 = vweird.f32 %v61_v47 }
 0x100   :  { %v86_v52 = vmul.f32 %v134_v48, %v85_v50 }
 0x101   :  { %v67_v53 = vmul.f32 0.5, %v66_v51 }
 0x102   :  { %v87_v54 = vmul.f32 0.5, %v86_v52 }
 0x103   :  { %v68_v55 = vsub.f32 1.5, %v67_v53 }
 0x104   :  { %v136_v56 = vpop.eup %135  ;;  %v88_v57 = vsub.f32 1.5, %v87_v54 }
 0x105   :  { %v138_v58 = vpop.eup %137  ;;  %v69_v59 = vmul.f32 %v132_v45, %v68_v55  ;;  %v95_v60 = vmul.f32 %v136_v56, %v63_v46  ;;  %vm101_vm10 = vweird.f32 %v136_v56 }
 0x106   :  { %v89_v61 = vmul.f32 %v134_v48, %v88_v57  ;;  %v75_v62 = vmul.f32 %v138_v58, %v61_v47  ;;  %vm81_vm11 = vweird.f32 %v138_v58  ;;  %vm102_vm13 = vmor %vm100_vm12, %vm101_vm10 }
 0x107   :  { %v73_v63 = vsel %vm72_vm5, %v132_v45, %v69_v59  ;;  %v96_v0 = vmul.f32 %v136_v56, %v95_v60  ;;  %vm82_vm15 = vmor %vm80_vm14, %vm81_vm11 }
 0x108   :  { %v104_v1 = vmul.f32 %v73_v63, %v36_v20  ;;  %v93_v2 = vsel %vm92_vm7, %v134_v48, %v89_v61  ;;  %v76_v3 = vmul.f32 %v138_v58, %v75_v62 }
 0x109   :  { %v106_v4 = vmul.f32 %v93_v2, %v166_v19  ;;  %v97_v5 = vmul.f32 0.5, %v96_v0 }
 0x10a   :  { %vm108_vm8 = vcmp.ge.f32.partialorder %v104_v1, 0.0  ;;  %v112_v6 = vmul.f32 0.2, %v104_v1  ;;  %v77_v7 = vmul.f32 0.5, %v76_v3 }
 0x10b   :  { %vm110_vm9 = vcmp.ge.f32.partialorder %v106_v4, 0.0  ;;  %v114_v8 = vmul.f32 0.2, %v106_v4  ;;  %v98_v9 = vsub.f32 1.5, %v97_v5 }
 0x10c   :  { %v116_v10 = vsel %vm108_vm8, %v104_v1, %v112_v6  ;;  %v78_v11 = vsub.f32 1.5, %v77_v7 }
 0x10d   :  { %120 = vst.msk [vmem:[%s202_s1] sm:$0xff] %vm12_vm0, %v116_v10  ;;  %v118_v12 = vsel %vm110_vm9, %v106_v4, %v114_v8  ;;  %v99_v13 = vmul.f32 %v136_v56, %v98_v9 }
 0x10e   :  { %122 = vst.msk [vmem:[%s202_s1 + $0x10] sm:$0xff] %vm12_vm0, %v118_v12  ;;  %v79_v14 = vmul.f32 %v138_v58, %v78_v11 }
 0x10f   :  { %v103_v15 = vsel %vm102_vm13, %v136_v56, %v99_v13 }
 0x110   :  { %v107_v16 = vmul.f32 %v103_v15, %v172_v29  ;;  %v83_v17 = vsel %vm82_vm15, %v138_v58, %v79_v14 }
 0x111   :  { %v105_v18 = vmul.f32 %v83_v17, %v174_v30 }
 0x112   :  { %vm111_vm1 = vcmp.ge.f32.partialorder %v107_v16, 0.0  ;;  %v115_v19 = vmul.f32 0.2, %v107_v16 }
 0x113   :  { %vm109_vm2 = vcmp.ge.f32.partialorder %v105_v18, 0.0  ;;  %v113_v20 = vmul.f32 0.2, %v105_v18 }
 0x114   :  { %v119_v21 = vsel %vm111_vm1, %v107_v16, %v115_v19 }
 0x115   :  { %123 = vst.msk [vmem:[%s202_s1 + $0x18] sm:$0xff] %vm12_vm0, %v119_v21  ;;  %v117_v22 = vsel %vm109_vm2, %v105_v18, %v113_v20 }
 0x116   :  { %121 = vst.msk [vmem:[%s202_s1 + $0x8] sm:$0xff] %vm12_vm0, %v117_v22 }

// kernel: raune_net_forward.36
= control target key start
LH: loop header
LB: loop body
LE: loop exit
PB: predicated region body
PF: predicated region fallthrough
CT: control target
= control target key end

     0   :  { %vm186_vm0 = vcmask 1040384   ;;  %vm161_vm1 = vcmask 801792   ;;  %s554_s1 = inlined_call_operand.vmem [shape: bf16[98,1], index: 1, kind: input, shape index: {}]   ;;  %s555_s2 = inlined_call_operand.<no memory space> [shape: f32[1,1], index: 2, kind: input, shape index: {}]   ;;  %s556_s0 = inlined_call_operand.vmem [shape: bf16[128,98], index: 0, kind: input, shape index: {}]   ;;  %s557_s3 = inlined_call_operand.vmem [shape: f32[128,1], index: 3, kind: output, shape index: {}]  }
   0x1   :  { %v81_v0 = vld [vmem:[%s554_s1 + $0x30] sm:$0x1]  ;;  %v407_v4 = vld [vmem:[%s554_s1 + $0x28] sm:$0xff]  ;;  %v406_v5 = vld [vmem:[%s554_s1 + $0x20] sm:$0xff]  ;;  %v8_v8 = vstv %s555_s2 }
   0x2   :  { %v147_v1 = vunpack.c.l.b16 %v81_v0  ;;  %v405_v6 = vld [vmem:[%s554_s1 + $0x18] sm:$0xff]  ;;  %v404_v7 = vld [vmem:[%s554_s1 + $0x10] sm:$0xff]  ;;  %9 = vst [vmem:[#allocation3] sm:$0x1] %v8_v8  ;;  %v403_v9 = vld [vmem:[%s554_s1 + $0x8] sm:$0xff] }
   0x3   :  { %v402_v10 = vld [vmem:[%s554_s1] sm:$0xff]  ;;  %v396_v12 = vld [vmem:[%s556_s0 + $0x10] sm:$0xff]  ;;  %v395_v15 = vld [vmem:[%s556_s0 + $0x8] sm:$0xff] }
   0x4   :  { %v154_v2 = vpack.c.b16 %v147_v1, %v147_v1  ;;  %v394_v11 = vld [vmem:[%s556_s0] sm:$0xff]  ;;  %v400_v14 = vld [vmem:[%s556_s0 + $0x30] sm:$0xff]  ;;  %v397_v16 = vld [vmem:[%s556_s0 + $0x18] sm:$0xff] }
   0x5   :  { %v398_v13 = vld [vmem:[%s556_s0 + $0x20] sm:$0xff]  ;;  %v399_v17 = vld [vmem:[%s556_s0 + $0x28] sm:$0xff]  ;;  %v401_v18 = vld [vmem:[%s556_s0 + $0x38] sm:$0xff] }
   0x6   :  { %v188_v3 = vsel %vm186_vm0, %v154_v2, 0 }
   0x7   :  { %191 = vmatpush.bf16.msra.mxu0 %v188_v3  ;;  %408 = vmatpush.bf16.msra.mxu1 %v188_v3 }
   0x8   :  { %409 = vmatpush.bf16.msra.mxu2 %v188_v3  ;;  %410 = vmatpush.bf16.msra.mxu3 %v188_v3 }
   0x9   :  { %v429_v19 = vld [vmem:[#allocation3] ss:$0 sm:$0xff] }
   0xb   :  { %192 = vmatpush.bf16.msra.mxu0 %v407_v4  ;;  %411 = vmatpush.bf16.msra.mxu1 %v407_v4 }
   0xc   :  { %412 = vmatpush.bf16.msra.mxu2 %v407_v4  ;;  %413 = vmatpush.bf16.msra.mxu3 %v407_v4 }
   0xf   :  { %193 = vmatpush.bf16.msra.mxu0 %v406_v5  ;;  %414 = vmatpush.bf16.msra.mxu1 %v406_v5 }
  0x10   :  { %415 = vmatpush.bf16.msra.mxu2 %v406_v5  ;;  %416 = vmatpush.bf16.msra.mxu3 %v406_v5 }
  0x13   :  { %194 = vmatpush.bf16.msra.mxu0 %v405_v6  ;;  %417 = vmatpush.bf16.msra.mxu1 %v405_v6 }
  0x14   :  { %418 = vmatpush.bf16.msra.mxu2 %v405_v6  ;;  %419 = vmatpush.bf16.msra.mxu3 %v405_v6 }
  0x17   :  { %195 = vmatpush.bf16.msra.mxu0 %v404_v7  ;;  %420 = vmatpush.bf16.msra.mxu1 %v404_v7 }
  0x18   :  { %421 = vmatpush.bf16.msra.mxu2 %v404_v7  ;;  %422 = vmatpush.bf16.msra.mxu3 %v404_v7 }
  0x1b   :  { %196 = vmatpush.bf16.msra.mxu0 %v403_v9  ;;  %423 = vmatpush.bf16.msra.mxu1 %v403_v9 }
  0x1c   :  { %424 = vmatpush.bf16.msra.mxu2 %v403_v9  ;;  %425 = vmatpush.bf16.msra.mxu3 %v403_v9 }
  0x1f   :  { %197 = vmatpush.bf16.msra.mxu0 %v402_v10  ;;  %426 = vmatpush.bf16.msra.mxu1 %v402_v10 }
  0x20   :  { %427 = vmatpush.bf16.msra.mxu2 %v402_v10  ;;  %428 = vmatpush.bf16.msra.mxu3 %v402_v10 }
  0x22   :  { %386 = vmatmul.msk.bf16.vlgmr.msra.gmra.mxu0 %vm161_vm1, %v394_v11  ;;  %388 = vmatmul.msk.bf16.vlgmr.msra.gmra.mxu1 %vm161_vm1, %v396_v12 }
  0x23   :  { %390 = vmatmul.msk.bf16.vlgmr.msra.gmra.mxu2 %vm161_vm1, %v398_v13  ;;  %392 = vmatmul.msk.bf16.vlgmr.msra.gmra.mxu3 %vm161_vm1, %v400_v14 }
  0x32   :  { %387 = vmatmul.msk.bf16.gmra.mxu0 %vm161_vm1, %v395_v15  ;;  %389 = vmatmul.msk.bf16.gmra.mxu1 %vm161_vm1, %v397_v16 }
  0x33   :  { %391 = vmatmul.msk.bf16.gmra.mxu2 %vm161_vm1, %v399_v17  ;;  %393 = vmatmul.msk.bf16.gmra.mxu3 %vm161_vm1, %v401_v18 }
  0x9f   :  { %v199_v20 = vpop.f32.mrf.mxu0  ;;  %v209_v21 = vpop.f32.mrf.mxu1 }
  0xa0   :  { %v294_v22 = vadd.f32 %v429_v19, %v199_v20  ;;  %v298_v23 = vadd.f32 %v429_v19, %v209_v21 }
  0xa2   :  { %310 = vst [vmem:[%s557_s3] sm:$0xff] %v294_v22 }
  0xa3   :  { %314 = vst [vmem:[%s557_s3 + $0x20] sm:$0xff] %v298_v23 }
  0xa6   :  { %v219_v24 = vpop.f32.mrf.mxu2  ;;  %v229_v25 = vpop.f32.mrf.mxu3 }
  0xa7   :  { %v302_v26 = vadd.f32 %v429_v19, %v219_v24  ;;  %v306_v27 = vadd.f32 %v429_v19, %v229_v25  ;;  %v201_v28 = vpop.f32.mrf.mxu0  ;;  %v211_v29 = vpop.f32.mrf.mxu1 }
  0xa8   :  { %v295_v30 = vadd.f32 %v429_v19, %v201_v28  ;;  %v299_v31 = vadd.f32 %v429_v19, %v211_v29 }
  0xa9   :  { %318 = vst [vmem:[%s557_s3 + $0x40] sm:$0xff] %v302_v26 }
  0xaa   :  { %322 = vst [vmem:[%s557_s3 + $0x60] sm:$0xff] %v306_v27 }
  0xab   :  { %311 = vst [vmem:[%s557_s3 + $0x8] sm:$0xff] %v295_v30 }
  0xac   :  { %315 = vst [vmem:[%s557_s3 + $0x28] sm:$0xff] %v299_v31 }
  0xae   :  { %v221_v32 = vpop.f32.mrf.mxu2  ;;  %v231_v33 = vpop.f32.mrf.mxu3 }
  0xaf   :  { %v303_v34 = vadd.f32 %v429_v19, %v221_v32  ;;  %v307_v35 = vadd.f32 %v429_v19, %v231_v33  ;;  %v204_v36 = vpop.f32.mrf.mxu0  ;;  %v214_v37 = vpop.f32.mrf.mxu1 }
  0xb0   :  { %v296_v38 = vadd.f32 %v429_v19, %v204_v36  ;;  %v300_v39 = vadd.f32 %v429_v19, %v214_v37 }
  0xb1   :  { %319 = vst [vmem:[%s557_s3 + $0x48] sm:$0xff] %v303_v34 }
  0xb2   :  { %323 = vst [vmem:[%s557_s3 + $0x68] sm:$0xff] %v307_v35 }
  0xb3   :  { %312 = vst [vmem:[%s557_s3 + $0x10] sm:$0xff] %v296_v38 }
  0xb4   :  { %316 = vst [vmem:[%s557_s3 + $0x30] sm:$0xff] %v300_v39 }
  0xb6   :  { %v224_v40 = vpop.f32.mrf.mxu2  ;;  %v234_v41 = vpop.f32.mrf.mxu3 }
  0xb7   :  { %v304_v42 = vadd.f32 %v429_v19, %v224_v40  ;;  %v308_v43 = vadd.f32 %v429_v19, %v234_v41  ;;  %v206_v44 = vpop.f32.mrf.mxu0  ;;  %v216_v45 = vpop.f32.mrf.mxu1 }
  0xb8   :  { %v297_v46 = vadd.f32 %v429_v19, %v206_v44  ;;  %v301_v47 = vadd.f32 %v429_v19, %v216_v45 }
  0xb9   :  { %320 = vst [vmem:[%s557_s3 + $0x50] sm:$0xff] %v304_v42 }
  0xba   :  { %324 = vst [vmem:[%s557_s3 + $0x70] sm:$0xff] %v308_v43 }
  0xbb   :  { %313 = vst [vmem:[%s557_s3 + $0x18] sm:$0xff] %v297_v46 }
  0xbc   :  { %317 = vst [vmem:[%s557_s3 + $0x38] sm:$0xff] %v301_v47 }
  0xbe   :  { %v226_v48 = vpop.f32.mrf.mxu2  ;;  %v236_v49 = vpop.f32.mrf.mxu3 }
  0xbf   :  { %v305_v50 = vadd.f32 %v429_v19, %v226_v48  ;;  %v309_v51 = vadd.f32 %v429_v19, %v236_v49 }
  0xc1   :  { %321 = vst [vmem:[%s557_s3 + $0x58] sm:$0xff] %v305_v50 }
  0xc2   :  { %325 = vst [vmem:[%s557_s3 + $0x78] sm:$0xff] %v309_v51 }

// kernel: raune_net_forward.37
= control target key start
LH: loop header
LB: loop body
LE: loop exit
PB: predicated region body
PF: predicated region fallthrough
CT: control target
= control target key end

     0   :  { %s406_s9 = smov 0   ;;  %s408_s10 = smov 0   ;;  %s442_s0 = inlined_call_operand.vmem [shape: f32[2,16,64], index: 0, kind: input, shape index: {}]   ;;  %s443_s1 = inlined_call_operand.vmem [shape: f32[2,1,64], index: 1, kind: input, shape index: {}]   ;;  %s444_s2 = inlined_call_operand.vmem [shape: f32[2,16,64], index: 2, kind: output, shape index: {}]  }
   0x1   :  { %s410_s11 = smov 0  }
   0x2 LB: > { %s24_s12 = sadd.s32 1, %s385_s10  ;;  %p329_p0 = scmp.ge.s32.totalorder %s389_s11, 1  ;;  %s389_s11 = sphi %s410_s11, %s12_s11   ;;  %s385_s10 = sphi %s408_s10, %s446_s10   ;;  %s381_s9 = sphi %s406_s9, %s445_s9  }
   0x3   : > { %p26_p1 = scmp.ge.s32.totalorder %s24_s12, 2  ;;  %p144_p2 = scmp.lt.s32.totalorder %s389_s11, 3 }
   0x5   : > { %s448_s12 = smov (%p26_p1, %s24_s12), 0  ;;  %p145_p3 = pnand %p329_p0, %p144_p2 }
   0x6   : > { %p178_p4 = scmp.lt.s32.totalorder (!%p145_p3), %s381_s9, 1 }
   0x7   : > { %148 = sbr.rel (%p145_p3) target bundleno = 49 (0x31), region = 28 }
   0xc   : > { %s450_s9 = smov (!%p178_p4, %s381_s9), 1  ;;  %vm227_vm4 = vcmask 523264  }
   0xd   : > { %s191_s15 = scalar_lea.vmem %s443_s1, %s450_s9  ;;  %s337_s16 = sshll.u32 %s450_s9, 4 }
   0xe   : > { %v202_v0 = vld [vmem:[%s191_s15] sm:$0x1]  ;;  %s185_s19 = scalar_lea.vmem %s442_s0, %s337_s16  ;;  %s199_s22 = scalar_lea.vmem %s444_s2, %s337_s16 }
   0xf   : > { %v334_v1 = vmul.f32 -1.442695, %v202_v0  ;;  %v200_v13 = vld [vmem:[%s185_s19] sm:$0xff]  ;;  %v201_v14 = vld [vmem:[%s185_s19 + $0x8] sm:$0xff] }
  0x11   : > { %363 = vpow2.f32 %v334_v1 }
  0x17   : > { %v364_v2 = vpop.eup %363 }
  0x18   : > { %v206_v3 = vadd.f32 1.0, %v364_v2 }
  0x1a   : > { %365 = vrcp.f32 %v206_v3  ;;  %v218_v6 = vand.u32 2147483648, %v206_v3  ;;  %vm212_vm0 = vweird.f32 %v206_v3  ;;  %v216_v8 = vand.u32 2147483647, %v206_v3 }
  0x1c   : > { %v219_v10 = vor.u32 1.1754944e-38, %v218_v6  ;;  %vm217_vm3 = vcmp.eq.f32.partialorder %v216_v8, 8.507059e+37 }
  0x20   : > { %v366_v4 = vpop.eup %365 }
  0x21   : > { %v208_v5 = vmul.f32 %v366_v4, %v206_v3  ;;  %vm213_vm1 = vweird.f32 %v366_v4 }
  0x22   : > { %vm214_vm2 = vmor %vm212_vm0, %vm213_vm1 }
  0x23   : > { %v209_v7 = vsub.f32 1.0, %v208_v5 }
  0x25   : > { %v210_v9 = vmul.f32 %v366_v4, %v209_v7 }
  0x27   : > { %v211_v11 = vadd.f32 %v366_v4, %v210_v9 }
  0x29   : > { %v215_v12 = vsel %vm214_vm2, %v366_v4, %v211_v11 }
  0x2a   : > { %v220_v15 = vsel %vm217_vm3, %v219_v10, %v215_v12 }
  0x2b   : > { %v223_v16 = vperm.slane %v220_v15, 0 }
  0x2d   : > { %v225_v17 = vmul.f32 %v223_v16, %v200_v13  ;;  %v226_v18 = vmul.f32 %v223_v16, %v201_v14 }
  0x2f   : > { %228 = vst.msk [vmem:[%s199_s22] sm:$0xff] %vm227_vm4, %v225_v17 }
  0x30   : > { %229 = vst.msk [vmem:[%s199_s22 + $0x8] sm:$0xff] %vm227_vm4, %v226_v18 }
  0x31 PF: > { %s12_s11 = sadd.s32 1, %s389_s11   ;;  %s445_s9 = smov %s385_s10 }
  0x32   : > { %p9_p5 = scmp.ge.s32.totalorder %s12_s11, 4   ;;  %s446_s10 = smov %s448_s12 }
  0x34   :  { %11 = sbr.rel (!%p9_p5) target bundleno = 2 (0x2), region = 61 }

// kernel: raune_net_forward.38
= control target key start
LH: loop header
LB: loop body
LE: loop exit
PB: predicated region body
PF: predicated region fallthrough
CT: control target
= control target key end

     0   :  { %s471_s1 = inlined_call_operand.vmem [shape: bf16[256,32], index: 1, kind: input, shape index: {}]   ;;  %s472_s0 = inlined_call_operand.vmem [shape: bf16[32,256], index: 0, kind: input, shape index: {}]   ;;  %s473_s2 = inlined_call_operand.vmem [shape: f32[1,32], index: 2, kind: input, shape index: {}]   ;;  %s474_s3 = inlined_call_operand.vmem [shape: f32[32,32], index: 3, kind: output, shape index: {}]  }
   0x1   :  { %v338_v0 = vld [vmem:[%s471_s1 + $0x38] sm:$0xff]  ;;  %v337_v2 = vld [vmem:[%s471_s1 + $0x30] sm:$0xff]  ;;  %v336_v4 = vld [vmem:[%s471_s1 + $0x28] sm:$0xff] }
   0x2   :  { %v346_v1 = vld [vmem:[%s471_s1 + $0x78] sm:$0xff]  ;;  %178 = vmatpush.bf16.msra.mxu0 %v338_v0  ;;  %347 = vmatpush.bf16.msra.mxu2 %v338_v0  ;;  %v345_v3 = vld [vmem:[%s471_s1 + $0x70] sm:$0xff]  ;;  %v344_v5 = vld [vmem:[%s471_s1 + $0x68] sm:$0xff] }
   0x3   :  { %197 = vmatpush.bf16.msra.mxu1 %v346_v1  ;;  %355 = vmatpush.bf16.msra.mxu3 %v346_v1  ;;  %v335_v6 = vld [vmem:[%s471_s1 + $0x20] sm:$0xff]  ;;  %v334_v8 = vld [vmem:[%s471_s1 + $0x18] sm:$0xff]  ;;  %v333_v10 = vld [vmem:[%s471_s1 + $0x10] sm:$0xff] }
   0x4   :  { %v343_v7 = vld [vmem:[%s471_s1 + $0x60] sm:$0xff]  ;;  %v342_v9 = vld [vmem:[%s471_s1 + $0x58] sm:$0xff]  ;;  %v341_v11 = vld [vmem:[%s471_s1 + $0x50] sm:$0xff] }
   0x5   :  { %v332_v12 = vld [vmem:[%s471_s1 + $0x8] sm:$0xff]  ;;  %v331_v14 = vld [vmem:[%s471_s1] sm:$0xff]  ;;  %v257_v18 = vld [vmem:[%s472_s0 + $0x10] sm:$0xf] }
   0x6   :  { %179 = vmatpush.bf16.msra.mxu0 %v337_v2  ;;  %348 = vmatpush.bf16.msra.mxu2 %v337_v2  ;;  %v340_v13 = vld [vmem:[%s471_s1 + $0x48] sm:$0xff]  ;;  %v339_v15 = vld [vmem:[%s471_s1 + $0x40] sm:$0xff]  ;;  %v330_v19 = vld [vmem:[%s472_s0 + $0x14] sm:$0xf0] }
   0x7   :  { %198 = vmatpush.bf16.msra.mxu1 %v345_v3  ;;  %356 = vmatpush.bf16.msra.mxu3 %v345_v3  ;;  %v249_v16 = vld [vmem:[%s472_s0] sm:$0xf]  ;;  %v328_v17 = vld [vmem:[%s472_s0 + $0x4] sm:$0xf0]  ;;  %v327_v20 = vld [vmem:[%s472_s0 + $0x4] sm:$0xf]  ;;  %v258_v25 = vor.u32 %v330_v19, %v257_v18 }
   0x8   :  { %v251_v21 = vld [vmem:[%s472_s0 + $0x8] sm:$0xf0]  ;;  %v329_v22 = vld [vmem:[%s472_s0 + $0x14] sm:$0xf]  ;;  %v259_v23 = vld [vmem:[%s472_s0 + $0x18] sm:$0xf0]  ;;  %v250_v24 = vor.u32 %v328_v17, %v249_v16 }
   0x9   :  { %v254_v26 = vor.u32 %v327_v20, %v251_v21  ;;  %v262_v27 = vor.u32 %v329_v22, %v259_v23  ;;  %v363_v29 = vld [vmem:[%s473_s2] ss:$0 sm:$0xff] }
   0xa   :  { %180 = vmatpush.bf16.msra.mxu0 %v336_v4  ;;  %349 = vmatpush.bf16.msra.mxu2 %v336_v4 }
   0xb   :  { %199 = vmatpush.bf16.msra.mxu1 %v344_v5  ;;  %357 = vmatpush.bf16.msra.mxu3 %v344_v5 }
   0xe   :  { %181 = vmatpush.bf16.msra.mxu0 %v335_v6  ;;  %350 = vmatpush.bf16.msra.mxu2 %v335_v6 }
   0xf   :  { %200 = vmatpush.bf16.msra.mxu1 %v343_v7  ;;  %358 = vmatpush.bf16.msra.mxu3 %v343_v7 }
  0x12   :  { %182 = vmatpush.bf16.msra.mxu0 %v334_v8  ;;  %351 = vmatpush.bf16.msra.mxu2 %v334_v8 }
  0x13   :  { %201 = vmatpush.bf16.msra.mxu1 %v342_v9  ;;  %359 = vmatpush.bf16.msra.mxu3 %v342_v9 }
  0x16   :  { %183 = vmatpush.bf16.msra.mxu0 %v333_v10  ;;  %352 = vmatpush.bf16.msra.mxu2 %v333_v10 }
  0x17   :  { %202 = vmatpush.bf16.msra.mxu1 %v341_v11  ;;  %360 = vmatpush.bf16.msra.mxu3 %v341_v11 }
  0x1a   :  { %184 = vmatpush.bf16.msra.mxu0 %v332_v12  ;;  %353 = vmatpush.bf16.msra.mxu2 %v332_v12 }
  0x1b   :  { %203 = vmatpush.bf16.msra.mxu1 %v340_v13  ;;  %361 = vmatpush.bf16.msra.mxu3 %v340_v13 }
  0x1e   :  { %185 = vmatpush.bf16.msra.mxu0 %v331_v14  ;;  %354 = vmatpush.bf16.msra.mxu2 %v331_v14 }
  0x1f   :  { %204 = vmatpush.bf16.msra.mxu1 %v339_v15  ;;  %362 = vmatpush.bf16.msra.mxu3 %v339_v15 }
  0x21   :  { %186 = vmatmul.bf16.vlgmr.msra.gmra.mxu0 %v250_v24  ;;  %191 = vmatmul.bf16.vlgmr.msra.gmra.mxu2 %v258_v25 }
  0x22   :  { %205 = vmatmul.bf16.vlgmr.msra.gmra.mxu1 %v254_v26  ;;  %210 = vmatmul.bf16.vlgmr.msra.gmra.mxu3 %v262_v27 }
  0x9e   :  { %v187_v28 = vpop.f32.mrf.mxu0 }
  0x9f   :  { %v206_v30 = vpop.f32.mrf.mxu1 }
  0xa0   :  { %v207_v31 = vadd.f32 %v206_v30, %v187_v28 }
  0xa2   :  { %v235_v32 = vadd.f32 %v363_v29, %v207_v31 }
  0xa4   :  { %239 = vst [vmem:[%s474_s3] sm:$0xff] %v235_v32  ;;  %v192_v33 = vpop.f32.mrf.mxu2 }
  0xa5   :  { %v211_v34 = vpop.f32.mrf.mxu3 }
  0xa6   :  { %v212_v35 = vadd.f32 %v211_v34, %v192_v33  ;;  %v189_v36 = vpop.f32.mrf.mxu0 }
  0xa7   :  { %v208_v37 = vpop.f32.mrf.mxu1 }
  0xa8   :  { %v237_v38 = vadd.f32 %v363_v29, %v212_v35  ;;  %v209_v39 = vadd.f32 %v208_v37, %v189_v36 }
  0xaa   :  { %241 = vst [vmem:[%s474_s3 + $0x10] sm:$0xff] %v237_v38  ;;  %v236_v40 = vadd.f32 %v363_v29, %v209_v39 }
  0xac   :  { %240 = vst [vmem:[%s474_s3 + $0x8] sm:$0xff] %v236_v40  ;;  %v194_v41 = vpop.f32.mrf.mxu2 }
  0xad   :  { %v213_v42 = vpop.f32.mrf.mxu3 }
  0xae   :  { %v214_v43 = vadd.f32 %v213_v42, %v194_v41 }
  0xb0   :  { %v238_v44 = vadd.f32 %v363_v29, %v214_v43 }
  0xb2   :  { %242 = vst [vmem:[%s474_s3 + $0x18] sm:$0xff] %v238_v44 }

// kernel: raune_net_forward.40
= control target key start
LH: loop header
LB: loop body
LE: loop exit
PB: predicated region body
PF: predicated region fallthrough
CT: control target
= control target key end

     0   :  { %vm18_vm0 = vcmask 130048   ;;  %v110_v24 = vmov 16.0   ;;  %vm58_vm2 = vcmask 7168   ;;  %s230_s0 = inlined_call_operand.vmem [shape: f32[64,16], index: 0, kind: input, shape index: {}]   ;;  %s231_s1 = inlined_call_operand.vmem [shape: f32[64,1], index: 1, kind: output, shape index: {0}]   ;;  %s232_s2 = inlined_call_operand.vmem [shape: f32[64,1], index: 2, kind: output, shape index: {1}]  }
   0x1   :  { %v10_v0 = vld [vmem:[%s230_s0] sm:$0xff]  ;;  %v12_v2 = vld [vmem:[%s230_s0 + $0x10] sm:$0xff]  ;;  %v11_v6 = vld [vmem:[%s230_s0 + $0x8] sm:$0xff]  ;;  %108 = vrcp.f32 %v110_v24 }
   0x2   :  { %v14_v1 = vld [vmem:[%s230_s0 + $0x20] sm:$0xff]  ;;  %v19_v3 = vsel %vm18_vm0, %v10_v0, 0.0  ;;  %v25_v5 = vsel %vm18_vm0, %v12_v2, 0.0  ;;  %v15_v7 = vld [vmem:[%s230_s0 + $0x28] sm:$0xff]  ;;  %v13_v8 = vld [vmem:[%s230_s0 + $0x18] sm:$0xff]  ;;  %v22_v9 = vsel %vm18_vm0, %v11_v6, 0.0 }
   0x3   :  { %v31_v4 = vsel %vm18_vm0, %v14_v1, 0.0  ;;  %20 = vadd.xlane.f32.xlu0 %v19_v3  ;;  %26 = vadd.xlane.f32.xlu1 %v25_v5  ;;  %v34_v10 = vsel %vm18_vm0, %v15_v7, 0.0  ;;  %v28_v11 = vsel %vm18_vm0, %v13_v8, 0.0  ;;  %v16_v12 = vld [vmem:[%s230_s0 + $0x30] sm:$0xff]  ;;  %v17_v13 = vld [vmem:[%s230_s0 + $0x38] sm:$0xff]  ;;  %v67_v15 = vsel %vm18_vm0, %v10_v0, -inf }
   0x4   :  { %32 = vadd.xlane.f32.xlu2 %v31_v4  ;;  %v37_v14 = vsel %vm18_vm0, %v16_v12, 0.0  ;;  %v40_v16 = vsel %vm18_vm0, %v17_v13, 0.0  ;;  %v70_v17 = vsel %vm18_vm0, %v11_v6, -inf  ;;  %v76_v18 = vsel %vm18_vm0, %v13_v8, -inf }
   0x5   :  { %v73_v19 = vsel %vm18_vm0, %v12_v2, -inf  ;;  %v79_v20 = vsel %vm18_vm0, %v14_v1, -inf  ;;  %v85_v21 = vsel %vm18_vm0, %v16_v12, -inf  ;;  %v82_v22 = vsel %vm18_vm0, %v15_v7, -inf }
   0x6   :  { %v88_v23 = vsel %vm18_vm0, %v17_v13, -inf }
   0x7   :  { %v109_v25 = vpop.eup %108 }
   0x8   :  { %v44_v26 = vmul.f32 16.0, %v109_v25  ;;  %vm48_vm1 = vweird.f32 %v109_v25 }
   0xa   :  { %v45_v27 = vsub.f32 1.0, %v44_v26 }
   0xb   :  { %23 = vadd.xlane.f32.xlu0 %v22_v9  ;;  %29 = vadd.xlane.f32.xlu1 %v28_v11 }
   0xc   :  { %35 = vadd.xlane.f32.xlu2 %v34_v10  ;;  %v46_v28 = vmul.f32 %v109_v25, %v45_v27 }
   0xe   :  { %v47_v29 = vadd.f32 %v109_v25, %v46_v28 }
  0x10   :  { %v49_v30 = vsel %vm48_vm1, %v109_v25, %v47_v29 }
  0x13   :  { %38 = vadd.xlane.f32.xlu0 %v37_v14  ;;  %41 = vadd.xlane.f32.xlu1 %v40_v16 }
  0x14   :  { %68 = vmax.xlane.f32.xlu2 %v67_v15 }
  0x1b   :  { %71 = vmax.xlane.f32.xlu0 %v70_v17  ;;  %74 = vmax.xlane.f32.xlu1 %v73_v19 }
  0x1c   :  { %77 = vmax.xlane.f32.xlu2 %v76_v18 }
  0x23   :  { %80 = vmax.xlane.f32.xlu0 %v79_v20  ;;  %83 = vmax.xlane.f32.xlu1 %v82_v22 }
  0x24   :  { %86 = vmax.xlane.f32.xlu2 %v85_v21 }
  0x2b   :  { %89 = vmax.xlane.f32.xlu0 %v88_v23 }
  0x76   :  { %v21_v31 = vpop.xlane.xlu0 %20  ;;  %v27_v35 = vpop.xlane.xlu1 %26 }
  0x77   :  { %v33_v32 = vpop.xlane.xlu2 %32  ;;  %v50_v33 = vmul.f32 %v49_v30, %v21_v31  ;;  %v52_v36 = vmul.f32 %v49_v30, %v27_v35 }
  0x78   :  { %v54_v34 = vmul.f32 %v49_v30, %v33_v32 }
  0x79   :  { %59 = vst.msk [vmem:[%s231_s1] sm:$0xff] %vm58_vm2, %v50_v33 }
  0x7a   :  { %63 = vst.msk [vmem:[%s231_s1 + $0x20] sm:$0xff] %vm58_vm2, %v54_v34 }
  0x7b   :  { %61 = vst.msk [vmem:[%s231_s1 + $0x10] sm:$0xff] %vm58_vm2, %v52_v36 }
  0x7e   :  { %v24_v37 = vpop.xlane.xlu0 %23  ;;  %v30_v41 = vpop.xlane.xlu1 %29 }
  0x7f   :  { %v36_v38 = vpop.xlane.xlu2 %35  ;;  %v51_v39 = vmul.f32 %v49_v30, %v24_v37  ;;  %v53_v42 = vmul.f32 %v49_v30, %v30_v41 }
  0x80   :  { %v55_v40 = vmul.f32 %v49_v30, %v36_v38 }
  0x81   :  { %60 = vst.msk [vmem:[%s231_s1 + $0x8] sm:$0xff] %vm58_vm2, %v51_v39 }
  0x82   :  { %64 = vst.msk [vmem:[%s231_s1 + $0x28] sm:$0xff] %vm58_vm2, %v55_v40 }
  0x83   :  { %62 = vst.msk [vmem:[%s231_s1 + $0x18] sm:$0xff] %vm58_vm2, %v53_v42 }
  0x86   :  { %v39_v43 = vpop.xlane.xlu0 %38  ;;  %v42_v46 = vpop.xlane.xlu1 %41 }
  0x87   :  { %v69_v44 = vpop.xlane.xlu2 %68  ;;  %v56_v45 = vmul.f32 %v49_v30, %v39_v43  ;;  %v57_v47 = vmul.f32 %v49_v30, %v42_v46 }
  0x88   :  { %91 = vst.msk [vmem:[%s232_s2] sm:$0xff] %vm58_vm2, %v69_v44 }
  0x89   :  { %65 = vst.msk [vmem:[%s231_s1 + $0x30] sm:$0xff] %vm58_vm2, %v56_v45 }
  0x8a   :  { %66 = vst.msk [vmem:[%s231_s1 + $0x38] sm:$0xff] %vm58_vm2, %v57_v47 }
  0x8e   :  { %v72_v48 = vpop.xlane.xlu0 %71  ;;  %v75_v50 = vpop.xlane.xlu1 %74 }
  0x8f   :  { %v78_v49 = vpop.xlane.xlu2 %77  ;;  %92 = vst.msk [vmem:[%s232_s2 + $0x8] sm:$0xff] %vm58_vm2, %v72_v48 }
  0x90   :  { %93 = vst.msk [vmem:[%s232_s2 + $0x10] sm:$0xff] %vm58_vm2, %v75_v50 }
  0x91   :  { %94 = vst.msk [vmem:[%s232_s2 + $0x18] sm:$0xff] %vm58_vm2, %v78_v49 }
  0x96   :  { %v81_v51 = vpop.xlane.xlu0 %80  ;;  %v84_v53 = vpop.xlane.xlu1 %83 }
  0x97   :  { %v87_v52 = vpop.xlane.xlu2 %86  ;;  %95 = vst.msk [vmem:[%s232_s2 + $0x20] sm:$0xff] %vm58_vm2, %v81_v51 }
  0x98   :  { %96 = vst.msk [vmem:[%s232_s2 + $0x28] sm:$0xff] %vm58_vm2, %v84_v53 }
  0x99   :  { %97 = vst.msk [vmem:[%s232_s2 + $0x30] sm:$0xff] %vm58_vm2, %v87_v52 }
  0x9e   :  { %v90_v54 = vpop.xlane.xlu0 %89 }
  0x9f   :  { %98 = vst.msk [vmem:[%s232_s2 + $0x38] sm:$0xff] %vm58_vm2, %v90_v54 }

// kernel: raune_net_forward.39
= control target key start
LH: loop header
LB: loop body
LE: loop exit
PB: predicated region body
PF: predicated region fallthrough
CT: control target
= control target key end

     0   :  { %vm16_vm0 = vcmask 130048   ;;  %v255_v16 = vmov 16.0   ;;  %s426_s0 = inlined_call_operand.vmem [shape: f32[64,16], index: 0, kind: input, shape index: {}]   ;;  %s427_s1 = inlined_call_operand.vmem [shape: f32[64,16], index: 1, kind: output, shape index: {}]  }
   0x1   :  { %v12_v0 = vld [vmem:[%s426_s0 + $0x20] sm:$0xff]  ;;  %v10_v1 = vld [vmem:[%s426_s0 + $0x10] sm:$0xff]  ;;  %v13_v6 = vld [vmem:[%s426_s0 + $0x28] sm:$0xff]  ;;  %237 = vrcp.f32 %v255_v16 }
   0x2   :  { %v8_v2 = vld [vmem:[%s426_s0] sm:$0xff]  ;;  %v29_v3 = vsel %vm16_vm0, %v12_v0, 0.0  ;;  %v23_v4 = vsel %vm16_vm0, %v10_v1, 0.0  ;;  %v11_v7 = vld [vmem:[%s426_s0 + $0x18] sm:$0xff]  ;;  %v9_v8 = vld [vmem:[%s426_s0 + $0x8] sm:$0xff]  ;;  %v32_v9 = vsel %vm16_vm0, %v13_v6, 0.0 }
   0x3   :  { %v17_v5 = vsel %vm16_vm0, %v8_v2, 0.0  ;;  %30 = vadd.xlane.f32.xlu2 %v29_v3  ;;  %24 = vadd.xlane.f32.xlu1 %v23_v4  ;;  %v26_v10 = vsel %vm16_vm0, %v11_v7, 0.0  ;;  %v20_v11 = vsel %vm16_vm0, %v9_v8, 0.0  ;;  %v15_v12 = vld [vmem:[%s426_s0 + $0x38] sm:$0xff]  ;;  %v14_v13 = vld [vmem:[%s426_s0 + $0x30] sm:$0xff] }
   0x4   :  { %18 = vadd.xlane.f32.xlu0 %v17_v5  ;;  %v38_v14 = vsel %vm16_vm0, %v15_v12, 0.0  ;;  %v35_v15 = vsel %vm16_vm0, %v14_v13, 0.0 }
   0x7   :  { %v238_v17 = vpop.eup %237 }
   0x8   :  { %v42_v18 = vmul.f32 16.0, %v238_v17  ;;  %vm46_vm1 = vweird.f32 %v238_v17 }
   0xa   :  { %v43_v19 = vsub.f32 1.0, %v42_v18 }
   0xb   :  { %33 = vadd.xlane.f32.xlu2 %v32_v9  ;;  %27 = vadd.xlane.f32.xlu1 %v26_v10 }
   0xc   :  { %21 = vadd.xlane.f32.xlu0 %v20_v11  ;;  %v44_v20 = vmul.f32 %v238_v17, %v43_v19 }
   0xe   :  { %v45_v21 = vadd.f32 %v238_v17, %v44_v20 }
  0x10   :  { %v298_v22 = vsel %vm46_vm1, %v238_v17, %v45_v21 }
  0x13   :  { %39 = vadd.xlane.f32.xlu1 %v38_v14 }
  0x14   :  { %36 = vadd.xlane.f32.xlu0 %v35_v15 }
  0x76   :  { %v31_v23 = vpop.xlane.xlu2 %30  ;;  %v25_v24 = vpop.xlane.xlu1 %24 }
  0x77   :  { %v50_v25 = vmul.f32 %v298_v22, %v25_v24  ;;  %v19_v26 = vpop.xlane.xlu0 %18  ;;  %v52_v39 = vmul.f32 %v298_v22, %v31_v23 }
  0x78   :  { %v48_v27 = vmul.f32 %v298_v22, %v19_v26 }
  0x79   :  { %v302_v28 = vsub.f32 %v10_v1, %v50_v25  ;;  %v326_v46 = vsub.f32 %v12_v0, %v52_v39 }
  0x7a   :  { %v304_v29 = vsub.f32 %v8_v2, %v48_v27 }
  0x7b   :  { %v66_v30 = vmul.f32 %v302_v28, %v302_v28  ;;  %v68_v55 = vmul.f32 %v326_v46, %v326_v46 }
  0x7c   :  { %v64_v31 = vmul.f32 %v304_v29, %v304_v29 }
  0x7d   :  { %v78_v32 = vsel %vm16_vm0, %v66_v30, 0.0  ;;  %v84_v58 = vsel %vm16_vm0, %v68_v55, 0.0 }
  0x7e   :  { %v34_v33 = vpop.xlane.xlu2 %33  ;;  %79 = vadd.xlane.f32.xlu1 %v78_v32  ;;  %v28_v34 = vpop.xlane.xlu1 %27  ;;  %v72_v35 = vsel %vm16_vm0, %v64_v31, 0.0 }
  0x7f   :  { %v53_v36 = vmul.f32 %v298_v22, %v34_v33  ;;  %v51_v37 = vmul.f32 %v298_v22, %v28_v34  ;;  %73 = vadd.xlane.f32.xlu2 %v72_v35  ;;  %v22_v38 = vpop.xlane.xlu0 %21 }
  0x80   :  { %v49_v40 = vmul.f32 %v298_v22, %v22_v38 }
  0x81   :  { %v316_v41 = vsub.f32 %v13_v6, %v53_v36  ;;  %v318_v42 = vsub.f32 %v11_v7, %v51_v37 }
  0x82   :  { %v320_v43 = vsub.f32 %v9_v8, %v49_v40 }
  0x83   :  { %v69_v44 = vmul.f32 %v316_v41, %v316_v41  ;;  %v67_v45 = vmul.f32 %v318_v42, %v318_v42 }
  0x84   :  { %v65_v47 = vmul.f32 %v320_v43, %v320_v43 }
  0x85   :  { %v87_v48 = vsel %vm16_vm0, %v69_v44, 0.0  ;;  %v81_v49 = vsel %vm16_vm0, %v67_v45, 0.0 }
  0x86   :  { %88 = vadd.xlane.f32.xlu1 %v87_v48  ;;  %v75_v50 = vsel %vm16_vm0, %v65_v47, 0.0  ;;  %v40_v51 = vpop.xlane.xlu1 %39 }
  0x87   :  { %82 = vadd.xlane.f32.xlu2 %v81_v49  ;;  %76 = vadd.xlane.f32.xlu0 %v75_v50  ;;  %v37_v52 = vpop.xlane.xlu0 %36  ;;  %v55_v54 = vmul.f32 %v298_v22, %v40_v51 }
  0x88   :  { %v54_v53 = vmul.f32 %v298_v22, %v37_v52 }
  0x89   :  { %v339_v57 = vsub.f32 %v15_v12, %v55_v54 }
  0x8a   :  { %v337_v56 = vsub.f32 %v14_v13, %v54_v53 }
  0x8b   :  { %v71_v61 = vmul.f32 %v339_v57, %v339_v57 }
  0x8c   :  { %v70_v59 = vmul.f32 %v337_v56, %v337_v56 }
  0x8d   :  { %v93_v62 = vsel %vm16_vm0, %v71_v61, 0.0 }
  0x8e   :  { %v90_v60 = vsel %vm16_vm0, %v70_v59, 0.0 }
  0x8f   :  { %85 = vadd.xlane.f32.xlu0 %v84_v58  ;;  %91 = vadd.xlane.f32.xlu2 %v90_v60 }
  0x97   :  { %94 = vadd.xlane.f32.xlu0 %v93_v62 }
  0xf1   :  { %v80_v63 = vpop.xlane.xlu1 %79 }
  0xf2   :  { %v98_v0 = vmul.f32 %v80_v63, %v298_v22  ;;  %v74_v1 = vpop.xlane.xlu2 %73 }
  0xf3   :  { %v96_v2 = vmul.f32 %v74_v1, %v298_v22 }
  0xf4   :  { %v106_v3 = vadd.f32 1e-05, %v98_v0 }
  0xf5   :  { %v104_v4 = vadd.f32 1e-05, %v96_v2 }
  0xf6   :  { %239 = vrsqrt.f32 %v106_v3  ;;  %vm138_vm2 = vweird.f32 %v106_v3 }
  0xf7   :  { %241 = vrsqrt.f32 %v104_v4  ;;  %vm118_vm5 = vweird.f32 %v104_v4 }
  0xf9   :  { %v89_v5 = vpop.xlane.xlu1 %88 }
  0xfa   :  { %v101_v6 = vmul.f32 %v89_v5, %v298_v22  ;;  %v83_v7 = vpop.xlane.xlu2 %82  ;;  %v77_v8 = vpop.xlane.xlu0 %76 }
  0xfb   :  { %v99_v9 = vmul.f32 %v83_v7, %v298_v22  ;;  %v97_v10 = vmul.f32 %v77_v8, %v298_v22 }
  0xfc   :  { %v240_v11 = vpop.eup %239  ;;  %v109_v12 = vadd.f32 1e-05, %v101_v6 }
  0xfd   :  { %v242_v13 = vpop.eup %241  ;;  %v133_v14 = vmul.f32 %v240_v11, %v106_v3  ;;  %v353_v15 = vadd.f32 1e-05, %v99_v9  ;;  %v355_v16 = vadd.f32 1e-05, %v97_v10  ;;  %vm139_vm3 = vweird.f32 %v240_v11 }
  0xfe   :  { %v113_v17 = vmul.f32 %v242_v13, %v104_v4  ;;  %243 = vrsqrt.f32 %v109_v12  ;;  %vm119_vm4 = vweird.f32 %v242_v13  ;;  %vm140_vm6 = vmor %vm138_vm2, %vm139_vm3  ;;  %vm168_vm7 = vweird.f32 %v109_v12 }
  0xff   :  { %v134_v18 = vmul.f32 %v240_v11, %v133_v14  ;;  %245 = vrsqrt.f32 %v353_v15  ;;  %vm120_vm8 = vmor %vm118_vm5, %vm119_vm4  ;;  %vm148_vm9 = vweird.f32 %v353_v15  ;;  %vm128_vm2 = vweird.f32 %v355_v16 }
 0x100   :  { %v114_v19 = vmul.f32 %v242_v13, %v113_v17  ;;  %247 = vrsqrt.f32 %v355_v16 }
 0x101   :  { %v135_v20 = vmul.f32 0.5, %v134_v18 }
 0x102   :  { %v115_v21 = vmul.f32 0.5, %v114_v19  ;;  %v92_v23 = vpop.xlane.xlu2 %91  ;;  %v86_v24 = vpop.xlane.xlu0 %85 }
 0x103   :  { %v136_v25 = vsub.f32 1.5, %v135_v20  ;;  %v102_v26 = vmul.f32 %v92_v23, %v298_v22  ;;  %v100_v27 = vmul.f32 %v86_v24, %v298_v22 }
 0x104   :  { %v244_v30 = vpop.eup %243  ;;  %v116_v31 = vsub.f32 1.5, %v115_v21 }
 0x105   :  { %v246_v32 = vpop.eup %245  ;;  %v137_v33 = vmul.f32 %v240_v11, %v136_v25  ;;  %v163_v34 = vmul.f32 %v244_v30, %v109_v12  ;;  %v361_v35 = vadd.f32 1e-05, %v102_v26  ;;  %v365_v39 = vadd.f32 1e-05, %v100_v27 }
 0x106   :  { %v248_v36 = vpop.eup %247  ;;  %v117_v37 = vmul.f32 %v242_v13, %v116_v31  ;;  %v143_v38 = vmul.f32 %v246_v32, %v353_v15  ;;  %vm169_vm10 = vweird.f32 %v244_v30  ;;  %vm149_vm14 = vweird.f32 %v246_v32 }
 0x107   :  { %v141_v40 = vsel %vm140_vm6, %v240_v11, %v137_v33  ;;  %v164_v44 = vmul.f32 %v244_v30, %v163_v34  ;;  %v123_v45 = vmul.f32 %v248_v36, %v355_v16  ;;  %249 = vrsqrt.f32 %v361_v35  ;;  %vm374_vm13 = vmor %vm168_vm7, %vm169_vm10 }
 0x108   :  { %v194_v47 = vmul.f32 %v141_v40, %v302_v28  ;;  %v121_v48 = vsel %vm120_vm8, %v242_v13, %v117_v37  ;;  %v144_v49 = vmul.f32 %v246_v32, %v143_v38  ;;  %251 = vrsqrt.f32 %v365_v39  ;;  %vm150_vm1 = vmor %vm148_vm9, %vm149_vm14 }
 0x109   :  { %v192_v50 = vmul.f32 %v121_v48, %v304_v29  ;;  %v165_v51 = vmul.f32 0.5, %v164_v44  ;;  %v124_v52 = vmul.f32 %v248_v36, %v123_v45  ;;  %vm129_vm15 = vweird.f32 %v248_v36 }
 0x10a   :  { %vm202_vm11 = vcmp.ge.f32.partialorder %v194_v47, 0.0  ;;  %v210_v53 = vmul.f32 0.2, %v194_v47  ;;  %v145_v54 = vmul.f32 0.5, %v144_v49  ;;  %v95_v55 = vpop.xlane.xlu0 %94  ;;  %vm130_vm3 = vmor %vm128_vm2, %vm129_vm15  ;;  %vm178_vm7 = vweird.f32 %v361_v35 }
 0x10b   :  { %vm200_vm12 = vcmp.ge.f32.partialorder %v192_v50, 0.0  ;;  %v208_v58 = vmul.f32 0.2, %v192_v50  ;;  %v166_v59 = vsub.f32 1.5, %v165_v51  ;;  %v125_v60 = vmul.f32 0.5, %v124_v52 }
 0x10c   :  { %v218_v28 = vsel %vm202_vm11, %v194_v47, %v210_v53  ;;  %v146_v29 = vsub.f32 1.5, %v145_v54  ;;  %v103_v62 = vmul.f32 %v95_v55, %v298_v22  ;;  %vm158_vm11 = vweird.f32 %v365_v39 }
 0x10d   :  { %226 = vst.msk [vmem:[%s427_s1 + $0x10] sm:$0xff] %vm16_vm0, %v218_v28  ;;  %v216_v63 = vsel %vm200_vm12, %v192_v50, %v208_v58  ;;  %v167_v0 = vmul.f32 %v244_v30, %v166_v59  ;;  %v126_v1 = vsub.f32 1.5, %v125_v60  ;;  %v250_v2 = vpop.eup %249 }
 0x10e   :  { %224 = vst.msk [vmem:[%s427_s1] sm:$0xff] %vm16_vm0, %v216_v63  ;;  %v147_v3 = vmul.f32 %v246_v32, %v146_v29  ;;  %v111_v4 = vadd.f32 1e-05, %v103_v62  ;;  %v173_v6 = vmul.f32 %v250_v2, %v361_v35  ;;  %v252_v7 = vpop.eup %251  ;;  %vm179_vm8 = vweird.f32 %v250_v2 }
 0x10f   :  { %v171_v22 = vsel %vm374_vm13, %v244_v30, %v167_v0  ;;  %v127_v5 = vmul.f32 %v248_v36, %v126_v1  ;;  %v153_v13 = vmul.f32 %v252_v7, %v365_v39  ;;  %vm159_vm9 = vweird.f32 %v252_v7  ;;  %vm180_vm10 = vmor %vm178_vm7, %vm179_vm8 }
 0x110   :  { %v197_v8 = vmul.f32 %v171_v22, %v316_v41  ;;  %v151_v9 = vsel %vm150_vm1, %v246_v32, %v147_v3  ;;  %253 = vrsqrt.f32 %v111_v4  ;;  %v174_v12 = vmul.f32 %v250_v2, %v173_v6  ;;  %vm160_vm12 = vmor %vm158_vm11, %vm159_vm9 }
 0x111   :  { %v195_v10 = vmul.f32 %v151_v9, %v318_v42  ;;  %v131_v11 = vsel %vm130_vm3, %v248_v36, %v127_v5  ;;  %v154_v18 = vmul.f32 %v252_v7, %v153_v13  ;;  %vm188_vm1 = vweird.f32 %v111_v4 }
 0x112   :  { %vm205_vm4 = vcmp.ge.f32.partialorder %v197_v8, 0.0  ;;  %v213_v14 = vmul.f32 0.2, %v197_v8  ;;  %v193_v15 = vmul.f32 %v131_v11, %v320_v43  ;;  %v175_v17 = vmul.f32 0.5, %v174_v12 }
 0x113   :  { %vm203_vm5 = vcmp.ge.f32.partialorder %v195_v10, 0.0  ;;  %v211_v16 = vmul.f32 0.2, %v195_v10  ;;  %v155_v21 = vmul.f32 0.5, %v154_v18 }
 0x114   :  { %v221_v19 = vsel %vm205_vm4, %v197_v8, %v213_v14  ;;  %vm201_vm6 = vcmp.ge.f32.partialorder %v193_v15, 0.0  ;;  %v209_v41 = vmul.f32 0.2, %v193_v15  ;;  %v176_v20 = vsub.f32 1.5, %v175_v17 }
 0x115   :  { %229 = vst.msk [vmem:[%s427_s1 + $0x28] sm:$0xff] %vm16_vm0, %v221_v19  ;;  %v219_v42 = vsel %vm203_vm5, %v195_v10, %v211_v16  ;;  %v156_v25 = vsub.f32 1.5, %v155_v21 }
 0x116   :  { %v254_v23 = vpop.eup %253  ;;  %227 = vst.msk [vmem:[%s427_s1 + $0x18] sm:$0xff] %vm16_vm0, %v219_v42  ;;  %v217_v43 = vsel %vm201_vm6, %v193_v15, %v209_v41  ;;  %v177_v24 = vmul.f32 %v250_v2, %v176_v20 }
 0x117   :  { %225 = vst.msk [vmem:[%s427_s1 + $0x8] sm:$0xff] %vm16_vm0, %v217_v43  ;;  %v183_v26 = vmul.f32 %v254_v23, %v111_v4  ;;  %v157_v30 = vmul.f32 %v252_v7, %v156_v25  ;;  %vm189_vm14 = vweird.f32 %v254_v23 }
 0x118   :  { %v181_v27 = vsel %vm180_vm10, %v250_v2, %v177_v24  ;;  %vm190_vm2 = vmor %vm188_vm1, %vm189_vm14 }
 0x119   :  { %v184_v31 = vmul.f32 %v254_v23, %v183_v26  ;;  %v198_v32 = vmul.f32 %v181_v27, %v337_v56  ;;  %v161_v33 = vsel %vm160_vm12, %v252_v7, %v157_v30 }
 0x11a   :  { %v196_v36 = vmul.f32 %v161_v33, %v326_v46 }
 0x11b   :  { %v185_v34 = vmul.f32 0.5, %v184_v31  ;;  %vm206_vm13 = vcmp.ge.f32.partialorder %v198_v32, 0.0  ;;  %v214_v35 = vmul.f32 0.2, %v198_v32 }
 0x11c   :  { %vm204_vm15 = vcmp.ge.f32.partialorder %v196_v36, 0.0  ;;  %v212_v40 = vmul.f32 0.2, %v196_v36 }
 0x11d   :  { %v186_v37 = vsub.f32 1.5, %v185_v34  ;;  %v222_v38 = vsel %vm206_vm13, %v198_v32, %v214_v35 }
 0x11e   :  { %230 = vst.msk [vmem:[%s427_s1 + $0x30] sm:$0xff] %vm16_vm0, %v222_v38  ;;  %v220_v56 = vsel %vm204_vm15, %v196_v36, %v212_v40 }
 0x11f   :  { %v187_v39 = vmul.f32 %v254_v23, %v186_v37  ;;  %228 = vst.msk [vmem:[%s427_s1 + $0x20] sm:$0xff] %vm16_vm0, %v220_v56 }
 0x121   :  { %v191_v46 = vsel %vm190_vm2, %v254_v23, %v187_v39 }
 0x122   :  { %v199_v44 = vmul.f32 %v191_v46, %v339_v57 }
 0x124   :  { %vm207_vm3 = vcmp.ge.f32.partialorder %v199_v44, 0.0  ;;  %v215_v45 = vmul.f32 0.2, %v199_v44 }
 0x126   :  { %v223_v47 = vsel %vm207_vm3, %v199_v44, %v215_v45 }
 0x127   :  { %231 = vst.msk [vmem:[%s427_s1 + $0x38] sm:$0xff] %vm16_vm0, %v223_v47 }

// kernel: raune_net_forward.41
= control target key start
LH: loop header
LB: loop body
LE: loop exit
PB: predicated region body
PF: predicated region fallthrough
CT: control target
= control target key end

     0   :  { %v284_v0 = vmov 0   ;;  %s498_s1 = inlined_call_operand.vmem [shape: f32[64,1], index: 1, kind: input, shape index: {}]   ;;  %s499_s0 = inlined_call_operand.vmem [shape: f32[64,16], index: 0, kind: input, shape index: {}]   ;;  %s500_s2 = inlined_call_operand.vmem [shape: f32[64,16], index: 2, kind: output, shape index: {}]  }
   0x1   :  { %250 = vset.pattern.permute.xlu1 %v284_v0  ;;  %249 = vset.pattern.permute.xlu0 %v284_v0  ;;  %v21_v1 = vld [vmem:[%s498_s1 + $0x10] sm:$0xff]  ;;  %v19_v2 = vld [vmem:[%s498_s1] sm:$0xff]  ;;  %v22_v3 = vld [vmem:[%s498_s1 + $0x18] sm:$0xff] }
   0x2   :  { %v242_v4 = vmul.f32 -1.442695, %v21_v1  ;;  %v240_v5 = vmul.f32 -1.442695, %v19_v2  ;;  %v243_v6 = vmul.f32 -1.442695, %v22_v3  ;;  %251 = vset.pattern.permute.xlu2 %v284_v0 }
   0x3   :  { %v20_v7 = vld [vmem:[%s498_s1 + $0x8] sm:$0xff]  ;;  %v26_v8 = vld [vmem:[%s498_s1 + $0x38] sm:$0xff]  ;;  %v25_v9 = vld [vmem:[%s498_s1 + $0x30] sm:$0xff] }
   0x4   :  { %252 = vpow2.f32 %v242_v4  ;;  %v241_v10 = vmul.f32 -1.442695, %v20_v7  ;;  %v247_v11 = vmul.f32 -1.442695, %v26_v8  ;;  %v246_v12 = vmul.f32 -1.442695, %v25_v9 }
   0x5   :  { %254 = vpow2.f32 %v240_v5  ;;  %v23_v13 = vld [vmem:[%s498_s1 + $0x20] sm:$0xff]  ;;  %v24_v14 = vld [vmem:[%s498_s1 + $0x28] sm:$0xff] }
   0x6   :  { %256 = vpow2.f32 %v243_v6  ;;  %v244_v18 = vmul.f32 -1.442695, %v23_v13  ;;  %v245_v21 = vmul.f32 -1.442695, %v24_v14  ;;  %v15_v58 = vld [vmem:[%s499_s0 + $0x20] sm:$0xff]  ;;  %v12_v7 = vld [vmem:[%s499_s0 + $0x8] sm:$0xff] }
   0x7   :  { %258 = vpow2.f32 %v241_v10 }
   0x8   :  { %260 = vpow2.f32 %v247_v11 }
   0x9   :  { %262 = vpow2.f32 %v246_v12  ;;  %v18_v12 = vld [vmem:[%s499_s0 + $0x38] sm:$0xff] }
   0xa   :  { %v253_v15 = vpop.eup %252 }
   0xb   :  { %v255_v16 = vpop.eup %254  ;;  %v53_v17 = vadd.f32 1.0, %v253_v15 }
   0xc   :  { %v257_v19 = vpop.eup %256  ;;  %v51_v20 = vadd.f32 1.0, %v255_v16 }
   0xd   :  { %v259_v22 = vpop.eup %258  ;;  %264 = vrcp.f32 %v53_v17  ;;  %v324_v25 = vadd.f32 1.0, %v257_v19  ;;  %v98_v28 = vand.u32 2147483647, %v53_v17  ;;  %v100_v29 = vand.u32 2147483648, %v53_v17 }
   0xe   :  { %v261_v23 = vpop.eup %260  ;;  %266 = vrcp.f32 %v51_v20  ;;  %v326_v26 = vadd.f32 1.0, %v259_v22  ;;  %v68_v30 = vand.u32 2147483647, %v51_v20  ;;  %v70_v31 = vand.u32 2147483648, %v51_v20 }
   0xf   :  { %v263_v24 = vpop.eup %262  ;;  %268 = vpow2.f32 %v244_v18  ;;  %v328_v27 = vadd.f32 1.0, %v261_v23  ;;  %vm94_vm0 = vweird.f32 %v53_v17  ;;  %vm64_vm1 = vweird.f32 %v51_v20 }
  0x10   :  { %270 = vpow2.f32 %v245_v21  ;;  %v332_v32 = vadd.f32 1.0, %v263_v24  ;;  %vm335_vm2 = vcmp.eq.f32.partialorder %v98_v28, 8.507059e+37  ;;  %v101_v38 = vor.u32 1.1754944e-38, %v100_v29 }
  0x11   :  { %272 = vrcp.f32 %v324_v25  ;;  %vm339_vm3 = vcmp.eq.f32.partialorder %v68_v30, 8.507059e+37  ;;  %v71_v43 = vor.u32 1.1754944e-38, %v70_v31  ;;  %vm109_vm6 = vweird.f32 %v324_v25 }
  0x12   :  { %274 = vrcp.f32 %v326_v26  ;;  %v113_v46 = vand.u32 2147483647, %v324_v25  ;;  %v115_v50 = vand.u32 2147483648, %v324_v25  ;;  %vm79_vm7 = vweird.f32 %v326_v26 }
  0x13   :  { %v265_v33 = vpop.eup %264  ;;  %276 = vrcp.f32 %v328_v27  ;;  %v83_v55 = vand.u32 2147483647, %v326_v26  ;;  %v85_v56 = vand.u32 2147483648, %v326_v26  ;;  %v173_v21 = vand.u32 2147483647, %v328_v27 }
  0x14   :  { %v267_v34 = vpop.eup %266  ;;  %v90_v35 = vmul.f32 %v265_v33, %v53_v17  ;;  %vm95_vm4 = vweird.f32 %v265_v33  ;;  %278 = vrcp.f32 %v332_v32  ;;  %v116_v13 = vor.u32 1.1754944e-38, %v115_v50 }
  0x15   :  { %v269_v36 = vpop.eup %268  ;;  %v60_v39 = vmul.f32 %v267_v34, %v51_v20  ;;  %vm65_vm5 = vweird.f32 %v267_v34  ;;  %vm352_vm8 = vmor %vm94_vm0, %vm95_vm4  ;;  %vm114_vm14 = vcmp.eq.f32.partialorder %v113_v46, 8.507059e+37  ;;  %v86_v17 = vor.u32 1.1754944e-38, %v85_v56 }
  0x16   :  { %v271_v41 = vpop.eup %270  ;;  %v91_v42 = vsub.f32 1.0, %v90_v35  ;;  %vm361_vm9 = vmor %vm64_vm1, %vm65_vm5  ;;  %v367_v63 = vadd.f32 1.0, %v269_v36  ;;  %vm84_vm15 = vcmp.eq.f32.partialorder %v83_v55, 8.507059e+37  ;;  %vm169_vm0 = vweird.f32 %v328_v27 }
  0x17   :  { %v273_v44 = vpop.eup %272  ;;  %v61_v45 = vsub.f32 1.0, %v60_v39  ;;  %v373_v4 = vadd.f32 1.0, %v271_v41  ;;  %v175_v22 = vand.u32 2147483648, %v328_v27  ;;  %v160_v24 = vand.u32 2147483648, %v332_v32 }
  0x18   :  { %v275_v47 = vpop.eup %274  ;;  %v92_v48 = vmul.f32 %v265_v33, %v91_v42  ;;  %v105_v49 = vmul.f32 %v273_v44, %v324_v25  ;;  %vm110_vm10 = vweird.f32 %v273_v44  ;;  %280 = vrcp.f32 %v367_v63 }
  0x19   :  { %v349_v51 = vpop.eup %276  ;;  %v62_v53 = vmul.f32 %v267_v34, %v61_v45  ;;  %v75_v54 = vmul.f32 %v275_v47, %v326_v26  ;;  %vm80_vm11 = vweird.f32 %v275_v47  ;;  %vm381_vm12 = vmor %vm109_vm6, %vm110_vm10  ;;  %282 = vrcp.f32 %v373_v4 }
  0x1a   :  { %v93_v57 = vadd.f32 %v265_v33, %v92_v48  ;;  %v106_v59 = vsub.f32 1.0, %v105_v49  ;;  %v165_v60 = vmul.f32 %v349_v51, %v328_v27  ;;  %v369_v0 = vpop.eup %278  ;;  %vm392_vm13 = vmor %vm79_vm7, %vm80_vm11  ;;  %vm170_vm1 = vweird.f32 %v349_v51 }
  0x1b   :  { %v63_v61 = vadd.f32 %v267_v34, %v62_v53  ;;  %v76_v62 = vsub.f32 1.0, %v75_v54  ;;  %v150_v9 = vmul.f32 %v369_v0, %v332_v32  ;;  %vm412_vm4 = vmor %vm169_vm0, %vm170_vm1  ;;  %v158_v31 = vand.u32 2147483647, %v332_v32 }
  0x1c   :  { %v97_v1 = vsel %vm352_vm8, %v265_v33, %v93_v57  ;;  %v107_v2 = vmul.f32 %v273_v44, %v106_v59  ;;  %v166_v3 = vsub.f32 1.0, %v165_v60  ;;  %vm418_vm5 = vcmp.eq.f32.partialorder %v173_v21, 8.507059e+37 }
  0x1d   :  { %v102_v5 = vsel %vm335_vm2, %v101_v38, %v97_v1  ;;  %v67_v6 = vsel %vm361_vm9, %v267_v34, %v63_v61  ;;  %v77_v8 = vmul.f32 %v275_v47, %v76_v62  ;;  %v151_v15 = vsub.f32 1.0, %v150_v9  ;;  %v13_v61 = vld [vmem:[%s499_s0 + $0x10] sm:$0xff]  ;;  %v11_v62 = vld [vmem:[%s499_s0] sm:$0xff] }
  0x1e   :  { %191 = vperm.xlu1 %250, %v102_v5   ;;  %v72_v10 = vsel %vm339_vm3, %v71_v43, %v67_v6  ;;  %v108_v11 = vadd.f32 %v273_v44, %v107_v2  ;;  %v167_v18 = vmul.f32 %v349_v51, %v166_v3  ;;  %vm154_vm2 = vweird.f32 %v332_v32  ;;  %v281_v28 = vpop.eup %280  ;;  %v14_v6 = vld [vmem:[%s499_s0 + $0x18] sm:$0xff] }
  0x1f   :  { %181 = vperm.xlu0 %249, %v72_v10   ;;  %v78_v14 = vadd.f32 %v275_v47, %v77_v8  ;;  %v152_v20 = vmul.f32 %v369_v0, %v151_v15  ;;  %vm155_vm3 = vweird.f32 %v369_v0  ;;  %v176_v33 = vor.u32 1.1754944e-38, %v175_v22  ;;  %v283_v36 = vpop.eup %282 }
  0x20   :  { %v112_v16 = vsel %vm381_vm12, %v273_v44, %v108_v11  ;;  %v168_v26 = vadd.f32 %v349_v51, %v167_v18  ;;  %vm422_vm6 = vmor %vm154_vm2, %vm155_vm3  ;;  %v120_v35 = vmul.f32 %v281_v28, %v367_v63  ;;  %v161_v37 = vor.u32 1.1754944e-38, %v160_v24 }
  0x21   :  { %v82_v19 = vsel %vm392_vm13, %v275_v47, %v78_v14  ;;  %v117_v23 = vsel %vm114_vm14, %v116_v13, %v112_v16  ;;  %v153_v30 = vadd.f32 %v369_v0, %v152_v20  ;;  %vm124_vm7 = vweird.f32 %v367_v63  ;;  %v17_v13 = vld [vmem:[%s499_s0 + $0x30] sm:$0xff] }
  0x22   :  { %v87_v25 = vsel %vm84_vm15, %v86_v17, %v82_v19  ;;  %v128_v38 = vand.u32 2147483647, %v367_v63  ;;  %v130_v32 = vand.u32 2147483648, %v367_v63  ;;  %v172_v39 = vsel %vm412_vm4, %v349_v51, %v168_v26 }
  0x23   :  { %v121_v40 = vsub.f32 1.0, %v120_v35  ;;  %vm125_vm8 = vweird.f32 %v281_v28  ;;  %v135_v41 = vmul.f32 %v283_v36, %v373_v4  ;;  %v157_v42 = vsel %vm422_vm6, %v369_v0, %v153_v30  ;;  %v16_v0 = vld [vmem:[%s499_s0 + $0x28] sm:$0xff] }
  0x24   :  { %vm159_vm9 = vcmp.eq.f32.partialorder %v158_v31, 8.507059e+37  ;;  %v177_v45 = vsel %vm418_vm5, %v176_v33, %v172_v39  ;;  %vm126_vm10 = vmor %vm124_vm7, %vm125_vm8  ;;  %vm129_vm11 = vcmp.eq.f32.partialorder %v128_v38, 8.507059e+37  ;;  %v131_v46 = vor.u32 1.1754944e-38, %v130_v32 }
  0x25   :  { %v122_v43 = vmul.f32 %v281_v28, %v121_v40  ;;  %v136_v44 = vsub.f32 1.0, %v135_v41  ;;  %vm139_vm12 = vweird.f32 %v373_v4  ;;  %v162_v47 = vsel %vm159_vm9, %v161_v37, %v157_v42 }
  0x26   :  { %196 = vperm.xlu1 %250, %v117_v23   ;;  %vm140_vm13 = vweird.f32 %v283_v36  ;;  %v145_v50 = vand.u32 2147483648, %v373_v4  ;;  %v143_v53 = vand.u32 2147483647, %v373_v4  ;;  %vm227_vm0 = vcmask 130048  }
  0x27   :  { %186 = vperm.xlu0 %249, %v87_v25   ;;  %v123_v48 = vadd.f32 %v281_v28, %v122_v43  ;;  %v137_v49 = vmul.f32 %v283_v36, %v136_v44  ;;  %vm141_vm14 = vmor %vm139_vm12, %vm140_vm13 }
  0x28   :  { %v146_v55 = vor.u32 1.1754944e-38, %v145_v50  ;;  %vm144_vm15 = vcmp.eq.f32.partialorder %v143_v53, 8.507059e+37 }
  0x29   :  { %v127_v51 = vsel %vm126_vm10, %v281_v28, %v123_v48  ;;  %v138_v52 = vadd.f32 %v283_v36, %v137_v49 }
  0x2a   :  { %v132_v54 = vsel %vm129_vm11, %v131_v46, %v127_v51 }
  0x2b   :  { %201 = vperm.xlu2 %251, %v132_v54   ;;  %v142_v56 = vsel %vm141_vm14, %v283_v36, %v138_v52 }
  0x2c   :  { %v147_v57 = vsel %vm144_vm15, %v146_v55, %v142_v56 }
  0x2e   :  { %216 = vperm.xlu1 %250, %v177_v45  }
  0x2f   :  { %211 = vperm.xlu0 %249, %v162_v47  }
  0x33   :  { %206 = vperm.xlu2 %251, %v147_v57  }
  0x85   :  { %v202_v59 = vpop.permute.xlu2 %201 }
  0x86   :  { %v223_v60 = vmul.f32 %v202_v59, %v15_v58 }
  0x88   :  { %232 = vst.msk [vmem:[%s500_s2 + $0x20] sm:$0xff] %vm227_vm0, %v223_v60 }
  0x8d   :  { %v207_v4 = vpop.permute.xlu2 %206 }
  0x8e   :  { %v224_v5 = vmul.f32 %v207_v4, %v16_v0 }
  0x90   :  { %v192_v63 = vpop.permute.xlu1 %191  ;;  %233 = vst.msk [vmem:[%s500_s2 + $0x28] sm:$0xff] %vm227_vm0, %v224_v5 }
  0x91   :  { %v221_v1 = vmul.f32 %v192_v63, %v13_v61  ;;  %v182_v2 = vpop.permute.xlu0 %181 }
  0x92   :  { %v219_v3 = vmul.f32 %v182_v2, %v11_v62 }
  0x93   :  { %230 = vst.msk [vmem:[%s500_s2 + $0x10] sm:$0xff] %vm227_vm0, %v221_v1 }
  0x94   :  { %228 = vst.msk [vmem:[%s500_s2] sm:$0xff] %vm227_vm0, %v219_v3 }
  0x98   :  { %v197_v8 = vpop.permute.xlu1 %196 }
  0x99   :  { %v222_v9 = vmul.f32 %v197_v8, %v14_v6  ;;  %v187_v10 = vpop.permute.xlu0 %186 }
  0x9a   :  { %v220_v11 = vmul.f32 %v187_v10, %v12_v7 }
  0x9b   :  { %231 = vst.msk [vmem:[%s500_s2 + $0x18] sm:$0xff] %vm227_vm0, %v222_v9 }
  0x9c   :  { %229 = vst.msk [vmem:[%s500_s2 + $0x8] sm:$0xff] %vm227_vm0, %v220_v11 }
  0xa0   :  { %v217_v14 = vpop.permute.xlu1 %216 }
  0xa1   :  { %v226_v15 = vmul.f32 %v217_v14, %v18_v12  ;;  %v212_v16 = vpop.permute.xlu0 %211 }
  0xa2   :  { %v225_v17 = vmul.f32 %v212_v16, %v17_v13 }
  0xa3   :  { %235 = vst.msk [vmem:[%s500_s2 + $0x38] sm:$0xff] %vm227_vm0, %v226_v15 }
  0xa4   :  { %234 = vst.msk [vmem:[%s500_s2 + $0x30] sm:$0xff] %vm227_vm0, %v225_v17 }

// kernel: raune_net_forward.42
= control target key start
LH: loop header
LB: loop body
LE: loop exit
PB: predicated region body
PF: predicated region fallthrough
CT: control target
= control target key end

     0   :  { %s338_s6 = smov 0   ;;  %s340_s7 = smov 0   ;;  %s383_s0 = inlined_call_operand.vmem [shape: f32[2,32,16], index: 0, kind: input, shape index: {}]   ;;  %s384_s1 = inlined_call_operand.vmem [shape: f32[2,2,16], index: 1, kind: output, shape index: {}]  }
   0x1   :  { %s342_s8 = smov 0  }
   0x2 LB: > { %s23_s9 = sadd.s32 1, %s321_s7  ;;  %p269_p0 = scmp.ge.s32.totalorder %s325_s8, 1  ;;  %s325_s8 = sphi %s342_s8, %s11_s8   ;;  %s321_s7 = sphi %s340_s7, %s386_s7   ;;  %s317_s6 = sphi %s338_s6, %s385_s6  }
   0x3   : > { %p25_p1 = scmp.ge.s32.totalorder %s23_s9, 2  ;;  %p106_p2 = scmp.lt.s32.totalorder %s325_s8, 3 }
   0x5   : > { %s388_s9 = smov (%p25_p1, %s23_s9), 0  ;;  %p107_p3 = pnand %p269_p0, %p106_p2 }
   0x6   : > { %p131_p4 = scmp.lt.s32.totalorder (!%p107_p3), %s317_s6, 1 }
   0x7   : > { %110 = sbr.rel (%p107_p3) target bundleno = 38 (0x26), region = 24 }
   0xc   : > { %v327_v0 = vmov 32.0   ;;  %s390_s6 = smov (!%p131_p4, %s317_s6), 1  ;;  %vm150_vm0 = vcmask 130048   ;;  %vm172_vm2 = vcmask 122880  }
   0xd   : > { %301 = vrcp.f32 %v327_v0  ;;  %s275_s10 = sshll.u32 %s390_s6, 5  ;;  %s272_s14 = sshll.u32 %s390_s6, 1 }
   0xe   : > { %s138_s13 = scalar_lea.vmem %s383_s0, %s275_s10  ;;  %s145_s17 = scalar_lea.vmem %s384_s1, %s272_s14 }
   0xf   : > { %v146_v1 = vld [vmem:[%s138_s13] sm:$0xff]  ;;  %v147_v2 = vld [vmem:[%s138_s13 + $0x8] sm:$0xff]  ;;  %v148_v3 = vld [vmem:[%s138_s13 + $0x10] sm:$0xff] }
  0x10   : > { %v149_v5 = vld [vmem:[%s138_s13 + $0x18] sm:$0xff]  ;;  %v151_v6 = vsel %vm150_vm0, %v146_v1, 0.0  ;;  %v152_v7 = vsel %vm150_vm0, %v147_v2, 0.0  ;;  %v154_v8 = vsel %vm150_vm0, %v148_v3, 0.0  ;;  %v174_v9 = vsel %vm150_vm0, %v146_v1, -inf }
  0x11   : > { %v153_v10 = vadd.f32 %v152_v7, %v151_v6  ;;  %v156_v12 = vsel %vm150_vm0, %v149_v5, 0.0  ;;  %v175_v13 = vsel %vm150_vm0, %v147_v2, -inf  ;;  %v176_v14 = vsel %vm150_vm0, %v148_v3, -inf }
  0x12   : > { %v177_v15 = vsel %vm150_vm0, %v149_v5, -inf  ;;  %v178_v17 = vmax.f32 %v174_v9, %v175_v13 }
  0x13   : > { %v302_v4 = vpop.eup %301  ;;  %v155_v16 = vadd.f32 %v154_v8, %v153_v10  ;;  %v179_v18 = vmax.f32 %v176_v14, %v177_v15 }
  0x14   : > { %v165_v11 = vmul.f32 32.0, %v302_v4  ;;  %vm169_vm1 = vweird.f32 %v302_v4 }
  0x15   : > { %v157_v20 = vadd.f32 %v156_v12, %v155_v16  ;;  %v180_v21 = vmax.f32 %v178_v17, %v179_v18 }
  0x16   : > { %v166_v19 = vsub.f32 1.0, %v165_v11 }
  0x17   : > { %v158_v22 = vrot.slane %v157_v20, 4  ;;  %v181_v23 = vrot.slane %v180_v21, 4 }
  0x18   : > { %v167_v24 = vmul.f32 %v302_v4, %v166_v19 }
  0x19   : > { %v159_v25 = vadd.f32 %v158_v22, %v157_v20  ;;  %v182_v26 = vmax.f32 %v180_v21, %v181_v23 }
  0x1a   : > { %v168_v29 = vadd.f32 %v302_v4, %v167_v24 }
  0x1b   : > { %v160_v27 = vrot.slane %v159_v25, 2  ;;  %v183_v28 = vrot.slane %v182_v26, 2 }
  0x1c   : > { %v170_v34 = vsel %vm169_vm1, %v302_v4, %v168_v29 }
  0x1d   : > { %v161_v30 = vadd.f32 %v160_v27, %v159_v25  ;;  %v184_v31 = vmax.f32 %v182_v26, %v183_v28 }
  0x1f   : > { %v162_v32 = vrot.slane %v161_v30, 1  ;;  %v185_v33 = vrot.slane %v184_v31, 1 }
  0x21   : > { %v163_v35 = vadd.f32 %v162_v32, %v161_v30  ;;  %v186_v36 = vmax.f32 %v184_v31, %v185_v33 }
  0x23   : > { %v171_v37 = vmul.f32 %v170_v34, %v163_v35  ;;  %187 = vst.msk [vmem:[%s145_s17 + $0x1] sm:$0x1] %vm172_vm2, %v186_v36 }
  0x25   : > { %173 = vst.msk [vmem:[%s145_s17] sm:$0x1] %vm172_vm2, %v171_v37 }
  0x26 PF: > { %s11_s8 = sadd.s32 1, %s325_s8   ;;  %s385_s6 = smov %s321_s7 }
  0x27   : > { %p8_p5 = scmp.ge.s32.totalorder %s11_s8, 4   ;;  %s386_s7 = smov %s388_s9 }
  0x29   :  { %10 = sbr.rel (!%p8_p5) target bundleno = 2 (0x2), region = 54 }

// kernel: raune_net_forward.44
= control target key start
LH: loop header
LB: loop body
LE: loop exit
PB: predicated region body
PF: predicated region fallthrough
CT: control target
= control target key end

     0   :  { %s412_s9 = smov 0   ;;  %s414_s10 = smov 0   ;;  %s452_s0 = inlined_call_operand.vmem [shape: f32[2,32,16], index: 0, kind: input, shape index: {}]   ;;  %s453_s1 = inlined_call_operand.vmem [shape: f32[2,1,16], index: 1, kind: input, shape index: {}]   ;;  %s454_s2 = inlined_call_operand.vmem [shape: f32[2,32,16], index: 2, kind: output, shape index: {}]  }
   0x1   :  { %s416_s11 = smov 0  }
   0x2 LB: > { %s24_s12 = sadd.s32 1, %s391_s10  ;;  %p335_p0 = scmp.ge.s32.totalorder %s395_s11, 1  ;;  %s395_s11 = sphi %s416_s11, %s12_s11   ;;  %s391_s10 = sphi %s414_s10, %s456_s10   ;;  %s387_s9 = sphi %s412_s9, %s455_s9  }
   0x3   : > { %p26_p1 = scmp.ge.s32.totalorder %s24_s12, 2  ;;  %p144_p2 = scmp.lt.s32.totalorder %s395_s11, 3 }
   0x5   : > { %s458_s12 = smov (%p26_p1, %s24_s12), 0  ;;  %p145_p3 = pnand %p335_p0, %p144_p2 }
   0x6   : > { %p178_p4 = scmp.lt.s32.totalorder (!%p145_p3), %s387_s9, 1 }
   0x7   : > { %148 = sbr.rel (%p145_p3) target bundleno = 51 (0x33), region = 28 }
   0xc   : > { %s460_s9 = smov (!%p178_p4, %s387_s9), 1  ;;  %vm231_vm4 = vcmask 130048  }
   0xd   : > { %s191_s15 = scalar_lea.vmem %s453_s1, %s460_s9  ;;  %s343_s16 = sshll.u32 %s460_s9, 5 }
   0xe   : > { %v204_v0 = vld [vmem:[%s191_s15] sm:$0x1]  ;;  %s185_s19 = scalar_lea.vmem %s452_s0, %s343_s16  ;;  %s199_s22 = scalar_lea.vmem %s454_s2, %s343_s16 }
   0xf   : > { %v340_v1 = vmul.f32 -1.442695, %v204_v0  ;;  %v200_v13 = vld [vmem:[%s185_s19] sm:$0xff]  ;;  %v201_v15 = vld [vmem:[%s185_s19 + $0x8] sm:$0xff]  ;;  %v202_v16 = vld [vmem:[%s185_s19 + $0x10] sm:$0xff] }
  0x10   : > { %v203_v18 = vld [vmem:[%s185_s19 + $0x18] sm:$0xff] }
  0x11   : > { %369 = vpow2.f32 %v340_v1 }
  0x17   : > { %v370_v2 = vpop.eup %369 }
  0x18   : > { %v208_v3 = vadd.f32 1.0, %v370_v2 }
  0x1a   : > { %371 = vrcp.f32 %v208_v3  ;;  %v220_v6 = vand.u32 2147483648, %v208_v3  ;;  %vm214_vm0 = vweird.f32 %v208_v3  ;;  %v218_v8 = vand.u32 2147483647, %v208_v3 }
  0x1c   : > { %v221_v10 = vor.u32 1.1754944e-38, %v220_v6  ;;  %vm219_vm3 = vcmp.eq.f32.partialorder %v218_v8, 8.507059e+37 }
  0x20   : > { %v372_v4 = vpop.eup %371 }
  0x21   : > { %v210_v5 = vmul.f32 %v372_v4, %v208_v3  ;;  %vm215_vm1 = vweird.f32 %v372_v4 }
  0x22   : > { %vm216_vm2 = vmor %vm214_vm0, %vm215_vm1 }
  0x23   : > { %v211_v7 = vsub.f32 1.0, %v210_v5 }
  0x25   : > { %v212_v9 = vmul.f32 %v372_v4, %v211_v7 }
  0x27   : > { %v213_v11 = vadd.f32 %v372_v4, %v212_v9 }
  0x29   : > { %v217_v12 = vsel %vm216_vm2, %v372_v4, %v213_v11 }
  0x2a   : > { %v222_v14 = vsel %vm219_vm3, %v221_v10, %v217_v12 }
  0x2b   : > { %v225_v17 = vperm.slane %v222_v14, 0 }
  0x2d   : > { %v227_v19 = vmul.f32 %v225_v17, %v200_v13  ;;  %v228_v20 = vmul.f32 %v225_v17, %v201_v15  ;;  %v229_v21 = vmul.f32 %v225_v17, %v202_v16  ;;  %v230_v22 = vmul.f32 %v225_v17, %v203_v18 }
  0x2f   : > { %232 = vst.msk [vmem:[%s199_s22] sm:$0xff] %vm231_vm4, %v227_v19 }
  0x30   : > { %233 = vst.msk [vmem:[%s199_s22 + $0x8] sm:$0xff] %vm231_vm4, %v228_v20 }
  0x31   : > { %234 = vst.msk [vmem:[%s199_s22 + $0x10] sm:$0xff] %vm231_vm4, %v229_v21 }
  0x32   : > { %235 = vst.msk [vmem:[%s199_s22 + $0x18] sm:$0xff] %vm231_vm4, %v230_v22 }
  0x33 PF: > { %s12_s11 = sadd.s32 1, %s395_s11   ;;  %s455_s9 = smov %s391_s10 }
  0x34   : > { %p9_p5 = scmp.ge.s32.totalorder %s12_s11, 4   ;;  %s456_s10 = smov %s458_s12 }
  0x36   :  { %11 = sbr.rel (!%p9_p5) target bundleno = 2 (0x2), region = 61 }

// kernel: raune_net_forward.43
= control target key start
LH: loop header
LB: loop body
LE: loop exit
PB: predicated region body
PF: predicated region fallthrough
CT: control target
= control target key end

     0   :  { %vm102_vm0 = vcmask 1040384   ;;  %vm95_vm1 = vcmask 801792   ;;  %s268_s1 = inlined_call_operand.vmem [shape: bf16[98,1], index: 1, kind: input, shape index: {}]   ;;  %s269_s2 = inlined_call_operand.<no memory space> [shape: f32[1,1], index: 2, kind: input, shape index: {}]   ;;  %s270_s0 = inlined_call_operand.vmem [shape: bf16[32,98], index: 0, kind: input, shape index: {}]   ;;  %s271_s3 = inlined_call_operand.vmem [shape: f32[32,1], index: 3, kind: output, shape index: {}]  }
   0x1   :  { %v45_v0 = vld [vmem:[%s268_s1 + $0x30] sm:$0x1]  ;;  %v8_v2 = vstv %s269_s2  ;;  %v197_v5 = vld [vmem:[%s268_s1 + $0x28] sm:$0xff]  ;;  %v196_v6 = vld [vmem:[%s268_s1 + $0x20] sm:$0xff] }
   0x2   :  { %v81_v1 = vunpack.c.l.b16 %v45_v0  ;;  %9 = vst [vmem:[#allocation3] sm:$0x1] %v8_v2  ;;  %v195_v7 = vld [vmem:[%s268_s1 + $0x18] sm:$0xff]  ;;  %v194_v8 = vld [vmem:[%s268_s1 + $0x10] sm:$0xff]  ;;  %v193_v9 = vld [vmem:[%s268_s1 + $0x8] sm:$0xff] }
   0x3   :  { %v192_v10 = vld [vmem:[%s268_s1] sm:$0xff]  ;;  %v191_v12 = vld [vmem:[%s270_s0 + $0x8] sm:$0xff] }
   0x4   :  { %v88_v3 = vpack.c.b16 %v81_v1, %v81_v1  ;;  %v190_v11 = vld [vmem:[%s270_s0] sm:$0xff] }
   0x6   :  { %v104_v4 = vsel %vm102_vm0, %v88_v3, 0 }
   0x7   :  { %107 = vmatpush.bf16.msra.mxu0 %v104_v4  ;;  %198 = vmatpush.bf16.msra.mxu1 %v104_v4 }
   0x9   :  { %v205_v13 = vld [vmem:[#allocation3] ss:$0 sm:$0xff] }
   0xb   :  { %108 = vmatpush.bf16.msra.mxu0 %v197_v5  ;;  %199 = vmatpush.bf16.msra.mxu1 %v197_v5 }
   0xf   :  { %109 = vmatpush.bf16.msra.mxu0 %v196_v6  ;;  %200 = vmatpush.bf16.msra.mxu1 %v196_v6 }
  0x13   :  { %110 = vmatpush.bf16.msra.mxu0 %v195_v7  ;;  %201 = vmatpush.bf16.msra.mxu1 %v195_v7 }
  0x17   :  { %111 = vmatpush.bf16.msra.mxu0 %v194_v8  ;;  %202 = vmatpush.bf16.msra.mxu1 %v194_v8 }
  0x1b   :  { %112 = vmatpush.bf16.msra.mxu0 %v193_v9  ;;  %203 = vmatpush.bf16.msra.mxu1 %v193_v9 }
  0x1f   :  { %113 = vmatpush.bf16.msra.mxu0 %v192_v10  ;;  %204 = vmatpush.bf16.msra.mxu1 %v192_v10 }
  0x22   :  { %188 = vmatmul.msk.bf16.vlgmr.msra.gmra.mxu0 %vm95_vm1, %v190_v11  ;;  %189 = vmatmul.msk.bf16.vlgmr.msra.gmra.mxu1 %vm95_vm1, %v191_v12 }
  0x9f   :  { %v115_v14 = vpop.f32.mrf.mxu0  ;;  %v120_v15 = vpop.f32.mrf.mxu1 }
  0xa0   :  { %v144_v16 = vadd.f32 %v205_v13, %v115_v14  ;;  %v146_v17 = vadd.f32 %v205_v13, %v120_v15 }
  0xa2   :  { %148 = vst [vmem:[%s271_s3] sm:$0xff] %v144_v16 }
  0xa3   :  { %150 = vst [vmem:[%s271_s3 + $0x10] sm:$0xff] %v146_v17 }
  0xa7   :  { %v117_v18 = vpop.f32.mrf.mxu0  ;;  %v122_v19 = vpop.f32.mrf.mxu1 }
  0xa8   :  { %v145_v20 = vadd.f32 %v205_v13, %v117_v18  ;;  %v147_v21 = vadd.f32 %v205_v13, %v122_v19 }
  0xaa   :  { %149 = vst [vmem:[%s271_s3 + $0x8] sm:$0xff] %v145_v20 }
  0xab   :  { %151 = vst [vmem:[%s271_s3 + $0x18] sm:$0xff] %v147_v21 }

// kernel: raune_net_forward.46
= control target key start
LH: loop header
LB: loop body
LE: loop exit
PB: predicated region body
PF: predicated region fallthrough
CT: control target
= control target key end

     0   :  { %vm16_vm0 = vcmask 130048   ;;  %v239_v16 = vmov 16.0   ;;  %s408_s0 = inlined_call_operand.vmem [shape: f32[64,16], index: 0, kind: input, shape index: {}]   ;;  %s409_s1 = inlined_call_operand.vmem [shape: f32[64,16], index: 1, kind: output, shape index: {}]  }
   0x1   :  { %v12_v0 = vld [vmem:[%s408_s0 + $0x20] sm:$0xff]  ;;  %v10_v1 = vld [vmem:[%s408_s0 + $0x10] sm:$0xff]  ;;  %v13_v6 = vld [vmem:[%s408_s0 + $0x28] sm:$0xff]  ;;  %221 = vrcp.f32 %v239_v16 }
   0x2   :  { %v8_v2 = vld [vmem:[%s408_s0] sm:$0xff]  ;;  %v29_v3 = vsel %vm16_vm0, %v12_v0, 0.0  ;;  %v23_v4 = vsel %vm16_vm0, %v10_v1, 0.0  ;;  %v11_v7 = vld [vmem:[%s408_s0 + $0x18] sm:$0xff]  ;;  %v9_v8 = vld [vmem:[%s408_s0 + $0x8] sm:$0xff]  ;;  %v32_v9 = vsel %vm16_vm0, %v13_v6, 0.0 }
   0x3   :  { %v17_v5 = vsel %vm16_vm0, %v8_v2, 0.0  ;;  %30 = vadd.xlane.f32.xlu2 %v29_v3  ;;  %24 = vadd.xlane.f32.xlu1 %v23_v4  ;;  %v26_v10 = vsel %vm16_vm0, %v11_v7, 0.0  ;;  %v20_v11 = vsel %vm16_vm0, %v9_v8, 0.0  ;;  %v15_v12 = vld [vmem:[%s408_s0 + $0x38] sm:$0xff]  ;;  %v14_v13 = vld [vmem:[%s408_s0 + $0x30] sm:$0xff] }
   0x4   :  { %18 = vadd.xlane.f32.xlu0 %v17_v5  ;;  %v38_v14 = vsel %vm16_vm0, %v15_v12, 0.0  ;;  %v35_v15 = vsel %vm16_vm0, %v14_v13, 0.0 }
   0x7   :  { %v222_v17 = vpop.eup %221 }
   0x8   :  { %v42_v18 = vmul.f32 16.0, %v222_v17  ;;  %vm46_vm1 = vweird.f32 %v222_v17 }
   0xa   :  { %v43_v19 = vsub.f32 1.0, %v42_v18 }
   0xb   :  { %33 = vadd.xlane.f32.xlu2 %v32_v9  ;;  %27 = vadd.xlane.f32.xlu1 %v26_v10 }
   0xc   :  { %21 = vadd.xlane.f32.xlu0 %v20_v11  ;;  %v44_v20 = vmul.f32 %v222_v17, %v43_v19 }
   0xe   :  { %v45_v21 = vadd.f32 %v222_v17, %v44_v20 }
  0x10   :  { %v282_v22 = vsel %vm46_vm1, %v222_v17, %v45_v21 }
  0x13   :  { %39 = vadd.xlane.f32.xlu1 %v38_v14 }
  0x14   :  { %36 = vadd.xlane.f32.xlu0 %v35_v15 }
  0x76   :  { %v31_v23 = vpop.xlane.xlu2 %30  ;;  %v25_v24 = vpop.xlane.xlu1 %24 }
  0x77   :  { %v50_v25 = vmul.f32 %v282_v22, %v25_v24  ;;  %v19_v26 = vpop.xlane.xlu0 %18  ;;  %v52_v39 = vmul.f32 %v282_v22, %v31_v23 }
  0x78   :  { %v48_v27 = vmul.f32 %v282_v22, %v19_v26 }
  0x79   :  { %v286_v28 = vsub.f32 %v10_v1, %v50_v25  ;;  %v310_v46 = vsub.f32 %v12_v0, %v52_v39 }
  0x7a   :  { %v288_v29 = vsub.f32 %v8_v2, %v48_v27 }
  0x7b   :  { %v66_v30 = vmul.f32 %v286_v28, %v286_v28  ;;  %v68_v55 = vmul.f32 %v310_v46, %v310_v46 }
  0x7c   :  { %v64_v31 = vmul.f32 %v288_v29, %v288_v29 }
  0x7d   :  { %v78_v32 = vsel %vm16_vm0, %v66_v30, 0.0  ;;  %v84_v58 = vsel %vm16_vm0, %v68_v55, 0.0 }
  0x7e   :  { %v34_v33 = vpop.xlane.xlu2 %33  ;;  %79 = vadd.xlane.f32.xlu1 %v78_v32  ;;  %v28_v34 = vpop.xlane.xlu1 %27  ;;  %v72_v35 = vsel %vm16_vm0, %v64_v31, 0.0 }
  0x7f   :  { %v53_v36 = vmul.f32 %v282_v22, %v34_v33  ;;  %v51_v37 = vmul.f32 %v282_v22, %v28_v34  ;;  %73 = vadd.xlane.f32.xlu2 %v72_v35  ;;  %v22_v38 = vpop.xlane.xlu0 %21 }
  0x80   :  { %v49_v40 = vmul.f32 %v282_v22, %v22_v38 }
  0x81   :  { %v300_v41 = vsub.f32 %v13_v6, %v53_v36  ;;  %v302_v42 = vsub.f32 %v11_v7, %v51_v37 }
  0x82   :  { %v304_v43 = vsub.f32 %v9_v8, %v49_v40 }
  0x83   :  { %v69_v44 = vmul.f32 %v300_v41, %v300_v41  ;;  %v67_v45 = vmul.f32 %v302_v42, %v302_v42 }
  0x84   :  { %v65_v47 = vmul.f32 %v304_v43, %v304_v43 }
  0x85   :  { %v87_v48 = vsel %vm16_vm0, %v69_v44, 0.0  ;;  %v81_v49 = vsel %vm16_vm0, %v67_v45, 0.0 }
  0x86   :  { %88 = vadd.xlane.f32.xlu1 %v87_v48  ;;  %v75_v50 = vsel %vm16_vm0, %v65_v47, 0.0  ;;  %v40_v51 = vpop.xlane.xlu1 %39 }
  0x87   :  { %82 = vadd.xlane.f32.xlu2 %v81_v49  ;;  %76 = vadd.xlane.f32.xlu0 %v75_v50  ;;  %v37_v52 = vpop.xlane.xlu0 %36  ;;  %v55_v54 = vmul.f32 %v282_v22, %v40_v51 }
  0x88   :  { %v54_v53 = vmul.f32 %v282_v22, %v37_v52 }
  0x89   :  { %v323_v57 = vsub.f32 %v15_v12, %v55_v54 }
  0x8a   :  { %v321_v56 = vsub.f32 %v14_v13, %v54_v53 }
  0x8b   :  { %v71_v61 = vmul.f32 %v323_v57, %v323_v57 }
  0x8c   :  { %v70_v59 = vmul.f32 %v321_v56, %v321_v56 }
  0x8d   :  { %v93_v62 = vsel %vm16_vm0, %v71_v61, 0.0 }
  0x8e   :  { %v90_v60 = vsel %vm16_vm0, %v70_v59, 0.0 }
  0x8f   :  { %85 = vadd.xlane.f32.xlu0 %v84_v58  ;;  %91 = vadd.xlane.f32.xlu2 %v90_v60 }
  0x97   :  { %94 = vadd.xlane.f32.xlu0 %v93_v62 }
  0xf1   :  { %v80_v63 = vpop.xlane.xlu1 %79 }
  0xf2   :  { %v98_v0 = vmul.f32 %v80_v63, %v282_v22  ;;  %v74_v1 = vpop.xlane.xlu2 %73 }
  0xf3   :  { %v96_v2 = vmul.f32 %v74_v1, %v282_v22 }
  0xf4   :  { %v106_v3 = vadd.f32 1e-05, %v98_v0 }
  0xf5   :  { %v104_v4 = vadd.f32 1e-05, %v96_v2 }
  0xf6   :  { %223 = vrsqrt.f32 %v106_v3  ;;  %vm138_vm2 = vweird.f32 %v106_v3 }
  0xf7   :  { %225 = vrsqrt.f32 %v104_v4  ;;  %vm118_vm6 = vweird.f32 %v104_v4 }
  0xf9   :  { %v89_v5 = vpop.xlane.xlu1 %88 }
  0xfa   :  { %v101_v6 = vmul.f32 %v89_v5, %v282_v22  ;;  %v83_v7 = vpop.xlane.xlu2 %82  ;;  %v77_v8 = vpop.xlane.xlu0 %76 }
  0xfb   :  { %v99_v9 = vmul.f32 %v83_v7, %v282_v22  ;;  %v97_v10 = vmul.f32 %v77_v8, %v282_v22 }
  0xfc   :  { %v224_v11 = vpop.eup %223  ;;  %v109_v12 = vadd.f32 1e-05, %v101_v6 }
  0xfd   :  { %v226_v13 = vpop.eup %225  ;;  %v133_v14 = vmul.f32 %v224_v11, %v106_v3  ;;  %v337_v15 = vadd.f32 1e-05, %v99_v9  ;;  %v339_v16 = vadd.f32 1e-05, %v97_v10  ;;  %vm139_vm3 = vweird.f32 %v224_v11 }
  0xfe   :  { %v113_v17 = vmul.f32 %v226_v13, %v104_v4  ;;  %227 = vrsqrt.f32 %v109_v12  ;;  %vm119_vm4 = vweird.f32 %v226_v13  ;;  %vm140_vm5 = vmor %vm138_vm2, %vm139_vm3  ;;  %vm168_vm8 = vweird.f32 %v109_v12 }
  0xff   :  { %v134_v18 = vmul.f32 %v224_v11, %v133_v14  ;;  %229 = vrsqrt.f32 %v337_v15  ;;  %vm120_vm7 = vmor %vm118_vm6, %vm119_vm4  ;;  %vm148_vm11 = vweird.f32 %v337_v15  ;;  %vm128_vm15 = vweird.f32 %v339_v16 }
 0x100   :  { %v114_v19 = vmul.f32 %v226_v13, %v113_v17  ;;  %231 = vrsqrt.f32 %v339_v16 }
 0x101   :  { %v135_v20 = vmul.f32 0.5, %v134_v18 }
 0x102   :  { %v115_v21 = vmul.f32 0.5, %v114_v19  ;;  %v92_v23 = vpop.xlane.xlu2 %91  ;;  %v86_v24 = vpop.xlane.xlu0 %85 }
 0x103   :  { %v136_v25 = vsub.f32 1.5, %v135_v20  ;;  %v102_v26 = vmul.f32 %v92_v23, %v282_v22  ;;  %v100_v27 = vmul.f32 %v86_v24, %v282_v22 }
 0x104   :  { %v228_v30 = vpop.eup %227  ;;  %v116_v31 = vsub.f32 1.5, %v115_v21 }
 0x105   :  { %v230_v32 = vpop.eup %229  ;;  %v137_v33 = vmul.f32 %v224_v11, %v136_v25  ;;  %v163_v34 = vmul.f32 %v228_v30, %v109_v12  ;;  %v345_v35 = vadd.f32 1e-05, %v102_v26  ;;  %v349_v39 = vadd.f32 1e-05, %v100_v27 }
 0x106   :  { %v232_v36 = vpop.eup %231  ;;  %v117_v37 = vmul.f32 %v226_v13, %v116_v31  ;;  %v143_v38 = vmul.f32 %v230_v32, %v337_v15  ;;  %vm169_vm9 = vweird.f32 %v228_v30  ;;  %vm149_vm12 = vweird.f32 %v230_v32 }
 0x107   :  { %v141_v40 = vsel %vm140_vm5, %v224_v11, %v137_v33  ;;  %v164_v44 = vmul.f32 %v228_v30, %v163_v34  ;;  %v123_v45 = vmul.f32 %v232_v36, %v339_v16  ;;  %233 = vrsqrt.f32 %v345_v35  ;;  %vm362_vm10 = vmor %vm168_vm8, %vm169_vm9 }
 0x108   :  { %v194_v47 = vmul.f32 %v141_v40, %v286_v28  ;;  %v121_v48 = vsel %vm120_vm7, %v226_v13, %v117_v37  ;;  %v144_v49 = vmul.f32 %v230_v32, %v143_v38  ;;  %235 = vrsqrt.f32 %v349_v39  ;;  %vm150_vm14 = vmor %vm148_vm11, %vm149_vm12 }
 0x109   :  { %v192_v50 = vmul.f32 %v121_v48, %v288_v29  ;;  %v165_v51 = vmul.f32 0.5, %v164_v44  ;;  %v124_v52 = vmul.f32 %v232_v36, %v123_v45  ;;  %vm129_vm13 = vweird.f32 %v232_v36 }
 0x10a   :  { %v202_v53 = vmax.f32 %v194_v47, 0.0  ;;  %v145_v54 = vmul.f32 0.5, %v144_v49  ;;  %v95_v55 = vpop.xlane.xlu0 %94  ;;  %vm130_vm1 = vmor %vm128_vm15, %vm129_vm13  ;;  %vm178_vm2 = vweird.f32 %v345_v35  ;;  %vm158_vm6 = vweird.f32 %v349_v39 }
 0x10b   :  { %v200_v58 = vmax.f32 %v192_v50, 0.0  ;;  %v166_v59 = vsub.f32 1.5, %v165_v51  ;;  %v125_v60 = vmul.f32 0.5, %v124_v52  ;;  %v103_v61 = vmul.f32 %v95_v55, %v282_v22 }
 0x10c   :  { %210 = vst.msk [vmem:[%s409_s1 + $0x10] sm:$0xff] %vm16_vm0, %v202_v53  ;;  %v146_v29 = vsub.f32 1.5, %v145_v54 }
 0x10d   :  { %208 = vst.msk [vmem:[%s409_s1] sm:$0xff] %vm16_vm0, %v200_v58  ;;  %v167_v22 = vmul.f32 %v228_v30, %v166_v59  ;;  %v126_v62 = vsub.f32 1.5, %v125_v60  ;;  %v111_v63 = vadd.f32 1e-05, %v103_v61  ;;  %v234_v0 = vpop.eup %233 }
 0x10e   :  { %v147_v1 = vmul.f32 %v230_v32, %v146_v29  ;;  %v173_v4 = vmul.f32 %v234_v0, %v345_v35  ;;  %v236_v5 = vpop.eup %235  ;;  %vm179_vm3 = vweird.f32 %v234_v0 }
 0x10f   :  { %v171_v2 = vsel %vm362_vm10, %v228_v30, %v167_v22  ;;  %v127_v3 = vmul.f32 %v232_v36, %v126_v62  ;;  %237 = vrsqrt.f32 %v111_v63  ;;  %v153_v11 = vmul.f32 %v236_v5, %v349_v39  ;;  %vm180_vm5 = vmor %vm178_vm2, %vm179_vm3 }
 0x110   :  { %v197_v6 = vmul.f32 %v171_v2, %v300_v41  ;;  %v151_v7 = vsel %vm150_vm14, %v230_v32, %v147_v1  ;;  %v174_v10 = vmul.f32 %v234_v0, %v173_v4  ;;  %vm159_vm4 = vweird.f32 %v236_v5 }
 0x111   :  { %v195_v8 = vmul.f32 %v151_v7, %v302_v42  ;;  %v131_v9 = vsel %vm130_vm1, %v232_v36, %v127_v3  ;;  %v154_v16 = vmul.f32 %v236_v5, %v153_v11  ;;  %vm160_vm7 = vmor %vm158_vm6, %vm159_vm4  ;;  %vm188_vm9 = vweird.f32 %v111_v63 }
 0x112   :  { %v205_v12 = vmax.f32 %v197_v6, 0.0  ;;  %v193_v13 = vmul.f32 %v131_v9, %v304_v43  ;;  %v175_v15 = vmul.f32 0.5, %v174_v10 }
 0x113   :  { %v203_v14 = vmax.f32 %v195_v8, 0.0  ;;  %v155_v17 = vmul.f32 0.5, %v154_v16 }
 0x114   :  { %213 = vst.msk [vmem:[%s409_s1 + $0x28] sm:$0xff] %vm16_vm0, %v205_v12  ;;  %v201_v41 = vmax.f32 %v193_v13, 0.0  ;;  %v176_v42 = vsub.f32 1.5, %v175_v15 }
 0x115   :  { %211 = vst.msk [vmem:[%s409_s1 + $0x18] sm:$0xff] %vm16_vm0, %v203_v14  ;;  %v238_v43 = vpop.eup %237  ;;  %v156_v19 = vsub.f32 1.5, %v155_v17 }
 0x116   :  { %209 = vst.msk [vmem:[%s409_s1 + $0x8] sm:$0xff] %vm16_vm0, %v201_v41  ;;  %v177_v18 = vmul.f32 %v234_v0, %v176_v42  ;;  %v183_v20 = vmul.f32 %v238_v43, %v111_v63  ;;  %vm189_vm8 = vweird.f32 %v238_v43 }
 0x117   :  { %v157_v23 = vmul.f32 %v236_v5, %v156_v19  ;;  %vm190_vm10 = vmor %vm188_vm9, %vm189_vm8 }
 0x118   :  { %v181_v21 = vsel %vm180_vm5, %v234_v0, %v177_v18  ;;  %v184_v24 = vmul.f32 %v238_v43, %v183_v20 }
 0x119   :  { %v198_v25 = vmul.f32 %v181_v21, %v321_v56  ;;  %v161_v26 = vsel %vm160_vm7, %v236_v5, %v157_v23 }
 0x11a   :  { %v185_v27 = vmul.f32 0.5, %v184_v24  ;;  %v196_v31 = vmul.f32 %v161_v26, %v310_v46 }
 0x11b   :  { %v206_v30 = vmax.f32 %v198_v25, 0.0 }
 0x11c   :  { %v186_v32 = vsub.f32 1.5, %v185_v27  ;;  %v204_v33 = vmax.f32 %v196_v31, 0.0 }
 0x11d   :  { %214 = vst.msk [vmem:[%s409_s1 + $0x30] sm:$0xff] %vm16_vm0, %v206_v30 }
 0x11e   :  { %v187_v34 = vmul.f32 %v238_v43, %v186_v32  ;;  %212 = vst.msk [vmem:[%s409_s1 + $0x20] sm:$0xff] %vm16_vm0, %v204_v33 }
 0x120   :  { %v191_v56 = vsel %vm190_vm10, %v238_v43, %v187_v34 }
 0x121   :  { %v199_v35 = vmul.f32 %v191_v56, %v323_v57 }
 0x123   :  { %v207_v46 = vmax.f32 %v199_v35, 0.0 }
 0x125   :  { %215 = vst.msk [vmem:[%s409_s1 + $0x38] sm:$0xff] %vm16_vm0, %v207_v46 }

// kernel: raune_net_forward.45
= control target key start
LH: loop header
LB: loop body
LE: loop exit
PB: predicated region body
PF: predicated region fallthrough
CT: control target
= control target key end

     0   :  { %vm209_vm0 = vcmask 261120   ;;  %s562_s1 = inlined_call_operand.vmem [shape: bf16[288,32], index: 1, kind: input, shape index: {}]   ;;  %s563_s0 = inlined_call_operand.vmem [shape: bf16[32,288], index: 0, kind: input, shape index: {}]   ;;  %s564_s2 = inlined_call_operand.vmem [shape: f32[1,32], index: 2, kind: input, shape index: {}]   ;;  %s565_s3 = inlined_call_operand.vmem [shape: f32[32,32], index: 3, kind: output, shape index: {}]  }
   0x1   :  { %v415_v0 = vld [vmem:[%s562_s1 + $0x38] sm:$0xff]  ;;  %v414_v2 = vld [vmem:[%s562_s1 + $0x30] sm:$0xff]  ;;  %v425_v4 = vld [vmem:[%s562_s1 + $0x88] sm:$0xff] }
   0x2   :  { %v423_v1 = vld [vmem:[%s562_s1 + $0x78] sm:$0xff]  ;;  %216 = vmatpush.bf16.msra.mxu0 %v415_v0  ;;  %v422_v3 = vld [vmem:[%s562_s1 + $0x70] sm:$0xff]  ;;  %426 = vmatpush.bf16.msra.mxu3 %v415_v0  ;;  %v424_v5 = vld [vmem:[%s562_s1 + $0x80] sm:$0xff] }
   0x3   :  { %235 = vmatpush.bf16.msra.mxu1 %v423_v1  ;;  %260 = vmatpush.bf16.msra.mxu2 %v425_v4  ;;  %v314_v6 = vld [vmem:[%s563_s0 + $0x8] sm:$0xf]  ;;  %v404_v7 = vld [vmem:[%s563_s0 + $0x10] sm:$0xf0]  ;;  %v412_v11 = vld [vmem:[%s562_s1 + $0x20] sm:$0xff] }
   0x4   :  { %v413_v8 = vld [vmem:[%s562_s1 + $0x28] sm:$0xff]  ;;  %v315_v10 = vor.u32 %v404_v7, %v314_v6  ;;  %v420_v12 = vld [vmem:[%s562_s1 + $0x60] sm:$0xff]  ;;  %v411_v13 = vld [vmem:[%s562_s1 + $0x18] sm:$0xff] }
   0x5   :  { %v421_v9 = vld [vmem:[%s562_s1 + $0x68] sm:$0xff]  ;;  %v419_v14 = vld [vmem:[%s562_s1 + $0x58] sm:$0xff]  ;;  %v410_v15 = vld [vmem:[%s562_s1 + $0x10] sm:$0xff] }
   0x6   :  { %217 = vmatpush.bf16.msra.mxu0 %v414_v2  ;;  %427 = vmatpush.bf16.msra.mxu3 %v414_v2  ;;  %v418_v16 = vld [vmem:[%s562_s1 + $0x50] sm:$0xff]  ;;  %v326_v17 = vld [vmem:[%s563_s0 + $0x20] sm:$0xf]  ;;  %v407_v18 = vld [vmem:[%s563_s0 + $0x28] sm:$0xf0] }
   0x7   :  { %236 = vmatpush.bf16.msra.mxu1 %v422_v3  ;;  %261 = vmatpush.bf16.msra.mxu2 %v424_v5  ;;  %v409_v19 = vld [vmem:[%s562_s1 + $0x8] sm:$0xff]  ;;  %v327_v21 = vor.u32 %v407_v18, %v326_v17  ;;  %v408_v22 = vld [vmem:[%s562_s1] sm:$0xff]  ;;  %v308_v27 = vld [vmem:[%s563_s0 + $0xc] sm:$0xf0] }
   0x8   :  { %v417_v20 = vld [vmem:[%s562_s1 + $0x48] sm:$0xff]  ;;  %v416_v23 = vld [vmem:[%s562_s1 + $0x40] sm:$0xff]  ;;  %v318_v28 = vld [vmem:[%s563_s0 + $0x18] sm:$0xf] }
   0x9   :  { %v306_v24 = vld [vmem:[%s563_s0] sm:$0xf]  ;;  %v403_v25 = vld [vmem:[%s563_s0 + $0x8] sm:$0xf0]  ;;  %v402_v26 = vld [vmem:[%s563_s0 + $0x4] sm:$0xf] }
   0xa   :  { %218 = vmatpush.bf16.msra.mxu0 %v413_v8  ;;  %428 = vmatpush.bf16.msra.mxu3 %v413_v8  ;;  %v406_v29 = vld [vmem:[%s563_s0 + $0x20] sm:$0xf0]  ;;  %v307_v30 = vor.u32 %v403_v25, %v306_v24  ;;  %v311_v31 = vor.u32 %v402_v26, %v308_v27  ;;  %v405_v33 = vld [vmem:[%s563_s0 + $0x1c] sm:$0xf]  ;;  %v320_v34 = vld [vmem:[%s563_s0 + $0x24] sm:$0xf0] }
   0xb   :  { %237 = vmatpush.bf16.msra.mxu1 %v421_v9  ;;  %400 = vmatmul.msk.bf16.vlgmr.msra.gmra.mxu2 %vm209_vm0, %v315_v10  ;;  %v319_v32 = vor.u32 %v406_v29, %v318_v28  ;;  %v323_v35 = vor.u32 %v405_v33, %v320_v34  ;;  %v434_v40 = vld [vmem:[%s564_s2] ss:$0 sm:$0xff] }
   0xe   :  { %219 = vmatpush.bf16.msra.mxu0 %v412_v11  ;;  %429 = vmatpush.bf16.msra.mxu3 %v412_v11 }
   0xf   :  { %238 = vmatpush.bf16.msra.mxu1 %v420_v12 }
  0x12   :  { %220 = vmatpush.bf16.msra.mxu0 %v411_v13  ;;  %430 = vmatpush.bf16.msra.mxu3 %v411_v13 }
  0x13   :  { %239 = vmatpush.bf16.msra.mxu1 %v419_v14 }
  0x16   :  { %221 = vmatpush.bf16.msra.mxu0 %v410_v15  ;;  %431 = vmatpush.bf16.msra.mxu3 %v410_v15 }
  0x17   :  { %240 = vmatpush.bf16.msra.mxu1 %v418_v16 }
  0x1a   :  { %222 = vmatpush.bf16.msra.mxu0 %v409_v19  ;;  %432 = vmatpush.bf16.msra.mxu3 %v409_v19 }
  0x1b   :  { %241 = vmatpush.bf16.msra.mxu1 %v417_v20  ;;  %401 = vmatmul.msk.bf16.gmra.mxu2 %vm209_vm0, %v327_v21 }
  0x1e   :  { %223 = vmatpush.bf16.msra.mxu0 %v408_v22  ;;  %433 = vmatpush.bf16.msra.mxu3 %v408_v22 }
  0x1f   :  { %242 = vmatpush.bf16.msra.mxu1 %v416_v23 }
  0x21   :  { %224 = vmatmul.bf16.vlgmr.msra.gmra.mxu0 %v307_v30  ;;  %229 = vmatmul.bf16.vlgmr.msra.gmra.mxu3 %v319_v32 }
  0x22   :  { %243 = vmatmul.bf16.vlgmr.msra.gmra.mxu1 %v311_v31 }
  0x32   :  { %248 = vmatmul.bf16.gmra.mxu1 %v323_v35 }
  0x8e   :  { %v263_v36 = vpop.f32.mrf.mxu2 }
  0x96   :  { %v265_v43 = vpop.f32.mrf.mxu2 }
  0x9e   :  { %v225_v37 = vpop.f32.mrf.mxu0  ;;  %v268_v50 = vpop.f32.mrf.mxu2 }
  0x9f   :  { %v244_v38 = vpop.f32.mrf.mxu1 }
  0xa0   :  { %v245_v39 = vadd.f32 %v244_v38, %v225_v37 }
  0xa2   :  { %v264_v41 = vadd.f32 %v263_v36, %v245_v39 }
  0xa4   :  { %v292_v42 = vadd.f32 %v434_v40, %v264_v41  ;;  %v230_v49 = vpop.f32.mrf.mxu3 }
  0xa6   :  { %296 = vst [vmem:[%s565_s3] sm:$0xff] %v292_v42  ;;  %v227_v44 = vpop.f32.mrf.mxu0  ;;  %v270_v58 = vpop.f32.mrf.mxu2 }
  0xa7   :  { %v246_v45 = vpop.f32.mrf.mxu1 }
  0xa8   :  { %v247_v46 = vadd.f32 %v246_v45, %v227_v44 }
  0xaa   :  { %v266_v47 = vadd.f32 %v265_v43, %v247_v46 }
  0xac   :  { %v293_v48 = vadd.f32 %v434_v40, %v266_v47  ;;  %v232_v55 = vpop.f32.mrf.mxu3 }
  0xae   :  { %297 = vst [vmem:[%s565_s3 + $0x8] sm:$0xff] %v293_v48 }
  0xaf   :  { %v249_v51 = vpop.f32.mrf.mxu1 }
  0xb0   :  { %v250_v52 = vadd.f32 %v249_v51, %v230_v49 }
  0xb2   :  { %v269_v53 = vadd.f32 %v268_v50, %v250_v52 }
  0xb4   :  { %v294_v54 = vadd.f32 %v434_v40, %v269_v53 }
  0xb6   :  { %298 = vst [vmem:[%s565_s3 + $0x10] sm:$0xff] %v294_v54 }
  0xb7   :  { %v251_v56 = vpop.f32.mrf.mxu1 }
  0xb8   :  { %v252_v57 = vadd.f32 %v251_v56, %v232_v55 }
  0xba   :  { %v271_v59 = vadd.f32 %v270_v58, %v252_v57 }
  0xbc   :  { %v295_v60 = vadd.f32 %v434_v40, %v271_v59 }
  0xbe   :  { %299 = vst [vmem:[%s565_s3 + $0x18] sm:$0xff] %v295_v60 }

// kernel: raune_net_forward.48
= control target key start
LH: loop header
LB: loop body
LE: loop exit
PB: predicated region body
PF: predicated region fallthrough
CT: control target
= control target key end

     0   :  { %vm19_vm0 = vcmask 130048   ;;  %v250_v16 = vmov 16.0   ;;  %s448_s0 = inlined_call_operand.vmem [shape: f32[64,16], index: 0, kind: input, shape index: {}]   ;;  %s449_s1 = inlined_call_operand.vmem [shape: f32[64,16], index: 1, kind: input, shape index: {}]   ;;  %s450_s2 = inlined_call_operand.vmem [shape: f32[64,16], index: 2, kind: output, shape index: {}]  }
   0x1   :  { %v15_v0 = vld [vmem:[%s448_s0 + $0x20] sm:$0xff]  ;;  %v13_v1 = vld [vmem:[%s448_s0 + $0x10] sm:$0xff]  ;;  %v16_v6 = vld [vmem:[%s448_s0 + $0x28] sm:$0xff]  ;;  %232 = vrcp.f32 %v250_v16 }
   0x2   :  { %v11_v2 = vld [vmem:[%s448_s0] sm:$0xff]  ;;  %v32_v3 = vsel %vm19_vm0, %v15_v0, 0.0  ;;  %v26_v4 = vsel %vm19_vm0, %v13_v1, 0.0  ;;  %v14_v7 = vld [vmem:[%s448_s0 + $0x18] sm:$0xff]  ;;  %v12_v8 = vld [vmem:[%s448_s0 + $0x8] sm:$0xff]  ;;  %v35_v9 = vsel %vm19_vm0, %v16_v6, 0.0 }
   0x3   :  { %v20_v5 = vsel %vm19_vm0, %v11_v2, 0.0  ;;  %33 = vadd.xlane.f32.xlu2 %v32_v3  ;;  %27 = vadd.xlane.f32.xlu1 %v26_v4  ;;  %v29_v10 = vsel %vm19_vm0, %v14_v7, 0.0  ;;  %v23_v11 = vsel %vm19_vm0, %v12_v8, 0.0  ;;  %v18_v12 = vld [vmem:[%s448_s0 + $0x38] sm:$0xff]  ;;  %v17_v13 = vld [vmem:[%s448_s0 + $0x30] sm:$0xff] }
   0x4   :  { %21 = vadd.xlane.f32.xlu0 %v20_v5  ;;  %v41_v14 = vsel %vm19_vm0, %v18_v12, 0.0  ;;  %v38_v15 = vsel %vm19_vm0, %v17_v13, 0.0 }
   0x7   :  { %v233_v17 = vpop.eup %232 }
   0x8   :  { %v45_v18 = vmul.f32 16.0, %v233_v17  ;;  %vm49_vm1 = vweird.f32 %v233_v17 }
   0xa   :  { %v46_v19 = vsub.f32 1.0, %v45_v18 }
   0xb   :  { %36 = vadd.xlane.f32.xlu2 %v35_v9  ;;  %30 = vadd.xlane.f32.xlu1 %v29_v10 }
   0xc   :  { %24 = vadd.xlane.f32.xlu0 %v23_v11  ;;  %v47_v20 = vmul.f32 %v233_v17, %v46_v19 }
   0xe   :  { %v48_v21 = vadd.f32 %v233_v17, %v47_v20 }
  0x10   :  { %v298_v22 = vsel %vm49_vm1, %v233_v17, %v48_v21 }
  0x13   :  { %42 = vadd.xlane.f32.xlu1 %v41_v14 }
  0x14   :  { %39 = vadd.xlane.f32.xlu0 %v38_v15 }
  0x76   :  { %v34_v23 = vpop.xlane.xlu2 %33  ;;  %v28_v24 = vpop.xlane.xlu1 %27 }
  0x77   :  { %v53_v25 = vmul.f32 %v298_v22, %v28_v24  ;;  %v22_v26 = vpop.xlane.xlu0 %21  ;;  %v55_v39 = vmul.f32 %v298_v22, %v34_v23 }
  0x78   :  { %v51_v27 = vmul.f32 %v298_v22, %v22_v26 }
  0x79   :  { %v302_v28 = vsub.f32 %v13_v1, %v53_v25  ;;  %v326_v46 = vsub.f32 %v15_v0, %v55_v39 }
  0x7a   :  { %v304_v29 = vsub.f32 %v11_v2, %v51_v27 }
  0x7b   :  { %v69_v30 = vmul.f32 %v302_v28, %v302_v28  ;;  %v71_v55 = vmul.f32 %v326_v46, %v326_v46 }
  0x7c   :  { %v67_v31 = vmul.f32 %v304_v29, %v304_v29 }
  0x7d   :  { %v81_v32 = vsel %vm19_vm0, %v69_v30, 0.0  ;;  %v87_v58 = vsel %vm19_vm0, %v71_v55, 0.0 }
  0x7e   :  { %v37_v33 = vpop.xlane.xlu2 %36  ;;  %82 = vadd.xlane.f32.xlu1 %v81_v32  ;;  %v31_v34 = vpop.xlane.xlu1 %30  ;;  %v75_v35 = vsel %vm19_vm0, %v67_v31, 0.0 }
  0x7f   :  { %v56_v36 = vmul.f32 %v298_v22, %v37_v33  ;;  %v54_v37 = vmul.f32 %v298_v22, %v31_v34  ;;  %76 = vadd.xlane.f32.xlu2 %v75_v35  ;;  %v25_v38 = vpop.xlane.xlu0 %24 }
  0x80   :  { %v52_v40 = vmul.f32 %v298_v22, %v25_v38 }
  0x81   :  { %v316_v41 = vsub.f32 %v16_v6, %v56_v36  ;;  %v318_v42 = vsub.f32 %v14_v7, %v54_v37 }
  0x82   :  { %v320_v43 = vsub.f32 %v12_v8, %v52_v40  ;;  %v205_v40 = vld [vmem:[%s449_s1 + $0x10] sm:$0xff] }
  0x83   :  { %v72_v44 = vmul.f32 %v316_v41, %v316_v41  ;;  %v70_v45 = vmul.f32 %v318_v42, %v318_v42 }
  0x84   :  { %v68_v47 = vmul.f32 %v320_v43, %v320_v43 }
  0x85   :  { %v90_v48 = vsel %vm19_vm0, %v72_v44, 0.0  ;;  %v84_v49 = vsel %vm19_vm0, %v70_v45, 0.0 }
  0x86   :  { %91 = vadd.xlane.f32.xlu1 %v90_v48  ;;  %v78_v50 = vsel %vm19_vm0, %v68_v47, 0.0  ;;  %v43_v51 = vpop.xlane.xlu1 %42 }
  0x87   :  { %85 = vadd.xlane.f32.xlu2 %v84_v49  ;;  %79 = vadd.xlane.f32.xlu0 %v78_v50  ;;  %v40_v52 = vpop.xlane.xlu0 %39  ;;  %v58_v54 = vmul.f32 %v298_v22, %v43_v51  ;;  %v203_v49 = vld [vmem:[%s449_s1] sm:$0xff] }
  0x88   :  { %v57_v53 = vmul.f32 %v298_v22, %v40_v52 }
  0x89   :  { %v339_v57 = vsub.f32 %v18_v12, %v58_v54 }
  0x8a   :  { %v337_v56 = vsub.f32 %v17_v13, %v57_v53 }
  0x8b   :  { %v74_v61 = vmul.f32 %v339_v57, %v339_v57 }
  0x8c   :  { %v73_v59 = vmul.f32 %v337_v56, %v337_v56 }
  0x8d   :  { %v96_v62 = vsel %vm19_vm0, %v74_v61, 0.0 }
  0x8e   :  { %v93_v60 = vsel %vm19_vm0, %v73_v59, 0.0 }
  0x8f   :  { %88 = vadd.xlane.f32.xlu0 %v87_v58  ;;  %94 = vadd.xlane.f32.xlu2 %v93_v60 }
  0x97   :  { %97 = vadd.xlane.f32.xlu0 %v96_v62 }
  0xf1   :  { %v83_v63 = vpop.xlane.xlu1 %82 }
  0xf2   :  { %v101_v0 = vmul.f32 %v83_v63, %v298_v22  ;;  %v77_v1 = vpop.xlane.xlu2 %76 }
  0xf3   :  { %v99_v2 = vmul.f32 %v77_v1, %v298_v22 }
  0xf4   :  { %v109_v3 = vadd.f32 1e-05, %v101_v0 }
  0xf5   :  { %v107_v4 = vadd.f32 1e-05, %v99_v2 }
  0xf6   :  { %234 = vrsqrt.f32 %v109_v3  ;;  %vm141_vm2 = vweird.f32 %v109_v3 }
  0xf7   :  { %236 = vrsqrt.f32 %v107_v4  ;;  %vm121_vm6 = vweird.f32 %v107_v4 }
  0xf9   :  { %v92_v5 = vpop.xlane.xlu1 %91 }
  0xfa   :  { %v104_v6 = vmul.f32 %v92_v5, %v298_v22  ;;  %v86_v7 = vpop.xlane.xlu2 %85  ;;  %v80_v8 = vpop.xlane.xlu0 %79 }
  0xfb   :  { %v102_v9 = vmul.f32 %v86_v7, %v298_v22  ;;  %v100_v10 = vmul.f32 %v80_v8, %v298_v22 }
  0xfc   :  { %v235_v11 = vpop.eup %234  ;;  %v112_v12 = vadd.f32 1e-05, %v104_v6 }
  0xfd   :  { %v237_v13 = vpop.eup %236  ;;  %v136_v14 = vmul.f32 %v235_v11, %v109_v3  ;;  %v353_v15 = vadd.f32 1e-05, %v102_v9  ;;  %v355_v16 = vadd.f32 1e-05, %v100_v10  ;;  %vm142_vm3 = vweird.f32 %v235_v11  ;;  %v206_v10 = vld [vmem:[%s449_s1 + $0x18] sm:$0xff] }
  0xfe   :  { %v116_v17 = vmul.f32 %v237_v13, %v107_v4  ;;  %238 = vrsqrt.f32 %v112_v12  ;;  %vm122_vm4 = vweird.f32 %v237_v13  ;;  %vm143_vm5 = vmor %vm141_vm2, %vm142_vm3  ;;  %vm171_vm8 = vweird.f32 %v112_v12  ;;  %v208_v4 = vld [vmem:[%s449_s1 + $0x28] sm:$0xff] }
  0xff   :  { %v137_v18 = vmul.f32 %v235_v11, %v136_v14  ;;  %240 = vrsqrt.f32 %v353_v15  ;;  %vm123_vm7 = vmor %vm121_vm6, %vm122_vm4  ;;  %vm151_vm11 = vweird.f32 %v353_v15  ;;  %vm131_vm15 = vweird.f32 %v355_v16 }
 0x100   :  { %v117_v19 = vmul.f32 %v237_v13, %v116_v17  ;;  %242 = vrsqrt.f32 %v355_v16 }
 0x101   :  { %v138_v20 = vmul.f32 0.5, %v137_v18 }
 0x102   :  { %v118_v21 = vmul.f32 0.5, %v117_v19  ;;  %v95_v23 = vpop.xlane.xlu2 %94  ;;  %v89_v24 = vpop.xlane.xlu0 %88 }
 0x103   :  { %v139_v25 = vsub.f32 1.5, %v138_v20  ;;  %v105_v26 = vmul.f32 %v95_v23, %v298_v22  ;;  %v103_v27 = vmul.f32 %v89_v24, %v298_v22 }
 0x104   :  { %v239_v30 = vpop.eup %238  ;;  %v119_v31 = vsub.f32 1.5, %v118_v21 }
 0x105   :  { %v241_v32 = vpop.eup %240  ;;  %v140_v33 = vmul.f32 %v235_v11, %v139_v25  ;;  %v166_v34 = vmul.f32 %v239_v30, %v112_v12  ;;  %v361_v35 = vadd.f32 1e-05, %v105_v26  ;;  %v365_v39 = vadd.f32 1e-05, %v103_v27  ;;  %v209_v27 = vld [vmem:[%s449_s1 + $0x30] sm:$0xff] }
 0x106   :  { %v243_v36 = vpop.eup %242  ;;  %v120_v37 = vmul.f32 %v237_v13, %v119_v31  ;;  %v146_v38 = vmul.f32 %v241_v32, %v353_v15  ;;  %vm172_vm9 = vweird.f32 %v239_v30  ;;  %vm152_vm12 = vweird.f32 %v241_v32 }
 0x107   :  { %v144_v44 = vsel %vm143_vm5, %v235_v11, %v140_v33  ;;  %v167_v45 = vmul.f32 %v239_v30, %v166_v34  ;;  %v126_v47 = vmul.f32 %v243_v36, %v355_v16  ;;  %244 = vrsqrt.f32 %v361_v35  ;;  %vm384_vm10 = vmor %vm171_vm8, %vm172_vm9  ;;  %v207_v34 = vld [vmem:[%s449_s1 + $0x20] sm:$0xff] }
 0x108   :  { %v197_v48 = vmul.f32 %v144_v44, %v302_v28  ;;  %v124_v50 = vsel %vm123_vm7, %v237_v13, %v120_v37  ;;  %v147_v51 = vmul.f32 %v241_v32, %v146_v38  ;;  %246 = vrsqrt.f32 %v365_v39  ;;  %vm153_vm14 = vmor %vm151_vm11, %vm152_vm12  ;;  %v204_v13 = vld [vmem:[%s449_s1 + $0x8] sm:$0xff] }
 0x109   :  { %v195_v52 = vmul.f32 %v124_v50, %v304_v29  ;;  %v168_v53 = vmul.f32 0.5, %v167_v45  ;;  %v127_v54 = vmul.f32 %v243_v36, %v126_v47  ;;  %vm132_vm13 = vweird.f32 %v243_v36 }
 0x10a   :  { %v213_v55 = vadd.f32 %v205_v40, %v197_v48  ;;  %v148_v58 = vmul.f32 0.5, %v147_v51  ;;  %v98_v59 = vpop.xlane.xlu0 %97  ;;  %vm133_vm1 = vmor %vm131_vm15, %vm132_vm13  ;;  %vm181_vm2 = vweird.f32 %v361_v35  ;;  %vm161_vm6 = vweird.f32 %v365_v39 }
 0x10b   :  { %v211_v60 = vadd.f32 %v203_v49, %v195_v52  ;;  %v169_v28 = vsub.f32 1.5, %v168_v53  ;;  %v128_v61 = vmul.f32 0.5, %v127_v54  ;;  %v106_v62 = vmul.f32 %v98_v59, %v298_v22 }
 0x10c   :  { %221 = vst.msk [vmem:[%s450_s2 + $0x10] sm:$0xff] %vm19_vm0, %v213_v55  ;;  %v149_v63 = vsub.f32 1.5, %v148_v58 }
 0x10d   :  { %219 = vst.msk [vmem:[%s450_s2] sm:$0xff] %vm19_vm0, %v211_v60  ;;  %v170_v22 = vmul.f32 %v239_v30, %v169_v28  ;;  %v129_v0 = vsub.f32 1.5, %v128_v61  ;;  %v114_v1 = vadd.f32 1e-05, %v106_v62  ;;  %v245_v2 = vpop.eup %244 }
 0x10e   :  { %v150_v3 = vmul.f32 %v241_v32, %v149_v63  ;;  %v176_v7 = vmul.f32 %v245_v2, %v361_v35  ;;  %v247_v8 = vpop.eup %246  ;;  %vm182_vm3 = vweird.f32 %v245_v2 }
 0x10f   :  { %v174_v5 = vsel %vm384_vm10, %v239_v30, %v170_v22  ;;  %v130_v6 = vmul.f32 %v243_v36, %v129_v0  ;;  %248 = vrsqrt.f32 %v114_v1  ;;  %v156_v16 = vmul.f32 %v247_v8, %v365_v39  ;;  %vm183_vm5 = vmor %vm181_vm2, %vm182_vm3 }
 0x110   :  { %v200_v9 = vmul.f32 %v174_v5, %v316_v41  ;;  %v154_v11 = vsel %vm153_vm14, %v241_v32, %v150_v3  ;;  %v177_v15 = vmul.f32 %v245_v2, %v176_v7  ;;  %vm162_vm4 = vweird.f32 %v247_v8 }
 0x111   :  { %v198_v12 = vmul.f32 %v154_v11, %v318_v42  ;;  %v134_v14 = vsel %vm133_vm1, %v243_v36, %v130_v6  ;;  %v157_v20 = vmul.f32 %v247_v8, %v156_v16  ;;  %vm163_vm7 = vmor %vm161_vm6, %vm162_vm4  ;;  %vm191_vm9 = vweird.f32 %v114_v1 }
 0x112   :  { %v216_v17 = vadd.f32 %v208_v4, %v200_v9  ;;  %v196_v41 = vmul.f32 %v134_v14, %v320_v43  ;;  %v178_v19 = vmul.f32 0.5, %v177_v15 }
 0x113   :  { %v214_v18 = vadd.f32 %v206_v10, %v198_v12  ;;  %v158_v23 = vmul.f32 0.5, %v157_v20 }
 0x114   :  { %224 = vst.msk [vmem:[%s450_s2 + $0x28] sm:$0xff] %vm19_vm0, %v216_v17  ;;  %v212_v42 = vadd.f32 %v204_v13, %v196_v41  ;;  %v179_v21 = vsub.f32 1.5, %v178_v19 }
 0x115   :  { %222 = vst.msk [vmem:[%s450_s2 + $0x18] sm:$0xff] %vm19_vm0, %v214_v18  ;;  %v249_v43 = vpop.eup %248  ;;  %v159_v25 = vsub.f32 1.5, %v158_v23 }
 0x116   :  { %220 = vst.msk [vmem:[%s450_s2 + $0x8] sm:$0xff] %vm19_vm0, %v212_v42  ;;  %v180_v24 = vmul.f32 %v245_v2, %v179_v21  ;;  %v186_v26 = vmul.f32 %v249_v43, %v114_v1  ;;  %vm192_vm8 = vweird.f32 %v249_v43 }
 0x117   :  { %v160_v31 = vmul.f32 %v247_v8, %v159_v25  ;;  %vm193_vm10 = vmor %vm191_vm9, %vm192_vm8 }
 0x118   :  { %v184_v30 = vsel %vm183_vm5, %v245_v2, %v180_v24  ;;  %v187_v32 = vmul.f32 %v249_v43, %v186_v26 }
 0x119   :  { %v201_v33 = vmul.f32 %v184_v30, %v337_v56  ;;  %v164_v35 = vsel %vm163_vm7, %v247_v8, %v160_v31 }
 0x11a   :  { %v188_v36 = vmul.f32 0.5, %v187_v32  ;;  %v199_v38 = vmul.f32 %v164_v35, %v326_v46  ;;  %v210_v46 = vld [vmem:[%s449_s1 + $0x38] sm:$0xff] }
 0x11b   :  { %v217_v37 = vadd.f32 %v209_v27, %v201_v33 }
 0x11c   :  { %v189_v40 = vsub.f32 1.5, %v188_v36  ;;  %v215_v39 = vadd.f32 %v207_v34, %v199_v38 }
 0x11d   :  { %225 = vst.msk [vmem:[%s450_s2 + $0x30] sm:$0xff] %vm19_vm0, %v217_v37 }
 0x11e   :  { %v190_v44 = vmul.f32 %v249_v43, %v189_v40  ;;  %223 = vst.msk [vmem:[%s450_s2 + $0x20] sm:$0xff] %vm19_vm0, %v215_v39 }
 0x120   :  { %v194_v56 = vsel %vm193_vm10, %v249_v43, %v190_v44 }
 0x121   :  { %v202_v45 = vmul.f32 %v194_v56, %v339_v57 }
 0x123   :  { %v218_v47 = vadd.f32 %v210_v46, %v202_v45 }
 0x125   :  { %226 = vst.msk [vmem:[%s450_s2 + $0x38] sm:$0xff] %vm19_vm0, %v218_v47 }

// kernel: raune_net_forward.53
= control target key start
LH: loop header
LB: loop body
LE: loop exit
PB: predicated region body
PF: predicated region fallthrough
CT: control target
= control target key end

     0   :  { %vm209_vm0 = vcmask 261120   ;;  %s562_s1 = inlined_call_operand.vmem [shape: bf16[288,64], index: 1, kind: input, shape index: {}]   ;;  %s563_s0 = inlined_call_operand.vmem [shape: bf16[32,288], index: 0, kind: input, shape index: {}]   ;;  %s564_s2 = inlined_call_operand.vmem [shape: f32[1,64], index: 2, kind: input, shape index: {}]   ;;  %s565_s3 = inlined_call_operand.vmem [shape: f32[32,64], index: 3, kind: output, shape index: {}]  }
   0x1   :  { %v415_v0 = vld [vmem:[%s562_s1 + $0x38] sm:$0xff]  ;;  %v414_v2 = vld [vmem:[%s562_s1 + $0x30] sm:$0xff]  ;;  %v425_v4 = vld [vmem:[%s562_s1 + $0x88] sm:$0xff] }
   0x2   :  { %v423_v1 = vld [vmem:[%s562_s1 + $0x78] sm:$0xff]  ;;  %216 = vmatpush.bf16.msra.mxu0 %v415_v0  ;;  %v422_v3 = vld [vmem:[%s562_s1 + $0x70] sm:$0xff]  ;;  %426 = vmatpush.bf16.msra.mxu3 %v415_v0  ;;  %v424_v5 = vld [vmem:[%s562_s1 + $0x80] sm:$0xff] }
   0x3   :  { %235 = vmatpush.bf16.msra.mxu1 %v423_v1  ;;  %260 = vmatpush.bf16.msra.mxu2 %v425_v4  ;;  %v314_v6 = vld [vmem:[%s563_s0 + $0x8] sm:$0xf]  ;;  %v404_v7 = vld [vmem:[%s563_s0 + $0x10] sm:$0xf0]  ;;  %v412_v11 = vld [vmem:[%s562_s1 + $0x20] sm:$0xff] }
   0x4   :  { %v413_v8 = vld [vmem:[%s562_s1 + $0x28] sm:$0xff]  ;;  %v315_v10 = vor.u32 %v404_v7, %v314_v6  ;;  %v420_v12 = vld [vmem:[%s562_s1 + $0x60] sm:$0xff]  ;;  %v411_v13 = vld [vmem:[%s562_s1 + $0x18] sm:$0xff] }
   0x5   :  { %v421_v9 = vld [vmem:[%s562_s1 + $0x68] sm:$0xff]  ;;  %v419_v14 = vld [vmem:[%s562_s1 + $0x58] sm:$0xff]  ;;  %v410_v15 = vld [vmem:[%s562_s1 + $0x10] sm:$0xff] }
   0x6   :  { %217 = vmatpush.bf16.msra.mxu0 %v414_v2  ;;  %427 = vmatpush.bf16.msra.mxu3 %v414_v2  ;;  %v418_v16 = vld [vmem:[%s562_s1 + $0x50] sm:$0xff]  ;;  %v326_v17 = vld [vmem:[%s563_s0 + $0x20] sm:$0xf]  ;;  %v407_v18 = vld [vmem:[%s563_s0 + $0x28] sm:$0xf0] }
   0x7   :  { %236 = vmatpush.bf16.msra.mxu1 %v422_v3  ;;  %261 = vmatpush.bf16.msra.mxu2 %v424_v5  ;;  %v409_v19 = vld [vmem:[%s562_s1 + $0x8] sm:$0xff]  ;;  %v327_v21 = vor.u32 %v407_v18, %v326_v17  ;;  %v408_v22 = vld [vmem:[%s562_s1] sm:$0xff]  ;;  %v308_v27 = vld [vmem:[%s563_s0 + $0xc] sm:$0xf0] }
   0x8   :  { %v417_v20 = vld [vmem:[%s562_s1 + $0x48] sm:$0xff]  ;;  %v416_v23 = vld [vmem:[%s562_s1 + $0x40] sm:$0xff]  ;;  %v318_v28 = vld [vmem:[%s563_s0 + $0x18] sm:$0xf] }
   0x9   :  { %v306_v24 = vld [vmem:[%s563_s0] sm:$0xf]  ;;  %v403_v25 = vld [vmem:[%s563_s0 + $0x8] sm:$0xf0]  ;;  %v402_v26 = vld [vmem:[%s563_s0 + $0x4] sm:$0xf] }
   0xa   :  { %218 = vmatpush.bf16.msra.mxu0 %v413_v8  ;;  %428 = vmatpush.bf16.msra.mxu3 %v413_v8  ;;  %v406_v29 = vld [vmem:[%s563_s0 + $0x20] sm:$0xf0]  ;;  %v307_v30 = vor.u32 %v403_v25, %v306_v24  ;;  %v311_v31 = vor.u32 %v402_v26, %v308_v27  ;;  %v405_v33 = vld [vmem:[%s563_s0 + $0x1c] sm:$0xf]  ;;  %v320_v34 = vld [vmem:[%s563_s0 + $0x24] sm:$0xf0] }
   0xb   :  { %237 = vmatpush.bf16.msra.mxu1 %v421_v9  ;;  %400 = vmatmul.msk.bf16.vlgmr.msra.gmra.mxu2 %vm209_vm0, %v315_v10  ;;  %v319_v32 = vor.u32 %v406_v29, %v318_v28  ;;  %v323_v35 = vor.u32 %v405_v33, %v320_v34  ;;  %v434_v40 = vld [vmem:[%s564_s2] ss:$0 sm:$0xff] }
   0xe   :  { %219 = vmatpush.bf16.msra.mxu0 %v412_v11  ;;  %429 = vmatpush.bf16.msra.mxu3 %v412_v11 }
   0xf   :  { %238 = vmatpush.bf16.msra.mxu1 %v420_v12 }
  0x12   :  { %220 = vmatpush.bf16.msra.mxu0 %v411_v13  ;;  %430 = vmatpush.bf16.msra.mxu3 %v411_v13 }
  0x13   :  { %239 = vmatpush.bf16.msra.mxu1 %v419_v14 }
  0x16   :  { %221 = vmatpush.bf16.msra.mxu0 %v410_v15  ;;  %431 = vmatpush.bf16.msra.mxu3 %v410_v15 }
  0x17   :  { %240 = vmatpush.bf16.msra.mxu1 %v418_v16 }
  0x1a   :  { %222 = vmatpush.bf16.msra.mxu0 %v409_v19  ;;  %432 = vmatpush.bf16.msra.mxu3 %v409_v19 }
  0x1b   :  { %241 = vmatpush.bf16.msra.mxu1 %v417_v20  ;;  %401 = vmatmul.msk.bf16.gmra.mxu2 %vm209_vm0, %v327_v21 }
  0x1e   :  { %223 = vmatpush.bf16.msra.mxu0 %v408_v22  ;;  %433 = vmatpush.bf16.msra.mxu3 %v408_v22 }
  0x1f   :  { %242 = vmatpush.bf16.msra.mxu1 %v416_v23 }
  0x21   :  { %224 = vmatmul.bf16.vlgmr.msra.gmra.mxu0 %v307_v30  ;;  %229 = vmatmul.bf16.vlgmr.msra.gmra.mxu3 %v319_v32 }
  0x22   :  { %243 = vmatmul.bf16.vlgmr.msra.gmra.mxu1 %v311_v31 }
  0x32   :  { %248 = vmatmul.bf16.gmra.mxu1 %v323_v35 }
  0x8e   :  { %v263_v36 = vpop.f32.mrf.mxu2 }
  0x96   :  { %v265_v43 = vpop.f32.mrf.mxu2 }
  0x9e   :  { %v225_v37 = vpop.f32.mrf.mxu0  ;;  %v268_v50 = vpop.f32.mrf.mxu2 }
  0x9f   :  { %v244_v38 = vpop.f32.mrf.mxu1 }
  0xa0   :  { %v245_v39 = vadd.f32 %v244_v38, %v225_v37 }
  0xa2   :  { %v264_v41 = vadd.f32 %v263_v36, %v245_v39 }
  0xa4   :  { %v292_v42 = vadd.f32 %v434_v40, %v264_v41  ;;  %v230_v49 = vpop.f32.mrf.mxu3 }
  0xa6   :  { %296 = vst [vmem:[%s565_s3] sm:$0xff] %v292_v42  ;;  %v227_v44 = vpop.f32.mrf.mxu0  ;;  %v270_v58 = vpop.f32.mrf.mxu2 }
  0xa7   :  { %v246_v45 = vpop.f32.mrf.mxu1 }
  0xa8   :  { %v247_v46 = vadd.f32 %v246_v45, %v227_v44 }
  0xaa   :  { %v266_v47 = vadd.f32 %v265_v43, %v247_v46 }
  0xac   :  { %v293_v48 = vadd.f32 %v434_v40, %v266_v47  ;;  %v232_v55 = vpop.f32.mrf.mxu3 }
  0xae   :  { %297 = vst [vmem:[%s565_s3 + $0x8] sm:$0xff] %v293_v48 }
  0xaf   :  { %v249_v51 = vpop.f32.mrf.mxu1 }
  0xb0   :  { %v250_v52 = vadd.f32 %v249_v51, %v230_v49 }
  0xb2   :  { %v269_v53 = vadd.f32 %v268_v50, %v250_v52 }
  0xb4   :  { %v294_v54 = vadd.f32 %v434_v40, %v269_v53 }
  0xb6   :  { %298 = vst [vmem:[%s565_s3 + $0x10] sm:$0xff] %v294_v54 }
  0xb7   :  { %v251_v56 = vpop.f32.mrf.mxu1 }
  0xb8   :  { %v252_v57 = vadd.f32 %v251_v56, %v232_v55 }
  0xba   :  { %v271_v59 = vadd.f32 %v270_v58, %v252_v57 }
  0xbc   :  { %v295_v60 = vadd.f32 %v434_v40, %v271_v59 }
  0xbe   :  { %299 = vst [vmem:[%s565_s3 + $0x18] sm:$0xff] %v295_v60 }

// kernel: raune_net_forward.54
= control target key start
LH: loop header
LB: loop body
LE: loop exit
PB: predicated region body
PF: predicated region fallthrough
CT: control target
= control target key end

     0   :  { %vm12_vm0 = vcmask 523264   ;;  %v131_v8 = vmov 64.0   ;;  %s193_s0 = inlined_call_operand.vmem [shape: f32[32,64], index: 0, kind: input, shape index: {}]   ;;  %s194_s1 = inlined_call_operand.vmem [shape: f32[32,64], index: 1, kind: output, shape index: {}]  }
   0x1   :  { %v10_v0 = vld [vmem:[%s193_s0 + $0x10] sm:$0xff]  ;;  %v8_v1 = vld [vmem:[%s193_s0] sm:$0xff]  ;;  %v11_v4 = vld [vmem:[%s193_s0 + $0x18] sm:$0xff]  ;;  %121 = vrcp.f32 %v131_v8 }
   0x2   :  { %v19_v2 = vsel %vm12_vm0, %v10_v0, 0.0  ;;  %v13_v3 = vsel %vm12_vm0, %v8_v1, 0.0  ;;  %v9_v5 = vld [vmem:[%s193_s0 + $0x8] sm:$0xff]  ;;  %v22_v6 = vsel %vm12_vm0, %v11_v4, 0.0 }
   0x3   :  { %20 = vadd.xlane.f32.xlu1 %v19_v2  ;;  %14 = vadd.xlane.f32.xlu0 %v13_v3  ;;  %v16_v7 = vsel %vm12_vm0, %v9_v5, 0.0 }
   0x7   :  { %v122_v9 = vpop.eup %121 }
   0x8   :  { %v26_v10 = vmul.f32 64.0, %v122_v9  ;;  %vm30_vm1 = vweird.f32 %v122_v9 }
   0xa   :  { %v27_v11 = vsub.f32 1.0, %v26_v10 }
   0xb   :  { %23 = vadd.xlane.f32.xlu1 %v22_v6  ;;  %17 = vadd.xlane.f32.xlu0 %v16_v7 }
   0xc   :  { %v28_v12 = vmul.f32 %v122_v9, %v27_v11 }
   0xe   :  { %v29_v13 = vadd.f32 %v122_v9, %v28_v12 }
  0x10   :  { %v31_v14 = vsel %vm30_vm1, %v122_v9, %v29_v13 }
  0x76   :  { %v21_v15 = vpop.xlane.xlu1 %20  ;;  %v15_v16 = vpop.xlane.xlu0 %14 }
  0x77   :  { %v34_v17 = vmul.f32 %v31_v14, %v21_v15  ;;  %v32_v18 = vmul.f32 %v31_v14, %v15_v16 }
  0x79   :  { %v158_v19 = vsub.f32 %v10_v0, %v34_v17  ;;  %v36_v20 = vsub.f32 %v8_v1, %v32_v18 }
  0x7b   :  { %v42_v21 = vmul.f32 %v158_v19, %v158_v19  ;;  %v40_v22 = vmul.f32 %v36_v20, %v36_v20 }
  0x7d   :  { %v50_v23 = vsel %vm12_vm0, %v42_v21, 0.0  ;;  %v44_v24 = vsel %vm12_vm0, %v40_v22, 0.0 }
  0x7e   :  { %v24_v25 = vpop.xlane.xlu1 %23  ;;  %51 = vadd.xlane.f32.xlu0 %v50_v23  ;;  %45 = vadd.xlane.f32.xlu2 %v44_v24  ;;  %v18_v26 = vpop.xlane.xlu0 %17 }
  0x7f   :  { %v35_v27 = vmul.f32 %v31_v14, %v24_v25  ;;  %v33_v28 = vmul.f32 %v31_v14, %v18_v26 }
  0x81   :  { %v164_v29 = vsub.f32 %v11_v4, %v35_v27  ;;  %v166_v30 = vsub.f32 %v9_v5, %v33_v28 }
  0x83   :  { %v43_v31 = vmul.f32 %v164_v29, %v164_v29  ;;  %v41_v32 = vmul.f32 %v166_v30, %v166_v30 }
  0x85   :  { %v53_v33 = vsel %vm12_vm0, %v43_v31, 0.0  ;;  %v47_v34 = vsel %vm12_vm0, %v41_v32, 0.0 }
  0x86   :  { %54 = vadd.xlane.f32.xlu1 %v53_v33  ;;  %48 = vadd.xlane.f32.xlu2 %v47_v34 }
  0xf1   :  { %v46_v35 = vpop.xlane.xlu2 %45  ;;  %v52_v36 = vpop.xlane.xlu0 %51 }
  0xf2   :  { %v56_v37 = vmul.f32 %v46_v35, %v31_v14  ;;  %v58_v38 = vmul.f32 %v52_v36, %v31_v14 }
  0xf4   :  { %v60_v39 = vadd.f32 1e-05, %v56_v37  ;;  %v62_v40 = vadd.f32 1e-05, %v58_v38 }
  0xf6   :  { %123 = vrsqrt.f32 %v60_v39  ;;  %vm70_vm4 = vweird.f32 %v60_v39  ;;  %vm90_vm6 = vweird.f32 %v62_v40 }
  0xf7   :  { %125 = vrsqrt.f32 %v62_v40 }
  0xf9   :  { %v55_v41 = vpop.xlane.xlu1 %54  ;;  %v49_v42 = vpop.xlane.xlu2 %48 }
  0xfa   :  { %v59_v43 = vmul.f32 %v55_v41, %v31_v14  ;;  %v57_v44 = vmul.f32 %v49_v42, %v31_v14 }
  0xfc   :  { %v124_v45 = vpop.eup %123  ;;  %v63_v46 = vadd.f32 1e-05, %v59_v43  ;;  %v61_v47 = vadd.f32 1e-05, %v57_v44 }
  0xfd   :  { %v126_v48 = vpop.eup %125  ;;  %v65_v49 = vmul.f32 %v124_v45, %v60_v39  ;;  %vm71_vm2 = vweird.f32 %v124_v45 }
  0xfe   :  { %v85_v50 = vmul.f32 %v126_v48, %v62_v40  ;;  %127 = vrsqrt.f32 %v63_v46  ;;  %vm91_vm3 = vweird.f32 %v126_v48  ;;  %vm72_vm5 = vmor %vm70_vm4, %vm71_vm2  ;;  %vm100_vm10 = vweird.f32 %v63_v46 }
  0xff   :  { %v66_v51 = vmul.f32 %v124_v45, %v65_v49  ;;  %129 = vrsqrt.f32 %v61_v47  ;;  %vm92_vm7 = vmor %vm90_vm6, %vm91_vm3  ;;  %vm80_vm12 = vweird.f32 %v61_v47 }
 0x100   :  { %v86_v52 = vmul.f32 %v126_v48, %v85_v50 }
 0x101   :  { %v67_v53 = vmul.f32 0.5, %v66_v51 }
 0x102   :  { %v87_v54 = vmul.f32 0.5, %v86_v52 }
 0x103   :  { %v68_v55 = vsub.f32 1.5, %v67_v53 }
 0x104   :  { %v128_v56 = vpop.eup %127  ;;  %v88_v57 = vsub.f32 1.5, %v87_v54 }
 0x105   :  { %v130_v58 = vpop.eup %129  ;;  %v69_v59 = vmul.f32 %v124_v45, %v68_v55  ;;  %v95_v60 = vmul.f32 %v128_v56, %v63_v46  ;;  %vm101_vm8 = vweird.f32 %v128_v56 }
 0x106   :  { %v89_v61 = vmul.f32 %v126_v48, %v88_v57  ;;  %v75_v62 = vmul.f32 %v130_v58, %v61_v47  ;;  %vm81_vm9 = vweird.f32 %v130_v58  ;;  %vm102_vm11 = vmor %vm100_vm10, %vm101_vm8 }
 0x107   :  { %v73_v63 = vsel %vm72_vm5, %v124_v45, %v69_v59  ;;  %v96_v0 = vmul.f32 %v128_v56, %v95_v60  ;;  %vm82_vm13 = vmor %vm80_vm12, %vm81_vm9 }
 0x108   :  { %v104_v1 = vmul.f32 %v73_v63, %v36_v20  ;;  %v93_v2 = vsel %vm92_vm7, %v126_v48, %v89_v61  ;;  %v76_v3 = vmul.f32 %v130_v58, %v75_v62 }
 0x109   :  { %v106_v4 = vmul.f32 %v93_v2, %v158_v19  ;;  %v97_v5 = vmul.f32 0.5, %v96_v0 }
 0x10a   :  { %v108_v6 = vmax.f32 %v104_v1, 0.0  ;;  %v77_v7 = vmul.f32 0.5, %v76_v3 }
 0x10b   :  { %v110_v8 = vmax.f32 %v106_v4, 0.0  ;;  %v98_v9 = vsub.f32 1.5, %v97_v5 }
 0x10c   :  { %112 = vst.msk [vmem:[%s194_s1] sm:$0xff] %vm12_vm0, %v108_v6  ;;  %v78_v10 = vsub.f32 1.5, %v77_v7 }
 0x10d   :  { %114 = vst.msk [vmem:[%s194_s1 + $0x10] sm:$0xff] %vm12_vm0, %v110_v8  ;;  %v99_v11 = vmul.f32 %v128_v56, %v98_v9 }
 0x10e   :  { %v79_v12 = vmul.f32 %v130_v58, %v78_v10 }
 0x10f   :  { %v103_v13 = vsel %vm102_vm11, %v128_v56, %v99_v11 }
 0x110   :  { %v107_v14 = vmul.f32 %v103_v13, %v164_v29  ;;  %v83_v15 = vsel %vm82_vm13, %v130_v58, %v79_v12 }
 0x111   :  { %v105_v16 = vmul.f32 %v83_v15, %v166_v30 }
 0x112   :  { %v111_v17 = vmax.f32 %v107_v14, 0.0 }
 0x113   :  { %v109_v18 = vmax.f32 %v105_v16, 0.0 }
 0x114   :  { %115 = vst.msk [vmem:[%s194_s1 + $0x18] sm:$0xff] %vm12_vm0, %v111_v17 }
 0x115   :  { %113 = vst.msk [vmem:[%s194_s1 + $0x8] sm:$0xff] %vm12_vm0, %v109_v18 }

// kernel: raune_net_forward.55
= control target key start
LH: loop header
LB: loop body
LE: loop exit
PB: predicated region body
PF: predicated region fallthrough
CT: control target
= control target key end

     0   :  { %vm211_vm0 = vcmask 130048   ;;  %s788_s1 = inlined_call_operand.vmem [shape: bf16[144,32], index: 1, kind: input, shape index: {}]   ;;  %s789_s0 = inlined_call_operand.vmem [shape: bf16[128,144], index: 0, kind: input, shape index: {}]   ;;  %s790_s2 = inlined_call_operand.vmem [shape: f32[1,32], index: 2, kind: input, shape index: {}]   ;;  %s791_s3 = inlined_call_operand.vmem [shape: f32[128,32], index: 3, kind: output, shape index: {}]  }
   0x1   :  { %v556_v0 = vld [vmem:[%s788_s1 + $0x38] sm:$0xff]  ;;  %v557_v1 = vld [vmem:[%s788_s1 + $0x40] sm:$0xff]  ;;  %v429_v3 = vld [vmem:[%s789_s0 + $0x8] sm:$0xf0] }
   0x2   :  { %v533_v2 = vld [vmem:[%s789_s0 + $0x4] sm:$0xf]  ;;  %236 = vmatpush.bf16.msra.mxu0 %v556_v0  ;;  %558 = vmatpush.bf16.msra.mxu2 %v556_v0  ;;  %v555_v5 = vld [vmem:[%s788_s1 + $0x30] sm:$0xff]  ;;  %v554_v6 = vld [vmem:[%s788_s1 + $0x28] sm:$0xff] }
   0x3   :  { %v432_v4 = vor.u32 %v533_v2, %v429_v3  ;;  %292 = vmatpush.bf16.msra.mxu1 %v557_v1  ;;  %566 = vmatpush.bf16.msra.mxu3 %v557_v1  ;;  %v543_v7 = vld [vmem:[%s789_s0 + $0x54] sm:$0xf]  ;;  %v469_v8 = vld [vmem:[%s789_s0 + $0x58] sm:$0xf0]  ;;  %v553_v10 = vld [vmem:[%s788_s1 + $0x20] sm:$0xff] }
   0x4   :  { %v472_v9 = vor.u32 %v543_v7, %v469_v8  ;;  %v552_v11 = vld [vmem:[%s788_s1 + $0x18] sm:$0xff]  ;;  %v535_v12 = vld [vmem:[%s789_s0 + $0x14] sm:$0xf]  ;;  %v550_v16 = vld [vmem:[%s788_s1 + $0x8] sm:$0xff] }
   0x5   :  { %v437_v13 = vld [vmem:[%s789_s0 + $0x18] sm:$0xf0]  ;;  %v551_v15 = vld [vmem:[%s788_s1 + $0x10] sm:$0xff]  ;;  %v545_v17 = vld [vmem:[%s789_s0 + $0x64] sm:$0xf] }
   0x6   :  { %525 = vmatmul.msk.bf16.vlgmr.msra.gmra.mxu1 %vm211_vm0, %v432_v4  ;;  %237 = vmatpush.bf16.msra.mxu0 %v555_v5  ;;  %v440_v14 = vor.u32 %v535_v12, %v437_v13  ;;  %v477_v18 = vld [vmem:[%s789_s0 + $0x68] sm:$0xf0]  ;;  %v549_v20 = vld [vmem:[%s788_s1] sm:$0xff]  ;;  %v534_v22 = vld [vmem:[%s789_s0 + $0x4] sm:$0xf0] }
   0x7   :  { %559 = vmatpush.bf16.msra.mxu2 %v555_v5  ;;  %530 = vmatmul.msk.bf16.vlgmr.msra.gmra.mxu3 %vm211_vm0, %v472_v9  ;;  %v480_v19 = vor.u32 %v545_v17, %v477_v18  ;;  %v427_v21 = vld [vmem:[%s789_s0] sm:$0xf]  ;;  %v542_v24 = vld [vmem:[%s789_s0 + $0x44] sm:$0xf0]  ;;  %v537_v27 = vld [vmem:[%s789_s0 + $0x24] sm:$0xf] }
   0x8   :  { %v459_v23 = vld [vmem:[%s789_s0 + $0x40] sm:$0xf]  ;;  %v428_v25 = vor.u32 %v534_v22, %v427_v21  ;;  %v445_v28 = vld [vmem:[%s789_s0 + $0x28] sm:$0xf0]  ;;  %v547_v30 = vld [vmem:[%s789_s0 + $0x74] sm:$0xf] }
   0x9   :  { %v460_v26 = vor.u32 %v542_v24, %v459_v23  ;;  %v448_v29 = vor.u32 %v537_v27, %v445_v28  ;;  %v485_v31 = vld [vmem:[%s789_s0 + $0x78] sm:$0xf0]  ;;  %v435_v33 = vld [vmem:[%s789_s0 + $0x10] sm:$0xf]  ;;  %v536_v34 = vld [vmem:[%s789_s0 + $0x14] sm:$0xf0] }
   0xa   :  { %238 = vmatpush.bf16.msra.mxu0 %v554_v6  ;;  %v488_v32 = vor.u32 %v547_v30, %v485_v31  ;;  %v467_v35 = vld [vmem:[%s789_s0 + $0x50] sm:$0xf]  ;;  %v544_v36 = vld [vmem:[%s789_s0 + $0x54] sm:$0xf0]  ;;  %v436_v37 = vor.u32 %v536_v34, %v435_v33  ;;  %v539_v39 = vld [vmem:[%s789_s0 + $0x34] sm:$0xf] }
   0xb   :  { %560 = vmatpush.bf16.msra.mxu2 %v554_v6  ;;  %v468_v38 = vor.u32 %v544_v36, %v467_v35  ;;  %v453_v40 = vld [vmem:[%s789_s0 + $0x38] sm:$0xf0]  ;;  %v443_v42 = vld [vmem:[%s789_s0 + $0x20] sm:$0xf]  ;;  %v538_v43 = vld [vmem:[%s789_s0 + $0x24] sm:$0xf0] }
   0xc   :  { %v456_v41 = vor.u32 %v539_v39, %v453_v40  ;;  %v475_v44 = vld [vmem:[%s789_s0 + $0x60] sm:$0xf]  ;;  %v546_v45 = vld [vmem:[%s789_s0 + $0x64] sm:$0xf0]  ;;  %v444_v46 = vor.u32 %v538_v43, %v443_v42  ;;  %v541_v48 = vld [vmem:[%s789_s0 + $0x44] sm:$0xf] }
   0xd   :  { %v476_v47 = vor.u32 %v546_v45, %v475_v44  ;;  %v461_v49 = vld [vmem:[%s789_s0 + $0x48] sm:$0xf0]  ;;  %v451_v51 = vld [vmem:[%s789_s0 + $0x30] sm:$0xf]  ;;  %v540_v52 = vld [vmem:[%s789_s0 + $0x34] sm:$0xf0] }
   0xe   :  { %239 = vmatpush.bf16.msra.mxu0 %v553_v10  ;;  %v464_v50 = vor.u32 %v541_v48, %v461_v49  ;;  %v483_v53 = vld [vmem:[%s789_s0 + $0x70] sm:$0xf]  ;;  %v548_v54 = vld [vmem:[%s789_s0 + $0x74] sm:$0xf0]  ;;  %v452_v55 = vor.u32 %v540_v52, %v451_v51  ;;  %v722_v61 = vld [vmem:[%s790_s2] ss:$0 sm:$0xff] }
   0xf   :  { %561 = vmatpush.bf16.msra.mxu2 %v553_v10  ;;  %v484_v56 = vor.u32 %v548_v54, %v483_v53 }
  0x12   :  { %240 = vmatpush.bf16.msra.mxu0 %v552_v11 }
  0x13   :  { %562 = vmatpush.bf16.msra.mxu2 %v552_v11 }
  0x16   :  { %526 = vmatmul.msk.bf16.gmra.mxu1 %vm211_vm0, %v440_v14  ;;  %241 = vmatpush.bf16.msra.mxu0 %v551_v15 }
  0x17   :  { %563 = vmatpush.bf16.msra.mxu2 %v551_v15  ;;  %531 = vmatmul.msk.bf16.gmra.mxu3 %vm211_vm0, %v480_v19 }
  0x1a   :  { %242 = vmatpush.bf16.msra.mxu0 %v550_v16 }
  0x1b   :  { %564 = vmatpush.bf16.msra.mxu2 %v550_v16 }
  0x1e   :  { %243 = vmatpush.bf16.msra.mxu0 %v549_v20 }
  0x1f   :  { %565 = vmatpush.bf16.msra.mxu2 %v549_v20 }
  0x21   :  { %244 = vmatmul.bf16.vlgmr.msra.gmra.mxu0 %v428_v25 }
  0x22   :  { %264 = vmatmul.bf16.vlgmr.msra.gmra.mxu2 %v460_v26 }
  0x26   :  { %527 = vmatmul.msk.bf16.gmra.mxu1 %vm211_vm0, %v448_v29 }
  0x27   :  { %532 = vmatmul.msk.bf16.gmra.mxu3 %vm211_vm0, %v488_v32 }
  0x31   :  { %249 = vmatmul.bf16.gmra.mxu0 %v436_v37 }
  0x32   :  { %269 = vmatmul.bf16.gmra.mxu2 %v468_v38 }
  0x36   :  { %528 = vmatmul.msk.bf16.gmra.mxu1 %vm211_vm0, %v456_v41 }
  0x41   :  { %254 = vmatmul.bf16.gmra.mxu0 %v444_v46 }
  0x42   :  { %274 = vmatmul.bf16.gmra.mxu2 %v476_v47 }
  0x46   :  { %529 = vmatmul.msk.bf16.gmra.mxu1 %vm211_vm0, %v464_v50 }
  0x51   :  { %259 = vmatmul.bf16.gmra.mxu0 %v452_v55 }
  0x52   :  { %279 = vmatmul.bf16.gmra.mxu2 %v484_v56 }
  0x83   :  { %v294_v57 = vpop.f32.mrf.mxu1 }
  0x8a   :  { %v319_v7 = vpop.f32.mrf.mxu3 }
  0x8b   :  { %v296_v58 = vpop.f32.mrf.mxu1 }
  0x92   :  { %v321_v14 = vpop.f32.mrf.mxu3 }
  0x93   :  { %v299_v59 = vpop.f32.mrf.mxu1 }
  0x9a   :  { %v324_v24 = vpop.f32.mrf.mxu3 }
  0x9b   :  { %v301_v60 = vpop.f32.mrf.mxu1 }
  0x9e   :  { %v245_v62 = vpop.f32.mrf.mxu0 }
  0x9f   :  { %v295_v63 = vadd.f32 %v294_v57, %v245_v62 }
  0xa1   :  { %v389_v0 = vadd.f32 %v722_v61, %v295_v63 }
  0xa2   :  { %v326_v36 = vpop.f32.mrf.mxu3 }
  0xa3   :  { %405 = vst [vmem:[%s791_s3] sm:$0xff] %v389_v0  ;;  %v304_v1 = vpop.f32.mrf.mxu1 }
  0xa5   :  { %v265_v2 = vpop.f32.mrf.mxu2 }
  0xa6   :  { %v247_v3 = vpop.f32.mrf.mxu0 }
  0xa7   :  { %v297_v4 = vadd.f32 %v296_v58, %v247_v3 }
  0xa9   :  { %v390_v5 = vadd.f32 %v722_v61, %v297_v4 }
  0xaa   :  { %v329_v47 = vpop.f32.mrf.mxu3 }
  0xab   :  { %406 = vst [vmem:[%s791_s3 + $0x8] sm:$0xff] %v390_v5  ;;  %v306_v6 = vpop.f32.mrf.mxu1 }
  0xad   :  { %v267_v8 = vpop.f32.mrf.mxu2 }
  0xae   :  { %v250_v9 = vpop.f32.mrf.mxu0 }
  0xaf   :  { %v300_v10 = vadd.f32 %v299_v59, %v250_v9 }
  0xb1   :  { %v391_v11 = vadd.f32 %v722_v61, %v300_v10 }
  0xb2   :  { %v331_v54 = vpop.f32.mrf.mxu3 }
  0xb3   :  { %407 = vst [vmem:[%s791_s3 + $0x10] sm:$0xff] %v391_v11  ;;  %v309_v12 = vpop.f32.mrf.mxu1 }
  0xb5   :  { %v270_v13 = vpop.f32.mrf.mxu2 }
  0xb6   :  { %v320_v15 = vadd.f32 %v319_v7, %v270_v13  ;;  %v252_v16 = vpop.f32.mrf.mxu0 }
  0xb7   :  { %v302_v17 = vadd.f32 %v301_v60, %v252_v16 }
  0xb8   :  { %v399_v18 = vadd.f32 %v722_v61, %v320_v15 }
  0xb9   :  { %v392_v19 = vadd.f32 %v722_v61, %v302_v17 }
  0xba   :  { %415 = vst [vmem:[%s791_s3 + $0x50] sm:$0xff] %v399_v18 }
  0xbb   :  { %408 = vst [vmem:[%s791_s3 + $0x18] sm:$0xff] %v392_v19  ;;  %v311_v20 = vpop.f32.mrf.mxu1 }
  0xbd   :  { %v272_v21 = vpop.f32.mrf.mxu2 }
  0xbe   :  { %v322_v22 = vadd.f32 %v321_v14, %v272_v21  ;;  %v255_v23 = vpop.f32.mrf.mxu0 }
  0xbf   :  { %v305_v25 = vadd.f32 %v304_v1, %v255_v23 }
  0xc0   :  { %v400_v26 = vadd.f32 %v722_v61, %v322_v22 }
  0xc1   :  { %v393_v27 = vadd.f32 %v722_v61, %v305_v25 }
  0xc2   :  { %416 = vst [vmem:[%s791_s3 + $0x58] sm:$0xff] %v400_v26 }
  0xc3   :  { %409 = vst [vmem:[%s791_s3 + $0x20] sm:$0xff] %v393_v27  ;;  %v314_v28 = vpop.f32.mrf.mxu1 }
  0xc4   :  { %v315_v29 = vadd.f32 %v314_v28, %v265_v2 }
  0xc5   :  { %v275_v30 = vpop.f32.mrf.mxu2 }
  0xc6   :  { %v397_v31 = vadd.f32 %v722_v61, %v315_v29  ;;  %v325_v32 = vadd.f32 %v324_v24, %v275_v30  ;;  %v257_v33 = vpop.f32.mrf.mxu0 }
  0xc7   :  { %v307_v34 = vadd.f32 %v306_v6, %v257_v33 }
  0xc8   :  { %413 = vst [vmem:[%s791_s3 + $0x40] sm:$0xff] %v397_v31  ;;  %v401_v35 = vadd.f32 %v722_v61, %v325_v32 }
  0xc9   :  { %v394_v37 = vadd.f32 %v722_v61, %v307_v34 }
  0xca   :  { %417 = vst [vmem:[%s791_s3 + $0x60] sm:$0xff] %v401_v35 }
  0xcb   :  { %410 = vst [vmem:[%s791_s3 + $0x28] sm:$0xff] %v394_v37  ;;  %v316_v38 = vpop.f32.mrf.mxu1 }
  0xcc   :  { %v317_v39 = vadd.f32 %v316_v38, %v267_v8 }
  0xcd   :  { %v277_v40 = vpop.f32.mrf.mxu2 }
  0xce   :  { %v398_v41 = vadd.f32 %v722_v61, %v317_v39  ;;  %v327_v42 = vadd.f32 %v326_v36, %v277_v40  ;;  %v260_v43 = vpop.f32.mrf.mxu0 }
  0xcf   :  { %v310_v44 = vadd.f32 %v309_v12, %v260_v43 }
  0xd0   :  { %414 = vst [vmem:[%s791_s3 + $0x48] sm:$0xff] %v398_v41  ;;  %v402_v45 = vadd.f32 %v722_v61, %v327_v42 }
  0xd1   :  { %v395_v46 = vadd.f32 %v722_v61, %v310_v44 }
  0xd2   :  { %418 = vst [vmem:[%s791_s3 + $0x68] sm:$0xff] %v402_v45 }
  0xd3   :  { %411 = vst [vmem:[%s791_s3 + $0x30] sm:$0xff] %v395_v46 }
  0xd5   :  { %v280_v48 = vpop.f32.mrf.mxu2 }
  0xd6   :  { %v330_v49 = vadd.f32 %v329_v47, %v280_v48  ;;  %v262_v50 = vpop.f32.mrf.mxu0 }
  0xd7   :  { %v312_v51 = vadd.f32 %v311_v20, %v262_v50 }
  0xd8   :  { %v403_v52 = vadd.f32 %v722_v61, %v330_v49 }
  0xd9   :  { %v396_v53 = vadd.f32 %v722_v61, %v312_v51 }
  0xda   :  { %419 = vst [vmem:[%s791_s3 + $0x70] sm:$0xff] %v403_v52 }
  0xdb   :  { %412 = vst [vmem:[%s791_s3 + $0x38] sm:$0xff] %v396_v53 }
  0xdd   :  { %v282_v55 = vpop.f32.mrf.mxu2 }
  0xde   :  { %v332_v56 = vadd.f32 %v331_v54, %v282_v55 }
  0xe0   :  { %v404_v57 = vadd.f32 %v722_v61, %v332_v56 }
  0xe2   :  { %420 = vst [vmem:[%s791_s3 + $0x78] sm:$0xff] %v404_v57 }

// kernel: raune_net_forward.57
= control target key start
LH: loop header
LB: loop body
LE: loop exit
PB: predicated region body
PF: predicated region fallthrough
CT: control target
= control target key end

     0   :  { %s2226_s12 = smov 0   ;;  %s2228_s13 = smov 0   ;;  %s2555_s0 = inlined_call_operand.vmem [shape: bf16[512,392], index: 0, kind: input, shape index: {}]   ;;  %s2556_s1 = inlined_call_operand.vmem [shape: bf16[392,3], index: 1, kind: input, shape index: {}]   ;;  %s2557_s2 = inlined_call_operand.vmem [shape: f32[1,3], index: 2, kind: input, shape index: {}]   ;;  %s2558_s3 = inlined_call_operand.vmem [shape: f32[512,3], index: 3, kind: output, shape index: {}]  }
   0x1   :  { %s2230_s14 = smov 0  }
   0x2 LB: > { %s32_s15 = sadd.s32 1, %s2200_s13  ;;  %p1628_p0 = scmp.ge.s32.totalorder %s2204_s14, 1  ;;  %s2204_s14 = sphi %s2230_s14, %s13_s14   ;;  %s2200_s13 = sphi %s2228_s13, %s2560_s13   ;;  %s2196_s12 = sphi %s2226_s12, %s2559_s12  }
   0x3   : > { %p34_p1 = scmp.ge.s32.totalorder %s32_s15, 2  ;;  %p191_p2 = scmp.lt.s32.totalorder %s2204_s14, 3 }
   0x5   : > { %s2562_s15 = smov (%p34_p1, %s32_s15), 0  ;;  %p192_p3 = pnand %p1628_p0, %p191_p2 }
   0x6   : > { %s1629_s22 = sshll.u32 (!%p192_p3), %s2196_s12, 5 }
   0x7   : > { %195 = sbr.rel (%p192_p3) target bundleno = 440 (0x1b8), region = 32  ;;  %p236_p4 = scmp.lt.s32.totalorder (!%p192_p3), %s1629_s22, 63 }
   0xc   : > { %v2076_v0 = vld [vmem:[%s2556_s1 + $0x38] sm:$0xff]  ;;  %v2075_v3 = vld [vmem:[%s2556_s1 + $0x30] sm:$0xff]  ;;  %s2564_s22 = smov (!%p236_p4, %s1629_s22), 63  ;;  %v2074_v6 = vld [vmem:[%s2556_s1 + $0x28] sm:$0xff]  ;;  %vm949_vm0 = vcmask 1043456   ;;  %vm900_vm1 = vcmask 64512  }
   0xd   : > { %v2084_v1 = vld [vmem:[%s2556_s1 + $0x78] sm:$0xff]  ;;  %953 = vmatpush.bf16.msra.mxu0 %v2076_v0  ;;  %v2083_v4 = vld [vmem:[%s2556_s1 + $0x70] sm:$0xff]  ;;  %s2004_s29 = sshll.u32 %s2564_s22, 4  ;;  %v2082_v7 = vld [vmem:[%s2556_s1 + $0x68] sm:$0xff]  ;;  %s1633_s28 = sshll.u32 %s2564_s22, 3 }
   0xe   : > { %v2092_v2 = vld [vmem:[%s2556_s1 + $0xb8] sm:$0xff]  ;;  %1042 = vmatpush.bf16.msra.mxu1 %v2084_v1  ;;  %v2091_v5 = vld [vmem:[%s2556_s1 + $0xb0] sm:$0xff]  ;;  %v448_v8 = vld [vmem:[%s2556_s1 + $0xc0] sm:$0xf]  ;;  %s2277_s11 = scalar_lea.vmem %s2555_s0, %s2004_s29  ;;  %s2430_s4 = scalar_lea.vmem %s2558_s3, %s1633_s28 }
   0xf   : > { %1131 = vmatpush.bf16.msra.mxu2 %v2092_v2  ;;  %v2090_v9 = vld [vmem:[%s2556_s1 + $0xa8] sm:$0xff]  ;;  %v850_v10 = vunpack.c.l.b16 %v448_v8  ;;  %v1646_v12 = vld [vmem:[%s2277_s11 + $0x18] sm:$0xf0]  ;;  %v2073_v14 = vld [vmem:[%s2556_s1 + $0x20] sm:$0xff] }
  0x10   : > { %v2006_v11 = vld [vmem:[%s2277_s11 + $0xc] sm:$0xf]  ;;  %v2081_v15 = vld [vmem:[%s2556_s1 + $0x60] sm:$0xff]  ;;  %v2072_v19 = vld [vmem:[%s2556_s1 + $0x18] sm:$0xff] }
  0x11   : > { %954 = vmatpush.bf16.msra.mxu0 %v2075_v3  ;;  %v875_v13 = vpack.c.b16 %v850_v10, %v850_v10  ;;  %v2089_v16 = vld [vmem:[%s2556_s1 + $0xa0] sm:$0xff]  ;;  %v1649_v18 = vor.u32 %v2006_v11, %v1646_v12  ;;  %v2080_v20 = vld [vmem:[%s2556_s1 + $0x58] sm:$0xff]  ;;  %v2071_v22 = vld [vmem:[%s2556_s1 + $0x10] sm:$0xff] }
  0x12   : > { %1043 = vmatpush.bf16.msra.mxu1 %v2083_v4  ;;  %v2088_v21 = vld [vmem:[%s2556_s1 + $0x98] sm:$0xff]  ;;  %v2079_v23 = vld [vmem:[%s2556_s1 + $0x50] sm:$0xff]  ;;  %v2070_v25 = vld [vmem:[%s2556_s1 + $0x8] sm:$0xff] }
  0x13   : > { %1132 = vmatpush.bf16.msra.mxu2 %v2091_v5  ;;  %v951_v17 = vsel %vm949_vm0, %v875_v13, 0  ;;  %v2087_v24 = vld [vmem:[%s2556_s1 + $0x90] sm:$0xff]  ;;  %v2078_v26 = vld [vmem:[%s2556_s1 + $0x48] sm:$0xff]  ;;  %v1662_v29 = vld [vmem:[%s2277_s11 + $0x38] sm:$0xf0] }
  0x14   : > { %1227 = vmatpush.bf16.msra.mxu3 %v951_v17  ;;  %v2086_v27 = vld [vmem:[%s2556_s1 + $0x88] sm:$0xff]  ;;  %v2069_v30 = vld [vmem:[%s2556_s1] sm:$0xff]  ;;  %v2007_v33 = vld [vmem:[%s2277_s11 + $0xc] sm:$0xf0] }
  0x15   : > { %955 = vmatpush.bf16.msra.mxu0 %v2074_v6  ;;  %v2010_v28 = vld [vmem:[%s2277_s11 + $0x2c] sm:$0xf]  ;;  %v2077_v31 = vld [vmem:[%s2556_s1 + $0x40] sm:$0xff]  ;;  %v1638_v35 = vld [vmem:[%s2277_s11 + $0x10] sm:$0xf0] }
  0x16   : > { %1044 = vmatpush.bf16.msra.mxu1 %v2082_v7  ;;  %v1636_v32 = vld [vmem:[%s2277_s11] sm:$0xf]  ;;  %v2005_v34 = vld [vmem:[%s2277_s11 + $0x4] sm:$0xf]  ;;  %v1644_v37 = vld [vmem:[%s2277_s11 + $0x8] sm:$0xf]  ;;  %v1665_v39 = vor.u32 %v2010_v28, %v1662_v29 }
  0x17   : > { %1133 = vmatpush.bf16.msra.mxu2 %v2090_v9  ;;  %1986 = vmatmul.msk.bf16.vlgmr.msra.gmra.mxu3 %vm900_vm1, %v1649_v18  ;;  %v2085_v36 = vld [vmem:[%s2556_s1 + $0x80] sm:$0xff]  ;;  %v2008_v38 = vld [vmem:[%s2277_s11 + $0x14] sm:$0xf0]  ;;  %v1637_v40 = vor.u32 %v2007_v33, %v1636_v32  ;;  %v1641_v41 = vor.u32 %v2005_v34, %v1638_v35  ;;  %v2014_v43 = vld [vmem:[%s2277_s11 + $0x4c] sm:$0xf] }
  0x18   : > { %v1645_v42 = vor.u32 %v2008_v38, %v1644_v37  ;;  %v1678_v44 = vld [vmem:[%s2277_s11 + $0x58] sm:$0xf0]  ;;  %v1652_v45 = vld [vmem:[%s2277_s11 + $0x20] sm:$0xf]  ;;  %v2011_v46 = vld [vmem:[%s2277_s11 + $0x2c] sm:$0xf0] }
  0x19   : > { %956 = vmatpush.bf16.msra.mxu0 %v2073_v14  ;;  %v2009_v47 = vld [vmem:[%s2277_s11 + $0x24] sm:$0xf]  ;;  %v1654_v48 = vld [vmem:[%s2277_s11 + $0x30] sm:$0xf0]  ;;  %v1660_v49 = vld [vmem:[%s2277_s11 + $0x28] sm:$0xf]  ;;  %v1681_v51 = vor.u32 %v2014_v43, %v1678_v44  ;;  %v1653_v52 = vor.u32 %v2011_v46, %v1652_v45 }
  0x1a   : > { %1045 = vmatpush.bf16.msra.mxu1 %v2081_v15  ;;  %v2012_v50 = vld [vmem:[%s2277_s11 + $0x34] sm:$0xf0]  ;;  %v1657_v53 = vor.u32 %v2009_v47, %v1654_v48  ;;  %v2018_v55 = vld [vmem:[%s2277_s11 + $0x6c] sm:$0xf]  ;;  %v1694_v56 = vld [vmem:[%s2277_s11 + $0x78] sm:$0xf0] }
  0x1b   : > { %1134 = vmatpush.bf16.msra.mxu2 %v2089_v16  ;;  %v1661_v54 = vor.u32 %v2012_v50, %v1660_v49  ;;  %v1668_v57 = vld [vmem:[%s2277_s11 + $0x40] sm:$0xf]  ;;  %v2015_v58 = vld [vmem:[%s2277_s11 + $0x4c] sm:$0xf0]  ;;  %v2013_v59 = vld [vmem:[%s2277_s11 + $0x44] sm:$0xf]  ;;  %v1697_v63 = vor.u32 %v2018_v55, %v1694_v56 }
  0x1c   : > { %v1670_v60 = vld [vmem:[%s2277_s11 + $0x50] sm:$0xf0]  ;;  %v1676_v61 = vld [vmem:[%s2277_s11 + $0x48] sm:$0xf]  ;;  %v2016_v62 = vld [vmem:[%s2277_s11 + $0x54] sm:$0xf0]  ;;  %v1669_v0 = vor.u32 %v2015_v58, %v1668_v57 }
  0x1d   : > { %957 = vmatpush.bf16.msra.mxu0 %v2072_v19  ;;  %v1673_v1 = vor.u32 %v2013_v59, %v1670_v60  ;;  %v1677_v2 = vor.u32 %v2016_v62, %v1676_v61  ;;  %v2022_v3 = vld [vmem:[%s2277_s11 + $0x8c] sm:$0xf]  ;;  %v1710_v4 = vld [vmem:[%s2277_s11 + $0x98] sm:$0xf0]  ;;  %v1684_v5 = vld [vmem:[%s2277_s11 + $0x60] sm:$0xf] }
  0x1e   : > { %1046 = vmatpush.bf16.msra.mxu1 %v2080_v20  ;;  %v2019_v6 = vld [vmem:[%s2277_s11 + $0x6c] sm:$0xf0]  ;;  %v2017_v7 = vld [vmem:[%s2277_s11 + $0x64] sm:$0xf]  ;;  %v1686_v8 = vld [vmem:[%s2277_s11 + $0x70] sm:$0xf0]  ;;  %v1713_v11 = vor.u32 %v2022_v3, %v1710_v4 }
  0x1f   : > { %1135 = vmatpush.bf16.msra.mxu2 %v2088_v21  ;;  %v1692_v9 = vld [vmem:[%s2277_s11 + $0x68] sm:$0xf]  ;;  %v2020_v10 = vld [vmem:[%s2277_s11 + $0x74] sm:$0xf0]  ;;  %v1685_v12 = vor.u32 %v2019_v6, %v1684_v5  ;;  %v1689_v13 = vor.u32 %v2017_v7, %v1686_v8  ;;  %v2026_v15 = vld [vmem:[%s2277_s11 + $0xac] sm:$0xf] }
  0x20   : > { %v1693_v14 = vor.u32 %v2020_v10, %v1692_v9  ;;  %v1726_v16 = vld [vmem:[%s2277_s11 + $0xb8] sm:$0xf0]  ;;  %v1700_v17 = vld [vmem:[%s2277_s11 + $0x80] sm:$0xf]  ;;  %v2023_v18 = vld [vmem:[%s2277_s11 + $0x8c] sm:$0xf0] }
  0x21   : > { %958 = vmatpush.bf16.msra.mxu0 %v2071_v22  ;;  %v2021_v19 = vld [vmem:[%s2277_s11 + $0x84] sm:$0xf]  ;;  %v1702_v20 = vld [vmem:[%s2277_s11 + $0x90] sm:$0xf0]  ;;  %v1708_v21 = vld [vmem:[%s2277_s11 + $0x88] sm:$0xf] }
  0x22   : > { %1047 = vmatpush.bf16.msra.mxu1 %v2079_v23  ;;  %v2024_v22 = vld [vmem:[%s2277_s11 + $0x94] sm:$0xf0]  ;;  %v1729_v23 = vor.u32 %v2026_v15, %v1726_v16  ;;  %v1742_v28 = vld [vmem:[%s2277_s11 + $0xd8] sm:$0xf0]  ;;  %v1716_v29 = vld [vmem:[%s2277_s11 + $0xa0] sm:$0xf] }
  0x23   : > { %1136 = vmatpush.bf16.msra.mxu2 %v2087_v24  ;;  %v1701_v24 = vor.u32 %v2023_v18, %v1700_v17  ;;  %v1718_v32 = vld [vmem:[%s2277_s11 + $0xb0] sm:$0xf0]  ;;  %v1724_v33 = vld [vmem:[%s2277_s11 + $0xa8] sm:$0xf]  ;;  %v2028_v34 = vld [vmem:[%s2277_s11 + $0xb4] sm:$0xf0] }
  0x24   : > { %v1725_v38 = vor.u32 %v2028_v34, %v1724_v33  ;;  %v2029_v43 = vld [vmem:[%s2277_s11 + $0xc4] sm:$0xf]  ;;  %v1734_v44 = vld [vmem:[%s2277_s11 + $0xd0] sm:$0xf0]  ;;  %v1740_v45 = vld [vmem:[%s2277_s11 + $0xc8] sm:$0xf] }
  0x25   : > { %959 = vmatpush.bf16.msra.mxu0 %v2070_v25  ;;  %v1705_v25 = vor.u32 %v2021_v19, %v1702_v20  ;;  %v2032_v46 = vld [vmem:[%s2277_s11 + $0xd4] sm:$0xf0]  ;;  %v1737_v49 = vor.u32 %v2029_v43, %v1734_v44  ;;  %v2033_v55 = vld [vmem:[%s2277_s11 + $0xe4] sm:$0xf]  ;;  %v1750_v56 = vld [vmem:[%s2277_s11 + $0xf0] sm:$0xf0] }
  0x26   : > { %1048 = vmatpush.bf16.msra.mxu1 %v2078_v26  ;;  %v1709_v26 = vor.u32 %v2024_v22, %v1708_v21  ;;  %v1741_v50 = vor.u32 %v2032_v46, %v1740_v45  ;;  %v1756_v57 = vld [vmem:[%s2277_s11 + $0xe8] sm:$0xf]  ;;  %v2036_v58 = vld [vmem:[%s2277_s11 + $0xf4] sm:$0xf0]  ;;  %v1753_v61 = vor.u32 %v2033_v55, %v1750_v56  ;;  %v2039_v3 = vld [vmem:[%s2277_s11 + $0x10c] sm:$0xf0] }
  0x27   : > { %1137 = vmatpush.bf16.msra.mxu2 %v2086_v27  ;;  %1987 = vmatmul.msk.bf16.gmra.mxu3 %vm900_vm1, %v1665_v39  ;;  %v2030_v27 = vld [vmem:[%s2277_s11 + $0xcc] sm:$0xf]  ;;  %v1757_v62 = vor.u32 %v2036_v58, %v1756_v57  ;;  %v2037_v4 = vld [vmem:[%s2277_s11 + $0x104] sm:$0xf]  ;;  %v1766_v5 = vld [vmem:[%s2277_s11 + $0x110] sm:$0xf0] }
  0x28   : > { %v1745_v35 = vor.u32 %v2030_v27, %v1742_v28  ;;  %v2034_v39 = vld [vmem:[%s2277_s11 + $0xec] sm:$0xf]  ;;  %v1772_v7 = vld [vmem:[%s2277_s11 + $0x108] sm:$0xf]  ;;  %v2040_v8 = vld [vmem:[%s2277_s11 + $0x114] sm:$0xf0] }
  0x29   : > { %960 = vmatpush.bf16.msra.mxu0 %v2069_v30  ;;  %v2027_v30 = vld [vmem:[%s2277_s11 + $0xac] sm:$0xf0]  ;;  %v2414_v19 = vld [vmem:[%s2557_s2] ss:$0 sm:$0xff]  ;;  %v2041_v28 = vld [vmem:[%s2277_s11 + $0x124] sm:$0xf] }
  0x2a   : > { %1049 = vmatpush.bf16.msra.mxu1 %v2077_v31  ;;  %v2025_v31 = vld [vmem:[%s2277_s11 + $0xa4] sm:$0xf]  ;;  %v2043_v27 = vld [vmem:[%s2277_s11 + $0x12c] sm:$0xf0] }
  0x2b   : > { %1138 = vmatpush.bf16.msra.mxu2 %v2085_v36  ;;  %v1717_v36 = vor.u32 %v2027_v30, %v1716_v29  ;;  %v1721_v37 = vor.u32 %v2025_v31, %v1718_v32  ;;  %v1782_v29 = vld [vmem:[%s2277_s11 + $0x130] sm:$0xf0]  ;;  %v1788_v31 = vld [vmem:[%s2277_s11 + $0x128] sm:$0xf]  ;;  %v2044_v32 = vld [vmem:[%s2277_s11 + $0x134] sm:$0xf0] }
  0x2c   : > { %961 = vmatmul.bf16.vlgmr.msra.gmra.mxu0 %v1637_v40  ;;  %v1758_v40 = vld [vmem:[%s2277_s11 + $0xf8] sm:$0xf0]  ;;  %v2047_v57 = vld [vmem:[%s2277_s11 + $0x14c] sm:$0xf0]  ;;  %v2045_v58 = vld [vmem:[%s2277_s11 + $0x144] sm:$0xf] }
  0x2d   : > { %1050 = vmatmul.bf16.vlgmr.msra.gmra.mxu1 %v1641_v41  ;;  %v1732_v41 = vld [vmem:[%s2277_s11 + $0xc0] sm:$0xf]  ;;  %v1761_v47 = vor.u32 %v2034_v39, %v1758_v40 }
  0x2e   : > { %1139 = vmatmul.bf16.vlgmr.msra.gmra.mxu2 %v1645_v42  ;;  %v2031_v42 = vld [vmem:[%s2277_s11 + $0xcc] sm:$0xf0] }
  0x2f   : > { %v1733_v48 = vor.u32 %v2031_v42, %v1732_v41  ;;  %v1789_v41 = vor.u32 %v2044_v32, %v1788_v31 }
  0x37   : > { %1988 = vmatmul.msk.bf16.gmra.mxu3 %vm900_vm1, %v1681_v51  ;;  %v2038_v51 = vld [vmem:[%s2277_s11 + $0x10c] sm:$0xf] }
  0x3c   : > { %966 = vmatmul.bf16.gmra.mxu0 %v1653_v52  ;;  %v1774_v52 = vld [vmem:[%s2277_s11 + $0x118] sm:$0xf0] }
  0x3d   : > { %1055 = vmatmul.bf16.gmra.mxu1 %v1657_v53  ;;  %v1748_v53 = vld [vmem:[%s2277_s11 + $0xe0] sm:$0xf]  ;;  %v1777_v59 = vor.u32 %v2038_v51, %v1774_v52  ;;  %v2050_v52 = vld [vmem:[%s2277_s11 + $0x16c] sm:$0xf] }
  0x3e   : > { %1144 = vmatmul.bf16.gmra.mxu2 %v1661_v54  ;;  %v2035_v54 = vld [vmem:[%s2277_s11 + $0xec] sm:$0xf0] }
  0x3f   : > { %v1749_v60 = vor.u32 %v2035_v54, %v1748_v53  ;;  %v1822_v53 = vld [vmem:[%s2277_s11 + $0x178] sm:$0xf0]  ;;  %v1796_v54 = vld [vmem:[%s2277_s11 + $0x140] sm:$0xf] }
  0x47   : > { %1989 = vmatmul.msk.bf16.gmra.mxu3 %vm900_vm1, %v1697_v63 }
  0x4c   : > { %971 = vmatmul.bf16.gmra.mxu0 %v1669_v0  ;;  %v2042_v0 = vld [vmem:[%s2277_s11 + $0x12c] sm:$0xf] }
  0x4d   : > { %1060 = vmatmul.bf16.gmra.mxu1 %v1673_v1  ;;  %v1790_v1 = vld [vmem:[%s2277_s11 + $0x138] sm:$0xf0] }
  0x4e   : > { %1149 = vmatmul.bf16.gmra.mxu2 %v1677_v2  ;;  %v1764_v2 = vld [vmem:[%s2277_s11 + $0x100] sm:$0xf]  ;;  %v1793_v9 = vor.u32 %v2042_v0, %v1790_v1 }
  0x4f   : > { %v1765_v10 = vor.u32 %v2039_v3, %v1764_v2  ;;  %v1797_v2 = vor.u32 %v2047_v57, %v1796_v54  ;;  %v2055_v54 = vld [vmem:[%s2277_s11 + $0x18c] sm:$0xf0] }
  0x57   : > { %1990 = vmatmul.msk.bf16.gmra.mxu3 %vm900_vm1, %v1713_v11  ;;  %v1769_v11 = vor.u32 %v2037_v4, %v1766_v5 }
  0x5c   : > { %976 = vmatmul.bf16.gmra.mxu0 %v1685_v12 }
  0x5d   : > { %1065 = vmatmul.bf16.gmra.mxu1 %v1689_v13 }
  0x5e   : > { %1154 = vmatmul.bf16.gmra.mxu2 %v1693_v14  ;;  %v1773_v14 = vor.u32 %v2040_v8, %v1772_v7 }
  0x67   : > { %1991 = vmatmul.msk.bf16.gmra.mxu3 %vm900_vm1, %v1729_v23  ;;  %v2046_v23 = vld [vmem:[%s2277_s11 + $0x14c] sm:$0xf] }
  0x6c   : > { %981 = vmatmul.bf16.gmra.mxu0 %v1701_v24  ;;  %v1806_v24 = vld [vmem:[%s2277_s11 + $0x158] sm:$0xf0] }
  0x6d   : > { %1070 = vmatmul.bf16.gmra.mxu1 %v1705_v25  ;;  %v1780_v25 = vld [vmem:[%s2277_s11 + $0x120] sm:$0xf]  ;;  %v1809_v33 = vor.u32 %v2046_v23, %v1806_v24  ;;  %v2051_v24 = vld [vmem:[%s2277_s11 + $0x16c] sm:$0xf0] }
  0x6e   : > { %1159 = vmatmul.bf16.gmra.mxu2 %v1709_v26 }
  0x77   : > { %1992 = vmatmul.msk.bf16.gmra.mxu3 %vm900_vm1, %v1745_v35 }
  0x7c   : > { %986 = vmatmul.bf16.gmra.mxu0 %v1717_v36  ;;  %v1781_v36 = vor.u32 %v2043_v27, %v1780_v25  ;;  %v2049_v25 = vld [vmem:[%s2277_s11 + $0x164] sm:$0xf] }
  0x7d   : > { %1075 = vmatmul.bf16.gmra.mxu1 %v1721_v37  ;;  %v1785_v37 = vor.u32 %v2041_v28, %v1782_v29  ;;  %v1820_v28 = vld [vmem:[%s2277_s11 + $0x168] sm:$0xf]  ;;  %v2052_v29 = vld [vmem:[%s2277_s11 + $0x174] sm:$0xf0] }
  0x7e   : > { %1164 = vmatmul.bf16.gmra.mxu2 %v1725_v38 }
  0x87   : > { %1993 = vmatmul.msk.bf16.gmra.mxu3 %vm900_vm1, %v1761_v47 }
  0x8c   : > { %991 = vmatmul.bf16.gmra.mxu0 %v1733_v48 }
  0x8d   : > { %1080 = vmatmul.bf16.gmra.mxu1 %v1737_v49 }
  0x8e   : > { %1169 = vmatmul.bf16.gmra.mxu2 %v1741_v50 }
  0x97   : > { %1994 = vmatmul.msk.bf16.gmra.mxu3 %vm900_vm1, %v1777_v59  ;;  %v1798_v59 = vld [vmem:[%s2277_s11 + $0x150] sm:$0xf0] }
  0x98   : > { %v1801_v3 = vor.u32 %v2045_v58, %v1798_v59  ;;  %v1836_v58 = vld [vmem:[%s2277_s11 + $0x188] sm:$0xf]  ;;  %v2056_v59 = vld [vmem:[%s2277_s11 + $0x194] sm:$0xf0] }
  0x9a   : > { %v1229_v63 = vpop.f32.mrf.mxu3 }
  0x9c   : > { %996 = vmatmul.bf16.gmra.mxu0 %v1749_v60 }
  0x9d   : > { %1085 = vmatmul.bf16.gmra.mxu1 %v1753_v61  ;;  %v1804_v61 = vld [vmem:[%s2277_s11 + $0x148] sm:$0xf] }
  0x9e   : > { %1174 = vmatmul.bf16.gmra.mxu2 %v1757_v62  ;;  %v2048_v62 = vld [vmem:[%s2277_s11 + $0x154] sm:$0xf0] }
  0x9f   : > { %v1805_v7 = vor.u32 %v2048_v62, %v1804_v61 }
  0xa2   : > { %v1231_v6 = vpop.f32.mrf.mxu3 }
  0xa7   : > { %1995 = vmatmul.msk.bf16.gmra.mxu3 %vm900_vm1, %v1793_v9 }
  0xa9   : > { %v962_v12 = vpop.f32.mrf.mxu0 }
  0xaa   : > { %v1051_v13 = vpop.f32.mrf.mxu1  ;;  %v1234_v16 = vpop.f32.mrf.mxu3 }
  0xab   : > { %v1052_v15 = vadd.f32 %v1051_v13, %v962_v12 }
  0xac   : > { %1001 = vmatmul.bf16.gmra.mxu0 %v1765_v10 }
  0xad   : > { %1090 = vmatmul.bf16.gmra.mxu1 %v1769_v11 }
  0xae   : > { %1179 = vmatmul.bf16.gmra.mxu2 %v1773_v14 }
  0xb1   : > { %v1140_v17 = vpop.f32.mrf.mxu2  ;;  %v964_v20 = vpop.f32.mrf.mxu0 }
  0xb2   : > { %v1141_v18 = vadd.f32 %v1140_v17, %v1052_v15  ;;  %v1053_v21 = vpop.f32.mrf.mxu1  ;;  %v1236_v30 = vpop.f32.mrf.mxu3 }
  0xb3   : > { %v1054_v34 = vadd.f32 %v1053_v21, %v964_v20  ;;  %v1838_v20 = vld [vmem:[%s2277_s11 + $0x198] sm:$0xf0]  ;;  %v1812_v21 = vld [vmem:[%s2277_s11 + $0x160] sm:$0xf] }
  0xb4   : > { %v1230_v22 = vadd.f32 %v1229_v63, %v1141_v18  ;;  %v1825_v63 = vor.u32 %v2050_v52, %v1822_v53  ;;  %v2054_v18 = vld [vmem:[%s2277_s11 + $0x18c] sm:$0xf] }
  0xb6   : > { %v1412_v26 = vadd.f32 %v2414_v19, %v1230_v22 }
  0xb7   : > { %1996 = vmatmul.msk.bf16.gmra.mxu3 %vm900_vm1, %v1809_v33  ;;  %v1813_v33 = vor.u32 %v2051_v24, %v1812_v21  ;;  %v2059_v21 = vld [vmem:[%s2277_s11 + $0x1ac] sm:$0xf0] }
  0xb8   : > { %2118 = vtanh.f32 %v1412_v26  ;;  %v1814_v26 = vld [vmem:[%s2277_s11 + $0x170] sm:$0xf0] }
  0xb9   : > { %v1142_v35 = vpop.f32.mrf.mxu2  ;;  %v967_v39 = vpop.f32.mrf.mxu0 }
  0xba   : > { %v1143_v38 = vadd.f32 %v1142_v35, %v1054_v34  ;;  %v1056_v40 = vpop.f32.mrf.mxu1  ;;  %v1239_v46 = vpop.f32.mrf.mxu3  ;;  %v1817_v34 = vor.u32 %v2049_v25, %v1814_v26  ;;  %v1852_v25 = vld [vmem:[%s2277_s11 + $0x1a8] sm:$0xf]  ;;  %v2060_v26 = vld [vmem:[%s2277_s11 + $0x1b4] sm:$0xf0] }
  0xbb   : > { %v1057_v45 = vadd.f32 %v1056_v40, %v967_v39 }
  0xbc   : > { %v1232_v42 = vadd.f32 %v1231_v6, %v1143_v38  ;;  %1006 = vmatmul.bf16.gmra.mxu0 %v1781_v36  ;;  %v1821_v38 = vor.u32 %v2052_v29, %v1820_v28 }
  0xbd   : > { %1095 = vmatmul.bf16.gmra.mxu1 %v1785_v37 }
  0xbe   : > { %v2119_v43 = vpop.eup %2118  ;;  %v1413_v44 = vadd.f32 %v2414_v19, %v1232_v42  ;;  %1184 = vmatmul.bf16.gmra.mxu2 %v1789_v41 }
  0xbf   : > { %1476 = vst [vmem:[%s2430_s4] sm:$0xff] %v2119_v43 }
  0xc0   : > { %2120 = vtanh.f32 %v1413_v44 }
  0xc1   : > { %v1145_v47 = vpop.f32.mrf.mxu2  ;;  %v969_v49 = vpop.f32.mrf.mxu0 }
  0xc2   : > { %v1146_v48 = vadd.f32 %v1145_v47, %v1057_v45  ;;  %v1058_v50 = vpop.f32.mrf.mxu1  ;;  %v1241_v60 = vpop.f32.mrf.mxu3 }
  0xc3   : > { %v1059_v0 = vadd.f32 %v1058_v50, %v969_v49  ;;  %v2058_v49 = vld [vmem:[%s2277_s11 + $0x1ac] sm:$0xf]  ;;  %v1854_v50 = vld [vmem:[%s2277_s11 + $0x1b8] sm:$0xf0] }
  0xc4   : > { %v1235_v51 = vadd.f32 %v1234_v16, %v1146_v48 }
  0xc6   : > { %v2121_v55 = vpop.eup %2120  ;;  %v1414_v56 = vadd.f32 %v2414_v19, %v1235_v51  ;;  %v1828_v51 = vld [vmem:[%s2277_s11 + $0x180] sm:$0xf] }
  0xc7   : > { %1477 = vst [vmem:[%s2430_s4 + $0x8] sm:$0xff] %v2121_v55  ;;  %1997 = vmatmul.msk.bf16.gmra.mxu3 %vm900_vm1, %v1825_v63  ;;  %v2053_v55 = vld [vmem:[%s2277_s11 + $0x184] sm:$0xf]  ;;  %v1829_v63 = vor.u32 %v2055_v54, %v1828_v51  ;;  %v2063_v51 = vld [vmem:[%s2277_s11 + $0x1cc] sm:$0xf0] }
  0xc8   : > { %2122 = vtanh.f32 %v1414_v56  ;;  %v1830_v56 = vld [vmem:[%s2277_s11 + $0x190] sm:$0xf0] }
  0xc9   : > { %v1147_v1 = vpop.f32.mrf.mxu2  ;;  %v972_v5 = vpop.f32.mrf.mxu0 }
  0xca   : > { %v1148_v4 = vadd.f32 %v1147_v1, %v1059_v0  ;;  %v1061_v6 = vpop.f32.mrf.mxu1  ;;  %v1244_v12 = vpop.f32.mrf.mxu3  ;;  %v1833_v0 = vor.u32 %v2053_v55, %v1830_v56  ;;  %v1868_v55 = vld [vmem:[%s2277_s11 + $0x1c8] sm:$0xf]  ;;  %v2064_v56 = vld [vmem:[%s2277_s11 + $0x1d4] sm:$0xf0] }
  0xcb   : > { %v1062_v11 = vadd.f32 %v1061_v6, %v972_v5 }
  0xcc   : > { %v1237_v8 = vadd.f32 %v1236_v30, %v1148_v4  ;;  %1011 = vmatmul.bf16.gmra.mxu0 %v1797_v2  ;;  %v1841_v30 = vor.u32 %v2054_v18, %v1838_v20  ;;  %v1837_v4 = vor.u32 %v2056_v59, %v1836_v58 }
  0xcd   : > { %1100 = vmatmul.bf16.gmra.mxu1 %v1801_v3 }
  0xce   : > { %v2123_v9 = vpop.eup %2122  ;;  %v1415_v10 = vadd.f32 %v2414_v19, %v1237_v8  ;;  %1189 = vmatmul.bf16.gmra.mxu2 %v1805_v7 }
  0xcf   : > { %1478 = vst [vmem:[%s2430_s4 + $0x10] sm:$0xff] %v2123_v9 }
  0xd0   : > { %2124 = vtanh.f32 %v1415_v10 }
  0xd1   : > { %v1150_v13 = vpop.f32.mrf.mxu2  ;;  %v974_v15 = vpop.f32.mrf.mxu0 }
  0xd2   : > { %v1151_v14 = vadd.f32 %v1150_v13, %v1062_v11  ;;  %v1063_v16 = vpop.f32.mrf.mxu1  ;;  %v1246_v27 = vpop.f32.mrf.mxu3 }
  0xd3   : > { %v1064_v31 = vadd.f32 %v1063_v16, %v974_v15  ;;  %v2062_v15 = vld [vmem:[%s2277_s11 + $0x1cc] sm:$0xf]  ;;  %v1870_v16 = vld [vmem:[%s2277_s11 + $0x1d8] sm:$0xf0] }
  0xd4   : > { %v1240_v17 = vadd.f32 %v1239_v46, %v1151_v14 }
  0xd6   : > { %v2125_v22 = vpop.eup %2124  ;;  %v1416_v23 = vadd.f32 %v2414_v19, %v1240_v17  ;;  %v1844_v17 = vld [vmem:[%s2277_s11 + $0x1a0] sm:$0xf] }
  0xd7   : > { %1479 = vst [vmem:[%s2430_s4 + $0x18] sm:$0xff] %v2125_v22  ;;  %1998 = vmatmul.msk.bf16.gmra.mxu3 %vm900_vm1, %v1841_v30  ;;  %v2057_v22 = vld [vmem:[%s2277_s11 + $0x1a4] sm:$0xf]  ;;  %v1845_v30 = vor.u32 %v2059_v21, %v1844_v17  ;;  %v1878_v17 = vld [vmem:[%s2277_s11 + $0x1f0] sm:$0xf0] }
  0xd8   : > { %2126 = vtanh.f32 %v1416_v23  ;;  %v1846_v23 = vld [vmem:[%s2277_s11 + $0x1b0] sm:$0xf0]  ;;  %v2068_v21 = vld [vmem:[%s2277_s11 + $0x1f4] sm:$0xf0] }
  0xd9   : > { %v1152_v32 = vpop.f32.mrf.mxu2  ;;  %v977_v36 = vpop.f32.mrf.mxu0 }
  0xda   : > { %v1153_v35 = vadd.f32 %v1152_v32, %v1064_v31  ;;  %v1066_v37 = vpop.f32.mrf.mxu1  ;;  %v1249_v43 = vpop.f32.mrf.mxu3  ;;  %v1849_v31 = vor.u32 %v2057_v22, %v1846_v23 }
  0xdb   : > { %v1067_v42 = vadd.f32 %v1066_v37, %v977_v36 }
  0xdc   : > { %v1242_v39 = vadd.f32 %v1241_v60, %v1153_v35  ;;  %1016 = vmatmul.bf16.gmra.mxu0 %v1813_v33  ;;  %v1857_v60 = vor.u32 %v2058_v49, %v1854_v50  ;;  %v1853_v35 = vor.u32 %v2060_v26, %v1852_v25 }
  0xdd   : > { %1105 = vmatmul.bf16.gmra.mxu1 %v1817_v34 }
  0xde   : > { %v2127_v40 = vpop.eup %2126  ;;  %v1417_v41 = vadd.f32 %v2414_v19, %v1242_v39  ;;  %1194 = vmatmul.bf16.gmra.mxu2 %v1821_v38 }
  0xdf   : > { %1480 = vst [vmem:[%s2430_s4 + $0x20] sm:$0xff] %v2127_v40 }
  0xe0   : > { %2128 = vtanh.f32 %v1417_v41 }
  0xe1   : > { %v1155_v44 = vpop.f32.mrf.mxu2  ;;  %v979_v46 = vpop.f32.mrf.mxu0 }
  0xe2   : > { %v1156_v45 = vadd.f32 %v1155_v44, %v1067_v42  ;;  %v1068_v47 = vpop.f32.mrf.mxu1  ;;  %v1251_v57 = vpop.f32.mrf.mxu3 }
  0xe3   : > { %v1069_v61 = vadd.f32 %v1068_v47, %v979_v46  ;;  %v2066_v46 = vld [vmem:[%s2277_s11 + $0x1ec] sm:$0xf]  ;;  %v1886_v47 = vld [vmem:[%s2277_s11 + $0x1f8] sm:$0xf0] }
  0xe4   : > { %v1245_v48 = vadd.f32 %v1244_v12, %v1156_v45 }
  0xe6   : > { %v2129_v52 = vpop.eup %2128  ;;  %v1418_v53 = vadd.f32 %v2414_v19, %v1245_v48  ;;  %v1860_v48 = vld [vmem:[%s2277_s11 + $0x1c0] sm:$0xf] }
  0xe7   : > { %1481 = vst [vmem:[%s2430_s4 + $0x28] sm:$0xff] %v2129_v52  ;;  %1999 = vmatmul.msk.bf16.gmra.mxu3 %vm900_vm1, %v1857_v60  ;;  %v2061_v52 = vld [vmem:[%s2277_s11 + $0x1c4] sm:$0xf]  ;;  %v1861_v60 = vor.u32 %v2063_v51, %v1860_v48 }
  0xe8   : > { %2130 = vtanh.f32 %v1418_v53  ;;  %v1862_v53 = vld [vmem:[%s2277_s11 + $0x1d0] sm:$0xf0] }
  0xe9   : > { %v1157_v62 = vpop.f32.mrf.mxu2  ;;  %v982_v2 = vpop.f32.mrf.mxu0 }
  0xea   : > { %v1158_v1 = vadd.f32 %v1157_v62, %v1069_v61  ;;  %v1071_v3 = vpop.f32.mrf.mxu1  ;;  %v1254_v9 = vpop.f32.mrf.mxu3  ;;  %v1865_v61 = vor.u32 %v2061_v52, %v1862_v53 }
  0xeb   : > { %v1072_v8 = vadd.f32 %v1071_v3, %v982_v2 }
  0xec   : > { %v1247_v5 = vadd.f32 %v1246_v27, %v1158_v1  ;;  %1021 = vmatmul.bf16.gmra.mxu0 %v1829_v63  ;;  %v1873_v27 = vor.u32 %v2062_v15, %v1870_v16  ;;  %v1869_v1 = vor.u32 %v2064_v56, %v1868_v55  ;;  %v2067_v15 = vld [vmem:[%s2277_s11 + $0x1ec] sm:$0xf0]  ;;  %v2065_v16 = vld [vmem:[%s2277_s11 + $0x1e4] sm:$0xf] }
  0xed   : > { %1110 = vmatmul.bf16.gmra.mxu1 %v1833_v0  ;;  %v1881_v25 = vor.u32 %v2065_v16, %v1878_v17 }
  0xee   : > { %v2131_v6 = vpop.eup %2130  ;;  %v1419_v7 = vadd.f32 %v2414_v19, %v1247_v5  ;;  %1199 = vmatmul.bf16.gmra.mxu2 %v1837_v4 }
  0xef   : > { %1482 = vst [vmem:[%s2430_s4 + $0x30] sm:$0xff] %v2131_v6 }
  0xf0   : > { %2132 = vtanh.f32 %v1419_v7 }
  0xf1   : > { %v1160_v10 = vpop.f32.mrf.mxu2  ;;  %v984_v12 = vpop.f32.mrf.mxu0 }
  0xf2   : > { %v1161_v11 = vadd.f32 %v1160_v10, %v1072_v8  ;;  %v1073_v13 = vpop.f32.mrf.mxu1  ;;  %v1256_v24 = vpop.f32.mrf.mxu3 }
  0xf3   : > { %v1074_v28 = vadd.f32 %v1073_v13, %v984_v12  ;;  %v1876_v12 = vld [vmem:[%s2277_s11 + $0x1e0] sm:$0xf] }
  0xf4   : > { %v1250_v14 = vadd.f32 %v1249_v43, %v1161_v11 }
  0xf6   : > { %v2133_v18 = vpop.eup %2132  ;;  %v1420_v20 = vadd.f32 %v2414_v19, %v1250_v14 }
  0xf7   : > { %1483 = vst [vmem:[%s2430_s4 + $0x38] sm:$0xff] %v2133_v18  ;;  %2000 = vmatmul.msk.bf16.gmra.mxu3 %vm900_vm1, %v1873_v27 }
  0xf8   : > { %2134 = vtanh.f32 %v1420_v20  ;;  %v1884_v20 = vld [vmem:[%s2277_s11 + $0x1e8] sm:$0xf] }
  0xf9   : > { %v1162_v29 = vpop.f32.mrf.mxu2  ;;  %v987_v33 = vpop.f32.mrf.mxu0 }
  0xfa   : > { %v1163_v32 = vadd.f32 %v1162_v29, %v1074_v28  ;;  %v1076_v34 = vpop.f32.mrf.mxu1  ;;  %v1259_v40 = vpop.f32.mrf.mxu3  ;;  %v1885_v29 = vor.u32 %v2068_v21, %v1884_v20 }
  0xfb   : > { %v1077_v39 = vadd.f32 %v1076_v34, %v987_v33 }
  0xfc   : > { %v1252_v36 = vadd.f32 %v1251_v57, %v1163_v32  ;;  %1026 = vmatmul.bf16.gmra.mxu0 %v1845_v30  ;;  %v1889_v57 = vor.u32 %v2066_v46, %v1886_v47 }
  0xfd   : > { %1115 = vmatmul.bf16.gmra.mxu1 %v1849_v31 }
  0xfe   : > { %v2135_v37 = vpop.eup %2134  ;;  %v1421_v38 = vadd.f32 %v2414_v19, %v1252_v36  ;;  %1204 = vmatmul.bf16.gmra.mxu2 %v1853_v35 }
  0xff   : > { %1484 = vst [vmem:[%s2430_s4 + $0x40] sm:$0xff] %v2135_v37 }
 0x100   : > { %2136 = vtanh.f32 %v1421_v38 }
 0x101   : > { %v1165_v41 = vpop.f32.mrf.mxu2  ;;  %v989_v43 = vpop.f32.mrf.mxu0 }
 0x102   : > { %v1166_v42 = vadd.f32 %v1165_v41, %v1077_v39  ;;  %v1078_v44 = vpop.f32.mrf.mxu1  ;;  %v1261_v54 = vpop.f32.mrf.mxu3 }
 0x103   : > { %v1079_v58 = vadd.f32 %v1078_v44, %v989_v43 }
 0x104   : > { %v1255_v45 = vadd.f32 %v1254_v9, %v1166_v42 }
 0x106   : > { %v2137_v49 = vpop.eup %2136  ;;  %v1422_v50 = vadd.f32 %v2414_v19, %v1255_v45 }
 0x107   : > { %1485 = vst [vmem:[%s2430_s4 + $0x48] sm:$0xff] %v2137_v49  ;;  %2001 = vmatmul.msk.bf16.gmra.mxu3 %vm900_vm1, %v1889_v57 }
 0x108   : > { %2138 = vtanh.f32 %v1422_v50 }
 0x109   : > { %v1167_v59 = vpop.f32.mrf.mxu2  ;;  %v992_v63 = vpop.f32.mrf.mxu0 }
 0x10a   : > { %v1168_v62 = vadd.f32 %v1167_v59, %v1079_v58  ;;  %v1081_v0 = vpop.f32.mrf.mxu1  ;;  %v1264_v6 = vpop.f32.mrf.mxu3 }
 0x10b   : > { %v1082_v5 = vadd.f32 %v1081_v0, %v992_v63 }
 0x10c   : > { %v1257_v2 = vadd.f32 %v1256_v24, %v1168_v62  ;;  %1031 = vmatmul.bf16.gmra.mxu0 %v1861_v60  ;;  %v1877_v24 = vor.u32 %v2067_v15, %v1876_v12 }
 0x10d   : > { %1120 = vmatmul.bf16.gmra.mxu1 %v1865_v61 }
 0x10e   : > { %v2139_v3 = vpop.eup %2138  ;;  %v1423_v4 = vadd.f32 %v2414_v19, %v1257_v2  ;;  %1209 = vmatmul.bf16.gmra.mxu2 %v1869_v1 }
 0x10f   : > { %1486 = vst [vmem:[%s2430_s4 + $0x50] sm:$0xff] %v2139_v3 }
 0x110   : > { %2140 = vtanh.f32 %v1423_v4 }
 0x111   : > { %v1170_v7 = vpop.f32.mrf.mxu2  ;;  %v994_v9 = vpop.f32.mrf.mxu0 }
 0x112   : > { %v1171_v8 = vadd.f32 %v1170_v7, %v1082_v5  ;;  %v1083_v10 = vpop.f32.mrf.mxu1  ;;  %v1266_v18 = vpop.f32.mrf.mxu3 }
 0x113   : > { %v1084_v22 = vadd.f32 %v1083_v10, %v994_v9 }
 0x114   : > { %v1260_v11 = vadd.f32 %v1259_v40, %v1171_v8 }
 0x116   : > { %v2141_v13 = vpop.eup %2140  ;;  %v1424_v14 = vadd.f32 %v2414_v19, %v1260_v11 }
 0x117   : > { %1487 = vst [vmem:[%s2430_s4 + $0x58] sm:$0xff] %v2141_v13 }
 0x118   : > { %2142 = vtanh.f32 %v1424_v14 }
 0x119   : > { %v1172_v23 = vpop.f32.mrf.mxu2  ;;  %v997_v27 = vpop.f32.mrf.mxu0 }
 0x11a   : > { %v1173_v26 = vadd.f32 %v1172_v23, %v1084_v22  ;;  %v1086_v28 = vpop.f32.mrf.mxu1  ;;  %v1269_v34 = vpop.f32.mrf.mxu3 }
 0x11b   : > { %v1087_v33 = vadd.f32 %v1086_v28, %v997_v27 }
 0x11c   : > { %v1262_v30 = vadd.f32 %v1261_v54, %v1173_v26  ;;  %1036 = vmatmul.bf16.gmra.mxu0 %v1877_v24 }
 0x11d   : > { %1125 = vmatmul.bf16.gmra.mxu1 %v1881_v25 }
 0x11e   : > { %v2143_v31 = vpop.eup %2142  ;;  %v1425_v32 = vadd.f32 %v2414_v19, %v1262_v30  ;;  %1214 = vmatmul.bf16.gmra.mxu2 %v1885_v29 }
 0x11f   : > { %1488 = vst [vmem:[%s2430_s4 + $0x60] sm:$0xff] %v2143_v31 }
 0x120   : > { %2144 = vtanh.f32 %v1425_v32 }
 0x121   : > { %v1175_v35 = vpop.f32.mrf.mxu2  ;;  %v999_v37 = vpop.f32.mrf.mxu0 }
 0x122   : > { %v1176_v36 = vadd.f32 %v1175_v35, %v1087_v33  ;;  %v1088_v38 = vpop.f32.mrf.mxu1  ;;  %v1271_v42 = vpop.f32.mrf.mxu3 }
 0x123   : > { %v1089_v43 = vadd.f32 %v1088_v38, %v999_v37 }
 0x124   : > { %v1265_v39 = vadd.f32 %v1264_v6, %v1176_v36 }
 0x126   : > { %v2145_v40 = vpop.eup %2144  ;;  %v1426_v41 = vadd.f32 %v2414_v19, %v1265_v39 }
 0x127   : > { %1489 = vst [vmem:[%s2430_s4 + $0x68] sm:$0xff] %v2145_v40 }
 0x128   : > { %2146 = vtanh.f32 %v1426_v41 }
 0x129   : > { %v1177_v44 = vpop.f32.mrf.mxu2  ;;  %v1002_v46 = vpop.f32.mrf.mxu0 }
 0x12a   : > { %v1178_v45 = vadd.f32 %v1177_v44, %v1089_v43  ;;  %v1091_v47 = vpop.f32.mrf.mxu1  ;;  %v1274_v52 = vpop.f32.mrf.mxu3 }
 0x12b   : > { %v1092_v51 = vadd.f32 %v1091_v47, %v1002_v46 }
 0x12c   : > { %v1267_v48 = vadd.f32 %v1266_v18, %v1178_v45 }
 0x12e   : > { %v2147_v49 = vpop.eup %2146  ;;  %v1427_v50 = vadd.f32 %v2414_v19, %v1267_v48 }
 0x12f   : > { %1490 = vst [vmem:[%s2430_s4 + $0x70] sm:$0xff] %v2147_v49 }
 0x130   : > { %2148 = vtanh.f32 %v1427_v50 }
 0x131   : > { %v1180_v53 = vpop.f32.mrf.mxu2  ;;  %v1004_v55 = vpop.f32.mrf.mxu0 }
 0x132   : > { %v1181_v54 = vadd.f32 %v1180_v53, %v1092_v51  ;;  %v1093_v56 = vpop.f32.mrf.mxu1  ;;  %v1276_v60 = vpop.f32.mrf.mxu3 }
 0x133   : > { %v1094_v61 = vadd.f32 %v1093_v56, %v1004_v55 }
 0x134   : > { %v1270_v57 = vadd.f32 %v1269_v34, %v1181_v54 }
 0x136   : > { %v2149_v58 = vpop.eup %2148  ;;  %v1428_v59 = vadd.f32 %v2414_v19, %v1270_v57 }
 0x137   : > { %1491 = vst [vmem:[%s2430_s4 + $0x78] sm:$0xff] %v2149_v58 }
 0x138   : > { %2150 = vtanh.f32 %v1428_v59 }
 0x139   : > { %v1182_v62 = vpop.f32.mrf.mxu2  ;;  %v1007_v0 = vpop.f32.mrf.mxu0 }
 0x13a   : > { %v1183_v63 = vadd.f32 %v1182_v62, %v1094_v61  ;;  %v1096_v1 = vpop.f32.mrf.mxu1  ;;  %v1279_v6 = vpop.f32.mrf.mxu3 }
 0x13b   : > { %v1097_v5 = vadd.f32 %v1096_v1, %v1007_v0 }
 0x13c   : > { %v1272_v2 = vadd.f32 %v1271_v42, %v1183_v63 }
 0x13e   : > { %v2151_v3 = vpop.eup %2150  ;;  %v1429_v4 = vadd.f32 %v2414_v19, %v1272_v2 }
 0x13f   : > { %1492 = vst [vmem:[%s2430_s4 + $0x80] sm:$0xff] %v2151_v3 }
 0x140   : > { %2152 = vtanh.f32 %v1429_v4 }
 0x141   : > { %v1185_v7 = vpop.f32.mrf.mxu2  ;;  %v1009_v9 = vpop.f32.mrf.mxu0 }
 0x142   : > { %v1186_v8 = vadd.f32 %v1185_v7, %v1097_v5  ;;  %v1098_v10 = vpop.f32.mrf.mxu1  ;;  %v1281_v14 = vpop.f32.mrf.mxu3 }
 0x143   : > { %v1099_v15 = vadd.f32 %v1098_v10, %v1009_v9 }
 0x144   : > { %v1275_v11 = vadd.f32 %v1274_v52, %v1186_v8 }
 0x146   : > { %v2153_v12 = vpop.eup %2152  ;;  %v1430_v13 = vadd.f32 %v2414_v19, %v1275_v11 }
 0x147   : > { %1493 = vst [vmem:[%s2430_s4 + $0x88] sm:$0xff] %v2153_v12 }
 0x148   : > { %2154 = vtanh.f32 %v1430_v13 }
 0x149   : > { %v1187_v16 = vpop.f32.mrf.mxu2  ;;  %v1012_v18 = vpop.f32.mrf.mxu0 }
 0x14a   : > { %v1188_v17 = vadd.f32 %v1187_v16, %v1099_v15  ;;  %v1101_v20 = vpop.f32.mrf.mxu1  ;;  %v1284_v26 = vpop.f32.mrf.mxu3 }
 0x14b   : > { %v1102_v24 = vadd.f32 %v1101_v20, %v1012_v18 }
 0x14c   : > { %v1277_v21 = vadd.f32 %v1276_v60, %v1188_v17 }
 0x14e   : > { %v2155_v22 = vpop.eup %2154  ;;  %v1431_v23 = vadd.f32 %v2414_v19, %v1277_v21 }
 0x14f   : > { %1494 = vst [vmem:[%s2430_s4 + $0x90] sm:$0xff] %v2155_v22 }
 0x150   : > { %2156 = vtanh.f32 %v1431_v23 }
 0x151   : > { %v1190_v25 = vpop.f32.mrf.mxu2  ;;  %v1014_v28 = vpop.f32.mrf.mxu0 }
 0x152   : > { %v1191_v27 = vadd.f32 %v1190_v25, %v1102_v24  ;;  %v1103_v29 = vpop.f32.mrf.mxu1  ;;  %v1286_v38 = vpop.f32.mrf.mxu3 }
 0x153   : > { %v1104_v33 = vadd.f32 %v1103_v29, %v1014_v28 }
 0x154   : > { %v1280_v30 = vadd.f32 %v1279_v6, %v1191_v27 }
 0x156   : > { %v2157_v31 = vpop.eup %2156  ;;  %v1432_v32 = vadd.f32 %v2414_v19, %v1280_v30 }
 0x157   : > { %1495 = vst [vmem:[%s2430_s4 + $0x98] sm:$0xff] %v2157_v31 }
 0x158   : > { %2158 = vtanh.f32 %v1432_v32 }
 0x159   : > { %v1192_v34 = vpop.f32.mrf.mxu2  ;;  %v1017_v36 = vpop.f32.mrf.mxu0 }
 0x15a   : > { %v1193_v35 = vadd.f32 %v1192_v34, %v1104_v33  ;;  %v1106_v37 = vpop.f32.mrf.mxu1  ;;  %v1289_v48 = vpop.f32.mrf.mxu3 }
 0x15b   : > { %v1107_v42 = vadd.f32 %v1106_v37, %v1017_v36 }
 0x15c   : > { %v1282_v39 = vadd.f32 %v1281_v14, %v1193_v35 }
 0x15e   : > { %v2159_v40 = vpop.eup %2158  ;;  %v1433_v41 = vadd.f32 %v2414_v19, %v1282_v39 }
 0x15f   : > { %1496 = vst [vmem:[%s2430_s4 + $0xa0] sm:$0xff] %v2159_v40 }
 0x160   : > { %2160 = vtanh.f32 %v1433_v41 }
 0x161   : > { %v1195_v43 = vpop.f32.mrf.mxu2  ;;  %v1019_v45 = vpop.f32.mrf.mxu0 }
 0x162   : > { %v1196_v44 = vadd.f32 %v1195_v43, %v1107_v42  ;;  %v1108_v46 = vpop.f32.mrf.mxu1  ;;  %v1291_v60 = vpop.f32.mrf.mxu3 }
 0x163   : > { %v1109_v51 = vadd.f32 %v1108_v46, %v1019_v45 }
 0x164   : > { %v1285_v47 = vadd.f32 %v1284_v26, %v1196_v44 }
 0x166   : > { %v2161_v49 = vpop.eup %2160  ;;  %v1434_v50 = vadd.f32 %v2414_v19, %v1285_v47 }
 0x167   : > { %1497 = vst [vmem:[%s2430_s4 + $0xa8] sm:$0xff] %v2161_v49 }
 0x168   : > { %2162 = vtanh.f32 %v1434_v50 }
 0x169   : > { %v1197_v52 = vpop.f32.mrf.mxu2  ;;  %v1022_v54 = vpop.f32.mrf.mxu0 }
 0x16a   : > { %v1198_v53 = vadd.f32 %v1197_v52, %v1109_v51  ;;  %v1111_v55 = vpop.f32.mrf.mxu1  ;;  %v1294_v6 = vpop.f32.mrf.mxu3 }
 0x16b   : > { %v1112_v59 = vadd.f32 %v1111_v55, %v1022_v54 }
 0x16c   : > { %v1287_v56 = vadd.f32 %v1286_v38, %v1198_v53 }
 0x16e   : > { %v2163_v57 = vpop.eup %2162  ;;  %v1435_v58 = vadd.f32 %v2414_v19, %v1287_v56 }
 0x16f   : > { %1498 = vst [vmem:[%s2430_s4 + $0xb0] sm:$0xff] %v2163_v57 }
 0x170   : > { %2164 = vtanh.f32 %v1435_v58 }
 0x171   : > { %v1200_v61 = vpop.f32.mrf.mxu2  ;;  %v1024_v63 = vpop.f32.mrf.mxu0 }
 0x172   : > { %v1201_v62 = vadd.f32 %v1200_v61, %v1112_v59  ;;  %v1113_v0 = vpop.f32.mrf.mxu1  ;;  %v1296_v18 = vpop.f32.mrf.mxu3 }
 0x173   : > { %v1114_v4 = vadd.f32 %v1113_v0, %v1024_v63 }
 0x174   : > { %v1290_v1 = vadd.f32 %v1289_v48, %v1201_v62 }
 0x176   : > { %v2165_v2 = vpop.eup %2164  ;;  %v1436_v3 = vadd.f32 %v2414_v19, %v1290_v1 }
 0x177   : > { %1499 = vst [vmem:[%s2430_s4 + $0xb8] sm:$0xff] %v2165_v2 }
 0x178   : > { %2166 = vtanh.f32 %v1436_v3 }
 0x179   : > { %v1202_v5 = vpop.f32.mrf.mxu2  ;;  %v1027_v8 = vpop.f32.mrf.mxu0 }
 0x17a   : > { %v1203_v7 = vadd.f32 %v1202_v5, %v1114_v4  ;;  %v1116_v9 = vpop.f32.mrf.mxu1  ;;  %v1299_v29 = vpop.f32.mrf.mxu3 }
 0x17b   : > { %v1117_v13 = vadd.f32 %v1116_v9, %v1027_v8 }
 0x17c   : > { %v1292_v10 = vadd.f32 %v1291_v60, %v1203_v7 }
 0x17e   : > { %v2167_v11 = vpop.eup %2166  ;;  %v1437_v12 = vadd.f32 %v2414_v19, %v1292_v10 }
 0x17f   : > { %1500 = vst [vmem:[%s2430_s4 + $0xc0] sm:$0xff] %v2167_v11 }
 0x180   : > { %2168 = vtanh.f32 %v1437_v12 }
 0x181   : > { %v1205_v14 = vpop.f32.mrf.mxu2  ;;  %v1029_v16 = vpop.f32.mrf.mxu0 }
 0x182   : > { %v1206_v15 = vadd.f32 %v1205_v14, %v1117_v13  ;;  %v1118_v17 = vpop.f32.mrf.mxu1  ;;  %v1301_v40 = vpop.f32.mrf.mxu3 }
 0x183   : > { %v1119_v23 = vadd.f32 %v1118_v17, %v1029_v16 }
 0x184   : > { %v1295_v20 = vadd.f32 %v1294_v6, %v1206_v15 }
 0x186   : > { %v2169_v21 = vpop.eup %2168  ;;  %v1438_v22 = vadd.f32 %v2414_v19, %v1295_v20 }
 0x187   : > { %1501 = vst [vmem:[%s2430_s4 + $0xc8] sm:$0xff] %v2169_v21 }
 0x188   : > { %2170 = vtanh.f32 %v1438_v22 }
 0x189   : > { %v1207_v24 = vpop.f32.mrf.mxu2  ;;  %v1032_v26 = vpop.f32.mrf.mxu0 }
 0x18a   : > { %v1208_v25 = vadd.f32 %v1207_v24, %v1119_v23  ;;  %v1121_v27 = vpop.f32.mrf.mxu1  ;;  %v1304_v50 = vpop.f32.mrf.mxu3 }
 0x18b   : > { %v1122_v32 = vadd.f32 %v1121_v27, %v1032_v26 }
 0x18c   : > { %v1297_v28 = vadd.f32 %v1296_v18, %v1208_v25 }
 0x18e   : > { %v2171_v30 = vpop.eup %2170  ;;  %v1439_v31 = vadd.f32 %v2414_v19, %v1297_v28 }
 0x18f   : > { %1502 = vst [vmem:[%s2430_s4 + $0xd0] sm:$0xff] %v2171_v30 }
 0x190   : > { %2172 = vtanh.f32 %v1439_v31 }
 0x191   : > { %v1210_v33 = vpop.f32.mrf.mxu2  ;;  %v1034_v35 = vpop.f32.mrf.mxu0 }
 0x192   : > { %v1211_v34 = vadd.f32 %v1210_v33, %v1122_v32  ;;  %v1123_v36 = vpop.f32.mrf.mxu1  ;;  %v1306_v61 = vpop.f32.mrf.mxu3 }
 0x193   : > { %v1124_v41 = vadd.f32 %v1123_v36, %v1034_v35 }
 0x194   : > { %v1300_v37 = vadd.f32 %v1299_v29, %v1211_v34 }
 0x196   : > { %v2173_v38 = vpop.eup %2172  ;;  %v1440_v39 = vadd.f32 %v2414_v19, %v1300_v37 }
 0x197   : > { %1503 = vst [vmem:[%s2430_s4 + $0xd8] sm:$0xff] %v2173_v38 }
 0x198   : > { %2174 = vtanh.f32 %v1440_v39 }
 0x199   : > { %v1212_v42 = vpop.f32.mrf.mxu2  ;;  %v1037_v44 = vpop.f32.mrf.mxu0 }
 0x19a   : > { %v1213_v43 = vadd.f32 %v1212_v42, %v1124_v41  ;;  %v1126_v45 = vpop.f32.mrf.mxu1 }
 0x19b   : > { %v1127_v49 = vadd.f32 %v1126_v45, %v1037_v44 }
 0x19c   : > { %v1302_v46 = vadd.f32 %v1301_v40, %v1213_v43 }
 0x19e   : > { %v2175_v47 = vpop.eup %2174  ;;  %v1441_v48 = vadd.f32 %v2414_v19, %v1302_v46 }
 0x19f   : > { %1504 = vst [vmem:[%s2430_s4 + $0xe0] sm:$0xff] %v2175_v47 }
 0x1a0   : > { %2176 = vtanh.f32 %v1441_v48 }
 0x1a1   : > { %v1215_v51 = vpop.f32.mrf.mxu2  ;;  %v1039_v54 = vpop.f32.mrf.mxu0 }
 0x1a2   : > { %v1216_v52 = vadd.f32 %v1215_v51, %v1127_v49  ;;  %v1128_v55 = vpop.f32.mrf.mxu1 }
 0x1a3   : > { %v1129_v58 = vadd.f32 %v1128_v55, %v1039_v54 }
 0x1a4   : > { %v1305_v53 = vadd.f32 %v1304_v50, %v1216_v52 }
 0x1a6   : > { %v2177_v56 = vpop.eup %2176  ;;  %v1442_v57 = vadd.f32 %v2414_v19, %v1305_v53 }
 0x1a7   : > { %1505 = vst [vmem:[%s2430_s4 + $0xe8] sm:$0xff] %v2177_v56 }
 0x1a8   : > { %2178 = vtanh.f32 %v1442_v57 }
 0x1a9   : > { %v1217_v59 = vpop.f32.mrf.mxu2 }
 0x1aa   : > { %v1218_v60 = vadd.f32 %v1217_v59, %v1129_v58 }
 0x1ac   : > { %v1307_v62 = vadd.f32 %v1306_v61, %v1218_v60 }
 0x1ae   : > { %v2179_v63 = vpop.eup %2178  ;;  %v1443_v0 = vadd.f32 %v2414_v19, %v1307_v62 }
 0x1af   : > { %1506 = vst [vmem:[%s2430_s4 + $0xf0] sm:$0xff] %v2179_v63 }
 0x1b0   : > { %2180 = vtanh.f32 %v1443_v0 }
 0x1b6   : > { %v2181_v1 = vpop.eup %2180 }
 0x1b7   : > { %1507 = vst [vmem:[%s2430_s4 + $0xf8] sm:$0xff] %v2181_v1 }
 0x1b8 PF: > { %s13_s14 = sadd.s32 1, %s2204_s14   ;;  %s2559_s12 = smov %s2200_s13 }
 0x1b9   : > { %p10_p5 = scmp.ge.s32.totalorder %s13_s14, 4   ;;  %s2560_s13 = smov %s2562_s15 }
 0x1bb   :  { %12 = sbr.rel (!%p10_p5) target bundleno = 2 (0x2), region = 76 }

</bundles_post_ra>
